<compile_context>
chip_gen: v7x
topology: tpu7x:2x2x1
jax: 0.10.0
libtpu: 0.0.40
codegen_flags: <defaults>
</compile_context>

<pallas_src>
import numpy as np
import jax
import jax.numpy as jnp
from jax.experimental import pallas as pl
from jax.experimental.pallas import tpu as pltpu


# ----------------------------------------------------------------------------
# helpers
# ----------------------------------------------------------------------------
def _vmem_bytes(shape, dtype):
    """Rough VMEM footprint of one block: minor dim padded to 128 lanes, second-minor
    padded to the dtype's sublane multiple (8 for f32, 16 for bf16)."""
    dt = jnp.dtype(dtype)
    if len(shape) == 0:
        return dt.itemsize
    minor = -(-int(shape[-1]) // 128) * 128
    if len(shape) == 1:
        return minor * dt.itemsize
    sub = 8 * (4 // dt.itemsize)
    second = -(-int(shape[-2]) // sub) * sub
    lead = 1
    for d in shape[:-2]:
        lead *= int(d)
    return lead * second * minor * dt.itemsize


def _vmem_budget_bytes():
    """Physical VMEM of the local chip minus ~8 MiB headroom; falls back to the smallest
    budget across v5e/v6e/v7x (64 MiB) if the query is unavailable."""
    try:
        cap = int(pltpu.get_tpu_info().vmem_capacity_bytes)
    except Exception:
        cap = 64 * 1024 * 1024
    return cap - 8 * 1024 * 1024


# ----------------------------------------------------------------------------
# Kernel 1: ConvTranspose2d(kernel=2, stride=2) as one matmul + bias per tile.
#   y[(a*2+b)*Cup + o, i*W + j] = sum_c Wd[c, o, a, b] * x[c, i, j]    (+ bias[o])
# ----------------------------------------------------------------------------
def _deconv_kernel(x_ref, w_ref, b_ref, o_ref):
    y = jnp.dot(w_ref[...], x_ref[0], preferred_element_type=jnp.float32)
    o_ref[0] = (y + b_ref[...]).astype(o_ref.dtype)


def _pick_tile(s, bytes_per_col, target_bytes=4 * 1024 * 1024):
    """Largest tile of the flattened spatial axis such that one (input + output) column
    block stays near `target_bytes` (keeps the HBM-bound deconv at roofline while leaving
    room for double buffering)."""
    cap = max(128, target_bytes // max(1, bytes_per_col))
    if s <= cap:
        return s
    for t in range((cap // 128) * 128, 0, -128):   # prefer multiples of 128 lanes
        if s % t == 0:
            return t
    for t in range(cap, 0, -1):                     # fallback: any divisor
        if s % t == 0:
            return t
    return s


def deconv2x2_stride2(x_nchw, w_t, bias):
    """x_nchw: (N, Cin, H, W); w_t: torch ConvTranspose2d weight (Cin, Cup, 2, 2).
    Returns the upsampled feature map in NHWC, bf16: (N, 2H, 2W, Cup)."""
    N, Cin, H, W = x_nchw.shape
    Cup = w_t.shape[1]
    S = H * W
    TS = _pick_tile(S, 2 * (Cin + 4 * Cup))

    x_flat = x_nchw.reshape(N, Cin, S).astype(jnp.bfloat16)   # single cast at the boundary
    # rows ordered (a, b, o)
    w_mat = jnp.transpose(w_t, (2, 3, 1, 0)).reshape(4 * Cup, Cin).astype(jnp.bfloat16)
    b_col = jnp.tile(bias, 4).reshape(4 * Cup, 1).astype(jnp.float32)

    y = pl.pallas_call(
        _deconv_kernel,
        out_shape=jax.ShapeDtypeStruct((N, 4 * Cup, S), jnp.bfloat16),
        grid=(N, S // TS),
        in_specs=[
            pl.BlockSpec((1, Cin, TS), lambda n, t: (n, 0, t)),
            pl.BlockSpec((4 * Cup, Cin), lambda n, t: (0, 0)),
            pl.BlockSpec((4 * Cup, 1), lambda n, t: (0, 0)),
        ],
        out_specs=pl.BlockSpec((1, 4 * Cup, TS), lambda n, t: (n, 0, t)),
        compiler_params=pltpu.CompilerParams(
            dimension_semantics=("parallel", "parallel")),
    )(x_flat, w_mat, b_col)

    # 2x2 sub-pixel interleave (one XLA copy of the smallest tensor in the op) -> NHWC
    # TODO(synk): fold this de-interleave into the TwoConv VMEM slab build.
    x0 = y.reshape(N, 2, 2, Cup, H, W).transpose(0, 4, 1, 5, 2, 3)
    return x0.reshape(N, 2 * H, 2 * W, Cup)


# ----------------------------------------------------------------------------
# Kernel 2: fused TwoConv per batch:
#   conv_0(3x3,pad=1,bias) + InstanceNorm + LeakyReLU + conv_1(3x3,pad=1,bias)
#   + InstanceNorm + LeakyReLU, with the channel concat fused via the conv_0 weights.
# Planes are zero-padded and spatially flattened: row r = i*(Wh+2) + j, channel minor.
# Tap (dy, dx) of a 3x3 conv is the sublane slice plane[s : s+R] with s = dy*(Wh+2)+dx.
# The 9 taps of all input planes are packed into a single (R, 9*Cin) bf16 patch slab in
# VMEM, so each conv is ONE MXU matmul with K = 9*Cin.  Rows with j >= Wh are junk and
# are excluded from the InstanceNorm stats via an iota-derived mask.
# ----------------------------------------------------------------------------
def _make_twoconv_kernel(chans, hh, wh, cout):
    n_planes = len(chans)
    wp = wh + 2
    r = hh * wp
    cin0 = sum(chans)
    k0 = 9 * cin0
    k1 = 9 * cout
    inv_cnt = 1.0 / float(hh * wh)
    col_off = [sum(chans[:i]) for i in range(n_planes)]

    def kernel(*refs):
        planes = refs[:n_planes]
        (w0_ref, b0_ref, g0_ref, bt0_ref,
         w1_ref, b1_ref, g1_ref, bt1_ref,
         o_ref, patch_ref, p1_ref) = refs[n_planes:]

        # validity mask computed in-register (2 VPU ops) instead of a lane-padded input
        row_id = jax.lax.broadcasted_iota(jnp.int32, (r, 1), 0)
        mask = (row_id % wp < wh).astype(jnp.float32)      # 1 = real pixel, 0 = pad column

        def instnorm_lrelu(acc, g_ref, bt_ref):
            # masked, biased InstanceNorm (eps=1e-5) + affine + LeakyReLU(0.1), fp32
            m = jnp.sum(acc * mask, axis=0, keepdims=True) * inv_cnt
            d = (acc - m) * mask
            v = jnp.sum(d * d, axis=0, keepdims=True) * inv_cnt
            y = (acc - m) * jax.lax.rsqrt(v + 1e-5) * g_ref[...] + bt_ref[...]
            return jnp.where(y > 0, y, 0.1 * y)

        # ---- conv_0: im2col into the VMEM patch slab (taps + skip-concat fused) -> 1 dot ----
        for k in range(9):
            s = (k // 3) * wp + (k % 3)
            for p_ref, off, c in zip(planes, col_off, chans):
                patch_ref[:, k * cin0 + off:k * cin0 + off + c] = p_ref[0, s:s + r, :]
        acc0 = jnp.dot(patch_ref[:, :k0], w0_ref[...], preferred_element_type=jnp.float32)
        y0 = instnorm_lrelu(acc0 + b0_ref[...], g0_ref, bt0_ref)

        # ---- conv_1 input plane: zero-padded conv_0 activation, built in VMEM ----
        # Only the halo rows are re-zeroed; the interior (incl. its pad columns, zeroed via
        # `mask`) is fully overwritten every step.  Cannot zero "once" because the batch
        # grid axis is 'parallel' and each core owns an un-initialized copy of the scratch.
        rp2 = p1_ref.shape[0]
        p1_ref[0:wp + 1, :] = jnp.zeros((wp + 1, cout), p1_ref.dtype)
        p1_ref[wp + 1 + r:rp2, :] = jnp.zeros((rp2 - wp - 1 - r, cout), p1_ref.dtype)
        p1_ref[wp + 1:wp + 1 + r, :] = (y0 * mask).astype(p1_ref.dtype)

        # ---- conv_1: same single-matmul structure (K = 9*Cout) ----
        for k in range(9):
            s = (k // 3) * wp + (k % 3)
            patch_ref[:, k * cout:(k + 1) * cout] = p1_ref[s:s + r, :]
        acc1 = jnp.dot(patch_ref[:, :k1], w1_ref[...], preferred_element_type=jnp.float32)
        o_ref[0] = instnorm_lrelu(acc1 + b1_ref[...], g1_ref, bt1_ref).astype(o_ref.dtype)

    return kernel


def _prep_plane(p_nhwc, hh, wh):
    """Zero-pad a (N, Hh, Wh, C) plane for a 3x3/pad=1 conv and flatten the padded spatial
    dims onto the sublane axis with ONE pad op -> (N, (Hh+3)*(Wh+2), C) bf16.  Height is
    padded by (1, 2) so the flattened slab also covers the last tap slice (2 extra rows)."""
    wp = wh + 2
    p = jnp.pad(p_nhwc, ((0, 0), (1, 2), (1, 1), (0, 0)))
    return p.reshape(p.shape[0], (hh + 3) * wp, p.shape[3])


# ----------------------------------------------------------------------------
# UpCat.forward  (NCHW in / NCHW out, matching the PyTorch module)
# ----------------------------------------------------------------------------
def upcat_forward(params, x_nchw, xe_nchw=None):
    N = x_nchw.shape[0]

    # --- upsample (deconv), bf16 NHWC ---
    x0 = deconv2x2_stride2(x_nchw, params["up_w"], params["up_b"])

    # --- optional replicate-pad; the channel concat itself is fused into conv_0 below ---
    if xe_nchw is not None:
        xe = jnp.transpose(xe_nchw, (0, 2, 3, 1)).astype(jnp.bfloat16)   # NCHW -> NHWC
        ph = xe.shape[1] - x0.shape[1]
        pw = xe.shape[2] - x0.shape[2]
        if ph > 0 or pw > 0:   # torch F.pad(x_0, sp, 'replicate'): bottom/right by 1
            x0 = jnp.pad(x0, ((0, 0), (0, ph), (0, pw), (0, 0)), mode="edge")
        planes_nhwc = [xe, x0]
    else:
        planes_nhwc = [x0]

    hh, wh = planes_nhwc[0].shape[1], planes_nhwc[0].shape[2]
    wp = wh + 2
    r = hh * wp
    rp2 = (hh + 2) * wp + 2
    rp3 = (hh + 3) * wp
    chans = [p.shape[3] for p in planes_nhwc]
    cin0 = sum(chans)
    cout = params["c0_w"].shape[0]
    kmax = 9 * max(cin0, cout)

    planes = [_prep_plane(p, hh, wh) for p in planes_nhwc]

    # conv weights, tap-major, already concatenated over [x_e, x_0]: (9*Cin0, Cout)
    w0 = jnp.transpose(params["c0_w"], (2, 3, 1, 0)).reshape(9 * cin0, cout).astype(jnp.bfloat16)
    w1 = jnp.transpose(params["c1_w"], (2, 3, 1, 0)).reshape(9 * cout, cout).astype(jnp.bfloat16)
    row = lambda v: v.reshape(1, -1).astype(jnp.float32)

    kernel = _make_twoconv_kernel(chans, hh, wh, cout)

    in_specs = [pl.BlockSpec((1, rp3, c), lambda n: (n, 0, 0)) for c in chans]
    in_specs.append(pl.BlockSpec((9 * cin0, cout), lambda n: (0, 0)))   # w0 (concat fused)
    in_specs += [pl.BlockSpec((1, cout), lambda n: (0, 0))] * 3         # b0, g0, bt0
    in_specs.append(pl.BlockSpec((9 * cout, cout), lambda n: (0, 0)))   # w1
    in_specs += [pl.BlockSpec((1, cout), lambda n: (0, 0))] * 3         # b1, g1, bt1

    # per-step VMEM estimate (incl. lane/sublane padding), clamped to the chip's budget
    blocks = ([((1, rp3, c), jnp.bfloat16) for c in chans]
              + [((9 * cin0, cout), jnp.bfloat16), ((9 * cout, cout), jnp.bfloat16)]
              + [((1, cout), jnp.float32)] * 6
              + [((1, r, cout), jnp.bfloat16)])
    step_bytes = 2 * sum(_vmem_bytes(s, d) for s, d in blocks)          # double-buffered pipeline
    step_bytes += _vmem_bytes((r, kmax), jnp.bfloat16)                  # patch scratch
    step_bytes += _vmem_bytes((rp2, cout), jnp.bfloat16)                # p1 scratch
    step_bytes += 8 * _vmem_bytes((r, cout), jnp.float32)               # live fp32 intermediates

    cp = {"dimension_semantics": ("parallel",)}
    budget = _vmem_budget_bytes()
    if step_bytes > 24 * 1024 * 1024:
        cp["vmem_limit_bytes"] = int(min(step_bytes * 3 // 2, budget))
    # TODO(synk): when step_bytes exceeds `budget`, tile the spatial axis
    # (grid=(N, Hh//TH), second axis 'parallel') and switch InstanceNorm to a two-pass
    # sum/sumsq reduction so the footprint is plane-size independent (needed on v7x).

    out = pl.pallas_call(
        kernel,
        out_shape=jax.ShapeDtypeStruct((N, r, cout), jnp.bfloat16),
        grid=(N,),
        in_specs=in_specs,
        out_specs=pl.BlockSpec((1, r, cout), lambda n: (n, 0, 0)),
        scratch_shapes=[
            pltpu.VMEM((r, kmax), jnp.bfloat16),     # im2col patch slab (reused by both convs)
            pltpu.VMEM((rp2, cout), jnp.bfloat16),   # conv_1's zero-padded input plane
        ],
        compiler_params=pltpu.CompilerParams(**cp),
    )(*planes, w0, row(params["c0_b"]), row(params["c0_g"]), row(params["c0_bt"]),
      w1, row(params["c1_b"]), row(params["c1_g"]), row(params["c1_bt"]))

    # TODO(synk): lane-dense (Hh, Wh*Cout) output layout would avoid the masked narrow
    # stores and this wrapper-side reshape/slice when Cout < 128.
    out = out.reshape(N, hh, wp, cout)[:, :, :wh, :]                    # drop the pad columns
    return jnp.transpose(out, (0, 3, 1, 2)).astype(jnp.float32)         # NHWC -> NCHW, fp32


# ----------------------------------------------------------------------------
# Pure-JAX fp32 reference (no Pallas) for validation.
# ----------------------------------------------------------------------------
def reference_forward(params, x_nchw, xe_nchw=None):
    x = jnp.transpose(x_nchw, (0, 2, 3, 1)).astype(jnp.float32)
    N, H, W, Cin = x.shape
    Wup = params["up_w"]
    Cup = Wup.shape[1]
    up = jnp.einsum("nijc,coab->niajbo", x, Wup, precision=jax.lax.Precision.HIGHEST)
    x0 = up.reshape(N, 2 * H, 2 * W, Cup) + params["up_b"]

    if xe_nchw is not None:
        xe = jnp.transpose(xe_nchw, (0, 2, 3, 1)).astype(jnp.float32)
        pad_h = xe.shape[1] - x0.shape[1]
        pad_w = xe.shape[2] - x0.shape[2]
        if pad_h > 0 or pad_w > 0:
            x0 = jnp.pad(x0, ((0, 0), (0, pad_h), (0, pad_w), (0, 0)), mode="edge")
        h = jnp.concatenate([xe, x0], axis=-1)
    else:
        h = x0

    def block(h, w_t, b, g, bt):
        w_hwio = jnp.transpose(w_t, (2, 3, 1, 0))
        y = jax.lax.conv_general_dilated(
            h, w_hwio, (1, 1), "SAME",
            dimension_numbers=("NHWC", "HWIO", "NHWC"),
            precision=jax.lax.Precision.HIGHEST,
        ) + b
        m = jnp.mean(y, axis=(1, 2), keepdims=True)
        v = jnp.mean(jnp.square(y - m), axis=(1, 2), keepdims=True)
        y = (y - m) * jax.lax.rsqrt(v + 1e-5) * g + bt
        return jnp.where(y > 0, y, 0.1 * y)

    h = block(h, params["c0_w"], params["c0_b"], params["c0_g"], params["c0_bt"])
    h = block(h, params["c1_w"], params["c1_b"], params["c1_g"], params["c1_bt"])
    return jnp.transpose(h, (0, 3, 1, 2))


if __name__ == "__main__":
    # UpCat(dim=2, in_chns=8, cat_chns=4, out_chns=4, ..., upsample='deconv', halves=True)
    N, in_chns, cat_chns, out_chns = 2, 8, 4, 4
    H = W = 8                      # x spatial; encoder feature map x_e is ~2x larger
    up_chns = in_chns // 2         # halves=True
    cin0 = cat_chns + up_chns      # TwoConv input channels

    key = jax.random.PRNGKey(0)
    ks = jax.random.split(key, 13)
    params = {
        # ConvTranspose2d(in_chns, up_chns, 2, 2): torch weight layout (Cin, Cup, 2, 2)
        "up_w": 0.2 * jax.random.normal(ks[0], (in_chns, up_chns, 2, 2), jnp.float32),
        "up_b": 0.1 * jax.random.normal(ks[1], (up_chns,), jnp.float32),
        # conv_0: Conv2d(cin0, out_chns, 3, pad=1) + InstanceNorm(affine) + LeakyReLU(0.1)
        "c0_w": 0.2 * jax.random.normal(ks[2], (out_chns, cin0, 3, 3), jnp.float32),
        "c0_b": 0.1 * jax.random.normal(ks[3], (out_chns,), jnp.float32),
        "c0_g": 1.0 + 0.1 * jax.random.normal(ks[4], (out_chns,), jnp.float32),
        "c0_bt": 0.1 * jax.random.normal(ks[5], (out_chns,), jnp.float32),
        # conv_1: Conv2d(out_chns, out_chns, 3, pad=1) + InstanceNorm(affine) + LeakyReLU(0.1)
        "c1_w": 0.2 * jax.random.normal(ks[6], (out_chns, out_chns, 3, 3), jnp.float32),
        "c1_b": 0.1 * jax.random.normal(ks[7], (out_chns,), jnp.float32),
        "c1_g": 1.0 + 0.1 * jax.random.normal(ks[8], (out_chns,), jnp.float32),
        "c1_bt": 0.1 * jax.random.normal(ks[9], (out_chns,), jnp.float32),
    }

    x = jax.random.normal(ks[10], (N, in_chns, H, W), jnp.float32)                      # NCHW
    x_e = jax.random.normal(ks[11], (N, cat_chns, 2 * H, 2 * W), jnp.float32)           # NCHW
    x_e_odd = jax.random.normal(ks[12], (N, cat_chns, 2 * H + 1, 2 * W + 1), jnp.float32)

    fwd = jax.jit(upcat_forward)

    # main case (spatial sizes match)
    out = jax.block_until_ready(fwd(params, x, x_e))
    ref = jax.block_until_ready(reference_forward(params, x, x_e))
    assert out.shape == (N, out_chns, 2 * H, 2 * W), out.shape
    # bf16 MXU operands + bf16 kernel output vs fp32 HIGHEST reference -> loosened tolerance
    np.testing.assert_allclose(np.asarray(out), np.asarray(ref), rtol=3e-2, atol=4e-2)

    # odd-sized encoder map: exercises the replicate-pad path
    out2 = jax.block_until_ready(fwd(params, x, x_e_odd))
    ref2 = jax.block_until_ready(reference_forward(params, x, x_e_odd))
    assert out2.shape == (N, out_chns, 2 * H + 1, 2 * W + 1), out2.shape
    np.testing.assert_allclose(np.asarray(out2), np.asarray(ref2), rtol=3e-2, atol=4e-2)

    print("KERNEL_OK")
</pallas_src>

<mosaic_0001>
module attributes {stable_mosaic.version = 11 : i64} {
  func.func @_deconv_kernel(%arg0: i32, %arg1: i32, %arg2: memref<1x8x64xbf16, #tpu.memory_space<vmem>>, %arg3: memref<16x8xbf16, #tpu.memory_space<vmem>>, %arg4: memref<16x1xf32, #tpu.memory_space<vmem>>, %arg5: memref<1x16x64xbf16, #tpu.memory_space<vmem>>) attributes {dimension_semantics = [#tpu.dimension_semantics<parallel>, #tpu.dimension_semantics<parallel>], iteration_bounds = array<i64: 2, 1>, scalar_prefetch = 0 : i64, scratch_operands = 0 : i64, tpu.core_type = #tpu.core_type<tc>, window_params = [{transform_indices = @transform_0, window_bounds = array<i64: 1, 8, 64>}, {pipeline_mode = #tpu.pipeline_mode<synchronous>, transform_indices = @transform_1, window_bounds = array<i64: 16, 8>}, {pipeline_mode = #tpu.pipeline_mode<synchronous>, transform_indices = @transform_2, window_bounds = array<i64: 16, 1>}, {transform_indices = @transform_3, window_bounds = array<i64: 1, 16, 64>}]} {
    %c0 = arith.constant 0 : index
    %c0_0 = arith.constant 0 : index
    %0 = vector.load %arg3[%c0, %c0_0] : memref<16x8xbf16, #tpu.memory_space<vmem>>, vector<16x8xbf16>
    %c0_1 = arith.constant 0 : index
    %c0_2 = arith.constant 0 : index
    %c0_3 = arith.constant 0 : index
    %1 = vector.load %arg2[%c0_1, %c0_2, %c0_3] : memref<1x8x64xbf16, #tpu.memory_space<vmem>>, vector<1x8x64xbf16>
    %2 = vector.shape_cast %1 : vector<1x8x64xbf16> to vector<8x64xbf16>
    %cst = arith.constant dense<0.000000e+00> : vector<16x64xf32>
    %3 = tpu.matmul %0, %2, %cst {dimension_numbers = #tpu.dot_dimension_numbers<[1], [0], [0], [1], [0, 0, 1, 1], [], []>} : vector<16x8xbf16>, vector<8x64xbf16>, vector<16x64xf32> -> vector<16x64xf32>
    %c0_4 = arith.constant 0 : index
    %c0_5 = arith.constant 0 : index
    %4 = vector.load %arg4[%c0_4, %c0_5] : memref<16x1xf32, #tpu.memory_space<vmem>>, vector<16x1xf32>
    %5 = vector.broadcast %4 : vector<16x1xf32> to vector<16x64xf32>
    %6 = arith.addf %3, %5 : vector<16x64xf32>
    %7 = arith.truncf %6 : vector<16x64xf32> to vector<16x64xbf16>
    %c0_6 = arith.constant 0 : index
    %c0_7 = arith.constant 0 : index
    %c0_8 = arith.constant 0 : index
    %8 = vector.load %arg5[%c0_6, %c0_7, %c0_8] : memref<1x16x64xbf16, #tpu.memory_space<vmem>>, vector<1x16x64xbf16>
    %9 = vector.shape_cast %8 : vector<1x16x64xbf16> to vector<16x64xbf16>
    %10 = vector.shape_cast %7 : vector<16x64xbf16> to vector<1x16x64xbf16>
    tpu.vector_store %arg5[%c0_6, %c0_7, %c0_8], %10 {strides = array<i32>} : memref<1x16x64xbf16, #tpu.memory_space<vmem>>, vector<1x16x64xbf16>,
    return
  }
  func.func @transform_0(%arg0: i32, %arg1: i32) -> (i32, i32, i32) {
    %c0_i32 = arith.constant 0 : i32
    %c0_i32_0 = arith.constant 0 : i32
    return %arg0, %c0_i32, %arg1 : i32, i32, i32
  }
  func.func @transform_1(%arg0: i32, %arg1: i32) -> (i32, i32) {
    %c0_i32 = arith.constant 0 : i32
    %c0_i32_0 = arith.constant 0 : i32
    %c0_i32_1 = arith.constant 0 : i32
    return %c0_i32, %c0_i32_0 : i32, i32
  }
  func.func @transform_2(%arg0: i32, %arg1: i32) -> (i32, i32) {
    %c0_i32 = arith.constant 0 : i32
    %c0_i32_0 = arith.constant 0 : i32
    %c0_i32_1 = arith.constant 0 : i32
    return %c0_i32, %c0_i32_0 : i32, i32
  }
  func.func @transform_3(%arg0: i32, %arg1: i32) -> (i32, i32, i32) {
    %c0_i32 = arith.constant 0 : i32
    %c0_i32_0 = arith.constant 0 : i32
    return %arg0, %c0_i32, %arg1 : i32, i32, i32
  }
}

module attributes {stable_mosaic.version = 11 : i64} {
  func.func @kernel(%arg0: i32, %arg1: memref<1x342x4xbf16, #tpu.memory_space<vmem>>, %arg2: memref<1x342x4xbf16, #tpu.memory_space<vmem>>, %arg3: memref<72x4xbf16, #tpu.memory_space<vmem>>, %arg4: memref<1x4xf32, #tpu.memory_space<vmem>>, %arg5: memref<1x4xf32, #tpu.memory_space<vmem>>, %arg6: memref<1x4xf32, #tpu.memory_space<vmem>>, %arg7: memref<36x4xbf16, #tpu.memory_space<vmem>>, %arg8: memref<1x4xf32, #tpu.memory_space<vmem>>, %arg9: memref<1x4xf32, #tpu.memory_space<vmem>>, %arg10: memref<1x4xf32, #tpu.memory_space<vmem>>, %arg11: memref<1x288x4xbf16, #tpu.memory_space<vmem>>, %arg12: memref<288x72xbf16, #tpu.memory_space<vmem>>, %arg13: memref<326x4xbf16, #tpu.memory_space<vmem>>) attributes {dimension_semantics = [#tpu.dimension_semantics<parallel>], iteration_bounds = array<i64: 2>, scalar_prefetch = 0 : i64, scratch_operands = 2 : i64, tpu.core_type = #tpu.core_type<tc>, window_params = [{transform_indices = @transform_0, window_bounds = array<i64: 1, 342, 4>}, {transform_indices = @transform_1, window_bounds = array<i64: 1, 342, 4>}, {pipeline_mode = #tpu.pipeline_mode<synchronous>, transform_indices = @transform_2, window_bounds = array<i64: 72, 4>}, {pipeline_mode = #tpu.pipeline_mode<synchronous>, transform_indices = @transform_3, window_bounds = array<i64: 1, 4>}, {pipeline_mode = #tpu.pipeline_mode<synchronous>, transform_indices = @transform_4, window_bounds = array<i64: 1, 4>}, {pipeline_mode = #tpu.pipeline_mode<synchronous>, transform_indices = @transform_5, window_bounds = array<i64: 1, 4>}, {pipeline_mode = #tpu.pipeline_mode<synchronous>, transform_indices = @transform_6, window_bounds = array<i64: 36, 4>}, {pipeline_mode = #tpu.pipeline_mode<synchronous>, transform_indices = @transform_7, window_bounds = array<i64: 1, 4>}, {pipeline_mode = #tpu.pipeline_mode<synchronous>, transform_indices = @transform_8, window_bounds = array<i64: 1, 4>}, {pipeline_mode = #tpu.pipeline_mode<synchronous>, transform_indices = @transform_9, window_bounds = array<i64: 1, 4>}, {transform_indices = @transform_10, window_bounds = array<i64: 1, 288, 4>}]} {
    %0 = tpu.iota {dimensions = array<i32: 0>} : vector<288x1xi32>
    %c18_i32 = arith.constant 18 : i32
    %c0_i32 = arith.constant 0 : i32
    %1 = arith.cmpi eq, %c18_i32, %c0_i32 : i32
    %c1_i32 = arith.constant 1 : i32
    %2 = arith.select %1, %c1_i32, %c18_i32 : i32
    %3 = vector.broadcast %2 : i32 to vector<288x1xi32>
    %4 = arith.remsi %0, %3 : vector<288x1xi32>
    %c0_i32_0 = arith.constant 0 : i32
    %5 = vector.broadcast %c0_i32_0 : i32 to vector<288x1xi32>
    %6 = arith.cmpi ne, %4, %5 : vector<288x1xi32>
    %c0_i32_1 = arith.constant 0 : i32
    %7 = vector.broadcast %c0_i32_1 : i32 to vector<288x1xi32>
    %8 = arith.cmpi slt, %4, %7 : vector<288x1xi32>
    %c0_i32_2 = arith.constant 0 : i32
    %9 = arith.cmpi slt, %2, %c0_i32_2 : i32
    %10 = vector.broadcast %9 : i1 to vector<288x1xi1>
    %11 = vector.broadcast %10 : vector<288x1xi1> to vector<288x1xi1>
    %12 = arith.xori %8, %11 : vector<288x1xi1>
    %13 = arith.andi %12, %6 : vector<288x1xi1>
    %14 = vector.broadcast %2 : i32 to vector<288x1xi32>
    %15 = arith.addi %4, %14 : vector<288x1xi32>
    %16 = arith.select %13, %15, %4 : vector<288x1xi1>, vector<288x1xi32>
    %c16_i32 = arith.constant 16 : i32
    %17 = vector.broadcast %c16_i32 : i32 to vector<288x1xi32>
    %18 = arith.cmpi slt, %16, %17 : vector<288x1xi32>
    %19 = arith.extui %18 : vector<288x1xi1> to vector<288x1xi32>
    %20 = arith.sitofp %19 : vector<288x1xi32> to vector<288x1xf32>
    %c0 = arith.constant 0 : index
    %c0_3 = arith.constant 0 : index
    %c0_4 = arith.constant 0 : index
    %21 = vector.load %arg1[%c0, %c0_3, %c0_4] : memref<1x342x4xbf16, #tpu.memory_space<vmem>>, vector<1x288x4xbf16>
    %22 = vector.shape_cast %21 : vector<1x288x4xbf16> to vector<288x4xbf16>
    %c0_5 = arith.constant 0 : index
    %c0_6 = arith.constant 0 : index
    %23 = vector.load %arg12[%c0_5, %c0_6] : memref<288x72xbf16, #tpu.memory_space<vmem>>, vector<288x4xbf16>
    tpu.vector_store %arg12[%c0_5, %c0_6], %22 {strides = array<i32>} : memref<288x72xbf16, #tpu.memory_space<vmem>>, vector<288x4xbf16>,
    %c0_7 = arith.constant 0 : index
    %c0_8 = arith.constant 0 : index
    %c0_9 = arith.constant 0 : index
    %24 = vector.load %arg2[%c0_7, %c0_8, %c0_9] : memref<1x342x4xbf16, #tpu.memory_space<vmem>>, vector<1x288x4xbf16>
    %25 = vector.shape_cast %24 : vector<1x288x4xbf16> to vector<288x4xbf16>
    %c0_10 = arith.constant 0 : index
    %c4 = arith.constant 4 : index
    %26 = vector.load %arg12[%c0_10, %c4] : memref<288x72xbf16, #tpu.memory_space<vmem>>, vector<288x4xbf16>
    tpu.vector_store %arg12[%c0_10, %c4], %25 {strides = array<i32>} : memref<288x72xbf16, #tpu.memory_space<vmem>>, vector<288x4xbf16>,
    %c0_11 = arith.constant 0 : index
    %c1 = arith.constant 1 : index
    %c0_12 = arith.constant 0 : index
    %27 = vector.load %arg1[%c0_11, %c1, %c0_12] : memref<1x342x4xbf16, #tpu.memory_space<vmem>>, vector<1x288x4xbf16>
    %28 = vector.shape_cast %27 : vector<1x288x4xbf16> to vector<288x4xbf16>
    %c0_13 = arith.constant 0 : index
    %c8 = arith.constant 8 : index
    %29 = vector.load %arg12[%c0_13, %c8] : memref<288x72xbf16, #tpu.memory_space<vmem>>, vector<288x4xbf16>
    tpu.vector_store %arg12[%c0_13, %c8], %28 {strides = array<i32>} : memref<288x72xbf16, #tpu.memory_space<vmem>>, vector<288x4xbf16>,
    %c0_14 = arith.constant 0 : index
    %c1_15 = arith.constant 1 : index
    %c0_16 = arith.constant 0 : index
    %30 = vector.load %arg2[%c0_14, %c1_15, %c0_16] : memref<1x342x4xbf16, #tpu.memory_space<vmem>>, vector<1x288x4xbf16>
    %31 = vector.shape_cast %30 : vector<1x288x4xbf16> to vector<288x4xbf16>
    %c0_17 = arith.constant 0 : index
    %c12 = arith.constant 12 : index
    %32 = vector.load %arg12[%c0_17, %c12] : memref<288x72xbf16, #tpu.memory_space<vmem>>, vector<288x4xbf16>
    tpu.vector_store %arg12[%c0_17, %c12], %31 {strides = array<i32>} : memref<288x72xbf16, #tpu.memory_space<vmem>>, vector<288x4xbf16>,
    %c0_18 = arith.constant 0 : index
    %c2 = arith.constant 2 : index
    %c0_19 = arith.constant 0 : index
    %33 = vector.load %arg1[%c0_18, %c2, %c0_19] : memref<1x342x4xbf16, #tpu.memory_space<vmem>>, vector<1x288x4xbf16>
    %34 = vector.shape_cast %33 : vector<1x288x4xbf16> to vector<288x4xbf16>
    %c0_20 = arith.constant 0 : index
    %c16 = arith.constant 16 : index
    %35 = vector.load %arg12[%c0_20, %c16] : memref<288x72xbf16, #tpu.memory_space<vmem>>, vector<288x4xbf16>
    tpu.vector_store %arg12[%c0_20, %c16], %34 {strides = array<i32>} : memref<288x72xbf16, #tpu.memory_space<vmem>>, vector<288x4xbf16>,
    %c0_21 = arith.constant 0 : index
    %c2_22 = arith.constant 2 : index
    %c0_23 = arith.constant 0 : index
    %36 = vector.load %arg2[%c0_21, %c2_22, %c0_23] : memref<1x342x4xbf16, #tpu.memory_space<vmem>>, vector<1x288x4xbf16>
    %37 = vector.shape_cast %36 : vector<1x288x4xbf16> to vector<288x4xbf16>
    %c0_24 = arith.constant 0 : index
    %c20 = arith.constant 20 : index
    %38 = vector.load %arg12[%c0_24, %c20] : memref<288x72xbf16, #tpu.memory_space<vmem>>, vector<288x4xbf16>
    tpu.vector_store %arg12[%c0_24, %c20], %37 {strides = array<i32>} : memref<288x72xbf16, #tpu.memory_space<vmem>>, vector<288x4xbf16>,
    %c0_25 = arith.constant 0 : index
    %c18 = arith.constant 18 : index
    %c0_26 = arith.constant 0 : index
    %39 = vector.load %arg1[%c0_25, %c18, %c0_26] : memref<1x342x4xbf16, #tpu.memory_space<vmem>>, vector<1x288x4xbf16>
    %40 = vector.shape_cast %39 : vector<1x288x4xbf16> to vector<288x4xbf16>
    %c0_27 = arith.constant 0 : index
    %c24 = arith.constant 24 : index
    %41 = vector.load %arg12[%c0_27, %c24] : memref<288x72xbf16, #tpu.memory_space<vmem>>, vector<288x4xbf16>
    tpu.vector_store %arg12[%c0_27, %c24], %40 {strides = array<i32>} : memref<288x72xbf16, #tpu.memory_space<vmem>>, vector<288x4xbf16>,
    %c0_28 = arith.constant 0 : index
    %c18_29 = arith.constant 18 : index
    %c0_30 = arith.constant 0 : index
    %42 = vector.load %arg2[%c0_28, %c18_29, %c0_30] : memref<1x342x4xbf16, #tpu.memory_space<vmem>>, vector<1x288x4xbf16>
    %43 = vector.shape_cast %42 : vector<1x288x4xbf16> to vector<288x4xbf16>
    %c0_31 = arith.constant 0 : index
    %c28 = arith.constant 28 : index
    %44 = vector.load %arg12[%c0_31, %c28] : memref<288x72xbf16, #tpu.memory_space<vmem>>, vector<288x4xbf16>
    tpu.vector_store %arg12[%c0_31, %c28], %43 {strides = array<i32>} : memref<288x72xbf16, #tpu.memory_space<vmem>>, vector<288x4xbf16>,
    %c0_32 = arith.constant 0 : index
    %c19 = arith.constant 19 : index
    %c0_33 = arith.constant 0 : index
    %45 = vector.load %arg1[%c0_32, %c19, %c0_33] : memref<1x342x4xbf16, #tpu.memory_space<vmem>>, vector<1x288x4xbf16>
    %46 = vector.shape_cast %45 : vector<1x288x4xbf16> to vector<288x4xbf16>
    %c0_34 = arith.constant 0 : index
    %c32 = arith.constant 32 : index
    %47 = vector.load %arg12[%c0_34, %c32] : memref<288x72xbf16, #tpu.memory_space<vmem>>, vector<288x4xbf16>
    tpu.vector_store %arg12[%c0_34, %c32], %46 {strides = array<i32>} : memref<288x72xbf16, #tpu.memory_space<vmem>>, vector<288x4xbf16>,
    %c0_35 = arith.constant 0 : index
    %c19_36 = arith.constant 19 : index
    %c0_37 = arith.constant 0 : index
    %48 = vector.load %arg2[%c0_35, %c19_36, %c0_37] : memref<1x342x4xbf16, #tpu.memory_space<vmem>>, vector<1x288x4xbf16>
    %49 = vector.shape_cast %48 : vector<1x288x4xbf16> to vector<288x4xbf16>
    %c0_38 = arith.constant 0 : index
    %c36 = arith.constant 36 : index
    %50 = vector.load %arg12[%c0_38, %c36] : memref<288x72xbf16, #tpu.memory_space<vmem>>, vector<288x4xbf16>
    tpu.vector_store %arg12[%c0_38, %c36], %49 {strides = array<i32>} : memref<288x72xbf16, #tpu.memory_space<vmem>>, vector<288x4xbf16>,
    %c0_39 = arith.constant 0 : index
    %c20_40 = arith.constant 20 : index
    %c0_41 = arith.constant 0 : index
    %51 = vector.load %arg1[%c0_39, %c20_40, %c0_41] : memref<1x342x4xbf16, #tpu.memory_space<vmem>>, vector<1x288x4xbf16>
    %52 = vector.shape_cast %51 : vector<1x288x4xbf16> to vector<288x4xbf16>
    %c0_42 = arith.constant 0 : index
    %c40 = arith.constant 40 : index
    %53 = vector.load %arg12[%c0_42, %c40] : memref<288x72xbf16, #tpu.memory_space<vmem>>, vector<288x4xbf16>
    tpu.vector_store %arg12[%c0_42, %c40], %52 {strides = array<i32>} : memref<288x72xbf16, #tpu.memory_space<vmem>>, vector<288x4xbf16>,
    %c0_43 = arith.constant 0 : index
    %c20_44 = arith.constant 20 : index
    %c0_45 = arith.constant 0 : index
    %54 = vector.load %arg2[%c0_43, %c20_44, %c0_45] : memref<1x342x4xbf16, #tpu.memory_space<vmem>>, vector<1x288x4xbf16>
    %55 = vector.shape_cast %54 : vector<1x288x4xbf16> to vector<288x4xbf16>
    %c0_46 = arith.constant 0 : index
    %c44 = arith.constant 44 : index
    %56 = vector.load %arg12[%c0_46, %c44] : memref<288x72xbf16, #tpu.memory_space<vmem>>, vector<288x4xbf16>
    tpu.vector_store %arg12[%c0_46, %c44], %55 {strides = array<i32>} : memref<288x72xbf16, #tpu.memory_space<vmem>>, vector<288x4xbf16>,
    %c0_47 = arith.constant 0 : index
    %c36_48 = arith.constant 36 : index
    %c0_49 = arith.constant 0 : index
    %57 = vector.load %arg1[%c0_47, %c36_48, %c0_49] : memref<1x342x4xbf16, #tpu.memory_space<vmem>>, vector<1x288x4xbf16>
    %58 = vector.shape_cast %57 : vector<1x288x4xbf16> to vector<288x4xbf16>
    %c0_50 = arith.constant 0 : index
    %c48 = arith.constant 48 : index
    %59 = vector.load %arg12[%c0_50, %c48] : memref<288x72xbf16, #tpu.memory_space<vmem>>, vector<288x4xbf16>
    tpu.vector_store %arg12[%c0_50, %c48], %58 {strides = array<i32>} : memref<288x72xbf16, #tpu.memory_space<vmem>>, vector<288x4xbf16>,
    %c0_51 = arith.constant 0 : index
    %c36_52 = arith.constant 36 : index
    %c0_53 = arith.constant 0 : index
    %60 = vector.load %arg2[%c0_51, %c36_52, %c0_53] : memref<1x342x4xbf16, #tpu.memory_space<vmem>>, vector<1x288x4xbf16>
    %61 = vector.shape_cast %60 : vector<1x288x4xbf16> to vector<288x4xbf16>
    %c0_54 = arith.constant 0 : index
    %c52 = arith.constant 52 : index
    %62 = vector.load %arg12[%c0_54, %c52] : memref<288x72xbf16, #tpu.memory_space<vmem>>, vector<288x4xbf16>
    tpu.vector_store %arg12[%c0_54, %c52], %61 {strides = array<i32>} : memref<288x72xbf16, #tpu.memory_space<vmem>>, vector<288x4xbf16>,
    %c0_55 = arith.constant 0 : index
    %c37 = arith.constant 37 : index
    %c0_56 = arith.constant 0 : index
    %63 = vector.load %arg1[%c0_55, %c37, %c0_56] : memref<1x342x4xbf16, #tpu.memory_space<vmem>>, vector<1x288x4xbf16>
    %64 = vector.shape_cast %63 : vector<1x288x4xbf16> to vector<288x4xbf16>
    %c0_57 = arith.constant 0 : index
    %c56 = arith.constant 56 : index
    %65 = vector.load %arg12[%c0_57, %c56] : memref<288x72xbf16, #tpu.memory_space<vmem>>, vector<288x4xbf16>
    tpu.vector_store %arg12[%c0_57, %c56], %64 {strides = array<i32>} : memref<288x72xbf16, #tpu.memory_space<vmem>>, vector<288x4xbf16>,
    %c0_58 = arith.constant 0 : index
    %c37_59 = arith.constant 37 : index
    %c0_60 = arith.constant 0 : index
    %66 = vector.load %arg2[%c0_58, %c37_59, %c0_60] : memref<1x342x4xbf16, #tpu.memory_space<vmem>>, vector<1x288x4xbf16>
    %67 = vector.shape_cast %66 : vector<1x288x4xbf16> to vector<288x4xbf16>
    %c0_61 = arith.constant 0 : index
    %c60 = arith.constant 60 : index
    %68 = vector.load %arg12[%c0_61, %c60] : memref<288x72xbf16, #tpu.memory_space<vmem>>, vector<288x4xbf16>
    tpu.vector_store %arg12[%c0_61, %c60], %67 {strides = array<i32>} : memref<288x72xbf16, #tpu.memory_space<vmem>>, vector<288x4xbf16>,
    %c0_62 = arith.constant 0 : index
    %c38 = arith.constant 38 : index
    %c0_63 = arith.constant 0 : index
    %69 = vector.load %arg1[%c0_62, %c38, %c0_63] : memref<1x342x4xbf16, #tpu.memory_space<vmem>>, vector<1x288x4xbf16>
    %70 = vector.shape_cast %69 : vector<1x288x4xbf16> to vector<288x4xbf16>
    %c0_64 = arith.constant 0 : index
    %c64 = arith.constant 64 : index
    %71 = vector.load %arg12[%c0_64, %c64] : memref<288x72xbf16, #tpu.memory_space<vmem>>, vector<288x4xbf16>
    tpu.vector_store %arg12[%c0_64, %c64], %70 {strides = array<i32>} : memref<288x72xbf16, #tpu.memory_space<vmem>>, vector<288x4xbf16>,
    %c0_65 = arith.constant 0 : index
    %c38_66 = arith.constant 38 : index
    %c0_67 = arith.constant 0 : index
    %72 = vector.load %arg2[%c0_65, %c38_66, %c0_67] : memref<1x342x4xbf16, #tpu.memory_space<vmem>>, vector<1x288x4xbf16>
    %73 = vector.shape_cast %72 : vector<1x288x4xbf16> to vector<288x4xbf16>
    %c0_68 = arith.constant 0 : index
    %c68 = arith.constant 68 : index
    %74 = vector.load %arg12[%c0_68, %c68] : memref<288x72xbf16, #tpu.memory_space<vmem>>, vector<288x4xbf16>
    tpu.vector_store %arg12[%c0_68, %c68], %73 {strides = array<i32>} : memref<288x72xbf16, #tpu.memory_space<vmem>>, vector<288x4xbf16>,
    %c0_69 = arith.constant 0 : index
    %c0_70 = arith.constant 0 : index
    %75 = vector.load %arg12[%c0_69, %c0_70] : memref<288x72xbf16, #tpu.memory_space<vmem>>, vector<288x72xbf16>
    %c0_71 = arith.constant 0 : index
    %c0_72 = arith.constant 0 : index
    %76 = vector.load %arg3[%c0_71, %c0_72] : memref<72x4xbf16, #tpu.memory_space<vmem>>, vector<72x4xbf16>
    %cst = arith.constant dense<0.000000e+00> : vector<288x4xf32>
    %77 = tpu.matmul %75, %76, %cst {dimension_numbers = #tpu.dot_dimension_numbers<[1], [0], [0], [1], [0, 0, 1, 1], [], []>} : vector<288x72xbf16>, vector<72x4xbf16>, vector<288x4xf32> -> vector<288x4xf32>
    %c0_73 = arith.constant 0 : index
    %c0_74 = arith.constant 0 : index
    %78 = vector.load %arg4[%c0_73, %c0_74] : memref<1x4xf32, #tpu.memory_space<vmem>>, vector<1x4xf32>
    %79 = vector.broadcast %78 : vector<1x4xf32> to vector<288x4xf32>
    %80 = arith.addf %77, %79 : vector<288x4xf32>
    %81 = vector.broadcast %20 : vector<288x1xf32> to vector<288x4xf32>
    %82 = arith.mulf %80, %81 : vector<288x4xf32>
    %cst_75 = arith.constant dense<0.000000e+00> : vector<4xf32>
    %83 = vector.multi_reduction <add>, %82, %cst_75 [0] : vector<288x4xf32> to vector<4xf32>
    %84 = vector.shape_cast %83 : vector<4xf32> to vector<1x4xf32>
    %cst_76 = arith.constant 3.906250e-03 : f32
    %85 = vector.broadcast %cst_76 : f32 to vector<1x4xf32>
    %86 = arith.mulf %84, %85 : vector<1x4xf32>
    %87 = vector.broadcast %86 : vector<1x4xf32> to vector<288x4xf32>
    %88 = arith.subf %80, %87 : vector<288x4xf32>
    %89 = vector.broadcast %20 : vector<288x1xf32> to vector<288x4xf32>
    %90 = arith.mulf %88, %89 : vector<288x4xf32>
    %91 = arith.mulf %90, %90 : vector<288x4xf32>
    %cst_77 = arith.constant dense<0.000000e+00> : vector<4xf32>
    %92 = vector.multi_reduction <add>, %91, %cst_77 [0] : vector<288x4xf32> to vector<4xf32>
    %93 = vector.shape_cast %92 : vector<4xf32> to vector<1x4xf32>
    %cst_78 = arith.constant 3.906250e-03 : f32
    %94 = vector.broadcast %cst_78 : f32 to vector<1x4xf32>
    %95 = arith.mulf %93, %94 : vector<1x4xf32>
    %96 = vector.broadcast %86 : vector<1x4xf32> to vector<288x4xf32>
    %97 = arith.subf %80, %96 : vector<288x4xf32>
    %cst_79 = arith.constant 9.99999974E-6 : f32
    %98 = vector.broadcast %cst_79 : f32 to vector<1x4xf32>
    %99 = arith.addf %95, %98 : vector<1x4xf32>
    %100 = math.rsqrt %99 : vector<1x4xf32>
    %101 = vector.broadcast %100 : vector<1x4xf32> to vector<288x4xf32>
    %102 = arith.mulf %97, %101 : vector<288x4xf32>
    %c0_80 = arith.constant 0 : index
    %c0_81 = arith.constant 0 : index
    %103 = vector.load %arg5[%c0_80, %c0_81] : memref<1x4xf32, #tpu.memory_space<vmem>>, vector<1x4xf32>
    %104 = vector.broadcast %103 : vector<1x4xf32> to vector<288x4xf32>
    %105 = arith.mulf %102, %104 : vector<288x4xf32>
    %c0_82 = arith.constant 0 : index
    %c0_83 = arith.constant 0 : index
    %106 = vector.load %arg6[%c0_82, %c0_83] : memref<1x4xf32, #tpu.memory_space<vmem>>, vector<1x4xf32>
    %107 = vector.broadcast %106 : vector<1x4xf32> to vector<288x4xf32>
    %108 = arith.addf %105, %107 : vector<288x4xf32>
    %cst_84 = arith.constant 0.000000e+00 : f32
    %109 = vector.broadcast %cst_84 : f32 to vector<288x4xf32>
    %110 = arith.cmpf ogt, %108, %109 : vector<288x4xf32>
    %cst_85 = arith.constant 1.000000e-01 : f32
    %111 = vector.broadcast %cst_85 : f32 to vector<288x4xf32>
    %112 = arith.mulf %111, %108 : vector<288x4xf32>
    %113 = arith.select %110, %108, %112 : vector<288x4xi1>, vector<288x4xf32>
    %cst_86 = arith.constant 0.000000e+00 : bf16
    %114 = vector.broadcast %cst_86 : bf16 to vector<19x4xbf16>
    %c0_87 = arith.constant 0 : index
    %c0_88 = arith.constant 0 : index
    %115 = vector.load %arg13[%c0_87, %c0_88] : memref<326x4xbf16, #tpu.memory_space<vmem>>, vector<19x4xbf16>
    tpu.vector_store %arg13[%c0_87, %c0_88], %114 {strides = array<i32>} : memref<326x4xbf16, #tpu.memory_space<vmem>>, vector<19x4xbf16>,
    %cst_89 = arith.constant 0.000000e+00 : bf16
    %116 = vector.broadcast %cst_89 : bf16 to vector<19x4xbf16>
    %c307 = arith.constant 307 : index
    %c0_90 = arith.constant 0 : index
    %117 = vector.load %arg13[%c307, %c0_90] : memref<326x4xbf16, #tpu.memory_space<vmem>>, vector<19x4xbf16>
    tpu.vector_store %arg13[%c307, %c0_90], %116 {strides = array<i32>} : memref<326x4xbf16, #tpu.memory_space<vmem>>, vector<19x4xbf16>,
    %118 = vector.broadcast %20 : vector<288x1xf32> to vector<288x4xf32>
    %119 = arith.mulf %113, %118 : vector<288x4xf32>
    %120 = arith.truncf %119 : vector<288x4xf32> to vector<288x4xbf16>
    %c19_91 = arith.constant 19 : index
    %c0_92 = arith.constant 0 : index
    %121 = vector.load %arg13[%c19_91, %c0_92] : memref<326x4xbf16, #tpu.memory_space<vmem>>, vector<288x4xbf16>
    tpu.vector_store %arg13[%c19_91, %c0_92], %120 {strides = array<i32>} : memref<326x4xbf16, #tpu.memory_space<vmem>>, vector<288x4xbf16>,
    %c0_93 = arith.constant 0 : index
    %c0_94 = arith.constant 0 : index
    %122 = vector.load %arg13[%c0_93, %c0_94] : memref<326x4xbf16, #tpu.memory_space<vmem>>, vector<288x4xbf16>
    %c0_95 = arith.constant 0 : index
    %c0_96 = arith.constant 0 : index
    %123 = vector.load %arg12[%c0_95, %c0_96] : memref<288x72xbf16, #tpu.memory_space<vmem>>, vector<288x4xbf16>
    tpu.vector_store %arg12[%c0_95, %c0_96], %122 {strides = array<i32>} : memref<288x72xbf16, #tpu.memory_space<vmem>>, vector<288x4xbf16>,
    %c1_97 = arith.constant 1 : index
    %c0_98 = arith.constant 0 : index
    %124 = vector.load %arg13[%c1_97, %c0_98] : memref<326x4xbf16, #tpu.memory_space<vmem>>, vector<288x4xbf16>
    %c0_99 = arith.constant 0 : index
    %c4_100 = arith.constant 4 : index
    %125 = vector.load %arg12[%c0_99, %c4_100] : memref<288x72xbf16, #tpu.memory_space<vmem>>, vector<288x4xbf16>
    tpu.vector_store %arg12[%c0_99, %c4_100], %124 {strides = array<i32>} : memref<288x72xbf16, #tpu.memory_space<vmem>>, vector<288x4xbf16>,
    %c2_101 = arith.constant 2 : index
    %c0_102 = arith.constant 0 : index
    %126 = vector.load %arg13[%c2_101, %c0_102] : memref<326x4xbf16, #tpu.memory_space<vmem>>, vector<288x4xbf16>
    %c0_103 = arith.constant 0 : index
    %c8_104 = arith.constant 8 : index
    %127 = vector.load %arg12[%c0_103, %c8_104] : memref<288x72xbf16, #tpu.memory_space<vmem>>, vector<288x4xbf16>
    tpu.vector_store %arg12[%c0_103, %c8_104], %126 {strides = array<i32>} : memref<288x72xbf16, #tpu.memory_space<vmem>>, vector<288x4xbf16>,
    %c18_105 = arith.constant 18 : index
    %c0_106 = arith.constant 0 : index
    %128 = vector.load %arg13[%c18_105, %c0_106] : memref<326x4xbf16, #tpu.memory_space<vmem>>, vector<288x4xbf16>
    %c0_107 = arith.constant 0 : index
    %c12_108 = arith.constant 12 : index
    %129 = vector.load %arg12[%c0_107, %c12_108] : memref<288x72xbf16, #tpu.memory_space<vmem>>, vector<288x4xbf16>
    tpu.vector_store %arg12[%c0_107, %c12_108], %128 {strides = array<i32>} : memref<288x72xbf16, #tpu.memory_space<vmem>>, vector<288x4xbf16>,
    %c19_109 = arith.constant 19 : index
    %c0_110 = arith.constant 0 : index
    %130 = vector.load %arg13[%c19_109, %c0_110] : memref<326x4xbf16, #tpu.memory_space<vmem>>, vector<288x4xbf16>
    %c0_111 = arith.constant 0 : index
    %c16_112 = arith.constant 16 : index
    %131 = vector.load %arg12[%c0_111, %c16_112] : memref<288x72xbf16, #tpu.memory_space<vmem>>, vector<288x4xbf16>
    tpu.vector_store %arg12[%c0_111, %c16_112], %130 {strides = array<i32>} : memref<288x72xbf16, #tpu.memory_space<vmem>>, vector<288x4xbf16>,
    %c20_113 = arith.constant 20 : index
    %c0_114 = arith.constant 0 : index
    %132 = vector.load %arg13[%c20_113, %c0_114] : memref<326x4xbf16, #tpu.memory_space<vmem>>, vector<288x4xbf16>
    %c0_115 = arith.constant 0 : index
    %c20_116 = arith.constant 20 : index
    %133 = vector.load %arg12[%c0_115, %c20_116] : memref<288x72xbf16, #tpu.memory_space<vmem>>, vector<288x4xbf16>
    tpu.vector_store %arg12[%c0_115, %c20_116], %132 {strides = array<i32>} : memref<288x72xbf16, #tpu.memory_space<vmem>>, vector<288x4xbf16>,
    %c36_117 = arith.constant 36 : index
    %c0_118 = arith.constant 0 : index
    %134 = vector.load %arg13[%c36_117, %c0_118] : memref<326x4xbf16, #tpu.memory_space<vmem>>, vector<288x4xbf16>
    %c0_119 = arith.constant 0 : index
    %c24_120 = arith.constant 24 : index
    %135 = vector.load %arg12[%c0_119, %c24_120] : memref<288x72xbf16, #tpu.memory_space<vmem>>, vector<288x4xbf16>
    tpu.vector_store %arg12[%c0_119, %c24_120], %134 {strides = array<i32>} : memref<288x72xbf16, #tpu.memory_space<vmem>>, vector<288x4xbf16>,
    %c37_121 = arith.constant 37 : index
    %c0_122 = arith.constant 0 : index
    %136 = vector.load %arg13[%c37_121, %c0_122] : memref<326x4xbf16, #tpu.memory_space<vmem>>, vector<288x4xbf16>
    %c0_123 = arith.constant 0 : index
    %c28_124 = arith.constant 28 : index
    %137 = vector.load %arg12[%c0_123, %c28_124] : memref<288x72xbf16, #tpu.memory_space<vmem>>, vector<288x4xbf16>
    tpu.vector_store %arg12[%c0_123, %c28_124], %136 {strides = array<i32>} : memref<288x72xbf16, #tpu.memory_space<vmem>>, vector<288x4xbf16>,
    %c38_125 = arith.constant 38 : index
    %c0_126 = arith.constant 0 : index
    %138 = vector.load %arg13[%c38_125, %c0_126] : memref<326x4xbf16, #tpu.memory_space<vmem>>, vector<288x4xbf16>
    %c0_127 = arith.constant 0 : index
    %c32_128 = arith.constant 32 : index
    %139 = vector.load %arg12[%c0_127, %c32_128] : memref<288x72xbf16, #tpu.memory_space<vmem>>, vector<288x4xbf16>
    tpu.vector_store %arg12[%c0_127, %c32_128], %138 {strides = array<i32>} : memref<288x72xbf16, #tpu.memory_space<vmem>>, vector<288x4xbf16>,
    %c0_129 = arith.constant 0 : index
    %c0_130 = arith.constant 0 : index
    %140 = vector.load %arg12[%c0_129, %c0_130] : memref<288x72xbf16, #tpu.memory_space<vmem>>, vector<288x36xbf16>
    %c0_131 = arith.constant 0 : index
    %c0_132 = arith.constant 0 : index
    %141 = vector.load %arg7[%c0_131, %c0_132] : memref<36x4xbf16, #tpu.memory_space<vmem>>, vector<36x4xbf16>
    %cst_133 = arith.constant dense<0.000000e+00> : vector<288x4xf32>
    %142 = tpu.matmul %140, %141, %cst_133 {dimension_numbers = #tpu.dot_dimension_numbers<[1], [0], [0], [1], [0, 0, 1, 1], [], []>} : vector<288x36xbf16>, vector<36x4xbf16>, vector<288x4xf32> -> vector<288x4xf32>
    %c0_134 = arith.constant 0 : index
    %c0_135 = arith.constant 0 : index
    %143 = vector.load %arg8[%c0_134, %c0_135] : memref<1x4xf32, #tpu.memory_space<vmem>>, vector<1x4xf32>
    %144 = vector.broadcast %143 : vector<1x4xf32> to vector<288x4xf32>
    %145 = arith.addf %142, %144 : vector<288x4xf32>
    %146 = vector.broadcast %20 : vector<288x1xf32> to vector<288x4xf32>
    %147 = arith.mulf %145, %146 : vector<288x4xf32>
    %cst_136 = arith.constant dense<0.000000e+00> : vector<4xf32>
    %148 = vector.multi_reduction <add>, %147, %cst_136 [0] : vector<288x4xf32> to vector<4xf32>
    %149 = vector.shape_cast %148 : vector<4xf32> to vector<1x4xf32>
    %cst_137 = arith.constant 3.906250e-03 : f32
    %150 = vector.broadcast %cst_137 : f32 to vector<1x4xf32>
    %151 = arith.mulf %149, %150 : vector<1x4xf32>
    %152 = vector.broadcast %151 : vector<1x4xf32> to vector<288x4xf32>
    %153 = arith.subf %145, %152 : vector<288x4xf32>
    %154 = vector.broadcast %20 : vector<288x1xf32> to vector<288x4xf32>
    %155 = arith.mulf %153, %154 : vector<288x4xf32>
    %156 = arith.mulf %155, %155 : vector<288x4xf32>
    %cst_138 = arith.constant dense<0.000000e+00> : vector<4xf32>
    %157 = vector.multi_reduction <add>, %156, %cst_138 [0] : vector<288x4xf32> to vector<4xf32>
    %158 = vector.shape_cast %157 : vector<4xf32> to vector<1x4xf32>
    %cst_139 = arith.constant 3.906250e-03 : f32
    %159 = vector.broadcast %cst_139 : f32 to vector<1x4xf32>
    %160 = arith.mulf %158, %159 : vector<1x4xf32>
    %161 = vector.broadcast %151 : vector<1x4xf32> to vector<288x4xf32>
    %162 = arith.subf %145, %161 : vector<288x4xf32>
    %cst_140 = arith.constant 9.99999974E-6 : f32
    %163 = vector.broadcast %cst_140 : f32 to vector<1x4xf32>
    %164 = arith.addf %160, %163 : vector<1x4xf32>
    %165 = math.rsqrt %164 : vector<1x4xf32>
    %166 = vector.broadcast %165 : vector<1x4xf32> to vector<288x4xf32>
    %167 = arith.mulf %162, %166 : vector<288x4xf32>
    %c0_141 = arith.constant 0 : index
    %c0_142 = arith.constant 0 : index
    %168 = vector.load %arg9[%c0_141, %c0_142] : memref<1x4xf32, #tpu.memory_space<vmem>>, vector<1x4xf32>
    %169 = vector.broadcast %168 : vector<1x4xf32> to vector<288x4xf32>
    %170 = arith.mulf %167, %169 : vector<288x4xf32>
    %c0_143 = arith.constant 0 : index
    %c0_144 = arith.constant 0 : index
    %171 = vector.load %arg10[%c0_143, %c0_144] : memref<1x4xf32, #tpu.memory_space<vmem>>, vector<1x4xf32>
    %172 = vector.broadcast %171 : vector<1x4xf32> to vector<288x4xf32>
    %173 = arith.addf %170, %172 : vector<288x4xf32>
    %cst_145 = arith.constant 0.000000e+00 : f32
    %174 = vector.broadcast %cst_145 : f32 to vector<288x4xf32>
    %175 = arith.cmpf ogt, %173, %174 : vector<288x4xf32>
    %cst_146 = arith.constant 1.000000e-01 : f32
    %176 = vector.broadcast %cst_146 : f32 to vector<288x4xf32>
    %177 = arith.mulf %176, %173 : vector<288x4xf32>
    %178 = arith.select %175, %173, %177 : vector<288x4xi1>, vector<288x4xf32>
    %179 = arith.truncf %178 : vector<288x4xf32> to vector<288x4xbf16>
    %c0_147 = arith.constant 0 : index
    %c0_148 = arith.constant 0 : index
    %c0_149 = arith.constant 0 : index
    %180 = vector.load %arg11[%c0_147, %c0_148, %c0_149] : memref<1x288x4xbf16, #tpu.memory_space<vmem>>, vector<1x288x4xbf16>
    %181 = vector.shape_cast %180 : vector<1x288x4xbf16> to vector<288x4xbf16>
    %182 = vector.shape_cast %179 : vector<288x4xbf16> to vector<1x288x4xbf16>
    tpu.vector_store %arg11[%c0_147, %c0_148, %c0_149], %182 {strides = array<i32>} : memref<1x288x4xbf16, #tpu.memory_space<vmem>>, vector<1x288x4xbf16>,
    return
  }
  func.func @transform_0(%arg0: i32) -> (i32, i32, i32) {
    %c0_i32 = arith.constant 0 : i32
    %c0_i32_0 = arith.constant 0 : i32
    %c0_i32_1 = arith.constant 0 : i32
    return %arg0, %c0_i32, %c0_i32_0 : i32, i32, i32
  }
  func.func @transform_1(%arg0: i32) -> (i32, i32, i32) {
    %c0_i32 = arith.constant 0 : i32
    %c0_i32_0 = arith.constant 0 : i32
    %c0_i32_1 = arith.constant 0 : i32
    return %arg0, %c0_i32, %c0_i32_0 : i32, i32, i32
  }
  func.func @transform_2(%arg0: i32) -> (i32, i32) {
    %c0_i32 = arith.constant 0 : i32
    %c0_i32_0 = arith.constant 0 : i32
    %c0_i32_1 = arith.constant 0 : i32
    return %c0_i32, %c0_i32_0 : i32, i32
  }
  func.func @transform_3(%arg0: i32) -> (i32, i32) {
    %c0_i32 = arith.constant 0 : i32
    %c0_i32_0 = arith.constant 0 : i32
    %c0_i32_1 = arith.constant 0 : i32
    return %c0_i32, %c0_i32_0 : i32, i32
  }
  func.func @transform_4(%arg0: i32) -> (i32, i32) {
    %c0_i32 = arith.constant 0 : i32
    %c0_i32_0 = arith.constant 0 : i32
    %c0_i32_1 = arith.constant 0 : i32
    return %c0_i32, %c0_i32_0 : i32, i32
  }
  func.func @transform_5(%arg0: i32) -> (i32, i32) {
    %c0_i32 = arith.constant 0 : i32
    %c0_i32_0 = arith.constant 0 : i32
    %c0_i32_1 = arith.constant 0 : i32
    return %c0_i32, %c0_i32_0 : i32, i32
  }
  func.func @transform_6(%arg0: i32) -> (i32, i32) {
    %c0_i32 = arith.constant 0 : i32
    %c0_i32_0 = arith.constant 0 : i32
    %c0_i32_1 = arith.constant 0 : i32
    return %c0_i32, %c0_i32_0 : i32, i32
  }
  func.func @transform_7(%arg0: i32) -> (i32, i32) {
    %c0_i32 = arith.constant 0 : i32
    %c0_i32_0 = arith.constant 0 : i32
    %c0_i32_1 = arith.constant 0 : i32
    return %c0_i32, %c0_i32_0 : i32, i32
  }
  func.func @transform_8(%arg0: i32) -> (i32, i32) {
    %c0_i32 = arith.constant 0 : i32
    %c0_i32_0 = arith.constant 0 : i32
    %c0_i32_1 = arith.constant 0 : i32
    return %c0_i32, %c0_i32_0 : i32, i32
  }
  func.func @transform_9(%arg0: i32) -> (i32, i32) {
    %c0_i32 = arith.constant 0 : i32
    %c0_i32_0 = arith.constant 0 : i32
    %c0_i32_1 = arith.constant 0 : i32
    return %c0_i32, %c0_i32_0 : i32, i32
  }
  func.func @transform_10(%arg0: i32) -> (i32, i32, i32) {
    %c0_i32 = arith.constant 0 : i32
    %c0_i32_0 = arith.constant 0 : i32
    %c0_i32_1 = arith.constant 0 : i32
    return %arg0, %c0_i32, %c0_i32_0 : i32, i32, i32
  }
}

</mosaic_0001>

<bundles_post_ra>
// kernel: tile.8
= control target key start
LH: loop header
LB: loop body
LE: loop exit
PB: predicated region body
PF: predicated region fallthrough
CT: control target
= control target key end

     0   :  { %s22_s0 = inlined_call_operand.vmem [shape: f32[4], index: 0, kind: input, shape index: {}]   ;;  %s23_s1 = inlined_call_operand.vmem [shape: f32[4,4], index: 1, kind: output, shape index: {}]  }
   0x1   :  { %v4_v0 = vld [vmem:[%s22_s0] ss:$0 sm:$0xff] }
   0x2   :  { %5 = vst [vmem:[%s23_s1] sm:$0xf] %v4_v0 }

// kernel: tile.0
= control target key start
LH: loop header
LB: loop body
LE: loop exit
PB: predicated region body
PF: predicated region fallthrough
CT: control target
= control target key end

     0   :  { %s34_s8 = smov 125   ;;  %vm7_vm0 = vcmask 7168   ;;  %s35_s11 = smov 126   ;;  %s61_s0 = inlined_call_operand.vmem [shape: f32[4,4], index: 0, kind: input, shape index: {}]   ;;  %s62_s1 = inlined_call_operand.vmem [shape: f32[16,1], index: 1, kind: output, shape index: {}]  }
   0x1   :  { %v4_v0 = vld [vmem:[%s61_s0] sm:$0xf]  ;;  %s33_s0 = smov 127  }
   0x2   :  { %5 = vst [vmem:[#allocation0] sm:$0xf] %v4_v0 }
   0x9   :  { %v9_v1 = vld [vmem:[#allocation0] sm:$0xf]  }
   0xa   :  { %v21_v2 = vld [vmem:[#allocation0] sm:$0xf]   ;;  %10 = vrot.lane.b32.xlu0 %v9_v1, %s33_s0 }
   0xb   :  { %22 = vrot.lane.b32.xlu1 %v21_v2, %s34_s8  ;;  %v6_v3 = vld [vmem:[#allocation0] sm:$0xf]  }
   0xc   :  { %v15_v4 = vld [vmem:[#allocation0] sm:$0xf]   ;;  %8 = vst.msk [vmem:[%s62_s1] ss:$4 sm:$0xf] %vm7_vm0, %v6_v3  }
   0xe   :  { %16 = vrot.lane.b32.xlu0 %v15_v4, %s35_s11 }
  0x7c   :  { %v11_v5 = vpop.permute.xlu0 %10  }
  0x7d   :  { %v23_v6 = vpop.permute.xlu1 %22   ;;  %27 = vst.msk [vmem:[%s62_s1 + $0x1] ss:$4 sm:$0xf] %vm7_vm0, %v11_v5  }
  0x7e   :  { %29 = vst.msk [vmem:[%s62_s1 + $0x3] ss:$4 sm:$0xf] %vm7_vm0, %v23_v6  }
  0x80   :  { %v17_v7 = vpop.permute.xlu0 %16  }
  0x81   :  { %28 = vst.msk [vmem:[%s62_s1 + $0x2] ss:$4 sm:$0xf] %vm7_vm0, %v17_v7  }

// kernel: upcat_forward.2
= control target key start
LH: loop header
LB: loop body
LE: loop exit
PB: predicated region body
PF: predicated region fallthrough
CT: control target
= control target key end

     0   :  { %s461_s12 = smov 0   ;;  %s463_s13 = smov 0   ;;  %s503_s0 = inlined_call_operand.vmem [shape: bf16[2,8,64], index: 0, kind: input, shape index: {}]   ;;  %s504_s1 = inlined_call_operand.vmem [shape: bf16[16,8], index: 1, kind: input, shape index: {}]   ;;  %s505_s2 = inlined_call_operand.vmem [shape: f32[16,1], index: 2, kind: input, shape index: {}]   ;;  %s506_s3 = inlined_call_operand.vmem [shape: bf16[2,16,64], index: 3, kind: output, shape index: {}]  }
   0x1   :  { %s465_s14 = smov 0  }
   0x2 LB: > { %s25_s15 = sadd.s32 1, %s432_s13  ;;  %p364_p0 = scmp.ge.s32.totalorder %s436_s14, 1  ;;  %s436_s14 = sphi %s465_s14, %s13_s14   ;;  %s432_s13 = sphi %s463_s13, %s508_s13   ;;  %s428_s12 = sphi %s461_s12, %s507_s12  }
   0x3   : > { %p27_p1 = scmp.ge.s32.totalorder %s25_s15, 2  ;;  %p155_p2 = scmp.lt.s32.totalorder %s436_s14, 3 }
   0x5   : > { %s510_s15 = smov (%p27_p1, %s25_s15), 0  ;;  %p156_p3 = pnand %p364_p0, %p155_p2 }
   0x6   : > { %p184_p4 = scmp.lt.s32.totalorder (!%p156_p3), %s428_s12, 1  ;;  %v438_v0 = vmov (!%p156_p3), 0.0   ;;  %vm439_vm0 = vmmov (!%p156_p3), 0   ;;  %v203_v1 = vld [vmem:[%s505_s2] sm:$0xff] (!%p156_p3)  ;;  %v440_v2 = vmov (!%p156_p3), 0   ;;  %vm224_vm1 = vcmask (!%p156_p3), 1043456  }
   0x7   : > { %159 = sbr.rel (%p156_p3) target bundleno = 241 (0xf1), region = 32  ;;  %379 = vmatprep.subr.bf16.mxu0 (!%p156_p3), %v438_v0  ;;  %381 = vmatprep.mubr.msk.bf16.mxu0 (!%p156_p3), %vm439_vm0, %v438_v0  ;;  %v204_v3 = vld [vmem:[%s505_s2 + $0x8] sm:$0xff] (!%p156_p3)  ;;  %v413_v6 = vld [vmem:[%s504_s1] sm:$0xff] (!%p156_p3)   ;;  %vm220_vm2 = vcmask (!%p156_p3), 64512   ;;  %vm277_vm3 = vcmask (!%p156_p3), 519168  }
   0x8   : > { %412 = vset.pattern.permute.xlu0 (!%p156_p3), %v440_v2 }
   0x9   : > { %207 = vperm.xlu0 (!%p156_p3), %412, %v203_v1  }
   0xd   : > { %212 = vperm.xlu0 (!%p156_p3), %412, %v204_v3  }
   0xe   : > { %s512_s12 = smov (!%p184_p4, %s428_s12), 1 }
   0xf   : > { %s365_s18 = sshll.u32 %s512_s12, 2  ;;  %s374_s26 = sshll.u32 %s512_s12, 3 }
  0x10   : > { %s190_s23 = scalar_lea.vmem %s503_s0, %s365_s18  ;;  %s198_s29 = scalar_lea.vmem %s506_s3, %s374_s26 }
  0x11   : > { %v202_v4 = vld [vmem:[%s190_s23] sm:$0xf] }
  0x12   : > { %v226_v5 = vsel %vm224_vm1, %v202_v4, 0 }
  0x13   : > { %380 = vmatpush3.bf16.msra.mxu0 %v226_v5 }
  0x16   : > { %382 = vmatmul.mubr.msk.bf16.vlgmr.msra.gmra.mrb[0].mxu0 %vm220_vm2, %v413_v6 }
  0x88   : > { %v208_v7 = vpop.permute.xlu0 %207 }
  0x8c   : > { %v213_v11 = vpop.permute.xlu0 %212 }
  0xe9   : > { %v262_v8 = vpop.f32.mrb[0].mxu0 }
  0xea   : > { %v263_v9 = vadd.f32 %v262_v8, %v208_v7  ;;  %v383_v10 = vpop.f32.mrb[1].mxu0 }
  0xeb   : > { %v265_v12 = vpop.f32.mrb[2].mxu0 }
  0xec   : > { %v375_v13 = vpack.c.bf16 %v263_v9, %v263_v9  ;;  %v266_v14 = vadd.f32 %v265_v12, %v213_v11  ;;  %v384_v15 = vpop.f32.mrb[3].mxu0 }
  0xee   : > { %278 = vst.msk [vmem:[%s198_s29] sm:$0xf] %vm277_vm3, %v375_v13  ;;  %v376_v16 = vpack.c.bf16 %v266_v14, %v266_v14 }
  0xf0   : > { %279 = vst.msk [vmem:[%s198_s29 + $0x4] sm:$0xf] %vm277_vm3, %v376_v16 }
  0xf1 PF: > { %s13_s14 = sadd.s32 1, %s436_s14   ;;  %s507_s12 = smov %s432_s13 }
  0xf2   : > { %p10_p5 = scmp.ge.s32.totalorder %s13_s14, 4   ;;  %s508_s13 = smov %s510_s15 }
  0xf4   :  { %12 = sbr.rel (!%p10_p5) target bundleno = 2 (0x2), region = 62 }

// kernel: upcat_forward.3
= control target key start
LH: loop header
LB: loop body
LE: loop exit
PB: predicated region body
PF: predicated region fallthrough
CT: control target
= control target key end

     0   :  { %s12596_s13 = smov 0   ;;  %s19037_s0 = inlined_call_operand.vmem [shape: bf16[2,342,4], index: 0, kind: input, shape index: {}]   ;;  %s19038_s1 = inlined_call_operand.vmem [shape: bf16[2,342,4], index: 1, kind: input, shape index: {}]   ;;  %s19039_s2 = inlined_call_operand.vmem [shape: bf16[72,4], index: 2, kind: input, shape index: {}]   ;;  %s19040_s3 = inlined_call_operand.vmem [shape: f32[1,4], index: 3, kind: input, shape index: {}]   ;;  %s19041_s4 = inlined_call_operand.vmem [shape: f32[1,4], index: 4, kind: input, shape index: {}]   ;;  %s19042_s5 = inlined_call_operand.vmem [shape: f32[1,4], index: 5, kind: input, shape index: {}]   ;;  %s19043_s6 = inlined_call_operand.vmem [shape: bf16[36,4], index: 6, kind: input, shape index: {}]   ;;  %s19044_s7 = inlined_call_operand.vmem [shape: f32[1,4], index: 7, kind: input, shape index: {}]   ;;  %s19045_s8 = inlined_call_operand.vmem [shape: f32[1,4], index: 8, kind: input, shape index: {}]   ;;  %s19046_s9 = inlined_call_operand.vmem [shape: f32[1,4], index: 9, kind: input, shape index: {}]   ;;  %s19047_s10 = inlined_call_operand.vmem [shape: bf16[2,288,4], index: 10, kind: output, shape index: {}]  }
   0x1 LB: > { %s11005_s14 = sadd.s32 4294967295, %s12520_s13   ;;  %p11009_p0 = scmp.ge.s32.totalorder %s12520_s13, 1  ;;  %s12520_s13 = sphi %s12596_s13, %s20_s13  }
   0x2   : > { %p322_p1 = scmp.lt.s32.totalorder %s12520_s13, 3 }
   0x4   : > { %p323_p2 = pnand %p11009_p0, %p322_p1 }
   0x6   : > { %326 = sbr.rel (%p323_p2) target bundleno = 2082 (0x822), region = 60 }
   0xd   : > { %p365_p3 = scmp.lt.s32.totalorder %s11005_s14, 1  ;;  %vm19103_vm0 = vcmask 1046528   ;;  %s19078_s22 = smov 4   ;;  %vm19076_vm1 = vsmask.f32 7424  ;;  %vm19087_vm3 = vcmask 1045504  }
   0xe   : > { %s19084_s23 = smov 16   ;;  %s19052_s24 = smov 20   ;;  %vm19102_vm2 = vsmask.f32 6400  ;;  %vm19086_vm4 = vsmask.f32 5376 }
   0xf   : > { %s20265_s14 = smov (!%p365_p3, %s11005_s14), 1  ;;  %s12525_s25 = smov 8   ;;  %vm19144_vm5 = vcmask 31744   ;;  %vm19088_vm6 = vcmask 1044480   ;;  %vm19056_vm7 = vcmask 64544   ;;  %vm19058_vm8 = vcmask 97344  }
  0x10   : > { %s11889_s15 = smul.u32 172, %s20265_s14  ;;  %s12526_s26 = smov 12   ;;  %vm19089_vm9 = vcmask 130144   ;;  %vm19059_vm10 = vcmask 162944   ;;  %vm19060_vm11 = vcmask 195744   ;;  %vm19061_vm12 = vcmask 228544  }
  0x11   : > { %s12527_s27 = smov 24   ;;  %s19054_s28 = smov 28   ;;  %vm19062_vm13 = vcmask 261344   ;;  %vm19068_vm14 = vcmask 294144   ;;  %vm19057_vm15 = vcmask 326944  }
  0x12   : > { %s12610_s18 = scalar_lea.vmem %s19038_s1, %s11889_s15  ;;  %s12615_s21 = scalar_lea.vmem %s19037_s0, %s11889_s15 }
  0x13   : > { %v11990_v0 = vld [vmem:[%s12610_s18] sm:$0xff]   ;;  %v11991_v1 = vld [vmem:[%s12615_s21 + $0x8] sm:$0xff]   ;;  %v12621_v2 = vld [vmem:[%s12615_s21 + $0x10] sm:$0xff]   ;;  %s19048_s29 = smov 32   ;;  %s12530_s30 = smov 36  }
  0x14   : > { %1391 = vrot.lane.b32.xlu0 %v11990_v0, %s19078_s22  ;;  %v11993_v3 = vld [vmem:[%s12610_s18 + $0x8] sm:$0xff]   ;;  %v2299_v4 = vrot.slane %v11991_v1, 1  ;;  %v2301_v5 = vrot.slane %v12621_v2, 1  ;;  %v12631_v8 = vld [vmem:[%s12610_s18 + $0x10] sm:$0xff]   ;;  %v11996_v10 = vld [vmem:[%s12615_s21] sm:$0xfe]  }
  0x15   : > { %v11994_v6 = vld [vmem:[%s12610_s18 + $0x8] sm:$0xff]   ;;  %v11997_v11 = vld [vmem:[%s12615_s21] sm:$0xff]   ;;  %v2541_v12 = vrot.slane %v12631_v8, 1  ;;  %v2298_v14 = vrot.slane %v11996_v10, 1  ;;  %v12639_v17 = vld [vmem:[%s12615_s21 + $0x10] sm:$0xff]   ;;  %s19071_s11 = smov 40  }
  0x16   : > { %v2302_v7 = vsel %vm19103_vm0, %v2299_v4, %v2301_v5  ;;  %v2539_v9 = vrot.slane %v11994_v6, 1  ;;  %v11998_v13 = vld [vmem:[%s12615_s21 + $0x8] sm:$0xff]   ;;  %v1596_v15 = vshrl.u32 %v11997_v11, 16  ;;  %v1598_v16 = vshll.u32 %v11997_v11, 16  ;;  %v11999_v23 = vld [vmem:[%s12610_s18] sm:$0xfe]  }
  0x17   : > { %2337 = vrot.lane.b32.xlu1 %v2302_v7, %s19084_s23  ;;  %v1603_v19 = vshll.u32 %v11998_v13, 16  ;;  %v1607_v20 = vshrl.u32 %v11998_v13, 16  ;;  %v2300_v21 = vsel %vm19103_vm0, %v2298_v14, %v2299_v4  ;;  %v1611_v24 = vshll.u32 %v12639_v17, 16  ;;  %v12001_v26 = vld [vmem:[%s12610_s18] sm:$0xff]   ;;  %v12002_v31 = vld [vmem:[%s12610_s18 + $0x8] sm:$0xff]   ;;  %v12654_v34 = vld [vmem:[%s12610_s18 + $0x10] sm:$0xff]  }
  0x18   : > { %1393 = vrot.lane.b32.xlu0 %v11993_v3, %s19078_s22  ;;  %v2542_v18 = vsel %vm19103_vm0, %v2539_v9, %v2541_v12  ;;  %v1600_v22 = vrot.slane %v1598_v16, 1  ;;  %v2538_v28 = vrot.slane %v11999_v23, 1  ;;  %v1947_v32 = vshrl.u32 %v12001_v26, 16  ;;  %v12005_v40 = vld [vmem:[%s12615_s21 + $0x10] sm:$0xff]   ;;  %v12665_v43 = vld [vmem:[%s12615_s21 + $0x18] sm:$0xff]   ;;  %s19069_s12 = smov 44  }
  0x19   : > { %v1605_v25 = vrot.slane %v1603_v19, 1  ;;  %v12650_v29 = vrot.slane %v1611_v24, 1  ;;  %v1949_v33 = vshll.u32 %v12001_v26, 16  ;;  %v1954_v38 = vshll.u32 %v12002_v31, 16  ;;  %v12004_v46 = vld [vmem:[%s12615_s21 + $0x8] sm:$0xfe]  }
  0x1a   : > { %v1601_v27 = vor.u32 %v1600_v22, %v1596_v15  ;;  %v2540_v36 = vsel %vm19103_vm0, %v2538_v28, %v2539_v9  ;;  %v1958_v39 = vshrl.u32 %v12002_v31, 16  ;;  %v1962_v42 = vshll.u32 %v12654_v34, 16  ;;  %v12008_v53 = vld [vmem:[%s12610_s18 + $0x10] sm:$0xff]   ;;  %v12007_v54 = vld [vmem:[%s12610_s18 + $0x8] sm:$0xfe]   ;;  %v12680_v58 = vld [vmem:[%s12610_s18 + $0x18] sm:$0xff]  }
  0x1b   : > { %2577 = vrot.lane.b32.xlu1 %v2542_v18, %s19052_s24  ;;  %v1609_v30 = vor.u32 %v1607_v20, %v1605_v25  ;;  %v1951_v37 = vrot.slane %v1949_v33, 1  ;;  %v1956_v45 = vrot.slane %v1954_v38, 1  ;;  %v2779_v47 = vrot.slane %v12005_v40, 1  ;;  %v12011_v60 = vld [vmem:[%s12615_s21 + $0x10] sm:$0xff]   ;;  %v12010_v62 = vld [vmem:[%s12615_s21 + $0x8] sm:$0xfe]  }
  0x1c   : > { %2335 = vrot.lane.b32.xlu0 %v2300_v21, %s19084_s23  ;;  %v1606_v35 = vsel %vm19076_vm1, %v1601_v27, %v1605_v25  ;;  %v12668_v48 = vrot.slane %v1962_v42, 1  ;;  %v2781_v49 = vrot.slane %v12665_v43, 1  ;;  %v2778_v52 = vrot.slane %v12004_v46, 1  ;;  %v12013_v10 = vld [vmem:[%s12615_s21 + $0x18] sm:$0xff]   ;;  %v12015_v11 = vld [vmem:[%s12610_s18 + $0x10] sm:$0xff]   ;;  %s19065_s15 = smov 48  }
  0x1d   : > { %v1614_v41 = vsel %vm19076_vm1, %v1609_v30, %v12650_v29  ;;  %v1952_v44 = vor.u32 %v1951_v37, %v1947_v32  ;;  %v1960_v51 = vor.u32 %v1958_v39, %v1956_v45  ;;  %v3019_v57 = vrot.slane %v12008_v53, 1  ;;  %v12014_v20 = vld [vmem:[%s12610_s18 + $0x8] sm:$0xfe]   ;;  %v12012_v24 = vld [vmem:[%s12610_s18 + $0x10] sm:$0xff]   ;;  %v12017_v30 = vld [vmem:[%s12615_s21 + $0x18] sm:$0xff]   ;;  %s19050_s16 = smov 52  }
  0x1e   : > { %v2780_v56 = vsel %vm19103_vm0, %v2778_v52, %v2779_v47  ;;  %v3018_v59 = vrot.slane %v12007_v54, 1  ;;  %v3021_v61 = vrot.slane %v12680_v58, 1  ;;  %v2782_v63 = vsel %vm19103_vm0, %v2779_v47, %v2781_v49  ;;  %v12018_v39 = vld [vmem:[%s12610_s18 + $0x18] sm:$0xff]   ;;  %v12020_v42 = vld [vmem:[%s12615_s21 + $0x10] sm:$0xff]   ;;  %v12712_v47 = vld [vmem:[%s12615_s21 + $0x20] sm:$0xff]   ;;  %s19082_s17 = smov 56  }
  0x1f   : > { %1743 = vrot.lane.b32.xlu1 %v1606_v35, %s12525_s25  ;;  %v1957_v50 = vsel %vm19076_vm1, %v1952_v44, %v1956_v45  ;;  %v1965_v55 = vsel %vm19076_vm1, %v1960_v51, %v12668_v48  ;;  %v3268_v0 = vshrl.u32 %v12011_v60, 16  ;;  %v3271_v1 = vshll.u32 %v12011_v60, 16  ;;  %v12019_v52 = vld [vmem:[%s12615_s21 + $0x8] sm:$0xfc]   ;;  %s19080_s19 = smov 60   ;;  %s12537_s20 = smov 64  }
  0x20   : > { %2575 = vrot.lane.b32.xlu0 %v2540_v36, %s19052_s24  ;;  %v3020_v3 = vsel %vm19103_vm0, %v3018_v59, %v3019_v57  ;;  %v3260_v4 = vshrl.u32 %v12010_v62, 16  ;;  %v3263_v6 = vshll.u32 %v12010_v62, 16  ;;  %v3022_v15 = vsel %vm19103_vm0, %v3019_v57, %v3021_v61  ;;  %v12022_v59 = vld [vmem:[%s12610_s18 + $0x18] sm:$0xff]   ;;  %v12813_v8 = vld [vmem:[%s12615_s21 + $0x28] sm:$0xff]  }
  0x21   : > { %v3270_v7 = vrot.slane %v3268_v0, 1  ;;  %v3273_v9 = vrot.slane %v3271_v1, 2  ;;  %v3277_v18 = vshrl.u32 %v12013_v10, 16  ;;  %v3280_v19 = vshll.u32 %v12013_v10, 16  ;;  %v12726_v1 = vld [vmem:[%s12615_s21 + $0x18] sm:$0xff]   ;;  %v12025_v10 = vld [vmem:[%s12610_s18 + $0x10] sm:$0xff]  }
  0x22   : > { %v3262_v13 = vrot.slane %v3260_v4, 1  ;;  %v3265_v14 = vrot.slane %v3263_v6, 2  ;;  %v3641_v22 = vshrl.u32 %v12015_v11, 16  ;;  %v3644_v23 = vshll.u32 %v12015_v11, 16  ;;  %v12737_v11 = vld [vmem:[%s12610_s18 + $0x20] sm:$0xff]  }
  0x23   : > { %1745 = vrot.lane.b32.xlu1 %v1614_v41, %s12525_s25  ;;  %v3274_v16 = vor.u32 %v3273_v9, %v3270_v7  ;;  %v3279_v25 = vrot.slane %v3277_v18, 1  ;;  %v3282_v26 = vrot.slane %v3280_v19, 2  ;;  %v3633_v27 = vshrl.u32 %v12014_v20, 16 }
  0x24   : > { %2094 = vrot.lane.b32.xlu0 %v1957_v50, %s12526_s26  ;;  %v3266_v21 = vor.u32 %v3265_v14, %v3262_v13  ;;  %v3636_v28 = vshll.u32 %v12014_v20, 16  ;;  %v3643_v32 = vrot.slane %v3641_v22, 1  ;;  %v3646_v33 = vrot.slane %v3644_v23, 2  ;;  %v12016_v50 = vld [vmem:[%s12610_s18 + $0x18] sm:$0xff]  }
  0x25   : > { %v12704_v35 = vor.u32 %v3282_v26, %v3279_v25  ;;  %v3635_v36 = vrot.slane %v3633_v27, 1  ;;  %v1615_v38 = vshrl.u32 %v12639_v17, 16  ;;  %v1619_v41 = vshll.u32 %v12017_v30, 16  ;;  %v12758_v27 = vld [vmem:[%s12610_s18 + $0x18] sm:$0xff]  }
  0x26   : > { %v3275_v31 = vsel %vm19102_vm2, %v3266_v21, %v3274_v16  ;;  %v3638_v37 = vrot.slane %v3636_v28, 2  ;;  %v3647_v40 = vor.u32 %v3646_v33, %v3643_v32  ;;  %v3650_v46 = vshrl.u32 %v12018_v39, 16  ;;  %v12029_v28 = vld [vmem:[%s12615_s21 + $0x10] sm:$0xfc]   ;;  %v12030_v32 = vld [vmem:[%s12615_s21 + $0x18] sm:$0xff]  }
  0x27   : > { %2096 = vrot.lane.b32.xlu1 %v1965_v55, %s12526_s26  ;;  %v3284_v44 = vsel %vm19102_vm2, %v3274_v16, %v12704_v35  ;;  %v3653_v51 = vshll.u32 %v12018_v39, 16  ;;  %v1617_v53 = vor.u32 %v1615_v38, %v12650_v29  ;;  %v1621_v54 = vrot.slane %v1619_v41, 1  ;;  %v12024_v16 = vld [vmem:[%s12610_s18 + $0x8] sm:$0xfc]   ;;  %v12032_v41 = vld [vmem:[%s12610_s18 + $0x18] sm:$0xff]  }
  0x28   : > { %2815 = vrot.lane.b32.xlu0 %v2780_v56, %s12527_s27  ;;  %v3639_v45 = vor.u32 %v3638_v37, %v3635_v36  ;;  %v3652_v55 = vrot.slane %v3650_v46, 1  ;;  %v1623_v57 = vshrl.u32 %v12017_v30, 16  ;;  %v4007_v60 = vrot.slane %v12020_v42, 2  ;;  %v12769_v37 = vld [vmem:[%s12615_s21 + $0x20] sm:$0xff]   ;;  %v12040_v46 = vld [vmem:[%s12615_s21 + $0x18] sm:$0xff]  }
  0x29   : > { %v3655_v56 = vrot.slane %v3653_v51, 2  ;;  %v1627_v62 = vshll.u32 %v12712_v47, 16  ;;  %v1970_v0 = vshll.u32 %v12022_v59, 16  ;;  %v1622_v29 = vsel %vm19076_vm1, %v1617_v53, %v1621_v54  ;;  %v12034_v51 = vld [vmem:[%s12610_s18 + $0x10] sm:$0xfc]  }
  0x2a   : > { %v3648_v17 = vsel %vm19102_vm2, %v3639_v45, %v3647_v40  ;;  %v1966_v4 = vshrl.u32 %v12654_v34, 16  ;;  %v1625_v7 = vor.u32 %v1623_v57, %v1621_v54  ;;  %v4009_v14 = vrot.slane %v12726_v1, 2  ;;  %v12782_v45 = vld [vmem:[%s12615_s21 + $0x20] sm:$0xff]  }
  0x2b   : > { %2817 = vrot.lane.b32.xlu1 %v2782_v63, %s12527_s27  ;;  %v12723_v63 = vor.u32 %v3655_v56, %v3652_v55  ;;  %v12733_v9 = vrot.slane %v1627_v62, 1  ;;  %v1972_v13 = vrot.slane %v1970_v0, 1  ;;  %v1974_v19 = vshrl.u32 %v12022_v59, 16  ;;  %v12796_v54 = vld [vmem:[%s12610_s18 + $0x20] sm:$0xff]  }
  0x2c   : > { %3055 = vrot.lane.b32.xlu0 %v3020_v3, %s19054_s28  ;;  %v4006_v3 = vrot.slane %v12019_v52, 2  ;;  %v1978_v20 = vshll.u32 %v12737_v11, 16  ;;  %v4247_v21 = vrot.slane %v12025_v10, 2  ;;  %v4246_v23 = vrot.slane %v12024_v16, 2  ;;  %v12035_v52 = vld [vmem:[%s12610_s18 + $0x18] sm:$0xff]  }
  0x2d   : > { %v3657_v6 = vsel %vm19102_vm2, %v3647_v40, %v12723_v63  ;;  %v1630_v18 = vsel %vm19076_vm1, %v1625_v7, %v12733_v9  ;;  %v1976_v25 = vor.u32 %v1974_v19, %v1972_v13  ;;  %v4249_v36 = vrot.slane %v12758_v27, 2  ;;  %v12043_v7 = vld [vmem:[%s12615_s21 + $0x20] sm:$0xff]   ;;  %v12044_v16 = vld [vmem:[%s12610_s18 + $0x10] sm:$0xfc]  }
  0x2e   : > { %v4008_v34 = vsel %vm19087_vm3, %v4006_v3, %v4007_v60  ;;  %v12755_v26 = vrot.slane %v1978_v20, 1  ;;  %v4248_v30 = vsel %vm19087_vm3, %v4246_v23, %v4247_v21  ;;  %v4486_v38 = vrot.slane %v12029_v28, 2  ;;  %v12805_v3 = vld [vmem:[%s12610_s18 + $0x20] sm:$0xff]  }
  0x2f   : > { %3057 = vrot.lane.b32.xlu1 %v3022_v15, %s19054_s28  ;;  %v1968_v15 = vor.u32 %v1966_v4, %v12668_v48  ;;  %v12027_v48 = vld [vmem:[%s12615_s21 + $0x18] sm:$0xff]   ;;  %v4487_v40 = vrot.slane %v12030_v32, 2  ;;  %v4250_v42 = vsel %vm19087_vm3, %v4247_v21, %v4249_v36  ;;  %v4489_v53 = vrot.slane %v12782_v45, 2  ;;  %v13017_v45 = vld [vmem:[%s12615_s21 + $0x30] sm:$0xff]  }
  0x30   : > { %3429 = vrot.lane.b32.xlu0 %v3275_v31, %s19048_s29  ;;  %v2303_v31 = vrot.slane %v12027_v48, 1  ;;  %v1981_v33 = vsel %vm19076_vm1, %v1976_v25, %v12755_v26  ;;  %v4976_v55 = vshrl.u32 %v12040_v46, 16  ;;  %v4979_v56 = vshll.u32 %v12040_v46, 16  ;;  %v12045_v21 = vld [vmem:[%s12610_s18 + $0x18] sm:$0xff]   ;;  %v12047_v25 = vld [vmem:[%s12615_s21 + $0x20] sm:$0xff]  }
  0x31   : > { %v1973_v22 = vsel %vm19076_vm1, %v1968_v15, %v1972_v13  ;;  %v4488_v2 = vsel %vm19087_vm3, %v4486_v38, %v4487_v40  ;;  %v4726_v62 = vrot.slane %v12034_v51, 2  ;;  %v4727_v0 = vrot.slane %v12035_v52, 2 }
  0x32   : > { %v2304_v39 = vsel %vm19103_vm0, %v2301_v5, %v2303_v31  ;;  %v2543_v5 = vrot.slane %v12032_v41, 1  ;;  %v4490_v4 = vsel %vm19087_vm3, %v4487_v40, %v4489_v53  ;;  %v4978_v10 = vrot.slane %v4976_v55, 2  ;;  %v12048_v41 = vld [vmem:[%s12610_s18 + $0x20] sm:$0xff]  }
  0x33   : > { %1395 = vrot.lane.b32.xlu1 %v12012_v24, %s19078_s22  ;;  %v4010_v24 = vsel %vm19087_vm3, %v4007_v60, %v4009_v14  ;;  %v4981_v13 = vrot.slane %v4979_v56, 3  ;;  %v4729_v20 = vrot.slane %v12805_v3, 2  ;;  %v4985_v23 = vshrl.u32 %v12043_v7, 16 }
  0x34   : > { %3431 = vrot.lane.b32.xlu0 %v3284_v44, %s19048_s29  ;;  %v2305_v44 = vrot.slane %v12769_v37, 1  ;;  %v2544_v60 = vsel %vm19103_vm0, %v2541_v12, %v2543_v5  ;;  %v12816_v12 = vld [vmem:[%s12610_s18 + $0x20] sm:$0xff]   ;;  %v4988_v48 = vshll.u32 %v12043_v7, 16  ;;  %v5341_v32 = vshrl.u32 %v12044_v16, 16 }
  0x35   : > { %v5344_v38 = vshll.u32 %v12044_v16, 16  ;;  %v5352_v40 = vshll.u32 %v12045_v21, 16  ;;  %v4987_v46 = vrot.slane %v4985_v23, 2  ;;  %v3289_v52 = vshll.u32 %v12047_v25, 16 }
  0x36   : > { %v5343_v43 = vrot.slane %v5341_v32, 2  ;;  %v5358_v56 = vshrl.u32 %v12048_v41, 16 }
  0x37   : > { %3802 = vrot.lane.b32.xlu1 %v3648_v17, %s12530_s30  ;;  %v2306_v17 = vsel %vm19103_vm0, %v2303_v31, %v2305_v44  ;;  %v3023_v31 = vrot.slane %v12816_v12, 1  ;;  %v5354_v55 = vrot.slane %v5352_v40, 3  ;;  %v12050_v12 = vld [vmem:[%s12615_s21 + $0x18] sm:$0xff]  }
  0x38   : > { %1397 = vrot.lane.b32.xlu0 %v12016_v50, %s19078_s22  ;;  %v12039_v50 = vld [vmem:[%s12615_s21 + $0x10] sm:$0xfc]  }
  0x39   : > { %v4968_v57 = vshrl.u32 %v12039_v50, 16  ;;  %v4971_v59 = vshll.u32 %v12039_v50, 16  ;;  %v4990_v50 = vrot.slane %v4988_v48, 3 }
  0x3b   : > { %1747 = vrot.lane.b32.xlu1 %v1622_v29, %s12525_s25  ;;  %v12037_v29 = vld [vmem:[%s12615_s21 + $0x20] sm:$0xff]   ;;  %v4973_v15 = vrot.slane %v4971_v59, 3  ;;  %v12848_v59 = vor.u32 %v4990_v50, %v4987_v46 }
  0x3c   : > { %3804 = vrot.lane.b32.xlu0 %v3657_v6, %s12530_s30  ;;  %v2545_v6 = vrot.slane %v12796_v54, 1  ;;  %v2783_v19 = vrot.slane %v12037_v29, 1  ;;  %v3291_v29 = vrot.slane %v3289_v52, 2  ;;  %v12879_v46 = vld [vmem:[%s12615_s21 + $0x20] sm:$0xff]   ;;  %v12055_v52 = vld [vmem:[%s12610_s18 + $0x10] sm:$0xf8]  }
  0x3d   : > { %v12051_v50 = vld [vmem:[%s12610_s18 + $0x20] sm:$0xff]  }
  0x3f   : > { %4043 = vrot.lane.b32.xlu1 %v4008_v34, %s19071_s11  ;;  %v4970_v34 = vrot.slane %v4968_v57, 2 }
  0x40   : > { %1749 = vrot.lane.b32.xlu0 %v1630_v18, %s12525_s25  ;;  %v4728_v18 = vsel %vm19087_vm3, %v4726_v62, %v4727_v0 }
  0x41   : > { %v4974_v28 = vor.u32 %v4973_v15, %v4970_v34  ;;  %v12052_v34 = vld [vmem:[%s12615_s21 + $0x28] sm:$0xff]  }
  0x43   : > { %2098 = vrot.lane.b32.xlu1 %v1973_v22, %s12526_s26  ;;  %v2546_v22 = vsel %vm19103_vm0, %v2543_v5, %v2545_v6  ;;  %v3286_v5 = vshrl.u32 %v12047_v25, 16 }
  0x44   : > { %4045 = vrot.lane.b32.xlu0 %v4010_v24, %s19071_s11  ;;  %v2785_v24 = vrot.slane %v12813_v8, 1 }
  0x46   : > { %v2786_v57 = vsel %vm19103_vm0, %v2783_v19, %v2785_v24 }
  0x47   : > { %4283 = vrot.lane.b32.xlu1 %v4248_v30, %s19069_s12  ;;  %v4982_v30 = vor.u32 %v4981_v13, %v4978_v10  ;;  %v5360_v13 = vrot.slane %v5358_v56, 2  ;;  %v5717_v56 = vrot.slane %v12879_v46, 3 }
  0x48   : > { %2100 = vrot.lane.b32.xlu0 %v1981_v33, %s12526_s26  ;;  %v2784_v33 = vsel %vm19103_vm0, %v2781_v49, %v2783_v19  ;;  %v5346_v49 = vrot.slane %v5344_v38, 3  ;;  %v12049_v19 = vld [vmem:[%s12615_s21 + $0x10] sm:$0xf8]  }
  0x49   : > { %v4983_v51 = vsel %vm19086_vm4, %v4974_v28, %v4982_v30  ;;  %v4992_v15 = vsel %vm19086_vm4, %v4982_v30, %v12848_v59  ;;  %v12063_v30 = vld [vmem:[%s12615_s21] sm:$0xff]   ;;  %v5714_v32 = vrot.slane %v12049_v19, 3  ;;  %v12913_v19 = vld [vmem:[%s12615_s21 + $0x30] sm:$0xff]  }
  0x4a   : > { %v5347_v7 = vor.u32 %v5346_v49, %v5343_v43  ;;  %1247 = vst.msk [vmem:[#allocation2] sm:$0xff] %vm19144_vm5, %v12063_v30  ;;  %v12059_v49 = vld [vmem:[%s12610_s18 + $0x28] sm:$0xff]   ;;  %v12081_v30 = vld [vmem:[%s12615_s21 + $0x10] sm:$0xff]  }
  0x4b   : > { %2339 = vrot.lane.b32.xlu1 %v2304_v39, %s19084_s23  ;;  %v5349_v39 = vshrl.u32 %v12045_v21, 16  ;;  %v3295_v21 = vshrl.u32 %v12052_v34, 16  ;;  %1249 = vst.msk [vmem:[#allocation2 + $0x10] sm:$0xff] %vm19144_vm5, %v12081_v30  ;;  %v12075_v30 = vld [vmem:[%s12610_s18 + $0x28] sm:$0xff]  }
  0x4c   : > { %4285 = vrot.lane.b32.xlu0 %v4250_v42, %s19069_s12  ;;  %v4730_v42 = vsel %vm19087_vm3, %v4727_v0, %v4729_v20  ;;  %v3288_v0 = vrot.slane %v3286_v5, 1  ;;  %v12066_v5 = vld [vmem:[%s12615_s21 + $0x8] sm:$0xff]  }
  0x4d   : > { %v3297_v38 = vrot.slane %v3295_v21, 1  ;;  %1248 = vst.msk [vmem:[#allocation2 + $0x8] sm:$0xff] %vm19144_vm5, %v12066_v5  ;;  %v12084_v5 = vld [vmem:[%s12615_s21 + $0x18] sm:$0xff]  }
  0x4e   : > { %1250 = vst.msk [vmem:[#allocation2 + $0x18] sm:$0xff] %vm19144_vm5, %v12084_v5 }
  0x4f   : > { %4523 = vrot.lane.b32.xlu1 %v4488_v2, %s19065_s15  ;;  %v12840_v2 = vld [vmem:[%s12610_s18 + $0x28] sm:$0xff]  }
  0x50   : > { %2341 = vrot.lane.b32.xlu0 %v2306_v17, %s19084_s23  ;;  %v5351_v17 = vrot.slane %v5349_v39, 2  ;;  %v3025_v62 = vrot.slane %v12840_v2, 1 }
  0x52   : > { %v5355_v10 = vor.u32 %v5354_v55, %v5351_v17  ;;  %v3026_v23 = vsel %vm19103_vm0, %v3023_v31, %v3025_v62  ;;  %v12058_v55 = vld [vmem:[%s12615_s21 + $0x28] sm:$0xff]  }
  0x53   : > { %2579 = vrot.lane.b32.xlu1 %v2544_v60, %s19052_s24  ;;  %v5361_v60 = vshll.u32 %v12048_v41, 16 }
  0x54   : > { %4525 = vrot.lane.b32.xlu0 %v4490_v4, %s19065_s15  ;;  %v3024_v4 = vsel %vm19103_vm0, %v3021_v61, %v3023_v31  ;;  %v5356_v58 = vsel %vm19086_vm4, %v5347_v7, %v5355_v10  ;;  %v3292_v61 = vor.u32 %v3291_v29, %v3288_v0  ;;  %v1631_v0 = vshrl.u32 %v12712_v47, 16 }
  0x55   : > { %v5363_v16 = vrot.slane %v5361_v60, 3  ;;  %v3668_v29 = vshrl.u32 %v12059_v49, 16 }
  0x56   : > { %v3293_v31 = vsel %vm19102_vm2, %v12704_v35, %v3292_v61 }
  0x57   : > { %4763 = vrot.lane.b32.xlu1 %v4728_v18, %s19050_s16  ;;  %v12053_v18 = vld [vmem:[%s12610_s18 + $0x20] sm:$0xff]   ;;  %v12868_v48 = vor.u32 %v5363_v16, %v5360_v13  ;;  %v1635_v13 = vshll.u32 %v12058_v55, 16  ;;  %v3670_v47 = vrot.slane %v3668_v29, 1  ;;  %v12966_v29 = vld [vmem:[%s12610_s18 + $0x28] sm:$0xff]  }
  0x58   : > { %2581 = vrot.lane.b32.xlu0 %v2546_v22, %s19052_s24  ;;  %v3298_v22 = vshll.u32 %v12052_v34, 16  ;;  %v3659_v25 = vshrl.u32 %v12053_v18, 16  ;;  %v3662_v28 = vshll.u32 %v12053_v18, 16  ;;  %v1633_v18 = vor.u32 %v1631_v0, %v12733_v9  ;;  %v12069_v0 = vld [vmem:[%s12615_s21 + $0x28] sm:$0xff]  }
  0x59   : > { %v5365_v40 = vsel %vm19086_vm4, %v5355_v10, %v12868_v48  ;;  %v5954_v10 = vrot.slane %v12055_v52, 3  ;;  %v1639_v9 = vshrl.u32 %v12058_v55, 16 }
  0x5a   : > { %v3300_v39 = vrot.slane %v3298_v22, 2  ;;  %v3661_v41 = vrot.slane %v3659_v25, 1 }
  0x5b   : > { %2819 = vrot.lane.b32.xlu1 %v2784_v33, %s12527_s27  ;;  %v5715_v33 = vrot.slane %v12050_v12, 3  ;;  %v12060_v12 = vld [vmem:[%s12615_s21 + $0x20] sm:$0xff]  }
  0x5c   : > { %4765 = vrot.lane.b32.xlu0 %v4730_v42, %s19050_s16  ;;  %v3664_v42 = vrot.slane %v3662_v28, 2  ;;  %v12889_v43 = vor.u32 %v3300_v39, %v3297_v38  ;;  %v4011_v22 = vrot.slane %v12060_v12, 2  ;;  %v1643_v28 = vshll.u32 %v12913_v19, 16 }
  0x5d   : > { %v5716_v35 = vsel %vm19088_vm6, %v5714_v32, %v5715_v33  ;;  %v5718_v34 = vsel %vm19088_vm6, %v5715_v33, %v5717_v56  ;;  %v12929_v33 = vld [vmem:[%s12610_s18 + $0x30] sm:$0xff]   ;;  %v1982_v39 = vshrl.u32 %v12737_v11, 16 }
  0x5e   : > { %v3665_v17 = vor.u32 %v3664_v42, %v3661_v41  ;;  %v3302_v60 = vsel %vm19102_vm2, %v3292_v61, %v12889_v43  ;;  %v12064_v61 = vld [vmem:[%s12610_s18 + $0x28] sm:$0xff]   ;;  %v12940_v42 = vrot.slane %v1643_v28, 1  ;;  %v1994_v52 = vshll.u32 %v12929_v33, 16 }
  0x5f   : > { %5137 = vrot.lane.b32.xlu1 %v4983_v51, %s19082_s17  ;;  %v12885_v51 = vld [vmem:[%s12610_s18 + $0x18] sm:$0xff]   ;;  %v1986_v32 = vshll.u32 %v12064_v61, 16  ;;  %v1984_v11 = vor.u32 %v1982_v39, %v12755_v26  ;;  %v12079_v28 = vld [vmem:[%s12615_s21 + $0x28] sm:$0xff]  }
  0x60   : > { %2821 = vrot.lane.b32.xlu0 %v2786_v57, %s12527_s27  ;;  %v5955_v57 = vrot.slane %v12885_v51, 3  ;;  %v3666_v7 = vsel %vm19102_vm2, %v12723_v63, %v3665_v17  ;;  %v1637_v63 = vrot.slane %v1635_v13, 1  ;;  %v4997_v5 = vshll.u32 %v12079_v28, 16 }
  0x61   : > { %v1988_v51 = vrot.slane %v1986_v32, 1 }
  0x62   : > { %v5956_v16 = vsel %vm19088_vm6, %v5954_v10, %v5955_v57  ;;  %v1638_v25 = vsel %vm19076_vm1, %v1633_v18, %v1637_v63  ;;  %v1641_v41 = vor.u32 %v1639_v9, %v1637_v63  ;;  %v12984_v18 = vld [vmem:[%s12615_s21 + $0x30] sm:$0xff]  }
  0x63   : > { %3059 = vrot.lane.b32.xlu1 %v3024_v4, %s19054_s28  ;;  %v3671_v4 = vshll.u32 %v12059_v49, 16  ;;  %v12999_v9 = vld [vmem:[%s12615_s21 + $0x30] sm:$0xff]  }
  0x64   : > { %5139 = vrot.lane.b32.xlu0 %v4992_v15, %s19082_s17 }
  0x65   : > { %v3673_v15 = vrot.slane %v3671_v4, 2 }
  0x67   : > { %5510 = vrot.lane.b32.xlu1 %v5356_v58, %s19080_s19  ;;  %v12057_v58 = vld [vmem:[%s12610_s18 + $0x28] sm:$0xff]   ;;  %v12919_v21 = vor.u32 %v3673_v15, %v3670_v47 }
  0x68   : > { %3061 = vrot.lane.b32.xlu0 %v3026_v23, %s19054_s28  ;;  %v12922_v23 = vld [vmem:[%s12610_s18 + $0x20] sm:$0xff]   ;;  %v12071_v47 = vld [vmem:[%s12615_s21 + $0x28] sm:$0xff]  }
  0x69   : > { %v5957_v38 = vrot.slane %v12922_v23, 3 }
  0x6b   : > { %3433 = vrot.lane.b32.xlu1 %v3293_v31, %s19048_s29  ;;  %v3675_v31 = vsel %vm19102_vm2, %v3665_v17, %v12919_v21  ;;  %v5958_v1 = vsel %vm19088_vm6, %v5955_v57, %v5957_v38  ;;  %v1990_v17 = vshrl.u32 %v12064_v61, 16  ;;  %v1989_v57 = vsel %vm19076_vm1, %v1984_v11, %v1988_v51 }
  0x6c   : > { %5512 = vrot.lane.b32.xlu0 %v5365_v40, %s19080_s19  ;;  %v4012_v40 = vsel %vm19087_vm3, %v4009_v14, %v4011_v22  ;;  %v1646_v14 = vsel %vm19076_vm1, %v1641_v41, %v12940_v42  ;;  %v13013_v41 = vld [vmem:[%s12610_s18 + $0x30] sm:$0xff]  }
  0x6f   : > { %5751 = vrot.lane.b32.xlu1 %v5716_v35, %s12537_s20  ;;  %v12067_v35 = vld [vmem:[%s12610_s18 + $0x20] sm:$0xff]  }
  0x70   : > { %1399 = vrot.lane.b32.xlu0 %v12051_v50, %s19078_s22  ;;  %v12943_v50 = vld [vmem:[%s12615_s21 + $0x28] sm:$0xff]   ;;  %v4251_v26 = vrot.slane %v12067_v35, 2 }
  0x71   : > { %v4013_v49 = vrot.slane %v12943_v50, 2 }
  0x72   : > { %v4252_v12 = vsel %vm19087_vm3, %v4249_v36, %v4251_v26  ;;  %v4491_v36 = vrot.slane %v12071_v47, 2 }
  0x73   : > { %3435 = vrot.lane.b32.xlu1 %v3302_v60, %s19048_s29  ;;  %s12538_s29 = smov 68   ;;  %v12962_v60 = vrot.slane %v1994_v52, 1  ;;  %v4014_v4 = vsel %vm19087_vm3, %v4011_v22, %v4013_v49  ;;  %v4731_v52 = vrot.slane %v12075_v30, 2 }
  0x74   : > { %3806 = vrot.lane.b32.xlu0 %v3666_v7, %s12530_s30  ;;  %v1992_v7 = vor.u32 %v1990_v17, %v1988_v51  ;;  %v4492_v37 = vsel %vm19087_vm3, %v4489_v53, %v4491_v36  ;;  %v4994_v53 = vshrl.u32 %v12079_v28, 16  ;;  %v12083_v51 = vld [vmem:[%s12615_s21 + $0x30] sm:$0xff]  }
  0x75   : > { %v13030_v17 = vld [vmem:[%s12610_s18 + $0x30] sm:$0xff]  }
  0x76   : > { %v1997_v15 = vsel %vm19076_vm1, %v1992_v7, %v12962_v60  ;;  %v5003_v7 = vshrl.u32 %v12083_v51, 16  ;;  %v4733_v47 = vrot.slane %v13030_v17, 2 }
  0x77   : > { %5753 = vrot.lane.b32.xlu1 %v5718_v34, %s12537_s20  ;;  %v2307_v34 = vrot.slane %v12069_v0, 1  ;;  %v4999_v0 = vrot.slane %v4997_v5, 3 }
  0x78   : > { %5991 = vrot.lane.b32.xlu0 %v5956_v16, %s12538_s29  ;;  %v4253_v16 = vrot.slane %v12966_v29, 2  ;;  %v5005_v28 = vrot.slane %v5003_v7, 2  ;;  %v4734_v30 = vsel %vm19087_vm3, %v4731_v52, %v4733_v47 }
  0x79   : > { %v2308_v27 = vsel %vm19103_vm0, %v2305_v44, %v2307_v34 }
  0x7a   : > { %v4254_v22 = vsel %vm19087_vm3, %v4251_v26, %v4253_v16  ;;  %v4996_v26 = vrot.slane %v4994_v53, 2 }
  0x7b   : > { %1401 = vrot.lane.b32.xlu1 %v12057_v58, %s19078_s22  ;;  %v12073_v58 = vld [vmem:[%s12610_s18 + $0x28] sm:$0xff]  }
  0x7c   : > { %1751 = vrot.lane.b32.xlu0 %v1638_v25, %s12525_s25  ;;  %v2309_v25 = vrot.slane %v12984_v18, 1  ;;  %v2547_v44 = vrot.slane %v12073_v58, 1 }
  0x7e   : > { %v2310_v39 = vsel %vm19103_vm0, %v2307_v34, %v2309_v25  ;;  %v2548_v35 = vsel %vm19103_vm0, %v2545_v6, %v2547_v44  ;;  %v2787_v6 = vrot.slane %v13017_v45, 1 }
  0x7f   : > { %3808 = vrot.lane.b32.xlu1 %v3675_v31, %s12530_s30 }
  0x80   : > { %4047 = vrot.lane.b32.xlu0 %v4012_v40, %s19071_s11  ;;  %v4493_v40 = vrot.slane %v12999_v9, 2  ;;  %v13307_v9 = vld [vmem:[%s12610_s18 + $0x40] sm:$0xff]  }
  0x82   : > { %v4494_v11 = vsel %vm19087_vm3, %v4491_v36, %v4493_v40 }
  0x83   : > { %5993 = vrot.lane.b32.xlu1 %v5958_v1, %s12538_s29 }
  0x84   : > { %1753 = vrot.lane.b32.xlu0 %v1646_v14, %s12525_s25  ;;  %v2549_v14 = vrot.slane %v13013_v41, 1  ;;  %v4737_v41 = vrot.slane %v13307_v9, 2  ;;  %v13593_v9 = vld [vmem:[%s12610_s18 + $0x50] sm:$0xff]  }
  0x86   : > { %v1392_v55 = vpop.permute.xlu0 %1391  ;;  %v2550_v34 = vsel %vm19103_vm0, %v2547_v44, %v2549_v14 }
  0x87   : > { %1446 = vst.msk [vmem:[#allocation2] sm:$0xff] %vm19056_vm7, %v1392_v55  ;;  %2102 = vrot.lane.b32.xlu1 %v1989_v57, %s12526_s26  ;;  %v13033_v55 = vld [vmem:[%s12615_s21 + $0x38] sm:$0xff]   ;;  %v12085_v57 = vld [vmem:[%s12610_s18 + $0x28] sm:$0xff]  }
  0x88   : > { %4049 = vrot.lane.b32.xlu0 %v4014_v4, %s19071_s11  ;;  %v13041_v4 = vld [vmem:[%s12610_s18 + $0x30] sm:$0xff]   ;;  %v5367_v36 = vshrl.u32 %v12085_v57, 16  ;;  %v5370_v58 = vshll.u32 %v12085_v57, 16  ;;  %v2789_v3 = vrot.slane %v13033_v55, 1  ;;  %v12091_v57 = vld [vmem:[%s12615_s21 + $0x38] sm:$0xff]  }
  0x89   : > { %v12973_v13 = vpop.permute.xlu1 %2337 }
  0x8a   : > { %v1394_v10 = vpop.permute.xlu0 %1393  ;;  %v5372_v45 = vrot.slane %v5370_v58, 3  ;;  %v3313_v58 = vshrl.u32 %v12091_v57, 16 }
  0x8b   : > { %1447 = vst.msk [vmem:[#allocation2 + $0x8] sm:$0xff] %vm19056_vm7, %v1394_v10  ;;  %4287 = vrot.lane.b32.xlu1 %v4252_v12, %s19069_s12  ;;  %v4732_v10 = vsel %vm19087_vm3, %v4729_v20, %v4731_v52  ;;  %v3027_v20 = vrot.slane %v13041_v4, 1  ;;  %v2790_v52 = vsel %vm19103_vm0, %v2787_v6, %v2789_v3 }
  0x8c   : > { %2104 = vrot.lane.b32.xlu0 %v1997_v15, %s12526_s26  ;;  %v5006_v15 = vshll.u32 %v12083_v51, 16  ;;  %v12113_v51 = vld [vmem:[%s12615_s21 + $0x20] sm:$0xff]  }
  0x8d   : > { %v12988_v63 = vpop.permute.xlu1 %2577  ;;  %1251 = vst.msk [vmem:[#allocation2 + $0x20] sm:$0xff] %vm19144_vm5, %v12113_v51 }
  0x8e   : > { %v2336_v61 = vpop.permute.xlu0 %2335 }
  0x8f   : > { %2343 = vrot.lane.b32.xlu1 %v2308_v27, %s19084_s23 }
  0x90   : > { %4289 = vrot.lane.b32.xlu0 %v4254_v22, %s19069_s12  ;;  %v5000_v22 = vor.u32 %v4999_v0, %v4996_v26 }
  0x91   : > { %v1744_v32 = vpop.permute.xlu1 %1743 }
  0x92   : > { %v2576_v31 = vpop.permute.xlu0 %2575  ;;  %1798 = vst.msk [vmem:[#allocation2] sm:$0xff] %vm19058_vm8, %v1744_v32  ;;  %v5008_v32 = vrot.slane %v5006_v15, 3  ;;  %v5001_v53 = vsel %vm19086_vm4, %v12848_v59, %v5000_v22  ;;  %v3028_v59 = vsel %vm19103_vm0, %v3025_v62, %v3027_v20  ;;  %v12092_v15 = vld [vmem:[%s12610_s18 + $0x30] sm:$0xff]  }
  0x93   : > { %4527 = vrot.lane.b32.xlu1 %v4492_v37, %s19065_s15  ;;  %v12088_v37 = vld [vmem:[%s12610_s18 + $0x30] sm:$0xff]  }
  0x94   : > { %2345 = vrot.lane.b32.xlu0 %v2310_v39, %s19084_s23  ;;  %v5369_v39 = vrot.slane %v5367_v36, 2  ;;  %v5376_v5 = vshrl.u32 %v12088_v37, 16  ;;  %v13108_v36 = vld [vmem:[%s12615_s21 + $0x28] sm:$0xff]  }
  0x95   : > { %v1746_v1 = vpop.permute.xlu1 %1745  ;;  %v5719_v4 = vrot.slane %v13108_v36, 3 }
  0x96   : > { %1799 = vst.msk [vmem:[#allocation2 + $0x8] sm:$0xff] %vm19058_vm8, %v1746_v1  ;;  %v2095_v54 = vpop.permute.xlu0 %2094  ;;  %v13084_v1 = vor.u32 %v5008_v32, %v5005_v28  ;;  %v5373_v26 = vor.u32 %v5372_v45, %v5369_v39  ;;  %v3316_v28 = vshll.u32 %v12091_v57, 16  ;;  %v3680_v39 = vshll.u32 %v12092_v15, 16  ;;  %v12125_v45 = vld [vmem:[%s19039_s2 + $0x10] sm:$0xff]  }
  0x97   : > { %2149 = vst.msk [vmem:[#allocation2] sm:$0xff] %vm19089_vm9, %v2095_v54  ;;  %2583 = vrot.lane.b32.xlu1 %v2548_v35, %s19052_s24  ;;  %v5720_v57 = vsel %vm19088_vm6, %v5717_v56, %v5719_v4  ;;  %v1647_v56 = vshrl.u32 %v12913_v19, 16 }
  0x98   : > { %2390 = vst.msk [vmem:[#allocation2] sm:$0xff] %vm19059_vm10, %v2336_v61  ;;  %4529 = vrot.lane.b32.xlu0 %v4494_v11, %s19065_s15  ;;  %v12087_v61 = vld [vmem:[%s12615_s21 + $0x30] sm:$0xff]   ;;  %v5379_v11 = vshll.u32 %v12088_v37, 16  ;;  %v5010_v2 = vsel %vm19086_vm4, %v5000_v22, %v13084_v1  ;;  %v12122_v37 = vld [vmem:[%s19039_s2 + $0x8] sm:$0xff]  }
  0x99   : > { %v2097_v12 = vpop.permute.xlu1 %2096  ;;  %2630 = vst.msk [vmem:[#allocation2] sm:$0xff] %vm19060_vm11, %v2576_v31  ;;  %v13072_v31 = vld [vmem:[%s12610_s18 + $0x38] sm:$0xff]   ;;  %v3304_v8 = vshrl.u32 %v12087_v61, 16 }
  0x9a   : > { %2150 = vst.msk [vmem:[#allocation2 + $0x8] sm:$0xff] %vm19089_vm9, %v2097_v12  ;;  %v2816_v27 = vpop.permute.xlu0 %2815  ;;  %v12118_v12 = vld [vmem:[%s19039_s2] sm:$0xff]   ;;  %v5381_v62 = vrot.slane %v5379_v11, 3 }
  0x9b   : > { %2391 = vst.msk [vmem:[#allocation2 + $0x8] sm:$0xff] %vm19059_vm10, %v12973_v13  ;;  %4767 = vrot.lane.b32.xlu1 %v4732_v10, %s19050_s16  ;;  %v2788_v13 = vsel %vm19103_vm0, %v2785_v24, %v2787_v6  ;;  %v3307_v24 = vshll.u32 %v12087_v61, 16  ;;  %v3029_v6 = vrot.slane %v13072_v31, 1  ;;  %v3306_v0 = vrot.slane %v3304_v8, 1  ;;  %11799 = vmatprep.subr.bf16.mxu0 %v12118_v12  ;;  %v12121_v61 = vld [vmem:[%s12615_s21 + $0x28] sm:$0xff]  }
  0x9c   : > { %2870 = vst.msk [vmem:[#allocation2] sm:$0xff] %vm19061_vm12, %v2816_v27  ;;  %2585 = vrot.lane.b32.xlu0 %v2550_v34, %s19052_s24  ;;  %v5378_v10 = vrot.slane %v5376_v5, 2  ;;  %11800 = vmatpush3.bf16.msra.mxu0 %v12118_v12  ;;  %v3315_v8 = vrot.slane %v3313_v58, 1  ;;  %s19204_s24 = smov 20  }
  0x9d   : > { %2631 = vst.msk [vmem:[#allocation2 + $0x8] sm:$0xff] %vm19060_vm11, %v12988_v63  ;;  %v2818_v44 = vpop.permute.xlu1 %2817  ;;  %v3309_v7 = vrot.slane %v3307_v24, 2  ;;  %11801 = vmatprep.subr.bf16.mxu0 %v12122_v37  ;;  %v3318_v24 = vrot.slane %v3316_v28, 2 }
  0x9e   : > { %2871 = vst.msk [vmem:[#allocation2 + $0x8] sm:$0xff] %vm19061_vm12, %v2818_v44  ;;  %v3056_v63 = vpop.permute.xlu0 %3055  ;;  %v13122_v32 = vor.u32 %v5381_v62, %v5378_v10 }
  0x9f   : > { %3110 = vst.msk [vmem:[#allocation2] sm:$0xff] %vm19062_vm13, %v3056_v63  ;;  %2823 = vrot.lane.b32.xlu1 %v2788_v13, %s12527_s27  ;;  %v5374_v13 = vsel %vm19086_vm4, %v12868_v48, %v5373_v26  ;;  %v3310_v22 = vor.u32 %v3309_v7, %v3306_v0  ;;  %v3677_v63 = vshrl.u32 %v12092_v15, 16  ;;  %v12097_v0 = vld [vmem:[%s12610_s18 + $0x38] sm:$0xff]   ;;  %v12131_v7 = vld [vmem:[%s19039_s2 + $0x20] ss:$0 sps:$4 sm:$0xff]  }
  0xa0   : > { %4769 = vrot.lane.b32.xlu0 %v4734_v30, %s19050_s16  ;;  %v3030_v30 = vsel %vm19103_vm0, %v3027_v20, %v3029_v6  ;;  %1252 = vst.msk [vmem:[#allocation2 + $0x28] sm:$0xff] %vm19144_vm5, %v12121_v61  ;;  %11802 = vmatpush3.bf16.msra.mxu0 %v12122_v37  ;;  %v5383_v5 = vsel %vm19086_vm4, %v5373_v26, %v13122_v32  ;;  %v3686_v15 = vshrl.u32 %v12097_v0, 16  ;;  %s19205_s16 = smov 52  }
  0xa1   : > { %v3058_v35 = vpop.permute.xlu1 %3057  ;;  %v3311_v20 = vsel %vm19102_vm2, %v12889_v43, %v3310_v22  ;;  %11803 = vmatprep.subr.bf16.mxu0 %v12125_v45  ;;  %v3679_v51 = vrot.slane %v3677_v63, 1  ;;  %v12128_v43 = vld [vmem:[%s19039_s2 + $0x18] sm:$0xff]   ;;  %v13154_v26 = vor.u32 %v3318_v24, %v3315_v8  ;;  %v13197_v8 = vld [vmem:[%s12610_s18 + $0x30] sm:$0xff]  }
  0xa2   : > { %3111 = vst.msk [vmem:[#allocation2 + $0x8] sm:$0xff] %vm19062_vm13, %v3058_v35  ;;  %v3430_v54 = vpop.permute.xlu0 %3429  ;;  %v3682_v35 = vrot.slane %v3680_v39, 2  ;;  %v3688_v37 = vrot.slane %v3686_v15, 1  ;;  %v1649_v39 = vor.u32 %v1647_v56, %v12940_v42  ;;  %v12101_v42 = vld [vmem:[%s12610_s18 + $0x38] sm:$0xff]  }
  0xa3   : > { %3484 = vst.msk [vmem:[#allocation2] sm:$0xff] %vm19068_vm14, %v3430_v54  ;;  %5141 = vrot.lane.b32.xlu1 %v5001_v53, %s19082_s17  ;;  %v12090_v54 = vld [vmem:[%s12610_s18 + $0x30] sm:$0xff]   ;;  %v3320_v62 = vsel %vm19102_vm2, %v3310_v22, %v13154_v26 }
  0xa4   : > { %2825 = vrot.lane.b32.xlu0 %v2790_v52, %s12527_s27  ;;  %v13138_v52 = vld [vmem:[%s12615_s21 + $0x30] sm:$0xff]   ;;  %11804 = vmatpush3.bf16.msra.mxu0 %v12125_v45  ;;  %v3683_v12 = vor.u32 %v3682_v35, %v3679_v51  ;;  %v13190_v45 = vld [vmem:[%s12615_s21 + $0x40] sm:$0xff]  }
  0xa5   : > { %v1396_v34 = vpop.permute.xlu1 %1395  ;;  %11805 = vmatprep.subr.bf16.mxu0 %v12128_v43  ;;  %v5721_v46 = vrot.slane %v13138_v52, 3  ;;  %v13179_v22 = vld [vmem:[%s12615_s21 + $0x30] sm:$0xff]   ;;  %v1659_v51 = vshll.u32 %v13190_v45, 16 }
  0xa6   : > { %1448 = vst.msk [vmem:[#allocation2 + $0x10] sm:$0xff] %vm19056_vm7, %v1396_v34  ;;  %v3432_v27 = vpop.permute.xlu0 %3431  ;;  %v13161_v34 = vld [vmem:[%s12615_s21 + $0x38] sm:$0xff]   ;;  %v3684_v61 = vsel %vm19102_vm2, %v12919_v21, %v3683_v12 }
  0xa7   : > { %3485 = vst.msk [vmem:[#allocation2 + $0x8] sm:$0xff] %vm19068_vm14, %v3432_v27  ;;  %3063 = vrot.lane.b32.xlu1 %v3028_v59, %s19054_s28  ;;  %v13148_v59 = vld [vmem:[%s12610_s18 + $0x28] sm:$0xff]   ;;  %v3689_v27 = vshll.u32 %v12097_v0, 16  ;;  %v5722_v21 = vsel %vm19088_vm6, %v5719_v4, %v5721_v46  ;;  %v12095_v4 = vld [vmem:[%s12610_s18 + $0x38] sm:$0xff]  }
  0xa8   : > { %5143 = vrot.lane.b32.xlu0 %v5010_v2, %s19082_s17  ;;  %11806 = vmatpush3.bf16.msra.mxu0 %v12128_v43  ;;  %v5959_v19 = vrot.slane %v13148_v59, 3  ;;  %v5961_v43 = vrot.slane %v13197_v8, 3  ;;  %v2002_v59 = vshll.u32 %v12101_v42, 16 }
  0xa9   : > { %v3803_v44 = vpop.permute.xlu1 %3802 }
  0xaa   : > { %3857 = vst.msk [vmem:[#allocation2] sm:$0xff] %vm19057_vm15, %v3803_v44  ;;  %v1398_v48 = vpop.permute.xlu0 %1397  ;;  %v3691_v44 = vrot.slane %v3689_v27, 2  ;;  %v5960_v63 = vsel %vm19088_vm6, %v5957_v38, %v5959_v19  ;;  %v4015_v38 = vrot.slane %v13179_v22, 2  ;;  %v5962_v50 = vsel %vm19088_vm6, %v5959_v19, %v5961_v43 }
  0xab   : > { %1449 = vst.msk [vmem:[#allocation2 + $0x18] sm:$0xff] %vm19056_vm7, %v1398_v48  ;;  %5514 = vrot.lane.b32.xlu1 %v5374_v13, %s19080_s19  ;;  %vm4097_vm7 = vcmask 359744   ;;  %v1651_v13 = vshll.u32 %v13161_v34, 16  ;;  %v2004_v56 = vrot.slane %v2002_v59, 1  ;;  %v12161_v59 = vld [vmem:[%s12615_s21 + $0x38] sm:$0xff]  }
  0xac   : > { %3065 = vrot.lane.b32.xlu0 %v3030_v30, %s19054_s28  ;;  %s19203_s28 = smov 32   ;;  %v13200_v23 = vor.u32 %v3691_v44, %v3688_v37  ;;  %v13251_v44 = vld [vmem:[%s12610_s18 + $0x38] sm:$0xff]   ;;  %1254 = vst.msk [vmem:[#allocation2 + $0x38] sm:$0xff] %vm19144_vm5, %v12161_v59  ;;  %v12127_v59 = vld [vmem:[%s12610_s18 + $0x40] sm:$0xff]  }
  0xad   : > { %v1748_v53 = vpop.permute.xlu1 %1747  ;;  %v1653_v48 = vrot.slane %v1651_v13, 1  ;;  %v12105_v13 = vld [vmem:[%s12615_s21 + $0x38] sm:$0xff]  }
  0xae   : > { %1800 = vst.msk [vmem:[#allocation2 + $0x10] sm:$0xff] %vm19058_vm8, %v1748_v53  ;;  %v3805_v11 = vpop.permute.xlu0 %3804 }
  0xaf   : > { %3858 = vst.msk [vmem:[#allocation2 + $0x8] sm:$0xff] %vm19057_vm15, %v3805_v11  ;;  %3437 = vrot.lane.b32.xlu1 %v3311_v20, %s19203_s28  ;;  %vm6180_vm15 = vcmask 1043456   ;;  %v1654_v53 = vsel %vm19076_vm1, %v1649_v39, %v1653_v48  ;;  %v3693_v11 = vsel %vm19102_vm2, %v3683_v12, %v13200_v23 }
  0xb0   : > { %5516 = vrot.lane.b32.xlu0 %v5383_v5, %s19080_s19  ;;  %11887 = vmatprep.subr.msk.bf16.mxu0 %vm6180_vm15, %v12131_v7  ;;  %v6182_v36 = vsel %vm6180_vm15, %v12131_v7, 0  ;;  %v1655_v5 = vshrl.u32 %v13161_v34, 16  ;;  %vm19073_vm15 = vcmask 425344   ;;  %v4016_v7 = vsel %vm19087_vm3, %v4013_v49, %v4015_v38 }
  0xb1   : > { %v4044_v10 = vpop.permute.xlu1 %4043  ;;  %11808 = vmatpush3.bf16.msra.mxu0 %v6182_v36  ;;  %v13221_v34 = vrot.slane %v1659_v51, 1  ;;  %v2006_v36 = vshrl.u32 %v12101_v42, 16  ;;  %v4257_v42 = vrot.slane %v13251_v44, 2  ;;  %v13278_v51 = vld [vmem:[%s12615_s21 + $0x40] sm:$0xff]  }
  0xb2   : > { %4098 = vst.msk [vmem:[#allocation2] sm:$0xff] %vm4097_vm7, %v4044_v10  ;;  %v1750_v2 = vpop.permute.xlu0 %1749  ;;  %v1657_v10 = vor.u32 %v1655_v5, %v1653_v48  ;;  %v2311_v48 = vrot.slane %v12105_v13, 1  ;;  %v12109_v5 = vld [vmem:[%s12610_s18 + $0x38] sm:$0xff]  }
  0xb3   : > { %1801 = vst.msk [vmem:[#allocation2 + $0x18] sm:$0xff] %vm19058_vm8, %v1750_v2  ;;  %5755 = vrot.lane.b32.xlu1 %v5720_v57, %s12537_s20  ;;  %vm19074_vm8 = vcmask 392544   ;;  %v13216_v57 = vld [vmem:[%s12615_s21 + $0x38] sm:$0xff]   ;;  %v13224_v2 = vld [vmem:[%s12610_s18 + $0x40] sm:$0xff]  }
  0xb4   : > { %1403 = vrot.lane.b32.xlu0 %v12090_v54, %s19078_s22  ;;  %v1998_v54 = vshrl.u32 %v12929_v33, 16  ;;  %v12103_v33 = vld [vmem:[%s12610_s18 + $0x30] sm:$0xff]   ;;  %v1662_v27 = vsel %vm19076_vm1, %v1657_v10, %v13221_v34  ;;  %v12116_v10 = vld [vmem:[%s12615_s21 + $0x38] sm:$0xff]  }
  0xb5   : > { %v2099_v58 = vpop.permute.xlu1 %2098  ;;  %v4255_v19 = vrot.slane %v12103_v33, 2 }
  0xb6   : > { %2151 = vst.msk [vmem:[#allocation2 + $0x10] sm:$0xff] %vm19089_vm9, %v2099_v58  ;;  %v4046_v28 = vpop.permute.xlu0 %4045  ;;  %v2000_v49 = vor.u32 %v1998_v54, %v12962_v60  ;;  %v2010_v58 = vshll.u32 %v13224_v2, 16 }
  0xb7   : > { %4099 = vst.msk [vmem:[#allocation2 + $0x8] sm:$0xff] %vm4097_vm7, %v4046_v28  ;;  %3439 = vrot.lane.b32.xlu1 %v3320_v62, %s19203_s28  ;;  %v4017_v62 = vrot.slane %v13216_v57, 2  ;;  %v4256_v39 = vsel %vm19087_vm3, %v4253_v16, %v4255_v19  ;;  %v2312_v16 = vsel %vm19103_vm0, %v2309_v25, %v2311_v48  ;;  %v12111_v25 = vld [vmem:[%s12610_s18 + $0x38] sm:$0xff]  }
  0xb8   : > { %3810 = vrot.lane.b32.xlu0 %v3684_v61, %s12530_s30  ;;  %v2005_v60 = vsel %vm19076_vm1, %v2000_v49, %v2004_v56  ;;  %v13248_v37 = vrot.slane %v2010_v58, 1  ;;  %v13300_v49 = vld [vmem:[%s12610_s18 + $0x40] sm:$0xff]   ;;  %v5015_v58 = vshll.u32 %v12116_v10, 16 }
  0xb9   : > { %v4284_v30 = vpop.permute.xlu1 %4283  ;;  %v4018_v22 = vsel %vm19087_vm3, %v4015_v38, %v4017_v62  ;;  %v2553_v13 = vrot.slane %v13300_v49, 1 }
  0xba   : > { %4338 = vst.msk [vmem:[#allocation2] sm:$0xff] %vm19074_vm8, %v4284_v30  ;;  %v2101_v20 = vpop.permute.xlu0 %2100 }
  0xbb   : > { %2152 = vst.msk [vmem:[#allocation2 + $0x18] sm:$0xff] %vm19089_vm9, %v2101_v20  ;;  %5757 = vrot.lane.b32.xlu1 %v5722_v21, %s12537_s20  ;;  %v2008_v21 = vor.u32 %v2006_v36, %v2004_v56  ;;  %v12107_v20 = vld [vmem:[%s12615_s21 + $0x38] sm:$0xff]   ;;  %v13303_v56 = vld [vmem:[%s12615_s21 + $0x40] sm:$0xff]   ;;  %v5012_v36 = vshrl.u32 %v12116_v10, 16 }
  0xbc   : > { %5995 = vrot.lane.b32.xlu0 %v5960_v63, %s12538_s29  ;;  %v12154_v63 = vld [vmem:[%s12615_s21 + $0x30] sm:$0xff]  }
  0xbd   : > { %v2340_v24 = vpop.permute.xlu1 %2339  ;;  %v2013_v38 = vsel %vm19076_vm1, %v2008_v21, %v13248_v37  ;;  %1253 = vst.msk [vmem:[#allocation2 + $0x30] sm:$0xff] %vm19144_vm5, %v12154_v63  ;;  %v12123_v21 = vld [vmem:[%s12610_s18 + $0x38] sm:$0xff]   ;;  %v13333_v63 = vld [vmem:[%s12610_s18 + $0x40] sm:$0xff]  }
  0xbe   : > { %2392 = vst.msk [vmem:[#allocation2 + $0x10] sm:$0xff] %vm19059_vm10, %v2340_v24  ;;  %v4286_v35 = vpop.permute.xlu0 %4285  ;;  %v13266_v24 = vld [vmem:[%s12615_s21 + $0x40] sm:$0xff]  }
  0xbf   : > { %4339 = vst.msk [vmem:[#allocation2 + $0x8] sm:$0xff] %vm19074_vm8, %v4286_v35  ;;  %1405 = vrot.lane.b32.xlu1 %v12095_v4, %s19078_s22  ;;  %v2313_v54 = vrot.slane %v13266_v24, 1  ;;  %v12157_v24 = vld [vmem:[%s12615_s21 + $0x48] sm:$0xff]  }
  0xc0   : > { %1755 = vrot.lane.b32.xlu0 %v1654_v53, %s12525_s25  ;;  %v4495_v53 = vrot.slane %v12107_v20, 2 }
  0xc1   : > { %v4524_v0 = vpop.permute.xlu1 %4523  ;;  %v2314_v33 = vsel %vm19103_vm0, %v2311_v48, %v2313_v54  ;;  %v5017_v48 = vrot.slane %v5015_v58, 3 }
  0xc2   : > { %4578 = vst.msk [vmem:[#allocation2] sm:$0xff] %vm19073_vm15, %v4524_v0  ;;  %v2342_v12 = vpop.permute.xlu0 %2341  ;;  %v4496_v0 = vsel %vm19087_vm3, %v4493_v40, %v4495_v53  ;;  %v4735_v40 = vrot.slane %v12111_v25, 2 }
  0xc3   : > { %2393 = vst.msk [vmem:[#allocation2 + $0x18] sm:$0xff] %vm19059_vm10, %v2342_v12  ;;  %3812 = vrot.lane.b32.xlu1 %v3693_v11, %s12530_s30  ;;  %vm19075_vm10 = vcmask 458144   ;;  %v4258_v11 = vsel %vm19087_vm3, %v4255_v19, %v4257_v42 }
  0xc4   : > { %4051 = vrot.lane.b32.xlu0 %v4016_v7, %s19071_s11  ;;  %v2551_v7 = vrot.slane %v12109_v5, 1  ;;  %v4738_v5 = vsel %vm19087_vm3, %v4735_v40, %v4737_v41 }
  0xc5   : > { %v2580_v15 = vpop.permute.xlu1 %2579 }
  0xc6   : > { %2632 = vst.msk [vmem:[#allocation2 + $0x10] sm:$0xff] %vm19060_vm11, %v2580_v15  ;;  %v4526_v61 = vpop.permute.xlu0 %4525 }
  0xc7   : > { %4579 = vst.msk [vmem:[#allocation2 + $0x8] sm:$0xff] %vm19073_vm15, %v4526_v61  ;;  %5997 = vrot.lane.b32.xlu1 %v5962_v50, %s12538_s29  ;;  %v4497_v50 = vrot.slane %v13278_v51, 2  ;;  %v12120_v61 = vld [vmem:[%s12615_s21 + $0x40] sm:$0xff]  }
  0xc8   : > { %1757 = vrot.lane.b32.xlu0 %v1662_v27, %s12525_s25  ;;  %v2552_v27 = vsel %vm19103_vm0, %v2549_v14, %v2551_v7  ;;  %v4736_v14 = vsel %vm19087_vm3, %v4733_v47, %v4735_v40  ;;  %v5021_v20 = vshrl.u32 %v12120_v61, 16  ;;  %v5385_v47 = vshrl.u32 %v12123_v21, 16 }
  0xc9   : > { %v4764_v28 = vpop.permute.xlu1 %4763  ;;  %v4498_v19 = vsel %vm19087_vm3, %v4495_v53, %v4497_v50 }
  0xca   : > { %4818 = vst.msk [vmem:[#allocation2] sm:$0xff] %vm19075_vm10, %v4764_v28  ;;  %v2582_v30 = vpop.permute.xlu0 %2581  ;;  %v5387_v55 = vrot.slane %v5385_v47, 2 }
  0xcb   : > { %2633 = vst.msk [vmem:[#allocation2 + $0x18] sm:$0xff] %vm19060_vm11, %v2582_v30  ;;  %2106 = vrot.lane.b32.xlu1 %v2005_v60, %s12526_s26  ;;  %vm19064_vm11 = vcmask 490944   ;;  %v13330_v30 = vld [vmem:[%s12615_s21 + $0x48] sm:$0xff]  }
  0xcc   : > { %4053 = vrot.lane.b32.xlu0 %v4018_v22, %s19071_s11  ;;  %v2791_v22 = vrot.slane %v13303_v56, 1  ;;  %v2793_v25 = vrot.slane %v13330_v30, 1 }
  0xcd   : > { %v2820_v4 = vpop.permute.xlu1 %2819 }
  0xce   : > { %2872 = vst.msk [vmem:[#allocation2 + $0x10] sm:$0xff] %vm19061_vm12, %v2820_v4  ;;  %v4766_v29 = vpop.permute.xlu0 %4765  ;;  %v5024_v4 = vshll.u32 %v12120_v61, 16  ;;  %v2792_v53 = vsel %vm19103_vm0, %v2789_v3, %v2791_v22  ;;  %v2794_v58 = vsel %vm19103_vm0, %v2791_v22, %v2793_v25 }
  0xcf   : > { %4819 = vst.msk [vmem:[#allocation2 + $0x8] sm:$0xff] %vm19075_vm10, %v4766_v29  ;;  %4291 = vrot.lane.b32.xlu1 %v4256_v39, %s19069_s12  ;;  %v5014_v39 = vrot.slane %v5012_v36, 2  ;;  %v2554_v29 = vsel %vm19103_vm0, %v2551_v7, %v2553_v13  ;;  %v5023_v7 = vrot.slane %v5021_v20, 2 }
  0xd0   : > { %2108 = vrot.lane.b32.xlu0 %v2013_v38, %s12526_s26  ;;  %v5026_v10 = vrot.slane %v5024_v4, 3 }
  0xd1   : > { %v5138_v35 = vpop.permute.xlu1 %5137 }
  0xd2   : > { %5192 = vst.msk [vmem:[#allocation2] sm:$0xff] %vm19064_vm11, %v5138_v35  ;;  %v2822_v18 = vpop.permute.xlu0 %2821  ;;  %v5018_v35 = vor.u32 %v5017_v48, %v5014_v39  ;;  %v13365_v61 = vor.u32 %v5026_v10, %v5023_v7  ;;  %v12132_v39 = vld [vmem:[%s12615_s21 + $0x48] sm:$0xff]  }
  0xd3   : > { %2873 = vst.msk [vmem:[#allocation2 + $0x18] sm:$0xff] %vm19061_vm12, %v2822_v18  ;;  %2347 = vrot.lane.b32.xlu1 %v2312_v16, %s19084_s23  ;;  %vm19063_vm12 = vcmask 523744   ;;  %v12126_v16 = vld [vmem:[%s12615_s21 + $0x40] sm:$0xff]   ;;  %v3331_v47 = vshrl.u32 %v12132_v39, 16 }
  0xd4   : > { %4293 = vrot.lane.b32.xlu0 %v4258_v11, %s19069_s12  ;;  %v5388_v11 = vshll.u32 %v12123_v21, 16  ;;  %v3322_v3 = vshrl.u32 %v12126_v16, 16  ;;  %v3325_v56 = vshll.u32 %v12126_v16, 16  ;;  %v5028_v20 = vsel %vm19086_vm4, %v5018_v35, %v13365_v61 }
  0xd5   : > { %v3060_v12 = vpop.permute.xlu1 %3059  ;;  %v3334_v16 = vshll.u32 %v12132_v39, 16  ;;  %v3333_v7 = vrot.slane %v3331_v47, 1  ;;  %v12197_v47 = vld [vmem:[%s12615_s21 + $0x48] sm:$0xff]  }
  0xd6   : > { %3112 = vst.msk [vmem:[#allocation2 + $0x10] sm:$0xff] %vm19062_vm13, %v3060_v12  ;;  %v5140_v15 = vpop.permute.xlu0 %5139  ;;  %v5390_v40 = vrot.slane %v5388_v11, 3  ;;  %v3327_v21 = vrot.slane %v3325_v56, 2 }
  0xd7   : > { %5193 = vst.msk [vmem:[#allocation2 + $0x8] sm:$0xff] %vm19064_vm11, %v5140_v15  ;;  %4531 = vrot.lane.b32.xlu1 %v4496_v0, %s19065_s15  ;;  %v3031_v0 = vrot.slane %v13333_v63, 1  ;;  %v5019_v15 = vsel %vm19086_vm4, %v13084_v1, %v5018_v35  ;;  %vm19207_vm11 = vcmask 326944   ;;  %v3324_v1 = vrot.slane %v3322_v3, 1 }
  0xd8   : > { %2349 = vrot.lane.b32.xlu0 %v2314_v33, %s19084_s23  ;;  %v13355_v33 = vld [vmem:[%s12610_s18 + $0x48] sm:$0xff]   ;;  %v3336_v10 = vrot.slane %v3334_v16, 2  ;;  %v13442_v16 = vld [vmem:[%s12615_s21 + $0x50] sm:$0xff]   ;;  %1256 = vst.msk [vmem:[#allocation2 + $0x48] sm:$0xff] %vm19144_vm5, %v12197_v47 }
  0xd9   : > { %v5511_v60 = vpop.permute.xlu1 %5510  ;;  %v3032_v22 = vsel %vm19103_vm0, %v3029_v6, %v3031_v0  ;;  %v3328_v6 = vor.u32 %v3327_v21, %v3324_v1  ;;  %v12146_v47 = vld [vmem:[%s12615_s21 + $0x48] sm:$0xff]  }
  0xda   : > { %5565 = vst.msk [vmem:[#allocation2] sm:$0xff] %vm19063_vm12, %v5511_v60  ;;  %v3062_v28 = vpop.permute.xlu0 %3061  ;;  %v5397_v60 = vshll.u32 %v12127_v59, 16  ;;  %v13419_v1 = vor.u32 %v3336_v10, %v3333_v7 }
  0xdb   : > { %3113 = vst.msk [vmem:[#allocation2 + $0x18] sm:$0xff] %vm19062_vm13, %v3062_v28  ;;  %2587 = vrot.lane.b32.xlu1 %v2552_v27, %s19204_s24  ;;  %vm19067_vm13 = vcmask 556544   ;;  %v5394_v27 = vshrl.u32 %v12127_v59, 16  ;;  %v3033_v28 = vrot.slane %v13355_v33, 1  ;;  %v13635_v33 = vld [vmem:[%s12615_s21 + $0x48] sm:$0xff]  }
  0xdc   : > { %4533 = vrot.lane.b32.xlu0 %v4498_v19, %s19065_s15  ;;  %v5399_v4 = vrot.slane %v5397_v60, 3  ;;  %s19208_s15 = smov 28   ;;  %v12190_v60 = vld [vmem:[%s12615_s21 + $0x40] sm:$0xff]  }
  0xdd   : > { %v3434_v38 = vpop.permute.xlu1 %3433  ;;  %v5396_v63 = vrot.slane %v5394_v27, 2  ;;  %1255 = vst.msk [vmem:[#allocation2 + $0x40] sm:$0xff] %vm19144_vm5, %v12190_v60  ;;  %v13477_v60 = vld [vmem:[%s12615_s21 + $0x48] sm:$0xff]  }
  0xde   : > { %3486 = vst.msk [vmem:[#allocation2 + $0x10] sm:$0xff] %vm19068_vm14, %v3434_v38  ;;  %v5513_v17 = vpop.permute.xlu0 %5512  ;;  %v12133_v38 = vld [vmem:[%s12610_s18 + $0x40] sm:$0xff]  }
  0xdf   : > { %5566 = vst.msk [vmem:[#allocation2 + $0x8] sm:$0xff] %vm19063_vm12, %v5513_v17  ;;  %4771 = vrot.lane.b32.xlu1 %v4736_v14, %s19205_s16  ;;  %vm19206_vm12 = vcmask 64544   ;;  %v5391_v14 = vor.u32 %v5390_v40, %v5387_v55  ;;  %v13383_v17 = vld [vmem:[%s12615_s21 + $0x38] sm:$0xff]   ;;  %v13391_v35 = vor.u32 %v5399_v4, %v5396_v63  ;;  %v3695_v11 = vshrl.u32 %v12133_v38, 16 }
  0xe0   : > { %2589 = vrot.lane.b32.xlu0 %v2554_v29, %s19204_s24  ;;  %v3698_v59 = vshll.u32 %v12133_v38, 16 }
  0xe1   : > { %v5752_v18 = vpop.permute.xlu1 %5751  ;;  %v5392_v31 = vsel %vm19086_vm4, %v13122_v32, %v5391_v14  ;;  %v5723_v32 = vrot.slane %v13383_v17, 3  ;;  %v5401_v55 = vsel %vm19086_vm4, %v5391_v14, %v13391_v35  ;;  %v3697_v3 = vrot.slane %v3695_v11, 1  ;;  %v12137_v14 = vld [vmem:[%s12615_s21 + $0x48] sm:$0xff]  }
  0xe2   : > { %5806 = vst.msk [vmem:[#allocation2] sm:$0xff] %vm19067_vm13, %v5752_v18  ;;  %v1400_v12 = vpop.permute.xlu0 %1399  ;;  %v3700_v56 = vrot.slane %v3698_v59, 2  ;;  %v1667_v17 = vshll.u32 %v12137_v14, 16 }
  0xe3   : > { %1450 = vst.msk [vmem:[#allocation2 + $0x20] sm:$0xff] %vm19206_vm12, %v1400_v12  ;;  %2827 = vrot.lane.b32.xlu1 %v2792_v53, %s12527_s27  ;;  %vm6045_vm12 = vcmask 589344  }
  0xe4   : > { %4773 = vrot.lane.b32.xlu0 %v4738_v5, %s19205_s16  ;;  %v3034_v5 = vsel %vm19103_vm0, %v3031_v0, %v3033_v28  ;;  %v3329_v0 = vsel %vm19102_vm2, %v13154_v26, %v3328_v6  ;;  %v13412_v26 = vld [vmem:[%s12610_s18 + $0x38] sm:$0xff]  }
  0xe5   : > { %v3436_v36 = vpop.permute.xlu1 %3435  ;;  %v5963_v38 = vrot.slane %v13412_v26, 3 }
  0xe6   : > { %3487 = vst.msk [vmem:[#allocation2 + $0x18] sm:$0xff] %vm19068_vm14, %v3436_v36  ;;  %v3807_v19 = vpop.permute.xlu0 %3806  ;;  %vm6125_vm14 = vcmask 588800   ;;  %v12130_v36 = vld [vmem:[%s12610_s18 + $0x40] sm:$0xff]  }
  0xe7   : > { %3859 = vst.msk [vmem:[#allocation2 + $0x10] sm:$0xff] %vm19207_vm11, %v3807_v19  ;;  %5145 = vrot.lane.b32.xlu1 %v5019_v15, %s19082_s17  ;;  %vm19209_vm11 = vcmask 64544   ;;  %v13403_v15 = vld [vmem:[%s12615_s21 + $0x40] sm:$0xff]   ;;  %v5724_v19 = vsel %vm19088_vm6, %v5721_v46, %v5723_v32  ;;  %v3338_v46 = vsel %vm19102_vm2, %v3328_v6, %v13419_v1  ;;  %v5964_v59 = vsel %vm19088_vm6, %v5961_v43, %v5963_v38 }
  0xe8   : > { %2829 = vrot.lane.b32.xlu0 %v2794_v58, %s12527_s27  ;;  %v12138_v58 = vld [vmem:[%s12610_s18 + $0x48] sm:$0xff]   ;;  %v5725_v52 = vrot.slane %v13403_v15, 3  ;;  %v13439_v6 = vld [vmem:[%s12615_s21 + $0x40] sm:$0xff]  }
  0xe9   : > { %v5754_v48 = vpop.permute.xlu1 %5753  ;;  %v3704_v39 = vshrl.u32 %v12138_v58, 16  ;;  %v4019_v8 = vrot.slane %v13439_v6, 2  ;;  %v13463_v43 = vld [vmem:[%s12610_s18 + $0x40] sm:$0xff]  }
  0xea   : > { %5807 = vst.msk [vmem:[#allocation2 + $0x8] sm:$0xff] %vm19067_vm13, %v5754_v48  ;;  %v5992_v29 = vpop.permute.xlu0 %5991  ;;  %vm19210_vm13 = vcmask 97344   ;;  %v3707_v48 = vshll.u32 %v12138_v58, 16  ;;  %v2014_v58 = vshrl.u32 %v13224_v2, 16 }
  0xeb   : > { %6046 = vst.msk [vmem:[#allocation2] sm:$0xff] %vm6045_vm12, %v5992_v29  ;;  %3067 = vrot.lane.b32.xlu1 %v3032_v22, %s19208_s15  ;;  %v3701_v22 = vor.u32 %v3700_v56, %v3697_v3  ;;  %v1663_v29 = vshrl.u32 %v13190_v45, 16  ;;  %v5726_v45 = vsel %vm19088_vm6, %v5723_v32, %v5725_v52  ;;  %v12136_v32 = vld [vmem:[%s12610_s18 + $0x48] sm:$0xff]   ;;  %v1671_v3 = vshrl.u32 %v12137_v14, 16 }
  0xec   : > { %5147 = vrot.lane.b32.xlu0 %v5028_v20, %s19082_s17  ;;  %v1675_v56 = vshll.u32 %v13442_v16, 16  ;;  %v2016_v2 = vor.u32 %v2014_v58, %v13248_v37 }
  0xed   : > { %v1402_v53 = vpop.permute.xlu1 %1401  ;;  %v3702_v4 = vsel %vm19102_vm2, %v13200_v23, %v3701_v22  ;;  %v3706_v23 = vrot.slane %v3704_v39, 1  ;;  %v4021_v39 = vrot.slane %v13477_v60, 2 }
  0xee   : > { %1451 = vst.msk [vmem:[#allocation2 + $0x28] sm:$0xff] %vm19209_vm11, %v1402_v53  ;;  %v1752_v18 = vpop.permute.xlu0 %1751  ;;  %vm19212_vm11 = vcmask 97344   ;;  %v3709_v53 = vrot.slane %v3707_v48, 2  ;;  %v12144_v48 = vld [vmem:[%s12610_s18 + $0x40] sm:$0xff]  }
  0xef   : > { %1802 = vst.msk [vmem:[#allocation2 + $0x20] sm:$0xff] %vm19210_vm13, %v1752_v18  ;;  %5518 = vrot.lane.b32.xlu1 %v5392_v31, %s19080_s19  ;;  %vm19211_vm13 = vcmask 326944   ;;  %v1665_v18 = vor.u32 %v1663_v29, %v13221_v34  ;;  %v12142_v34 = vld [vmem:[%s12610_s18 + $0x48] sm:$0xff]  }
  0xf0   : > { %3069 = vrot.lane.b32.xlu0 %v3034_v5, %s19208_s15  ;;  %v13459_v10 = vor.u32 %v3709_v53, %v3706_v23  ;;  %v2018_v26 = vshll.u32 %v12142_v34, 16  ;;  %v2022_v29 = vshrl.u32 %v12142_v34, 16  ;;  %v13526_v34 = vld [vmem:[%s12615_s21 + $0x50] sm:$0xff]  }
  0xf1   : > { %v3809_v12 = vpop.permute.xlu1 %3808 }
  0xf2   : > { %3860 = vst.msk [vmem:[#allocation2 + $0x18] sm:$0xff] %vm19211_vm13, %v3809_v12  ;;  %v4048_v40 = vpop.permute.xlu0 %4047  ;;  %v6064_v27 = vld [vmem:[#allocation2] sm:$0xff]  ;;  %vm19213_vm13 = vcmask 162944  }
  0xf3   : > { %4100 = vst.msk [vmem:[#allocation2 + $0x10] sm:$0xff] %vm4097_vm7, %v4048_v40  ;;  %3441 = vrot.lane.b32.xlu1 %v3329_v0, %s19203_s28  ;;  %11809 = vmatprep.mubr.msk.bf16.mxu0 %vm6125_vm14, %v6064_v27  ;;  %v1669_v0 = vrot.slane %v1667_v17, 1  ;;  %v3711_v27 = vsel %vm19102_vm2, %v3701_v22, %v13459_v10 }
  0xf4   : > { %5520 = vrot.lane.b32.xlu0 %v5401_v55, %s19080_s19 }
  0xf5   : > { %v5994_v21 = vpop.permute.xlu1 %5993  ;;  %v1670_v55 = vsel %vm19076_vm1, %v1665_v18, %v1669_v0  ;;  %v1673_v14 = vor.u32 %v1671_v3, %v1669_v0  ;;  %v2315_v0 = vrot.slane %v12146_v47, 1 }
  0xf6   : > { %6047 = vst.msk [vmem:[#allocation2 + $0x8] sm:$0xff] %vm6045_vm12, %v5994_v21  ;;  %v1754_v63 = vpop.permute.xlu0 %1753  ;;  %v4020_v21 = vsel %vm19087_vm3, %v4017_v62, %v4019_v8  ;;  %v2020_v62 = vrot.slane %v2018_v26, 1  ;;  %v12152_v26 = vld [vmem:[%s12610_s18 + $0x48] sm:$0xff]  }
  0xf7   : > { %1803 = vst.msk [vmem:[#allocation2 + $0x28] sm:$0xff] %vm19212_vm11, %v1754_v63  ;;  %5759 = vrot.lane.b32.xlu1 %v5724_v19, %s12537_s20  ;;  %v13482_v63 = vrot.slane %v1675_v56, 1  ;;  %vm19214_vm11 = vmmov %vm19213_vm13  ;;  %v4739_v51 = vrot.slane %v12152_v26, 2 }
  0xf8   : > { %1407 = vrot.lane.b32.xlu0 %v12130_v36, %s19078_s22  ;;  %v5965_v36 = vrot.slane %v13463_v43, 3  ;;  %v2021_v37 = vsel %vm19076_vm1, %v2016_v2, %v2020_v62  ;;  %v2024_v23 = vor.u32 %v2022_v29, %v2020_v62  ;;  %v12155_v62 = vld [vmem:[%s12615_s21 + $0x50] sm:$0xff]   ;;  %v12178_v43 = vld [vmem:[%s12610_s18 + $0x58] sm:$0xff]  }
  0xf9   : > { %v2103_v20 = vpop.permute.xlu1 %2102  ;;  %v2795_v47 = vrot.slane %v12155_v62, 1 }
  0xfa   : > { %2153 = vst.msk [vmem:[#allocation2 + $0x20] sm:$0xff] %vm19089_vm9, %v2103_v20  ;;  %v4050_v31 = vpop.permute.xlu0 %4049  ;;  %v5966_v57 = vsel %vm19088_vm6, %v5963_v38, %v5965_v36  ;;  %v4259_v38 = vrot.slane %v12144_v48, 2 }
  0xfb   : > { %4101 = vst.msk [vmem:[#allocation2 + $0x18] sm:$0xff] %vm4097_vm7, %v4050_v31  ;;  %3443 = vrot.lane.b32.xlu1 %v3338_v46, %s19203_s28  ;;  %v13485_v46 = vld [vmem:[%s12610_s18 + $0x50] sm:$0xff]  }
  0xfc   : > { %3814 = vrot.lane.b32.xlu0 %v3702_v4, %s12530_s30  ;;  %v1678_v4 = vsel %vm19076_vm1, %v1673_v14, %v13482_v63  ;;  %v2026_v17 = vshll.u32 %v13485_v46, 16  ;;  %v4260_v18 = vsel %vm19087_vm3, %v4257_v42, %v4259_v38  ;;  %v12150_v42 = vld [vmem:[%s12610_s18 + $0x48] sm:$0xff]  }
  0xfd   : > { %v4288_v5 = vpop.permute.xlu1 %4287  ;;  %v6065_v11 = vld [vmem:[#allocation2 + $0x8] sm:$0xff] }
  0xfe   : > { %4340 = vst.msk [vmem:[#allocation2 + $0x10] sm:$0xff] %vm19074_vm8, %v4288_v5  ;;  %v2105_v7 = vpop.permute.xlu0 %2104  ;;  %11810 = vmatmul.mubr.msk.bf16.vlgmr.msra.gmra.mrb[0].mxu0 %vm6125_vm14, %v6065_v11  ;;  %v13509_v53 = vrot.slane %v2026_v17, 1  ;;  %v13512_v5 = vld [vmem:[%s12610_s18 + $0x48] sm:$0xff]  }
  0xff   : > { %2154 = vst.msk [vmem:[#allocation2 + $0x28] sm:$0xff] %vm19089_vm9, %v2105_v7  ;;  %5761 = vrot.lane.b32.xlu1 %v5726_v45, %s12537_s20  ;;  %v4022_v45 = vsel %vm19087_vm3, %v4019_v8, %v4021_v39  ;;  %v4261_v8 = vrot.slane %v13512_v5, 2  ;;  %v6899_v5 = vld [vmem:[#allocation3 + $0x8] sm:$0x3] }
 0x100   : > { %5999 = vrot.lane.b32.xlu0 %v5964_v59, %s12538_s29  ;;  %v12148_v59 = vld [vmem:[%s12615_s21 + $0x48] sm:$0xff]  }
 0x101   : > { %v2344_v12 = vpop.permute.xlu1 %2343  ;;  %v4499_v44 = vrot.slane %v12148_v59, 2  ;;  %v4262_v56 = vsel %vm19087_vm3, %v4259_v38, %v4261_v8 }
 0x102   : > { %2394 = vst.msk [vmem:[#allocation2 + $0x20] sm:$0xff] %vm19213_vm13, %v2344_v12  ;;  %v4290_v40 = vpop.permute.xlu0 %4289  ;;  %vm19215_vm13 = vcmask 195744  }
 0x103   : > { %4341 = vst.msk [vmem:[#allocation2 + $0x18] sm:$0xff] %vm19074_vm8, %v4290_v40  ;;  %1409 = vrot.lane.b32.xlu1 %v12136_v32, %s19078_s22  ;;  %v2029_v32 = vsel %vm19076_vm1, %v2024_v23, %v13509_v53  ;;  %v2317_v40 = vrot.slane %v13526_v34, 1 }
 0x104   : > { %1759 = vrot.lane.b32.xlu0 %v1670_v55, %s12525_s25  ;;  %v2316_v55 = vsel %vm19103_vm0, %v2313_v54, %v2315_v0  ;;  %v4500_v54 = vsel %vm19087_vm3, %v4497_v50, %v4499_v44  ;;  %v5030_v50 = vshrl.u32 %v12157_v24, 16 }
 0x105   : > { %v4528_v19 = vpop.permute.xlu1 %4527  ;;  %v2318_v14 = vsel %vm19103_vm0, %v2315_v0, %v2317_v40 }
 0x106   : > { %4580 = vst.msk [vmem:[#allocation2 + $0x10] sm:$0xff] %vm19073_vm15, %v4528_v19  ;;  %v2346_v22 = vpop.permute.xlu0 %2345  ;;  %v2555_v19 = vrot.slane %v12150_v42, 1  ;;  %v5032_v49 = vrot.slane %v5030_v50, 2  ;;  %v2796_v42 = vsel %vm19103_vm0, %v2793_v25, %v2795_v47 }
 0x107   : > { %2395 = vst.msk [vmem:[#allocation2 + $0x28] sm:$0xff] %vm19214_vm11, %v2346_v22  ;;  %3816 = vrot.lane.b32.xlu1 %v3711_v27, %s12530_s30  ;;  %vm19216_vm11 = vmmov %vm19215_vm13  ;;  %v13541_v27 = vld [vmem:[%s12615_s21 + $0x50] sm:$0xff]  }
 0x108   : > { %4055 = vrot.lane.b32.xlu0 %v4020_v21, %s19071_s11  ;;  %v4501_v22 = vrot.slane %v13541_v27, 2  ;;  %v2556_v48 = vsel %vm19103_vm0, %v2553_v13, %v2555_v19  ;;  %v12162_v13 = vld [vmem:[%s12610_s18 + $0x48] sm:$0xff]  }
 0x109   : > { %v2584_v20 = vpop.permute.xlu1 %2583 }
 0x10a   : > { %2634 = vst.msk [vmem:[#allocation2 + $0x20] sm:$0xff] %vm19215_vm13, %v2584_v20  ;;  %v4530_v31 = vpop.permute.xlu0 %4529  ;;  %vm19217_vm13 = vcmask 228544   ;;  %v5033_v20 = vshll.u32 %v12157_v24, 16  ;;  %v4502_v17 = vsel %vm19087_vm3, %v4499_v44, %v4501_v22  ;;  %v5406_v44 = vshll.u32 %v12162_v13, 16 }
 0x10b   : > { %4581 = vst.msk [vmem:[#allocation2 + $0x18] sm:$0xff] %vm19073_vm15, %v4530_v31  ;;  %6001 = vrot.lane.b32.xlu1 %v5966_v57, %s12538_s29  ;;  %v13557_v57 = vld [vmem:[%s12610_s18 + $0x50] sm:$0xff]  }
 0x10c   : > { %1761 = vrot.lane.b32.xlu0 %v1678_v4, %s12525_s25  ;;  %v12160_v4 = vld [vmem:[%s12615_s21 + $0x50] sm:$0xff]   ;;  %v2557_v31 = vrot.slane %v13557_v57, 1  ;;  %v5035_v23 = vrot.slane %v5033_v20, 3  ;;  %v5408_v25 = vrot.slane %v5406_v44, 3 }
 0x10d   : > { %v4768_v6 = vpop.permute.xlu1 %4767 }
 0x10e   : > { %4820 = vst.msk [vmem:[#allocation2 + $0x10] sm:$0xff] %vm19075_vm10, %v4768_v6  ;;  %v2586_v11 = vpop.permute.xlu0 %2585  ;;  %v13577_v6 = vld [vmem:[%s12615_s21 + $0x58] sm:$0xff]  }
 0x10f   : > { %2635 = vst.msk [vmem:[#allocation2 + $0x28] sm:$0xff] %vm19216_vm11, %v2586_v11  ;;  %2110 = vrot.lane.b32.xlu1 %v2021_v37, %s12526_s26  ;;  %vm19218_vm11 = vcmask 490944   ;;  %v13573_v37 = vld [vmem:[%s12610_s18 + $0x50] sm:$0xff]   ;;  %v5039_v11 = vshrl.u32 %v12160_v4, 16 }
 0x110   : > { %4057 = vrot.lane.b32.xlu0 %v4022_v45, %s19071_s11  ;;  %v4740_v45 = vsel %vm19087_vm3, %v4737_v41, %v4739_v51  ;;  %v4741_v0 = vrot.slane %v13573_v37, 2  ;;  %v5403_v41 = vshrl.u32 %v12162_v13, 16 }
 0x111   : > { %v2824_v7 = vpop.permute.xlu1 %2823 }
 0x112   : > { %2874 = vst.msk [vmem:[#allocation2 + $0x20] sm:$0xff] %vm19217_vm13, %v2824_v7  ;;  %v4770_v12 = vpop.permute.xlu0 %4769  ;;  %v5042_v7 = vshll.u32 %v12160_v4, 16  ;;  %v4742_v26 = vsel %vm19087_vm3, %v4739_v51, %v4741_v0  ;;  %v5405_v30 = vrot.slane %v5403_v41, 2 }
 0x113   : > { %4821 = vst.msk [vmem:[#allocation2 + $0x18] sm:$0xff] %vm19075_vm10, %v4770_v12  ;;  %4295 = vrot.lane.b32.xlu1 %v4260_v18, %s19069_s12  ;;  %v2558_v18 = vsel %vm19103_vm0, %v2555_v19, %v2557_v31  ;;  %v2797_v12 = vrot.slane %v13577_v6, 1 }
 0x114   : > { %2112 = vrot.lane.b32.xlu0 %v2029_v32, %s12526_s26  ;;  %v5044_v24 = vrot.slane %v5042_v7, 3 }
 0x115   : > { %v5142_v3 = vpop.permute.xlu1 %5141 }
 0x116   : > { %5194 = vst.msk [vmem:[#allocation2 + $0x10] sm:$0xff] %vm19218_vm11, %v5142_v3  ;;  %v2826_v58 = vpop.permute.xlu0 %2825  ;;  %vm19219_vm11 = vcmask 261344   ;;  %v5041_v3 = vrot.slane %v5039_v11, 2 }
 0x117   : > { %2875 = vst.msk [vmem:[#allocation2 + $0x28] sm:$0xff] %vm19217_vm13, %v2826_v58  ;;  %2351 = vrot.lane.b32.xlu1 %v2316_v55, %s19084_s23  ;;  %vm19220_vm13 = vcmask 490944   ;;  %v5036_v55 = vor.u32 %v5035_v23, %v5032_v49  ;;  %v12169_v49 = vld [vmem:[%s12610_s18 + $0x50] sm:$0xff]  }
 0x118   : > { %4297 = vrot.lane.b32.xlu0 %v4262_v56, %s19069_s12  ;;  %s19221_s12 = smov 48   ;;  %v12164_v56 = vld [vmem:[%s12615_s21 + $0x50] sm:$0xff]   ;;  %v13619_v20 = vor.u32 %v5044_v24, %v5041_v3  ;;  %v3713_v44 = vshrl.u32 %v12169_v49, 16 }
 0x119   : > { %v3064_v21 = vpop.permute.xlu1 %3063  ;;  %v3340_v62 = vshrl.u32 %v12164_v56, 16  ;;  %v3343_v51 = vshll.u32 %v12164_v56, 16 }
 0x11a   : > { %3114 = vst.msk [vmem:[#allocation2 + $0x20] sm:$0xff] %vm19219_vm11, %v3064_v21  ;;  %v5144_v2 = vpop.permute.xlu0 %5143  ;;  %vm19222_vm11 = vcmask 523744   ;;  %v3035_v21 = vrot.slane %v13593_v9, 1 }
 0x11b   : > { %5195 = vst.msk [vmem:[#allocation2 + $0x18] sm:$0xff] %vm19220_vm13, %v5144_v2  ;;  %4535 = vrot.lane.b32.xlu1 %v4500_v54, %s19221_s12  ;;  %vm19223_vm13 = vcmask 261344   ;;  %v12165_v54 = vld [vmem:[%s12610_s18 + $0x50] sm:$0xff]   ;;  %v5037_v2 = vsel %vm19086_vm4, %v13365_v61, %v5036_v55  ;;  %v3345_v23 = vrot.slane %v3343_v51, 2 }
 0x11c   : > { %2353 = vrot.lane.b32.xlu0 %v2318_v14, %s19084_s23  ;;  %v13609_v14 = vld [vmem:[%s12610_s18 + $0x58] sm:$0xff]   ;;  %v5412_v4 = vshrl.u32 %v12165_v54, 16  ;;  %v3036_v61 = vsel %vm19103_vm0, %v3033_v28, %v3035_v21  ;;  %v12226_v28 = vld [vmem:[%s12615_s21 + $0x50] sm:$0xff]  }
 0x11d   : > { %v5515_v29 = vpop.permute.xlu1 %5514  ;;  %v3037_v13 = vrot.slane %v13609_v14, 1  ;;  %1257 = vst.msk [vmem:[#allocation2 + $0x50] sm:$0xff] %vm19144_vm5, %v12226_v28 }
 0x11e   : > { %5567 = vst.msk [vmem:[#allocation2 + $0x10] sm:$0xff] %vm19222_vm11, %v5515_v29  ;;  %v3066_v38 = vpop.permute.xlu0 %3065  ;;  %vm19224_vm11 = vcmask 294144   ;;  %v5415_v29 = vshll.u32 %v12165_v54, 16  ;;  %v5727_v54 = vrot.slane %v13635_v33, 3 }
 0x11f   : > { %3115 = vst.msk [vmem:[#allocation2 + $0x28] sm:$0xff] %vm19223_vm13, %v3066_v38  ;;  %2591 = vrot.lane.b32.xlu1 %v2556_v48, %s19204_s24  ;;  %vm19225_vm13 = vcmask 523744   ;;  %v2798_v48 = vsel %vm19103_vm0, %v2795_v47, %v2797_v12  ;;  %v12168_v38 = vld [vmem:[%s12615_s21 + $0x58] sm:$0xff]   ;;  %v5409_v47 = vor.u32 %v5408_v25, %v5405_v30  ;;  %v3715_v25 = vrot.slane %v3713_v44, 1 }
 0x120   : > { %4537 = vrot.lane.b32.xlu0 %v4502_v17, %s19221_s12  ;;  %v5417_v7 = vrot.slane %v5415_v29, 3  ;;  %v3349_v9 = vshrl.u32 %v12168_v38, 16  ;;  %v3352_v41 = vshll.u32 %v12168_v38, 16  ;;  %v13666_v29 = vld [vmem:[%s12615_s21 + $0x58] sm:$0xff]   ;;  %v5728_v38 = vsel %vm19088_vm6, %v5725_v52, %v5727_v54 }
 0x121   : > { %v3438_v59 = vpop.permute.xlu1 %3437  ;;  %v1683_v15 = vshll.u32 %v13666_v29, 16 }
 0x122   : > { %3488 = vst.msk [vmem:[#allocation2 + $0x20] sm:$0xff] %vm19224_vm11, %v3438_v59  ;;  %v5517_v32 = vpop.permute.xlu0 %5516  ;;  %vm19226_vm11 = vcmask 556544   ;;  %v5046_v59 = vsel %vm19086_vm4, %v5036_v55, %v13619_v20  ;;  %v5410_v55 = vsel %vm19086_vm4, %v13391_v35, %v5409_v47  ;;  %v3351_v35 = vrot.slane %v3349_v9, 1 }
 0x123   : > { %5568 = vst.msk [vmem:[#allocation2 + $0x18] sm:$0xff] %vm19225_vm13, %v5517_v32  ;;  %4775 = vrot.lane.b32.xlu1 %v4740_v45, %s19205_s16  ;;  %vm19227_vm13 = vcmask 64544   ;;  %v3342_v45 = vrot.slane %v3340_v62, 1  ;;  %v3354_v30 = vrot.slane %v3352_v41, 2  ;;  %v13660_v62 = vld [vmem:[%s12610_s18 + $0x48] sm:$0xff]  }
 0x124   : > { %2593 = vrot.lane.b32.xlu0 %v2558_v18, %s19204_s24  ;;  %v5414_v18 = vrot.slane %v5412_v4, 2 }
 0x125   : > { %v5756_v58 = vpop.permute.xlu1 %5755  ;;  %v3346_v3 = vor.u32 %v3345_v23, %v3342_v45 }
 0x126   : > { %5808 = vst.msk [vmem:[#allocation2 + $0x10] sm:$0xff] %vm19226_vm11, %v5756_v58  ;;  %v1404_v19 = vpop.permute.xlu0 %1403  ;;  %vm19228_vm11 = vcmask 294144   ;;  %v3038_v58 = vsel %vm19103_vm0, %v3035_v21, %v3037_v13 }
 0x127   : > { %1452 = vst.msk [vmem:[#allocation2 + $0x30] sm:$0xff] %vm19227_vm13, %v1404_v19  ;;  %2831 = vrot.lane.b32.xlu1 %v2796_v42, %s12527_s27  ;;  %vm19229_vm13 = vcmask 326944   ;;  %v3716_v42 = vshll.u32 %v12169_v49, 16  ;;  %v13654_v19 = vld [vmem:[%s12615_s21 + $0x50] sm:$0xff]   ;;  %v3347_v21 = vsel %vm19102_vm2, %v13419_v1, %v3346_v3  ;;  %v12174_v1 = vld [vmem:[%s12610_s18 + $0x58] sm:$0xff]   ;;  %v13678_v49 = vor.u32 %v3354_v30, %v3351_v35 }
 0x128   : > { %4777 = vrot.lane.b32.xlu0 %v4742_v26, %s19205_s16  ;;  %v13647_v26 = vor.u32 %v5417_v7, %v5414_v18  ;;  %v5729_v23 = vrot.slane %v13654_v19, 3  ;;  %v5967_v18 = vrot.slane %v13660_v62, 3  ;;  %v3722_v52 = vshrl.u32 %v12174_v1, 16 }
 0x129   : > { %v3440_v50 = vpop.permute.xlu1 %3439  ;;  %v3725_v7 = vshll.u32 %v12174_v1, 16 }
 0x12a   : > { %3489 = vst.msk [vmem:[#allocation2 + $0x28] sm:$0xff] %vm19228_vm11, %v3440_v50  ;;  %v3811_v17 = vpop.permute.xlu0 %3810  ;;  %vm19230_vm11 = vcmask 556544   ;;  %v5419_v50 = vsel %vm19086_vm4, %v5409_v47, %v13647_v26  ;;  %v5730_v9 = vsel %vm19088_vm6, %v5727_v54, %v5729_v23  ;;  %v3724_v41 = vrot.slane %v3722_v52, 1  ;;  %v12172_v54 = vld [vmem:[%s12610_s18 + $0x58] sm:$0xff]  }
 0x12b   : > { %3861 = vst.msk [vmem:[#allocation2 + $0x20] sm:$0xff] %vm19229_vm13, %v3811_v17  ;;  %5149 = vrot.lane.b32.xlu1 %v5037_v2, %s19082_s17  ;;  %vm19231_vm13 = vcmask 64544   ;;  %v3718_v2 = vrot.slane %v3716_v42, 2  ;;  %v12233_v17 = vld [vmem:[%s12615_s21 + $0x58] sm:$0xff]   ;;  %v3727_v44 = vrot.slane %v3725_v7, 2  ;;  %v12175_v42 = vld [vmem:[%s12615_s21 + $0x50] sm:$0xff]  }
 0x12c   : > { %2833 = vrot.lane.b32.xlu0 %v2798_v48, %s12527_s27  ;;  %1258 = vst.msk [vmem:[#allocation2 + $0x58] sm:$0xff] %vm19144_vm5, %v12233_v17 }
 0x12d   : > { %v5758_v11 = vpop.permute.xlu1 %5757  ;;  %v3719_v45 = vor.u32 %v3718_v2, %v3715_v25  ;;  %v4023_v25 = vrot.slane %v12175_v42, 2  ;;  %v1687_v2 = vshrl.u32 %v13666_v29, 16  ;;  %v2034_v29 = vshll.u32 %v12178_v43, 16 }
 0x12e   : > { %5809 = vst.msk [vmem:[#allocation2 + $0x18] sm:$0xff] %vm19230_vm11, %v5758_v11  ;;  %v5996_v32 = vpop.permute.xlu0 %5995  ;;  %vm19232_vm11 = vcmask 97344   ;;  %v1679_v11 = vshrl.u32 %v13442_v16, 16  ;;  %v3356_v16 = vsel %vm19102_vm2, %v3346_v3, %v13678_v49  ;;  %v5968_v3 = vsel %vm19088_vm6, %v5965_v36, %v5967_v18 }
 0x12f   : > { %6048 = vst.msk [vmem:[#allocation2 + $0x10] sm:$0xff] %vm6045_vm12, %v5996_v32  ;;  %3071 = vrot.lane.b32.xlu1 %v3036_v61, %s19208_s15  ;;  %v12167_v61 = vld [vmem:[%s12610_s18 + $0x50] sm:$0xff]   ;;  %v3720_v33 = vsel %vm19102_vm2, %v13459_v10, %v3719_v45  ;;  %v13718_v36 = vor.u32 %v3727_v44, %v3724_v41  ;;  %v4024_v17 = vsel %vm19087_vm3, %v4021_v39, %v4023_v25  ;;  %v2036_v39 = vrot.slane %v2034_v29, 1  ;;  %v13801_v29 = vld [vmem:[%s12615_s21 + $0x60] sm:$0xff]  }
 0x130   : > { %5151 = vrot.lane.b32.xlu0 %v5046_v59, %s19082_s17 }
 0x131   : > { %v1406_v56 = vpop.permute.xlu1 %1405 }
 0x132   : > { %1453 = vst.msk [vmem:[#allocation2 + $0x38] sm:$0xff] %vm19231_vm13, %v1406_v56  ;;  %v1756_v24 = vpop.permute.xlu0 %1755  ;;  %vm19233_vm13 = vcmask 326944   ;;  %v1681_v56 = vor.u32 %v1679_v11, %v13482_v63  ;;  %v13740_v11 = vld [vmem:[%s12610_s18 + $0x60] sm:$0xff]  }
 0x133   : > { %1804 = vst.msk [vmem:[#allocation2 + $0x30] sm:$0xff] %vm19232_vm11, %v1756_v24  ;;  %5522 = vrot.lane.b32.xlu1 %v5410_v55, %s19080_s19  ;;  %v13706_v24 = vld [vmem:[%s12615_s21 + $0x60] sm:$0xff]  }
 0x134   : > { %3073 = vrot.lane.b32.xlu0 %v3038_v58, %s19208_s15  ;;  %v1685_v58 = vrot.slane %v1683_v15, 1  ;;  %v1691_v62 = vshll.u32 %v13706_v24, 16 }
 0x135   : > { %v3813_v51 = vpop.permute.xlu1 %3812 }
 0x136   : > { %3862 = vst.msk [vmem:[#allocation2 + $0x28] sm:$0xff] %vm19233_vm13, %v3813_v51  ;;  %v4052_v48 = vpop.permute.xlu0 %4051  ;;  %v6066_v4 = vld [vmem:[#allocation2 + $0x10] sm:$0xff]  ;;  %v1686_v30 = vsel %vm19076_vm1, %v1681_v56, %v1685_v58  ;;  %vm19234_vm13 = vcmask 162944  }
 0x137   : > { %4102 = vst.msk [vmem:[#allocation2 + $0x20] sm:$0xff] %vm4097_vm7, %v4052_v48  ;;  %3445 = vrot.lane.b32.xlu1 %v3347_v21, %s19203_s28  ;;  %11813 = vmatprep.mubr.msk.bf16.mxu0 %vm6125_vm14, %v6066_v4  ;;  %v13714_v21 = vld [vmem:[%s12610_s18 + $0x50] sm:$0xff]   ;;  %v2030_v4 = vshrl.u32 %v13485_v46, 16 }
 0x138   : > { %5524 = vrot.lane.b32.xlu0 %v5419_v50, %s19080_s19  ;;  %v3729_v50 = vsel %vm19102_vm2, %v3719_v45, %v13718_v36  ;;  %v5969_v48 = vrot.slane %v13714_v21, 3 }
 0x139   : > { %v5998_v47 = vpop.permute.xlu1 %5997  ;;  %v2032_v46 = vor.u32 %v2030_v4, %v13509_v53 }
 0x13a   : > { %6049 = vst.msk [vmem:[#allocation2 + $0x18] sm:$0xff] %vm6045_vm12, %v5998_v47  ;;  %v1758_v59 = vpop.permute.xlu0 %1757  ;;  %v13737_v47 = vld [vmem:[%s12615_s21 + $0x58] sm:$0xff]   ;;  %v5970_v60 = vsel %vm19088_vm6, %v5967_v18, %v5969_v48 }
 0x13b   : > { %1805 = vst.msk [vmem:[#allocation2 + $0x38] sm:$0xff] %vm19232_vm11, %v1758_v59  ;;  %5763 = vrot.lane.b32.xlu1 %v5728_v38, %s12537_s20  ;;  %v1689_v38 = vor.u32 %v1687_v2, %v1685_v58  ;;  %vm19235_vm11 = vmmov %vm19234_vm13  ;;  %v12180_v59 = vld [vmem:[%s12610_s18 + $0x50] sm:$0xff]   ;;  %v4025_v7 = vrot.slane %v13737_v47, 2  ;;  %v2037_v53 = vsel %vm19076_vm1, %v2032_v46, %v2036_v39  ;;  %v12184_v58 = vld [vmem:[%s12615_s21 + $0x58] sm:$0xff]  }
 0x13c   : > { %1411 = vrot.lane.b32.xlu0 %v12167_v61, %s19078_s22  ;;  %v13734_v61 = vrot.slane %v1691_v62, 1  ;;  %v4263_v18 = vrot.slane %v12180_v59, 2  ;;  %v12186_v2 = vld [vmem:[%s12610_s18 + $0x58] sm:$0xff]   ;;  %v19240_v62 = vmov 0 }
 0x13d   : > { %v2107_v32 = vpop.permute.xlu1 %2106  ;;  %v4026_v41 = vsel %vm19087_vm3, %v4023_v25, %v4025_v7  ;;  %v4503_v25 = vrot.slane %v12184_v58, 2  ;;  %v2559_v46 = vrot.slane %v12186_v2, 1  ;;  %v13862_v2 = vld [vmem:[%s12610_s18 + $0x60] sm:$0xff]  }
 0x13e   : > { %2155 = vst.msk [vmem:[#allocation2 + $0x30] sm:$0xff] %vm19089_vm9, %v2107_v32  ;;  %v4054_v28 = vpop.permute.xlu0 %4053  ;;  %v1694_v52 = vsel %vm19076_vm1, %v1689_v38, %v13734_v61  ;;  %v2042_v32 = vshll.u32 %v13740_v11, 16  ;;  %v3039_v6 = vrot.slane %v13862_v2, 1 }
 0x13f   : > { %4103 = vst.msk [vmem:[#allocation2 + $0x28] sm:$0xff] %vm4097_vm7, %v4054_v28  ;;  %3447 = vrot.lane.b32.xlu1 %v3356_v16, %s19203_s28  ;;  %v2038_v16 = vshrl.u32 %v12178_v43, 16  ;;  %v12182_v28 = vld [vmem:[%s12615_s21 + $0x58] sm:$0xff]  }
 0x140   : > { %3818 = vrot.lane.b32.xlu0 %v3720_v33, %s12530_s30  ;;  %v13764_v42 = vrot.slane %v2042_v32, 1  ;;  %v2319_v56 = vrot.slane %v12182_v28, 1  ;;  %v13828_v32 = vld [vmem:[%s12615_s21 + $0x60] sm:$0xff]  }
 0x141   : > { %v4292_v10 = vpop.permute.xlu1 %4291  ;;  %v6067_v55 = vld [vmem:[#allocation2 + $0x18] sm:$0xff]  ;;  %v2040_v44 = vor.u32 %v2038_v16, %v2036_v39  ;;  %v13825_v16 = vld [vmem:[%s12610_s18 + $0x60] sm:$0xff]  }
 0x142   : > { %4342 = vst.msk [vmem:[#allocation2 + $0x20] sm:$0xff] %vm19074_vm8, %v4292_v10  ;;  %v2109_v35 = vpop.permute.xlu0 %2108  ;;  %11814 = vmatmul.mubr.msk.bf16.gmra.mrb[4].mxu0 %vm6125_vm14, %v6067_v55  ;;  %v13767_v10 = vld [vmem:[%s12610_s18 + $0x58] sm:$0xff]  }
 0x143   : > { %2156 = vst.msk [vmem:[#allocation2 + $0x38] sm:$0xff] %vm19089_vm9, %v2109_v35  ;;  %5765 = vrot.lane.b32.xlu1 %v5730_v9, %s12537_s20  ;;  %v4265_v43 = vrot.slane %v13767_v10, 2  ;;  %v12188_v39 = vld [vmem:[%s12610_s18 + $0x58] sm:$0xff]  }
 0x144   : > { %6003 = vrot.lane.b32.xlu0 %v5968_v3, %s12538_s29  ;;  %v4264_v3 = vsel %vm19087_vm3, %v4261_v8, %v4263_v18  ;;  %v2320_v8 = vsel %vm19103_vm0, %v2317_v40, %v2319_v56  ;;  %v4743_v28 = vrot.slane %v12188_v39, 2 }
 0x145   : > { %v2348_v63 = vpop.permute.xlu1 %2347  ;;  %v4266_v4 = vsel %vm19087_vm3, %v4263_v18, %v4265_v43  ;;  %v2560_v18 = vsel %vm19103_vm0, %v2557_v31, %v2559_v46  ;;  %v13849_v31 = vld [vmem:[%s12615_s21 + $0x68] sm:$0xff]  }
 0x146   : > { %2396 = vst.msk [vmem:[#allocation2 + $0x30] sm:$0xff] %vm19234_vm13, %v2348_v63  ;;  %v4294_v51 = vpop.permute.xlu0 %4293  ;;  %vm19236_vm13 = vcmask 195744   ;;  %v13781_v63 = vld [vmem:[%s12615_s21 + $0x60] sm:$0xff]   ;;  %v2801_v37 = vrot.slane %v13849_v31, 1 }
 0x147   : > { %4343 = vst.msk [vmem:[#allocation2 + $0x28] sm:$0xff] %vm19074_vm8, %v4294_v51  ;;  %1413 = vrot.lane.b32.xlu1 %v12172_v54, %s19078_s22  ;;  %v2045_v54 = vsel %vm19076_vm1, %v2040_v44, %v13764_v42  ;;  %vm6902_vm8 = vcmask 27649   ;;  %v6905_v51 = vld [vmem:[#allocation3 + $0x98] sm:$0xe]  ;;  %v2321_v34 = vrot.slane %v13781_v63, 1 }
 0x148   : > { %1763 = vrot.lane.b32.xlu0 %v1686_v30, %s12525_s25  ;;  %v12229_v63 = vld [vmem:[%s12615_s21 + $0x68] sm:$0xff]  }
 0x149   : > { %v4532_v1 = vpop.permute.xlu1 %4531 }
 0x14a   : > { %4582 = vst.msk [vmem:[#allocation2 + $0x20] sm:$0xff] %vm19073_vm15, %v4532_v1  ;;  %v2350_v45 = vpop.permute.xlu0 %2349  ;;  %v19243_v1 = vmov 0 }
 0x14b   : > { %2397 = vst.msk [vmem:[#allocation2 + $0x38] sm:$0xff] %vm19235_vm11, %v2350_v45  ;;  %3820 = vrot.lane.b32.xlu1 %v3729_v50, %s12530_s30  ;;  %vm19237_vm11 = vmmov %vm19236_vm13  ;;  %v12193_v45 = vld [vmem:[%s12615_s21 + $0x58] sm:$0xff]  }
 0x14c   : > { %4059 = vrot.lane.b32.xlu0 %v4024_v17, %s19071_s11  ;;  %v5048_v27 = vshrl.u32 %v12193_v45, 16 }
 0x14d   : > { %v2588_v15 = vpop.permute.xlu1 %2587 }
 0x14e   : > { %2636 = vst.msk [vmem:[#allocation2 + $0x30] sm:$0xff] %vm19236_vm13, %v2588_v15  ;;  %v4534_v33 = vpop.permute.xlu0 %4533  ;;  %vm19238_vm13 = vcmask 228544   ;;  %v2322_v15 = vsel %vm19103_vm0, %v2319_v56, %v2321_v34  ;;  %v5050_v58 = vrot.slane %v5048_v27, 2 }
 0x14f   : > { %4583 = vst.msk [vmem:[#allocation2 + $0x28] sm:$0xff] %vm19073_vm15, %v4534_v33  ;;  %6005 = vrot.lane.b32.xlu1 %v5970_v60, %s12538_s29  ;;  %vm19077_vm15 = vsmask.f32 1280  ;;  %v4504_v60 = vsel %vm19087_vm3, %v4501_v22, %v4503_v25  ;;  %v12196_v22 = vld [vmem:[%s12615_s21 + $0x60] sm:$0xff]  }
 0x150   : > { %1765 = vrot.lane.b32.xlu0 %v1694_v52, %s12525_s25  ;;  %v4505_v52 = vrot.slane %v13801_v29, 2  ;;  %v5066_v29 = vshrl.u32 %v12229_v63, 16 }
 0x151   : > { %v4772_v9 = vpop.permute.xlu1 %4771 }
 0x152   : > { %4822 = vst.msk [vmem:[#allocation2 + $0x20] sm:$0xff] %vm19075_vm10, %v4772_v9  ;;  %v2590_v55 = vpop.permute.xlu0 %2589  ;;  %v5051_v9 = vshll.u32 %v12193_v45, 16  ;;  %v4506_v44 = vsel %vm19087_vm3, %v4503_v25, %v4505_v52 }
 0x153   : > { %2637 = vst.msk [vmem:[#allocation2 + $0x38] sm:$0xff] %vm19237_vm11, %v2590_v55  ;;  %2114 = vrot.lane.b32.xlu1 %v2037_v53, %s12526_s26  ;;  %vm6896_vm11 = vcmask 25600   ;;  %v13832_v53 = vld [vmem:[%s12610_s18 + $0x60] sm:$0xff]   ;;  %v2561_v55 = vrot.slane %v13825_v16, 1  ;;  %v5068_v16 = vrot.slane %v5066_v29, 2 }
 0x154   : > { %4061 = vrot.lane.b32.xlu0 %v4026_v41, %s19071_s11  ;;  %s19239_s11 = smov 44   ;;  %v4745_v57 = vrot.slane %v13832_v53, 2 }
 0x155   : > { %v2828_v35 = vpop.permute.xlu1 %2827  ;;  %v2562_v25 = vsel %vm19103_vm0, %v2559_v46, %v2561_v55 }
 0x156   : > { %2876 = vst.msk [vmem:[#allocation2 + $0x30] sm:$0xff] %vm19238_vm13, %v2828_v35  ;;  %v4774_v30 = vpop.permute.xlu0 %4773  ;;  %vm13792_vm13 = vmand %vm6896_vm11, %vm19077_vm15  ;;  %vm19246_vm11 = vcmask 490944   ;;  %vm19247_vm15 = vcmask 228544   ;;  %v5057_v35 = vshrl.u32 %v12196_v22, 16  ;;  %v4746_v46 = vsel %vm19087_vm3, %v4743_v28, %v4745_v57 }
 0x157   : > { %4823 = vst.msk [vmem:[#allocation2 + $0x28] sm:$0xff] %vm19075_vm10, %v4774_v30  ;;  %4299 = vrot.lane.b32.xlu1 %v4264_v3, %s19239_s11  ;;  %v19241_v62 = vsel %vm13792_vm13, 4294967295, %v19240_v62  ;;  %vm6903_vm10 = vsmask.f32 7942  ;;  %v6900_v40 = vsel %vm13792_vm13, 0, %v6899_v5  ;;  %v2799_v3 = vrot.slane %v13828_v32, 1 }
 0x158   : > { %2116 = vrot.lane.b32.xlu0 %v2045_v54, %s12526_s26  ;;  %19242 = vst [vmem:[#allocation4_spill] sm:$0xff] %v19241_v62  ;;  %vm13805_vm1 = vmand %vm6902_vm8, %vm6903_vm10  ;;  %vm19248_vm8 = vcmask 261344   ;;  %v4744_v54 = vsel %vm19087_vm3, %v4741_v0, %v4743_v28  ;;  %v5053_v30 = vrot.slane %v5051_v9, 3  ;;  %v12198_v5 = vld [vmem:[%s12610_s18 + $0x58] sm:$0xff]   ;;  %v5059_v0 = vrot.slane %v5057_v35, 2 }
 0x159   : > { %v5146_v50 = vpop.permute.xlu1 %5145  ;;  %v19244_v1 = vsel %vm13805_vm1, 4294967295, %v19243_v1  ;;  %6901 = vst [vmem:[#allocation3 + $0x8] sm:$0x3] %v6900_v40  ;;  %v6906_v38 = vsel %vm13805_vm1, 0, %v6905_v51  ;;  %vm19249_vm10 = vmmov %vm19246_vm11  ;;  %v5060_v51 = vshll.u32 %v12196_v22, 16  ;;  %v2800_v40 = vsel %vm19103_vm0, %v2797_v12, %v2799_v3  ;;  %v13882_v12 = vld [vmem:[%s12610_s18 + $0x68] sm:$0xff]  }
 0x15a   : > { %19245 = vst [vmem:[#allocation5_spill] sm:$0xff] %v19244_v1  ;;  %5196 = vst.msk [vmem:[#allocation2 + $0x20] sm:$0xff] %vm19246_vm11, %v5146_v50  ;;  %v2830_v17 = vpop.permute.xlu0 %2829  ;;  %v5424_v45 = vshll.u32 %v12198_v5, 16  ;;  %v2802_v9 = vsel %vm19103_vm0, %v2799_v3, %v2801_v37  ;;  %v3040_v3 = vsel %vm19103_vm0, %v3037_v13, %v3039_v6 }
 0x15b   : > { %2877 = vst.msk [vmem:[#allocation2 + $0x38] sm:$0xff] %vm19247_vm15, %v2830_v17  ;;  %2355 = vrot.lane.b32.xlu1 %v2320_v8, %s19084_s23  ;;  %6907 = vst [vmem:[#allocation3 + $0x98] sm:$0xe] %v6906_v38  ;;  %vm19250_vm15 = vcmask 523744   ;;  %v5054_v17 = vor.u32 %v5053_v30, %v5050_v58  ;;  %v5421_v38 = vshrl.u32 %v12198_v5, 16  ;;  %v5062_v39 = vrot.slane %v5060_v51, 3 }
 0x15c   : > { %4301 = vrot.lane.b32.xlu0 %v4266_v4, %s19239_s11  ;;  %vm19251_vm11 = vmmov %vm19248_vm8  ;;  %v12200_v4 = vld [vmem:[%s12615_s21 + $0x60] sm:$0xff]   ;;  %v12204_v30 = vld [vmem:[%s12615_s21 + $0x68] sm:$0xff]  }
 0x15d   : > { %v3068_v59 = vpop.permute.xlu1 %3067  ;;  %v3358_v32 = vshrl.u32 %v12200_v4, 16  ;;  %v5055_v27 = vsel %vm19086_vm4, %v13619_v20, %v5054_v17  ;;  %v5423_v22 = vrot.slane %v5421_v38, 2  ;;  %v12205_v20 = vld [vmem:[%s12610_s18 + $0x60] sm:$0xff]   ;;  %v3367_v14 = vshrl.u32 %v12204_v30, 16 }
 0x15e   : > { %3116 = vst.msk [vmem:[#allocation2 + $0x30] sm:$0xff] %vm19248_vm8, %v3068_v59  ;;  %v5148_v33 = vpop.permute.xlu0 %5147  ;;  %vm19252_vm8 = vcmask 294144   ;;  %v12201_v59 = vld [vmem:[%s12610_s18 + $0x60] sm:$0xff]   ;;  %v3370_v13 = vshll.u32 %v12204_v30, 16 }
 0x15f   : > { %5197 = vst.msk [vmem:[#allocation2 + $0x28] sm:$0xff] %vm19249_vm10, %v5148_v33  ;;  %4539 = vrot.lane.b32.xlu1 %v4504_v60, %s19221_s12  ;;  %vm19253_vm10 = vmmov %vm19250_vm15  ;;  %v3361_v33 = vshll.u32 %v12200_v4, 16  ;;  %v3360_v35 = vrot.slane %v3358_v32, 1  ;;  %v12262_v38 = vld [vmem:[%s12615_s21 + $0x60] sm:$0xff]  }
 0x160   : > { %2357 = vrot.lane.b32.xlu0 %v2322_v15, %s19084_s23  ;;  %1259 = vst.msk [vmem:[#allocation2 + $0x60] sm:$0xff] %vm19144_vm5, %v12262_v38 }
 0x161   : > { %v5519_v41 = vpop.permute.xlu1 %5518 }
 0x162   : > { %5569 = vst.msk [vmem:[#allocation2 + $0x20] sm:$0xff] %vm19250_vm15, %v5519_v41  ;;  %v3070_v56 = vpop.permute.xlu0 %3069  ;;  %vm19254_vm15 = vcmask 556544   ;;  %v13890_v41 = vor.u32 %v5062_v39, %v5059_v0 }
 0x163   : > { %3117 = vst.msk [vmem:[#allocation2 + $0x38] sm:$0xff] %vm19251_vm11, %v3070_v56  ;;  %2595 = vrot.lane.b32.xlu1 %v2560_v18, %s19204_s24  ;;  %vm19255_vm11 = vcmask 64544   ;;  %v5426_v18 = vrot.slane %v5424_v45, 3  ;;  %v5433_v56 = vshll.u32 %v12201_v59, 16  ;;  %v3731_v45 = vshrl.u32 %v12205_v20, 16 }
 0x164   : > { %4541 = vrot.lane.b32.xlu0 %v4506_v44, %s19221_s12  ;;  %v5430_v44 = vshrl.u32 %v12201_v59, 16  ;;  %v5064_v2 = vsel %vm19086_vm4, %v5054_v17, %v13890_v41 }
 0x165   : > { %v3442_v8 = vpop.permute.xlu1 %3441  ;;  %v5427_v5 = vor.u32 %v5426_v18, %v5423_v22  ;;  %v3372_v22 = vrot.slane %v3370_v13, 2  ;;  %v3733_v18 = vrot.slane %v3731_v45, 1 }
 0x166   : > { %3490 = vst.msk [vmem:[#allocation2 + $0x30] sm:$0xff] %vm19252_vm8, %v3442_v8  ;;  %v5521_v50 = vpop.permute.xlu0 %5520  ;;  %v3041_v8 = vrot.slane %v13882_v12, 1  ;;  %v5432_v51 = vrot.slane %v5430_v44, 2  ;;  %v12298_v12 = vld [vmem:[%s12615_s21 + $0x70] sm:$0xff]  }
 0x167   : > { %5570 = vst.msk [vmem:[#allocation2 + $0x28] sm:$0xff] %vm19253_vm10, %v5521_v50  ;;  %4779 = vrot.lane.b32.xlu1 %v4744_v54, %s19205_s16  ;;  %v3363_v54 = vrot.slane %v3361_v33, 2  ;;  %vm19256_vm10 = vcmask 326944   ;;  %v5435_v50 = vrot.slane %v5433_v56, 3  ;;  %v5428_v17 = vsel %vm19086_vm4, %v13647_v26, %v5427_v5  ;;  %v13927_v33 = vld [vmem:[%s12615_s21 + $0x60] sm:$0xff]  }
 0x168   : > { %2597 = vrot.lane.b32.xlu0 %v2562_v25, %s19204_s24  ;;  %v3042_v39 = vsel %vm19103_vm0, %v3039_v6, %v3041_v8  ;;  %v3369_v6 = vrot.slane %v3367_v14, 1  ;;  %1261 = vst.msk [vmem:[#allocation2 + $0x70] sm:$0xff] %vm19144_vm5, %v12298_v12 }
 0x169   : > { %v5760_v60 = vpop.permute.xlu1 %5759  ;;  %v3364_v0 = vor.u32 %v3363_v54, %v3360_v35  ;;  %v13918_v59 = vor.u32 %v5435_v50, %v5432_v51  ;;  %v12210_v35 = vld [vmem:[%s12610_s18 + $0x68] sm:$0xff]  }
 0x16a   : > { %5810 = vst.msk [vmem:[#allocation2 + $0x20] sm:$0xff] %vm19254_vm15, %v5760_v60  ;;  %v1408_v15 = vpop.permute.xlu0 %1407  ;;  %v3734_v60 = vshll.u32 %v12205_v20, 16  ;;  %v12269_v54 = vld [vmem:[%s12615_s21 + $0x68] sm:$0xff]   ;;  %v12203_v20 = vld [vmem:[%s12610_s18 + $0x60] sm:$0xff]  }
 0x16b   : > { %1454 = vst.msk [vmem:[#allocation2 + $0x40] sm:$0xff] %vm19255_vm11, %v1408_v15  ;;  %2835 = vrot.lane.b32.xlu1 %v2800_v40, %s12527_s27  ;;  %v13906_v40 = vld [vmem:[%s12615_s21 + $0x58] sm:$0xff]   ;;  %v3365_v26 = vsel %vm19102_vm2, %v13678_v49, %v3364_v0  ;;  %v5437_v44 = vsel %vm19086_vm4, %v5427_v5, %v13918_v59 }
 0x16c   : > { %4781 = vrot.lane.b32.xlu0 %v4746_v46, %s19205_s16  ;;  %v5731_v32 = vrot.slane %v13906_v40, 3  ;;  %1260 = vst.msk [vmem:[#allocation2 + $0x68] sm:$0xff] %vm19144_vm5, %v12269_v54  ;;  %v3743_v40 = vshll.u32 %v12210_v35, 16 }
 0x16d   : > { %v3444_v28 = vpop.permute.xlu1 %3443 }
 0x16e   : > { %3491 = vst.msk [vmem:[#allocation2 + $0x38] sm:$0xff] %vm19252_vm8, %v3444_v28  ;;  %v3815_v58 = vpop.permute.xlu0 %3814  ;;  %vm19257_vm8 = vcmask 97344   ;;  %v3736_v28 = vrot.slane %v3734_v60, 2  ;;  %v5732_v30 = vsel %vm19088_vm6, %v5729_v23, %v5731_v32  ;;  %v3740_v23 = vshrl.u32 %v12210_v35, 16 }
 0x16f   : > { %3863 = vst.msk [vmem:[#allocation2 + $0x30] sm:$0xff] %vm19256_vm10, %v3815_v58  ;;  %5153 = vrot.lane.b32.xlu1 %v5055_v27, %s19082_s17  ;;  %v13930_v27 = vld [vmem:[%s12610_s18 + $0x58] sm:$0xff]   ;;  %v13937_v58 = vld [vmem:[%s12615_s21 + $0x68] sm:$0xff]   ;;  %v3745_v60 = vrot.slane %v3743_v40, 2  ;;  %v12216_v40 = vld [vmem:[%s12610_s18 + $0x60] sm:$0xff]  }
 0x170   : > { %2837 = vrot.lane.b32.xlu0 %v2802_v9, %s12527_s27  ;;  %v5971_v51 = vrot.slane %v13930_v27, 3  ;;  %v1699_v19 = vshll.u32 %v13937_v58, 16 }
 0x171   : > { %v5762_v25 = vpop.permute.xlu1 %5761 }
 0x172   : > { %5811 = vst.msk [vmem:[#allocation2 + $0x28] sm:$0xff] %vm19254_vm15, %v5762_v25  ;;  %v6000_v4 = vpop.permute.xlu0 %5999  ;;  %v3737_v25 = vor.u32 %v3736_v28, %v3733_v18  ;;  %vm19258_vm15 = vmmov %vm19257_vm8  ;;  %v13987_v18 = vld [vmem:[%s12610_s18 + $0x60] sm:$0xff]  }
 0x173   : > { %6050 = vst.msk [vmem:[#allocation2 + $0x20] sm:$0xff] %vm6045_vm12, %v6000_v4  ;;  %3075 = vrot.lane.b32.xlu1 %v3040_v3, %s19208_s15  ;;  %v13949_v3 = vor.u32 %v3372_v22, %v3369_v6  ;;  %v1695_v4 = vshrl.u32 %v13706_v24, 16  ;;  %v13979_v6 = vld [vmem:[%s12615_s21 + $0x70] sm:$0xff]   ;;  %v12208_v22 = vld [vmem:[%s12610_s18 + $0x68] sm:$0xff]   ;;  %v5973_v54 = vrot.slane %v13987_v18, 3 }
 0x174   : > { %5155 = vrot.lane.b32.xlu0 %v5064_v2, %s19082_s17  ;;  %v5733_v2 = vrot.slane %v13927_v33, 3  ;;  %v3738_v13 = vsel %vm19102_vm2, %v13718_v36, %v3737_v25 }
 0x175   : > { %v1410_v46 = vpop.permute.xlu1 %1409  ;;  %v3374_v38 = vsel %vm19102_vm2, %v3364_v0, %v13949_v3  ;;  %v3742_v0 = vrot.slane %v3740_v23, 1  ;;  %v14013_v23 = vld [vmem:[%s12610_s18 + $0x70] sm:$0xff]   ;;  %v5974_v47 = vsel %vm19088_vm6, %v5971_v51, %v5973_v54 }
 0x176   : > { %1455 = vst.msk [vmem:[#allocation2 + $0x48] sm:$0xff] %vm19255_vm11, %v1410_v46  ;;  %v1760_v15 = vpop.permute.xlu0 %1759  ;;  %v5734_v45 = vsel %vm19088_vm6, %v5731_v32, %v5733_v2  ;;  %vm19259_vm11 = vcmask 392544  }
 0x177   : > { %1806 = vst.msk [vmem:[#allocation2 + $0x40] sm:$0xff] %vm19257_vm8, %v1760_v15  ;;  %5526 = vrot.lane.b32.xlu1 %v5428_v17, %s19080_s19  ;;  %v12211_v17 = vld [vmem:[%s12615_s21 + $0x60] sm:$0xff]   ;;  %v1697_v15 = vor.u32 %v1695_v4, %v13734_v61  ;;  %v13990_v21 = vor.u32 %v3745_v60, %v3742_v0  ;;  %vm19260_vm8 = vsmask.f32 7424  ;;  %v12218_v0 = vld [vmem:[%s12615_s21 + $0x68] sm:$0xff]  }
 0x178   : > { %3077 = vrot.lane.b32.xlu0 %v3042_v39, %s19208_s15  ;;  %v5972_v39 = vsel %vm19088_vm6, %v5969_v48, %v5971_v51  ;;  %v12214_v48 = vld [vmem:[%s12610_s18 + $0x68] sm:$0xff]   ;;  %v4267_v51 = vrot.slane %v12216_v40, 2 }
 0x179   : > { %v3817_v9 = vpop.permute.xlu1 %3816  ;;  %v3747_v35 = vsel %vm19102_vm2, %v3737_v25, %v13990_v21 }
 0x17a   : > { %3864 = vst.msk [vmem:[#allocation2 + $0x38] sm:$0xff] %vm19256_vm10, %v3817_v9  ;;  %v4056_v49 = vpop.permute.xlu0 %4055  ;;  %v6068_v56 = vld [vmem:[#allocation2 + $0x20] sm:$0xff]  ;;  %v4027_v9 = vrot.slane %v12211_v17, 2  ;;  %vm19261_vm10 = vcmask 162944  }
 0x17b   : > { %4104 = vst.msk [vmem:[#allocation2 + $0x30] sm:$0xff] %vm4097_vm7, %v4056_v49  ;;  %3449 = vrot.lane.b32.xlu1 %v3365_v26, %s19203_s28  ;;  %11817 = vmatprep.mubr.msk.bf16.mxu0 %vm6125_vm14, %v6068_v56  ;;  %v1701_v26 = vrot.slane %v1699_v19, 1  ;;  %v1707_v49 = vshll.u32 %v13979_v6, 16  ;;  %v14010_v19 = vld [vmem:[%s12615_s21 + $0x68] sm:$0xff]  }
 0x17c   : > { %5528 = vrot.lane.b32.xlu0 %v5437_v44, %s19080_s19  ;;  %v1703_v44 = vshrl.u32 %v13937_v58, 16  ;;  %v2050_v58 = vshll.u32 %v12214_v48, 16 }
 0x17d   : > { %v6002_v5 = vpop.permute.xlu1 %6001  ;;  %v1702_v28 = vsel %vm19260_vm8, %v1697_v15, %v1701_v26  ;;  %v14007_v4 = vrot.slane %v1707_v49, 1  ;;  %vm19264_vm8 = vmmov %vm19261_vm10  ;;  %v12222_v49 = vld [vmem:[%s12610_s18 + $0x68] sm:$0xff]  }
 0x17e   : > { %6051 = vst.msk [vmem:[#allocation2 + $0x28] sm:$0xff] %vm6045_vm12, %v6002_v5  ;;  %v1762_v50 = vpop.permute.xlu0 %1761  ;;  %v4028_v5 = vsel %vm19087_vm3, %v4025_v7, %v4027_v9  ;;  %v2052_v7 = vrot.slane %v2050_v58, 1  ;;  %v14071_v58 = vld [vmem:[%s12615_s21 + $0x70] sm:$0xff]  }
 0x17f   : > { %1807 = vst.msk [vmem:[#allocation2 + $0x48] sm:$0xff] %vm19258_vm15, %v1762_v50  ;;  %5767 = vrot.lane.b32.xlu1 %v5732_v30, %s12537_s20  ;;  %vm19262_vm15 = vmmov %vm19259_vm11  ;;  %v2046_v30 = vshrl.u32 %v13740_v11, 16  ;;  %v1705_v50 = vor.u32 %v1703_v44, %v1701_v26  ;;  %v4268_v26 = vsel %vm19087_vm3, %v4265_v43, %v4267_v51 }
 0x180   : > { %1415 = vrot.lane.b32.xlu0 %v12203_v20, %s19078_s22 }
 0x181   : > { %v2111_v14 = vpop.permute.xlu1 %2110  ;;  %v2048_v11 = vor.u32 %v2046_v30, %v13764_v42 }
 0x182   : > { %2157 = vst.msk [vmem:[#allocation2 + $0x40] sm:$0xff] %vm19089_vm9, %v2111_v14  ;;  %v4058_v24 = vpop.permute.xlu0 %4057 }
 0x183   : > { %4105 = vst.msk [vmem:[#allocation2 + $0x38] sm:$0xff] %vm4097_vm7, %v4058_v24  ;;  %3451 = vrot.lane.b32.xlu1 %v3374_v38, %s19203_s28  ;;  %v2054_v24 = vshrl.u32 %v12214_v48, 16 }
 0x184   : > { %3822 = vrot.lane.b32.xlu0 %v3738_v13, %s12530_s30  ;;  %v4029_v13 = vrot.slane %v14010_v19, 2 }
 0x185   : > { %v4296_v36 = vpop.permute.xlu1 %4295  ;;  %v6069_v46 = vld [vmem:[#allocation2 + $0x28] sm:$0xff] }
 0x186   : > { %4344 = vst.msk [vmem:[#allocation2 + $0x30] sm:$0xff] %vm19259_vm11, %v4296_v36  ;;  %v2113_v32 = vpop.permute.xlu0 %2112  ;;  %11818 = vmatmul.mubr.msk.bf16.gmra.mrb[8].mxu0 %vm6125_vm14, %v6069_v46  ;;  %vm19263_vm11 = vcmask 425344   ;;  %v4030_v17 = vsel %vm19087_vm3, %v4027_v9, %v4029_v13  ;;  %v2056_v36 = vor.u32 %v2054_v24, %v2052_v7  ;;  %v14056_v9 = vld [vmem:[%s12615_s21 + $0x70] sm:$0xff]  }
 0x187   : > { %2158 = vst.msk [vmem:[#allocation2 + $0x48] sm:$0xff] %vm19089_vm9, %v2113_v32  ;;  %5769 = vrot.lane.b32.xlu1 %v5734_v45, %s12537_s20  ;;  %v2058_v45 = vshll.u32 %v14013_v23, 16  ;;  %v2323_v32 = vrot.slane %v12218_v0, 1  ;;  %v2325_v30 = vrot.slane %v14056_v9, 1  ;;  %v12232_v0 = vld [vmem:[%s12615_s21 + $0x70] sm:$0xff]   ;;  %v12265_v9 = vld [vmem:[%s12615_s21 + $0x78] sm:$0xff]  }
 0x188   : > { %6007 = vrot.lane.b32.xlu0 %v5972_v39, %s12538_s29  ;;  %v14042_v39 = vld [vmem:[%s12610_s18 + $0x68] sm:$0xff]  }
 0x189   : > { %v2352_v61 = vpop.permute.xlu1 %2351  ;;  %v14039_v46 = vrot.slane %v2058_v45, 1  ;;  %v2324_v10 = vsel %vm19103_vm0, %v2321_v34, %v2323_v32  ;;  %v14098_v45 = vld [vmem:[%s12610_s18 + $0x70] sm:$0xff]  }
 0x18a   : > { %2398 = vst.msk [vmem:[#allocation2 + $0x40] sm:$0xff] %vm19261_vm10, %v2352_v61  ;;  %v4298_v56 = vpop.permute.xlu0 %4297  ;;  %vm19266_vm10 = vsmask.f32 7424 }
 0x18b   : > { %4345 = vst.msk [vmem:[#allocation2 + $0x38] sm:$0xff] %vm19262_vm15, %v4298_v56  ;;  %1417 = vrot.lane.b32.xlu1 %v12208_v22, %s19078_s22  ;;  %s19265_s22 = smov 40   ;;  %v1710_v14 = vsel %vm19266_vm10, %v1705_v50, %v14007_v4  ;;  %vm19267_vm15 = vcmask 195744   ;;  %v12220_v22 = vld [vmem:[%s12615_s21 + $0x68] sm:$0xff]  }
 0x18c   : > { %1767 = vrot.lane.b32.xlu0 %v1702_v28, %s12525_s25  ;;  %v4269_v28 = vrot.slane %v14042_v39, 2  ;;  %v4507_v43 = vrot.slane %v12220_v22, 2  ;;  %v12224_v50 = vld [vmem:[%s12610_s18 + $0x68] sm:$0xff]   ;;  %v4749_v22 = vrot.slane %v14098_v45, 2 }
 0x18d   : > { %v4536_v20 = vpop.permute.xlu1 %4535  ;;  %v4747_v24 = vrot.slane %v12224_v50, 2 }
 0x18e   : > { %4584 = vst.msk [vmem:[#allocation2 + $0x30] sm:$0xff] %vm19263_vm11, %v4536_v20  ;;  %v2354_v25 = vpop.permute.xlu0 %2353  ;;  %v4508_v34 = vsel %vm19087_vm3, %v4505_v52, %v4507_v43  ;;  %v5069_v52 = vshll.u32 %v12229_v63, 16 }
 0x18f   : > { %2399 = vst.msk [vmem:[#allocation2 + $0x48] sm:$0xff] %vm19264_vm8, %v2354_v25  ;;  %3824 = vrot.lane.b32.xlu1 %v3747_v35, %s12530_s30  ;;  %vm19268_vm8 = vmmov %vm19266_vm10  ;;  %vm19269_vm10 = vcmask 458144   ;;  %v4270_v35 = vsel %vm19087_vm3, %v4267_v51, %v4269_v28  ;;  %v4750_v63 = vsel %vm19087_vm3, %v4747_v24, %v4749_v22 }
 0x190   : > { %4063 = vrot.lane.b32.xlu0 %v4028_v5, %s19265_s22  ;;  %v2053_v42 = vsel %vm19268_vm8, %v2048_v11, %v2052_v7  ;;  %v2563_v5 = vrot.slane %v12222_v49, 1  ;;  %v4509_v11 = vrot.slane %v14071_v58, 2  ;;  %v14087_v7 = vld [vmem:[%s12610_s18 + $0x70] sm:$0xff]   ;;  %v5084_v58 = vshrl.u32 %v12265_v9, 16 }
 0x191   : > { %v2592_v38 = vpop.permute.xlu1 %2591  ;;  %v2565_v51 = vrot.slane %v14087_v7, 1 }
 0x192   : > { %2638 = vst.msk [vmem:[#allocation2 + $0x40] sm:$0xff] %vm19267_vm15, %v2592_v38  ;;  %v4538_v27 = vpop.permute.xlu0 %4537  ;;  %v12227_v38 = vld [vmem:[%s12615_s21 + $0x70] sm:$0xff]   ;;  %v5086_v7 = vrot.slane %v5084_v58, 2 }
 0x193   : > { %4585 = vst.msk [vmem:[#allocation2 + $0x38] sm:$0xff] %vm19263_vm11, %v4538_v27  ;;  %6009 = vrot.lane.b32.xlu1 %v5974_v47, %s12538_s29  ;;  %vm19270_vm11 = vmmov %vm19268_vm8  ;;  %vm19271_vm8 = vcmask 228544   ;;  %v2326_v47 = vsel %vm19103_vm0, %v2323_v32, %v2325_v30  ;;  %v2566_v32 = vsel %vm19103_vm0, %v2563_v5, %v2565_v51 }
 0x194   : > { %1769 = vrot.lane.b32.xlu0 %v1710_v14, %s12525_s25  ;;  %v2061_v61 = vsel %vm19270_vm11, %v2056_v36, %v14039_v46  ;;  %vm19273_vm11 = vmmov %vm19271_vm8  ;;  %v2564_v14 = vsel %vm19103_vm0, %v2561_v55, %v2563_v5  ;;  %v5071_v55 = vrot.slane %v5069_v52, 3  ;;  %v2803_v36 = vrot.slane %v12227_v38, 1 }
 0x195   : > { %v4776_v60 = vpop.permute.xlu1 %4775 }
 0x196   : > { %4824 = vst.msk [vmem:[#allocation2 + $0x30] sm:$0xff] %vm19269_vm10, %v4776_v60  ;;  %v2594_v15 = vpop.permute.xlu0 %2593 }
 0x197   : > { %2639 = vst.msk [vmem:[#allocation2 + $0x48] sm:$0xff] %vm19267_vm15, %v2594_v15  ;;  %2118 = vrot.lane.b32.xlu1 %v2053_v42, %s12526_s26  ;;  %vm19272_vm15 = vcmask 490944   ;;  %v4510_v42 = vsel %vm19087_vm3, %v4507_v43, %v4509_v11  ;;  %v12234_v15 = vld [vmem:[%s12610_s18 + $0x68] sm:$0xff]   ;;  %v2804_v43 = vsel %vm19103_vm0, %v2801_v37, %v2803_v36 }
 0x198   : > { %4065 = vrot.lane.b32.xlu0 %v4030_v17, %s19265_s22  ;;  %v4748_v17 = vsel %vm19087_vm3, %v4745_v57, %v4747_v24  ;;  %v5072_v57 = vor.u32 %v5071_v55, %v5068_v16  ;;  %v5439_v49 = vshrl.u32 %v12234_v15, 16 }
 0x199   : > { %v2832_v48 = vpop.permute.xlu1 %2831 }
 0x19a   : > { %2878 = vst.msk [vmem:[#allocation2 + $0x40] sm:$0xff] %vm19271_vm8, %v2832_v48  ;;  %v4778_v44 = vpop.permute.xlu0 %4777  ;;  %vm19274_vm8 = vcmask 261344   ;;  %v14118_v48 = vld [vmem:[%s12615_s21 + $0x78] sm:$0xff]   ;;  %v5073_v31 = vsel %vm19086_vm4, %v13890_v41, %v5072_v57 }
 0x19b   : > { %4825 = vst.msk [vmem:[#allocation2 + $0x38] sm:$0xff] %vm19269_vm10, %v4778_v44  ;;  %4303 = vrot.lane.b32.xlu1 %v4268_v26, %s19239_s11  ;;  %vm19275_vm10 = vmmov %vm19272_vm15  ;;  %v5078_v44 = vshll.u32 %v12232_v0, 16 }
 0x19c   : > { %2120 = vrot.lane.b32.xlu0 %v2061_v61, %s12526_s26  ;;  %v5075_v61 = vshrl.u32 %v12232_v0, 16 }
 0x19d   : > { %v5150_v56 = vpop.permute.xlu1 %5149  ;;  %v5080_v50 = vrot.slane %v5078_v44, 3 }
 0x19e   : > { %5198 = vst.msk [vmem:[#allocation2 + $0x30] sm:$0xff] %vm19272_vm15, %v5150_v56  ;;  %v2834_v20 = vpop.permute.xlu0 %2833  ;;  %vm19276_vm15 = vcmask 523744   ;;  %v5442_v56 = vshll.u32 %v12234_v15, 16  ;;  %v5077_v5 = vrot.slane %v5075_v61, 2  ;;  %v12240_v15 = vld [vmem:[%s12615_s21 + $0x78] sm:$0xff]  }
 0x19f   : > { %2879 = vst.msk [vmem:[#allocation2 + $0x48] sm:$0xff] %vm19273_vm11, %v2834_v20  ;;  %2359 = vrot.lane.b32.xlu1 %v2324_v10, %s19084_s23  ;;  %vm19277_vm11 = vmmov %vm19274_vm8  ;;  %v12231_v10 = vld [vmem:[%s12610_s18 + $0x70] sm:$0xff]  }
 0x1a0   : > { %4305 = vrot.lane.b32.xlu0 %v4270_v35, %s19239_s11  ;;  %v12236_v35 = vld [vmem:[%s12615_s21 + $0x70] sm:$0xff]   ;;  %v3043_v37 = vrot.slane %v12231_v10, 1  ;;  %v5444_v38 = vrot.slane %v5442_v56, 3  ;;  %v3385_v56 = vshrl.u32 %v12240_v15, 16 }
 0x1a1   : > { %v3072_v25 = vpop.permute.xlu1 %3071  ;;  %v3376_v29 = vshrl.u32 %v12236_v35, 16  ;;  %v3379_v52 = vshll.u32 %v12236_v35, 16  ;;  %v12241_v10 = vld [vmem:[%s12610_s18 + $0x70] sm:$0xff]   ;;  %v3388_v35 = vshll.u32 %v12240_v15, 16 }
 0x1a2   : > { %3118 = vst.msk [vmem:[#allocation2 + $0x40] sm:$0xff] %vm19274_vm8, %v3072_v25  ;;  %v5152_v40 = vpop.permute.xlu0 %5151  ;;  %vm19278_vm8 = vcmask 294144   ;;  %v12237_v25 = vld [vmem:[%s12610_s18 + $0x70] sm:$0xff]   ;;  %v3044_v16 = vsel %vm19103_vm0, %v3041_v8, %v3043_v37 }
 0x1a3   : > { %5199 = vst.msk [vmem:[#allocation2 + $0x38] sm:$0xff] %vm19275_vm10, %v5152_v40  ;;  %4543 = vrot.lane.b32.xlu1 %v4508_v34, %s19221_s12  ;;  %vm19279_vm10 = vmmov %vm19276_vm15  ;;  %v2805_v34 = vrot.slane %v14118_v48, 1  ;;  %v5441_v40 = vrot.slane %v5439_v49, 2  ;;  %v5448_v0 = vshrl.u32 %v12237_v25, 16 }
 0x1a4   : > { %2361 = vrot.lane.b32.xlu0 %v2326_v47, %s19084_s23 }
 0x1a5   : > { %v5523_v27 = vpop.permute.xlu1 %5522  ;;  %v2806_v24 = vsel %vm19103_vm0, %v2803_v36, %v2805_v34  ;;  %v5445_v55 = vor.u32 %v5444_v38, %v5441_v40  ;;  %v3381_v36 = vrot.slane %v3379_v52, 2  ;;  %v5450_v44 = vrot.slane %v5448_v0, 2 }
 0x1a6   : > { %5571 = vst.msk [vmem:[#allocation2 + $0x30] sm:$0xff] %vm19276_vm15, %v5523_v27  ;;  %v3074_v60 = vpop.permute.xlu0 %3073  ;;  %vm19280_vm15 = vcmask 556544   ;;  %v14143_v27 = vor.u32 %v5080_v50, %v5077_v5  ;;  %v3749_v50 = vshrl.u32 %v12241_v10, 16  ;;  %v3390_v40 = vrot.slane %v3388_v35, 2 }
 0x1a7   : > { %3119 = vst.msk [vmem:[#allocation2 + $0x48] sm:$0xff] %vm19277_vm11, %v3074_v60  ;;  %2599 = vrot.lane.b32.xlu1 %v2564_v14, %s19204_s24  ;;  %vm19281_vm11 = vcmask 64544   ;;  %v5451_v60 = vshll.u32 %v12237_v25, 16  ;;  %v5446_v8 = vsel %vm19086_vm4, %v13918_v59, %v5445_v55  ;;  %v3752_v25 = vshll.u32 %v12241_v10, 16 }
 0x1a8   : > { %4545 = vrot.lane.b32.xlu0 %v4510_v42, %s19221_s12  ;;  %v14146_v42 = vld [vmem:[%s12610_s18 + $0x78] sm:$0xff]   ;;  %v3751_v52 = vrot.slane %v3749_v50, 1 }
 0x1a9   : > { %v3446_v26 = vpop.permute.xlu1 %3445  ;;  %v3045_v61 = vrot.slane %v14146_v42, 1  ;;  %v12333_v42 = vld [vmem:[%s12615_s21 + $0x80] sm:$0xff]  }
 0x1aa   : > { %3492 = vst.msk [vmem:[#allocation2 + $0x40] sm:$0xff] %vm19278_vm8, %v3446_v26  ;;  %v5525_v53 = vpop.permute.xlu0 %5524 }
 0x1ab   : > { %5572 = vst.msk [vmem:[#allocation2 + $0x38] sm:$0xff] %vm19279_vm10, %v5525_v53  ;;  %4783 = vrot.lane.b32.xlu1 %v4748_v17, %s19205_s16  ;;  %vm19282_vm10 = vcmask 326944   ;;  %v3378_v17 = vrot.slane %v3376_v29, 1  ;;  %v5453_v53 = vrot.slane %v5451_v60, 3 }
 0x1ac   : > { %2601 = vrot.lane.b32.xlu0 %v2566_v32, %s19204_s24  ;;  %v5082_v32 = vsel %vm19086_vm4, %v5072_v57, %v14143_v27  ;;  %v12238_v57 = vld [vmem:[%s12615_s21 + $0x68] sm:$0xff]   ;;  %1263 = vst.msk [vmem:[#allocation2 + $0x80] sm:$0xff] %vm19144_vm5, %v12333_v42 }
 0x1ad   : > { %v5764_v20 = vpop.permute.xlu1 %5763  ;;  %v3382_v49 = vor.u32 %v3381_v36, %v3378_v17  ;;  %v14172_v5 = vor.u32 %v5453_v53, %v5450_v44  ;;  %v12246_v17 = vld [vmem:[%s12610_s18 + $0x78] sm:$0xff]  }
 0x1ae   : > { %5812 = vst.msk [vmem:[#allocation2 + $0x30] sm:$0xff] %vm19280_vm15, %v5764_v20  ;;  %v1412_v47 = vpop.permute.xlu0 %1411  ;;  %v3758_v53 = vshrl.u32 %v12246_v17, 16  ;;  %v3761_v10 = vshll.u32 %v12246_v17, 16 }
 0x1af   : > { %1456 = vst.msk [vmem:[#allocation2 + $0x50] sm:$0xff] %vm19281_vm11, %v1412_v47  ;;  %2839 = vrot.lane.b32.xlu1 %v2804_v43, %s12527_s27  ;;  %v3383_v59 = vsel %vm19102_vm2, %v13949_v3, %v3382_v49  ;;  %v5455_v29 = vsel %vm19086_vm4, %v5445_v55, %v14172_v5  ;;  %v12305_v3 = vld [vmem:[%s12615_s21 + $0x78] sm:$0xff]   ;;  %v14195_v55 = vld [vmem:[%s12615_s21 + $0x70] sm:$0xff]  }
 0x1b0   : > { %4785 = vrot.lane.b32.xlu0 %v4750_v63, %s19205_s16  ;;  %v3046_v63 = vsel %vm19103_vm0, %v3043_v37, %v3045_v61  ;;  %v3387_v37 = vrot.slane %v3385_v56, 1  ;;  %1262 = vst.msk [vmem:[#allocation2 + $0x78] sm:$0xff] %vm19144_vm5, %v12305_v3 }
 0x1b1   : > { %v3448_v14 = vpop.permute.xlu1 %3447 }
 0x1b2   : > { %3493 = vst.msk [vmem:[#allocation2 + $0x48] sm:$0xff] %vm19278_vm8, %v3448_v14  ;;  %v3819_v41 = vpop.permute.xlu0 %3818  ;;  %vm19283_vm8 = vcmask 97344   ;;  %v3754_v14 = vrot.slane %v3752_v25, 2 }
 0x1b3   : > { %3865 = vst.msk [vmem:[#allocation2 + $0x40] sm:$0xff] %vm19282_vm10, %v3819_v41  ;;  %5157 = vrot.lane.b32.xlu1 %v5073_v31, %s19082_s17  ;;  %v5735_v31 = vrot.slane %v12238_v57, 3  ;;  %v12239_v41 = vld [vmem:[%s12610_s18 + $0x70] sm:$0xff]   ;;  %v1711_v57 = vshrl.u32 %v13979_v6, 16 }
 0x1b4   : > { %2841 = vrot.lane.b32.xlu0 %v2806_v24, %s12527_s27  ;;  %v3755_v15 = vor.u32 %v3754_v14, %v3751_v52 }
 0x1b5   : > { %v5766_v26 = vpop.permute.xlu1 %5765  ;;  %v5736_v60 = vsel %vm19088_vm6, %v5733_v2, %v5735_v31  ;;  %v5737_v2 = vrot.slane %v14195_v55, 3  ;;  %v1713_v25 = vor.u32 %v1711_v57, %v14007_v4  ;;  %v12250_v4 = vld [vmem:[%s12610_s18 + $0x78] sm:$0xff]  }
 0x1b6   : > { %5813 = vst.msk [vmem:[#allocation2 + $0x38] sm:$0xff] %vm19280_vm15, %v5766_v26  ;;  %v6004_v43 = vpop.permute.xlu0 %6003  ;;  %v14199_v26 = vld [vmem:[%s12610_s18 + $0x68] sm:$0xff]   ;;  %vm19284_vm15 = vmmov %vm19283_vm8  ;;  %v3756_v12 = vsel %vm19102_vm2, %v13990_v21, %v3755_v15  ;;  %v2066_v17 = vshll.u32 %v12250_v4, 16 }
 0x1b7   : > { %6052 = vst.msk [vmem:[#allocation2 + $0x30] sm:$0xff] %vm6045_vm12, %v6004_v43  ;;  %3079 = vrot.lane.b32.xlu1 %v3044_v16, %s19208_s15  ;;  %v14192_v16 = vor.u32 %v3390_v40, %v3387_v37  ;;  %v5738_v21 = vsel %vm19088_vm6, %v5735_v31, %v5737_v2  ;;  %v14227_v37 = vld [vmem:[%s12615_s21 + $0x80] sm:$0xff]   ;;  %v12244_v31 = vld [vmem:[%s12610_s18 + $0x78] sm:$0xff]  }
 0x1b8   : > { %5159 = vrot.lane.b32.xlu0 %v5082_v32, %s19082_s17  ;;  %v12245_v32 = vld [vmem:[%s12615_s21 + $0x78] sm:$0xff]   ;;  %v2068_v57 = vrot.slane %v2066_v17, 1 }
 0x1b9   : > { %v1414_v20 = vpop.permute.xlu1 %1413  ;;  %v3392_v33 = vsel %vm19102_vm2, %v3382_v49, %v14192_v16  ;;  %v1715_v56 = vshll.u32 %v12245_v32, 16  ;;  %v3760_v49 = vrot.slane %v3758_v53, 1  ;;  %v1719_v14 = vshrl.u32 %v12245_v32, 16  ;;  %v14259_v53 = vld [vmem:[%s12615_s21 + $0x78] sm:$0xff]  }
 0x1ba   : > { %1457 = vst.msk [vmem:[#allocation2 + $0x58] sm:$0xff] %vm19281_vm11, %v1414_v20  ;;  %v1764_v47 = vpop.permute.xlu0 %1763  ;;  %v3763_v20 = vrot.slane %v3761_v10, 2  ;;  %vm19286_vm11 = vcmask 392544   ;;  %v14262_v10 = vld [vmem:[%s12610_s18 + $0x80] sm:$0xff]   ;;  %v12258_v17 = vld [vmem:[%s12610_s18 + $0x78] sm:$0xff]  }
 0x1bb   : > { %1808 = vst.msk [vmem:[#allocation2 + $0x50] sm:$0xff] %vm19283_vm8, %v1764_v47  ;;  %5530 = vrot.lane.b32.xlu1 %v5446_v8, %s19080_s19  ;;  %v5975_v8 = vrot.slane %v14199_v26, 3  ;;  %v1717_v47 = vrot.slane %v1715_v56, 1  ;;  %vm19287_vm8 = vsmask.f32 7424  ;;  %v12252_v56 = vld [vmem:[%s12610_s18 + $0x70] sm:$0xff]  }
 0x1bc   : > { %3081 = vrot.lane.b32.xlu0 %v3046_v63, %s19208_s15  ;;  %v14235_v18 = vor.u32 %v3763_v20, %v3760_v49  ;;  %v4033_v49 = vrot.slane %v14259_v53, 2  ;;  %v2070_v20 = vshrl.u32 %v12250_v4, 16 }
 0x1bd   : > { %v3821_v38 = vpop.permute.xlu1 %3820  ;;  %v5976_v50 = vsel %vm19088_vm6, %v5973_v54, %v5975_v8  ;;  %v14238_v54 = vld [vmem:[%s12610_s18 + $0x70] sm:$0xff]  }
 0x1be   : > { %3866 = vst.msk [vmem:[#allocation2 + $0x48] sm:$0xff] %vm19282_vm10, %v3821_v38  ;;  %v4060_v24 = vpop.permute.xlu0 %4059  ;;  %v6070_v0 = vld [vmem:[#allocation2 + $0x30] sm:$0xff]  ;;  %vm19288_vm10 = vcmask 162944   ;;  %v3765_v3 = vsel %vm19102_vm2, %v3755_v15, %v14235_v18 }
 0x1bf   : > { %4106 = vst.msk [vmem:[#allocation2 + $0x40] sm:$0xff] %vm4097_vm7, %v4060_v24  ;;  %3453 = vrot.lane.b32.xlu1 %v3383_v59, %s19203_s28  ;;  %11821 = vmatprep.mubr.msk.bf16.mxu0 %vm6125_vm14, %v6070_v0  ;;  %v12247_v59 = vld [vmem:[%s12615_s21 + $0x70] sm:$0xff]   ;;  %v1723_v24 = vshll.u32 %v14227_v37, 16 }
 0x1c0   : > { %5532 = vrot.lane.b32.xlu0 %v5455_v29, %s19080_s19  ;;  %s19285_s19 = smov 4   ;;  %v1718_v29 = vsel %vm19287_vm8, %v1713_v25, %v1717_v47  ;;  %v4031_v52 = vrot.slane %v12247_v59, 2  ;;  %vm19291_vm8 = vmmov %vm19288_vm10  ;;  %v2072_v59 = vor.u32 %v2070_v20, %v2068_v57  ;;  %v14340_v20 = vld [vmem:[%s12610_s18 + $0x80] sm:$0xff]  }
 0x1c1   : > { %v6006_v36 = vpop.permute.xlu1 %6005 }
 0x1c2   : > { %6053 = vst.msk [vmem:[#allocation2 + $0x38] sm:$0xff] %vm6045_vm12, %v6006_v36  ;;  %v1766_v44 = vpop.permute.xlu0 %1765  ;;  %v4032_v32 = vsel %vm19087_vm3, %v4029_v13, %v4031_v52 }
 0x1c3   : > { %1809 = vst.msk [vmem:[#allocation2 + $0x58] sm:$0xff] %vm19284_vm15, %v1766_v44  ;;  %5771 = vrot.lane.b32.xlu1 %v5736_v60, %s12537_s20  ;;  %vm19289_vm15 = vmmov %vm19286_vm11  ;;  %v5977_v60 = vrot.slane %v14238_v54, 3  ;;  %v1721_v44 = vor.u32 %v1719_v14, %v1717_v47  ;;  %v4034_v47 = vsel %vm19087_vm3, %v4031_v52, %v4033_v49  ;;  %v12256_v52 = vld [vmem:[%s12615_s21 + $0x78] sm:$0xff]  }
 0x1c4   : > { %1419 = vrot.lane.b32.xlu0 %v12239_v41, %s19285_s19  ;;  %v2062_v41 = vshrl.u32 %v14013_v23, 16 }
 0x1c5   : > { %v2115_v43 = vpop.permute.xlu1 %2114 }
 0x1c6   : > { %2159 = vst.msk [vmem:[#allocation2 + $0x50] sm:$0xff] %vm19089_vm9, %v2115_v43  ;;  %v4062_v35 = vpop.permute.xlu0 %4061  ;;  %v5978_v43 = vsel %vm19088_vm6, %v5975_v8, %v5977_v60  ;;  %v4271_v8 = vrot.slane %v12252_v56, 2 }
 0x1c7   : > { %4107 = vst.msk [vmem:[#allocation2 + $0x48] sm:$0xff] %vm4097_vm7, %v4062_v35  ;;  %3455 = vrot.lane.b32.xlu1 %v3392_v33, %s19203_s28  ;;  %v14256_v33 = vrot.slane %v1723_v24, 1 }
 0x1c8   : > { %3826 = vrot.lane.b32.xlu0 %v3756_v12, %s12530_s30  ;;  %v2064_v12 = vor.u32 %v2062_v41, %v14039_v46 }
 0x1c9   : > { %v4300_v6 = vpop.permute.xlu1 %4299  ;;  %v6071_v63 = vld [vmem:[#allocation2 + $0x38] sm:$0xff] }
 0x1ca   : > { %4346 = vst.msk [vmem:[#allocation2 + $0x40] sm:$0xff] %vm19286_vm11, %v4300_v6  ;;  %v2117_v40 = vpop.permute.xlu0 %2116  ;;  %11822 = vmatmul.mubr.msk.bf16.gmra.mrb[12].mxu0 %vm6125_vm14, %v6071_v63  ;;  %vm19290_vm11 = vcmask 425344   ;;  %v2074_v6 = vshll.u32 %v14262_v10, 16 }
 0x1cb   : > { %2160 = vst.msk [vmem:[#allocation2 + $0x58] sm:$0xff] %vm19089_vm9, %v2117_v40  ;;  %5773 = vrot.lane.b32.xlu1 %v5738_v21, %s12537_s20 }
 0x1cc   : > { %6011 = vrot.lane.b32.xlu0 %v5976_v50, %s12538_s29  ;;  %v12254_v50 = vld [vmem:[%s12615_s21 + $0x78] sm:$0xff]   ;;  %v14292_v40 = vrot.slane %v2074_v6, 1 }
 0x1cd   : > { %v2356_v38 = vpop.permute.xlu1 %2355 }
 0x1ce   : > { %2400 = vst.msk [vmem:[#allocation2 + $0x50] sm:$0xff] %vm19288_vm10, %v2356_v38  ;;  %v4302_v0 = vpop.permute.xlu0 %4301  ;;  %vm19292_vm10 = vsmask.f32 7424  ;;  %v4272_v38 = vsel %vm19087_vm3, %v4269_v28, %v4271_v8  ;;  %v4511_v28 = vrot.slane %v12256_v52, 2 }
 0x1cf   : > { %4347 = vst.msk [vmem:[#allocation2 + $0x48] sm:$0xff] %vm19289_vm15, %v4302_v0  ;;  %1421 = vrot.lane.b32.xlu1 %v12244_v31, %s19285_s19  ;;  %v1726_v21 = vsel %vm19292_vm10, %v1721_v44, %v14256_v33  ;;  %vm19293_vm15 = vcmask 195744   ;;  %v14295_v31 = vld [vmem:[%s12610_s18 + $0x78] sm:$0xff]  }
 0x1d0   : > { %1771 = vrot.lane.b32.xlu0 %v1718_v29, %s12525_s25  ;;  %v2327_v29 = vrot.slane %v12254_v50, 1  ;;  %v4273_v0 = vrot.slane %v14295_v31, 2 }
 0x1d1   : > { %v4540_v36 = vpop.permute.xlu1 %4539  ;;  %v14251_v26 = vpop.f32.mrb[0].mxu0 }
 0x1d2   : > { %4586 = vst.msk [vmem:[#allocation2 + $0x40] sm:$0xff] %vm19290_vm11, %v4540_v36  ;;  %v2358_v15 = vpop.permute.xlu0 %2357  ;;  %v14265_v23 = vpop.f32.mrb[1].mxu0  ;;  %v2328_v39 = vsel %vm19103_vm0, %v2325_v30, %v2327_v29  ;;  %v4512_v30 = vsel %vm19087_vm3, %v4509_v11, %v4511_v28  ;;  %v5087_v11 = vshll.u32 %v12265_v9, 16 }
 0x1d3   : > { %2401 = vst.msk [vmem:[#allocation2 + $0x58] sm:$0xff] %vm19291_vm8, %v2358_v15  ;;  %3828 = vrot.lane.b32.xlu1 %v3765_v3, %s12530_s30  ;;  %v14269_v19 = vpop.f32.mrb[2].mxu0  ;;  %vm19294_vm8 = vmmov %vm19292_vm10  ;;  %vm19295_vm10 = vcmask 458144   ;;  %v14309_v3 = vld [vmem:[%s12615_s21 + $0x80] sm:$0xff]  }
 0x1d4   : > { %4067 = vrot.lane.b32.xlu0 %v4032_v32, %s19265_s22  ;;  %v14272_v13 = vpop.f32.mrb[3].mxu0  ;;  %v2069_v46 = vsel %vm19294_vm8, %v2064_v12, %v2068_v57  ;;  %v4274_v32 = vsel %vm19087_vm3, %v4271_v8, %v4273_v0  ;;  %v2329_v44 = vrot.slane %v14309_v3, 1  ;;  %v14324_v15 = vld [vmem:[%s12615_s21 + $0x80] sm:$0xff]   ;;  %v2567_v12 = vrot.slane %v12258_v17, 1  ;;  %v12260_v57 = vld [vmem:[%s12610_s18 + $0x78] sm:$0xff]  }
 0x1d5   : > { %v2596_v35 = vpop.permute.xlu1 %2595  ;;  %v12263_v8 = vld [vmem:[%s12615_s21 + $0x80] sm:$0xff]  }
 0x1d6   : > { %2640 = vst.msk [vmem:[#allocation2 + $0x50] sm:$0xff] %vm19293_vm15, %v2596_v35  ;;  %v4542_v63 = vpop.permute.xlu0 %4541  ;;  %v2330_v35 = vsel %vm19103_vm0, %v2327_v29, %v2329_v44  ;;  %v2807_v52 = vrot.slane %v12263_v8, 1 }
 0x1d7   : > { %4587 = vst.msk [vmem:[#allocation2 + $0x48] sm:$0xff] %vm19290_vm11, %v4542_v63  ;;  %6013 = vrot.lane.b32.xlu1 %v5978_v43, %s12538_s29  ;;  %vm19296_vm11 = vmmov %vm19294_vm8  ;;  %vm19297_vm8 = vcmask 228544   ;;  %v2568_v63 = vsel %vm19103_vm0, %v2565_v51, %v2567_v12  ;;  %v5089_v51 = vrot.slane %v5087_v11, 3  ;;  %v12273_v11 = vld [vmem:[%s12610_s18 + $0x80] sm:$0xff]  }
 0x1d8   : > { %1773 = vrot.lane.b32.xlu0 %v1726_v21, %s12525_s25  ;;  %v2077_v24 = vsel %vm19296_vm11, %v2072_v59, %v14292_v40  ;;  %vm19299_vm11 = vmmov %vm19297_vm8  ;;  %v4513_v21 = vrot.slane %v14324_v15, 2  ;;  %v14355_v59 = vld [vmem:[%s12610_s18 + $0x80] sm:$0xff]   ;;  %v12304_v15 = vld [vmem:[%s12615_s21 + $0x90] sm:$0xff]  }
 0x1d9   : > { %v4780_v25 = vpop.permute.xlu1 %4779 }
 0x1da   : > { %4826 = vst.msk [vmem:[#allocation2 + $0x40] sm:$0xff] %vm19295_vm10, %v4780_v25  ;;  %v2598_v4 = vpop.permute.xlu0 %2597  ;;  %v4514_v25 = vsel %vm19087_vm3, %v4511_v28, %v4513_v21  ;;  %v14371_v28 = vld [vmem:[%s12615_s21 + $0x88] sm:$0xff]  }
 0x1db   : > { %2641 = vst.msk [vmem:[#allocation2 + $0x58] sm:$0xff] %vm19293_vm15, %v2598_v4  ;;  %2122 = vrot.lane.b32.xlu1 %v2069_v46, %s12526_s26  ;;  %vm19298_vm15 = vcmask 490944   ;;  %v4751_v46 = vrot.slane %v12260_v57, 2  ;;  %v12268_v4 = vld [vmem:[%s12615_s21 + $0x80] sm:$0xff]  }
 0x1dc   : > { %4069 = vrot.lane.b32.xlu0 %v4034_v47, %s19265_s22  ;;  %v2569_v47 = vrot.slane %v14340_v20, 1  ;;  %v5093_v17 = vshrl.u32 %v12268_v4, 16  ;;  %v5111_v20 = vshrl.u32 %v12304_v15, 16 }
 0x1dd   : > { %v2836_v14 = vpop.permute.xlu1 %2835  ;;  %v4752_v29 = vsel %vm19087_vm3, %v4749_v22, %v4751_v46  ;;  %v5090_v22 = vor.u32 %v5089_v51, %v5086_v7  ;;  %v14399_v51 = vld [vmem:[%s12610_s18 + $0x88] sm:$0xff]  }
 0x1de   : > { %2880 = vst.msk [vmem:[#allocation2 + $0x50] sm:$0xff] %vm19297_vm8, %v2836_v14  ;;  %v4782_v41 = vpop.permute.xlu0 %4781  ;;  %vm19300_vm8 = vcmask 261344   ;;  %v12270_v14 = vld [vmem:[%s12610_s18 + $0x78] sm:$0xff]  }
 0x1df   : > { %4827 = vst.msk [vmem:[#allocation2 + $0x48] sm:$0xff] %vm19295_vm10, %v4782_v41  ;;  %4307 = vrot.lane.b32.xlu1 %v4272_v38, %s19239_s11  ;;  %vm19301_vm10 = vmmov %vm19298_vm15  ;;  %v2570_v41 = vsel %vm19103_vm0, %v2567_v12, %v2569_v47  ;;  %v5457_v9 = vshrl.u32 %v12270_v14, 16  ;;  %v12272_v12 = vld [vmem:[%s12615_s21 + $0x80] sm:$0xff]   ;;  %v5091_v48 = vsel %vm19086_vm4, %v14143_v27, %v5090_v22 }
 0x1e0   : > { %2124 = vrot.lane.b32.xlu0 %v2077_v24, %s12526_s26 }
 0x1e1   : > { %v5154_v36 = vpop.permute.xlu1 %5153 }
 0x1e2   : > { %5200 = vst.msk [vmem:[#allocation2 + $0x40] sm:$0xff] %vm19298_vm15, %v5154_v36  ;;  %v2838_v43 = vpop.permute.xlu0 %2837  ;;  %vm19302_vm15 = vcmask 523744   ;;  %v5096_v36 = vshll.u32 %v12268_v4, 16 }
 0x1e3   : > { %2881 = vst.msk [vmem:[#allocation2 + $0x58] sm:$0xff] %vm19299_vm11, %v2838_v43  ;;  %2363 = vrot.lane.b32.xlu1 %v2328_v39, %s19084_s23  ;;  %vm19303_vm11 = vmmov %vm19300_vm8  ;;  %v4753_v39 = vrot.slane %v14355_v59, 2  ;;  %v2808_v43 = vsel %vm19103_vm0, %v2805_v34, %v2807_v52  ;;  %v12303_v59 = vld [vmem:[%s12610_s18 + $0x90] sm:$0xff]  }
 0x1e4   : > { %4309 = vrot.lane.b32.xlu0 %v4274_v32, %s19239_s11  ;;  %v12267_v32 = vld [vmem:[%s12610_s18 + $0x80] sm:$0xff]   ;;  %v5098_v58 = vrot.slane %v5096_v36, 3  ;;  %v12276_v36 = vld [vmem:[%s12615_s21 + $0x88] sm:$0xff]  }
 0x1e5   : > { %v3076_v56 = vpop.permute.xlu1 %3075  ;;  %v3047_v34 = vrot.slane %v12267_v32, 1 }
 0x1e6   : > { %3120 = vst.msk [vmem:[#allocation2 + $0x50] sm:$0xff] %vm19300_vm8, %v3076_v56  ;;  %v5156_v6 = vpop.permute.xlu0 %5155  ;;  %vm19304_vm8 = vcmask 294144   ;;  %v4754_v56 = vsel %vm19087_vm3, %v4751_v46, %v4753_v39  ;;  %v5459_v46 = vrot.slane %v5457_v9, 2 }
 0x1e7   : > { %5201 = vst.msk [vmem:[#allocation2 + $0x48] sm:$0xff] %vm19301_vm10, %v5156_v6  ;;  %4547 = vrot.lane.b32.xlu1 %v4512_v30, %s19221_s12  ;;  %vm19305_vm10 = vmmov %vm19302_vm15  ;;  %v5460_v30 = vshll.u32 %v12270_v14, 16  ;;  %v5095_v6 = vrot.slane %v5093_v17, 2  ;;  %v5469_v14 = vshll.u32 %v12273_v11, 16 }
 0x1e8   : > { %2365 = vrot.lane.b32.xlu0 %v2330_v35, %s19084_s23  ;;  %v2809_v35 = vrot.slane %v14371_v28, 1  ;;  %v3051_v28 = vrot.slane %v12303_v59, 1 }
 0x1e9   : > { %v5527_v50 = vpop.permute.xlu1 %5526  ;;  %v5462_v8 = vrot.slane %v5460_v30, 3  ;;  %v14396_v7 = vor.u32 %v5098_v58, %v5095_v6  ;;  %v5471_v30 = vrot.slane %v5469_v14, 3  ;;  %v3403_v6 = vshrl.u32 %v12276_v36, 16 }
 0x1ea   : > { %5573 = vst.msk [vmem:[#allocation2 + $0x40] sm:$0xff] %vm19302_vm15, %v5527_v50  ;;  %v3078_v38 = vpop.permute.xlu0 %3077  ;;  %vm19306_vm15 = vcmask 556544   ;;  %v3394_v50 = vshrl.u32 %v12272_v12, 16  ;;  %v3406_v58 = vshll.u32 %v12276_v36, 16 }
 0x1eb   : > { %3121 = vst.msk [vmem:[#allocation2 + $0x58] sm:$0xff] %vm19303_vm11, %v3078_v38  ;;  %2603 = vrot.lane.b32.xlu1 %v2568_v63, %s19204_s24  ;;  %vm19307_vm11 = vcmask 64544   ;;  %v2810_v38 = vsel %vm19103_vm0, %v2807_v52, %v2809_v35  ;;  %v3048_v52 = vsel %vm19103_vm0, %v3045_v61, %v3047_v34  ;;  %v5100_v32 = vsel %vm19086_vm4, %v5090_v22, %v14396_v7  ;;  %v12274_v22 = vld [vmem:[%s12615_s21 + $0x78] sm:$0xff]  }
 0x1ec   : > { %4549 = vrot.lane.b32.xlu0 %v4514_v25, %s19221_s12  ;;  %v3397_v25 = vshll.u32 %v12272_v12, 16  ;;  %v12277_v12 = vld [vmem:[%s12610_s18 + $0x80] sm:$0xff]  }
 0x1ed   : > { %v3450_v24 = vpop.permute.xlu1 %3449 }
 0x1ee   : > { %3494 = vst.msk [vmem:[#allocation2 + $0x50] sm:$0xff] %vm19304_vm8, %v3450_v24  ;;  %v5529_v45 = vpop.permute.xlu0 %5528  ;;  %v5463_v24 = vor.u32 %v5462_v8, %v5459_v46  ;;  %v3399_v17 = vrot.slane %v3397_v25, 2  ;;  %v3767_v46 = vshrl.u32 %v12277_v12, 16  ;;  %v3770_v8 = vshll.u32 %v12277_v12, 16  ;;  %v14452_v12 = vld [vmem:[%s12610_s18 + $0x78] sm:$0xff]  }
 0x1ef   : > { %5574 = vst.msk [vmem:[#allocation2 + $0x48] sm:$0xff] %vm19305_vm10, %v5529_v45  ;;  %4787 = vrot.lane.b32.xlu1 %v4752_v29, %s19205_s16  ;;  %v5466_v29 = vshrl.u32 %v12273_v11, 16  ;;  %vm19308_vm10 = vcmask 326944   ;;  %v5739_v25 = vrot.slane %v12274_v22, 3 }
 0x1f0   : > { %2605 = vrot.lane.b32.xlu0 %v2570_v41, %s19204_s24  ;;  %v3396_v41 = vrot.slane %v3394_v50, 1  ;;  %v5464_v61 = vsel %vm19086_vm4, %v14172_v5, %v5463_v24  ;;  %v3769_v14 = vrot.slane %v3767_v46, 1 }
 0x1f1   : > { %v5768_v57 = vpop.permute.xlu1 %5767  ;;  %v5468_v9 = vrot.slane %v5466_v29, 2 }
 0x1f2   : > { %5814 = vst.msk [vmem:[#allocation2 + $0x40] sm:$0xff] %vm19306_vm15, %v5768_v57  ;;  %v1416_v63 = vpop.permute.xlu0 %1415 }
 0x1f3   : > { %1458 = vst.msk [vmem:[#allocation2 + $0x60] sm:$0xff] %vm19307_vm11, %v1416_v63  ;;  %2843 = vrot.lane.b32.xlu1 %v2808_v43, %s12527_s27  ;;  %v3049_v43 = vrot.slane %v14399_v51, 1 }
 0x1f4   : > { %4789 = vrot.lane.b32.xlu0 %v4754_v56, %s19205_s16  ;;  %v3400_v56 = vor.u32 %v3399_v17, %v3396_v41  ;;  %v12275_v17 = vld [vmem:[%s12610_s18 + $0x80] sm:$0xff]  }
 0x1f5   : > { %v3452_v4 = vpop.permute.xlu1 %3451  ;;  %v3050_v63 = vsel %vm19103_vm0, %v3047_v34, %v3049_v43  ;;  %v3405_v34 = vrot.slane %v3403_v6, 1 }
 0x1f6   : > { %3495 = vst.msk [vmem:[#allocation2 + $0x58] sm:$0xff] %vm19304_vm8, %v3452_v4  ;;  %v3823_v27 = vpop.permute.xlu0 %3822  ;;  %vm19309_vm8 = vcmask 97344   ;;  %v3401_v5 = vsel %vm19102_vm2, %v14192_v16, %v3400_v56  ;;  %v3408_v4 = vrot.slane %v3406_v58, 2  ;;  %v12334_v16 = vld [vmem:[%s12615_s21 + $0x88] sm:$0xff]  }
 0x1f7   : > { %3867 = vst.msk [vmem:[#allocation2 + $0x50] sm:$0xff] %vm19308_vm10, %v3823_v27  ;;  %5161 = vrot.lane.b32.xlu1 %v5091_v48, %s19082_s17  ;;  %v14425_v48 = vor.u32 %v5471_v30, %v5468_v9  ;;  %v3772_v27 = vrot.slane %v3770_v8, 2 }
 0x1f8   : > { %2845 = vrot.lane.b32.xlu0 %v2810_v38, %s12527_s27  ;;  %v14445_v36 = vor.u32 %v3408_v4, %v3405_v34  ;;  %1264 = vst.msk [vmem:[#allocation2 + $0x88] sm:$0xff] %vm19144_vm5, %v12334_v16 }
 0x1f9   : > { %v5770_v45 = vpop.permute.xlu1 %5769  ;;  %v5473_v29 = vsel %vm19086_vm4, %v5463_v24, %v14425_v48  ;;  %v5740_v24 = vsel %vm19088_vm6, %v5737_v2, %v5739_v25  ;;  %v3773_v30 = vor.u32 %v3772_v27, %v3769_v14  ;;  %v12285_v14 = vld [vmem:[%s12615_s21 + $0x90] ss:$0 sps:$4 sm:$0x11]  }
 0x1fa   : > { %5815 = vst.msk [vmem:[#allocation2 + $0x48] sm:$0xff] %vm19306_vm15, %v5770_v45  ;;  %v6008_v57 = vpop.permute.xlu0 %6007  ;;  %v14448_v45 = vld [vmem:[%s12615_s21 + $0x80] sm:$0xff]   ;;  %vm19311_vm15 = vmmov %vm19309_vm8  ;;  %v3410_v55 = vsel %vm19102_vm2, %v3400_v56, %v14445_v36 }
 0x1fb   : > { %6054 = vst.msk [vmem:[#allocation2 + $0x40] sm:$0xff] %vm6045_vm12, %v6008_v57  ;;  %3083 = vrot.lane.b32.xlu1 %v3048_v52, %s19208_s15  ;;  %v12281_v57 = vld [vmem:[%s12615_s21 + $0x88] sm:$0xff]   ;;  %v5741_v2 = vrot.slane %v14448_v45, 3  ;;  %v3774_v58 = vsel %vm19102_vm2, %v14235_v18, %v3773_v30 }
 0x1fc   : > { %5163 = vrot.lane.b32.xlu0 %v5100_v32, %s19082_s17  ;;  %s19310_s17 = smov 60   ;;  %v12282_v32 = vld [vmem:[%s12610_s18 + $0x88] sm:$0xff]   ;;  %v1731_v46 = vshll.u32 %v12281_v57, 16 }
 0x1fd   : > { %v1418_v11 = vpop.permute.xlu1 %1417  ;;  %v3779_v22 = vshll.u32 %v12282_v32, 16  ;;  %v5742_v18 = vsel %vm19088_vm6, %v5739_v25, %v5741_v2  ;;  %v12280_v25 = vld [vmem:[%s12610_s18 + $0x88] sm:$0xff]  }
 0x1fe   : > { %1459 = vst.msk [vmem:[#allocation2 + $0x68] sm:$0xff] %vm19307_vm11, %v1418_v11  ;;  %v1768_v50 = vpop.permute.xlu0 %1767  ;;  %v5979_v11 = vrot.slane %v14452_v12, 3  ;;  %vm19312_vm11 = vcmask 392544  }
 0x1ff   : > { %1810 = vst.msk [vmem:[#allocation2 + $0x60] sm:$0xff] %vm19309_vm8, %v1768_v50  ;;  %5534 = vrot.lane.b32.xlu1 %v5464_v61, %s19310_s17  ;;  %v3776_v61 = vshrl.u32 %v12282_v32, 16  ;;  %v3781_v50 = vrot.slane %v3779_v22, 2  ;;  %vm19313_vm8 = vsmask.f32 7424 }
 0x200   : > { %3085 = vrot.lane.b32.xlu0 %v3050_v63, %s19208_s15  ;;  %v1727_v63 = vshrl.u32 %v14227_v37, 16  ;;  %v5980_v34 = vsel %vm19088_vm6, %v5977_v60, %v5979_v11  ;;  %v14489_v60 = vld [vmem:[%s12610_s18 + $0x80] sm:$0xff]  }
 0x201   : > { %v3825_v38 = vpop.permute.xlu1 %3824  ;;  %v3778_v56 = vrot.slane %v3776_v61, 1  ;;  %v5981_v12 = vrot.slane %v14489_v60, 3 }
 0x202   : > { %3868 = vst.msk [vmem:[#allocation2 + $0x58] sm:$0xff] %vm19308_vm10, %v3825_v38  ;;  %v4064_v52 = vpop.permute.xlu0 %4063  ;;  %v6072_v41 = vld [vmem:[#allocation2 + $0x40] sm:$0xff]  ;;  %v1729_v4 = vor.u32 %v1727_v63, %v14256_v33  ;;  %v1733_v38 = vrot.slane %v1731_v46, 1  ;;  %v12286_v33 = vld [vmem:[%s12610_s18 + $0x88] sm:$0xff]   ;;  %vm19314_vm10 = vcmask 162944  }
 0x203   : > { %4108 = vst.msk [vmem:[#allocation2 + $0x50] sm:$0xff] %vm4097_vm7, %v4064_v52  ;;  %3457 = vrot.lane.b32.xlu1 %v3401_v5, %s19203_s28  ;;  %11825 = vmatprep.mubr.msk.bf16.mxu0 %vm6125_vm14, %v6072_v41  ;;  %v14486_v54 = vor.u32 %v3781_v50, %v3778_v56  ;;  %v14507_v63 = vld [vmem:[%s12615_s21 + $0x88] sm:$0xff]   ;;  %v12289_v46 = vld [vmem:[%s12610_s18 + $0x90] ss:$0 sps:$4 sm:$0x11]   ;;  %v12288_v50 = vld [vmem:[%s12610_s18 + $0x80] sm:$0xff]  }
 0x204   : > { %5536 = vrot.lane.b32.xlu0 %v5473_v29, %s19310_s17  ;;  %v12283_v29 = vld [vmem:[%s12615_s21 + $0x80] sm:$0xff]   ;;  %v1734_v41 = vsel %vm19313_vm8, %v1729_v4, %v1733_v38  ;;  %vm19317_vm8 = vmmov %vm19314_vm10  ;;  %v2086_v4 = vshrl.u32 %v12286_v33, 16 }
 0x205   : > { %v6010_v9 = vpop.permute.xlu1 %6009  ;;  %v4035_v16 = vrot.slane %v12283_v29, 2 }
 0x206   : > { %6055 = vst.msk [vmem:[#allocation2 + $0x48] sm:$0xff] %vm6045_vm12, %v6010_v9  ;;  %v1770_v42 = vpop.permute.xlu0 %1769  ;;  %v3783_v9 = vsel %vm19102_vm2, %v3773_v30, %v14486_v54 }
 0x207   : > { %1811 = vst.msk [vmem:[#allocation2 + $0x68] sm:$0xff] %vm19311_vm15, %v1770_v42  ;;  %5775 = vrot.lane.b32.xlu1 %v5740_v24, %s12537_s20  ;;  %v1735_v24 = vshrl.u32 %v12281_v57, 16  ;;  %vm19315_vm15 = vmmov %vm19312_vm11  ;;  %v2078_v42 = vshrl.u32 %v14262_v10, 16  ;;  %v2082_v57 = vshll.u32 %v12286_v33, 16  ;;  %v4036_v22 = vsel %vm19087_vm3, %v4033_v49, %v4035_v16 }
 0x208   : > { %1423 = vrot.lane.b32.xlu0 %v12275_v17, %s19285_s19  ;;  %v1739_v17 = vshll.u32 %v12285_v14, 16  ;;  %v5982_v49 = vsel %vm19088_vm6, %v5979_v11, %v5981_v12  ;;  %v4275_v11 = vrot.slane %v12288_v50, 2  ;;  %v12290_v14 = vld [vmem:[%s12615_s21 + $0x88] sm:$0xff]  }
 0x209   : > { %v2119_v6 = vpop.permute.xlu1 %2118  ;;  %v2084_v56 = vrot.slane %v2082_v57, 1  ;;  %v12301_v50 = vld [vmem:[%s12615_s21 + $0x88] sm:$0xff]  }
 0x20a   : > { %2161 = vst.msk [vmem:[#allocation2 + $0x60] sm:$0xff] %vm19089_vm9, %v2119_v6  ;;  %v4066_v8 = vpop.permute.xlu0 %4065  ;;  %v1737_v6 = vor.u32 %v1735_v24, %v1733_v38  ;;  %v2090_v38 = vshll.u32 %v12289_v46, 16 }
 0x20b   : > { %4109 = vst.msk [vmem:[#allocation2 + $0x58] sm:$0xff] %vm4097_vm7, %v4066_v8  ;;  %3459 = vrot.lane.b32.xlu1 %v3410_v55, %s19203_s28  ;;  %v2088_v33 = vor.u32 %v2086_v4, %v2084_v56 }
 0x20c   : > { %3830 = vrot.lane.b32.xlu0 %v3774_v58, %s12530_s30  ;;  %v1741_v58 = vrot.slane %v1739_v17, 1  ;;  %v4276_v17 = vsel %vm19087_vm3, %v4273_v0, %v4275_v11 }
 0x20d   : > { %v4304_v37 = vpop.permute.xlu1 %4303  ;;  %v6073_v5 = vld [vmem:[#allocation2 + $0x48] sm:$0xff] }
 0x20e   : > { %4348 = vst.msk [vmem:[#allocation2 + $0x50] sm:$0xff] %vm19312_vm11, %v4304_v37  ;;  %v2121_v27 = vpop.permute.xlu0 %2120  ;;  %11826 = vmatmul.mubr.msk.bf16.gmra.mrb[16].mxu0 %vm6125_vm14, %v6073_v5  ;;  %vm19316_vm11 = vcmask 425344  }
 0x20f   : > { %2162 = vst.msk [vmem:[#allocation2 + $0x68] sm:$0xff] %vm19089_vm9, %v2121_v27  ;;  %5777 = vrot.lane.b32.xlu1 %v5742_v18, %s12537_s20  ;;  %v2080_v18 = vor.u32 %v2078_v42, %v14292_v40 }
 0x210   : > { %6015 = vrot.lane.b32.xlu0 %v5980_v34, %s12538_s29  ;;  %v4037_v34 = vrot.slane %v14507_v63, 2  ;;  %v12322_v63 = vld [vmem:[%s12615_s21 + $0xa0] ss:$0 sps:$4 sm:$0x33]  }
 0x211   : > { %v2360_v52 = vpop.permute.xlu1 %2359 }
 0x212   : > { %2402 = vst.msk [vmem:[#allocation2 + $0x60] sm:$0xff] %vm19314_vm10, %v2360_v52  ;;  %v4306_v32 = vpop.permute.xlu0 %4305  ;;  %vm19318_vm10 = vsmask.f32 7424  ;;  %v2092_v52 = vrot.slane %v2090_v38, 1 }
 0x213   : > { %4349 = vst.msk [vmem:[#allocation2 + $0x58] sm:$0xff] %vm19315_vm15, %v4306_v32  ;;  %1425 = vrot.lane.b32.xlu1 %v12280_v25, %s19285_s19  ;;  %v1742_v5 = vsel %vm19318_vm10, %v1737_v6, %v1741_v58  ;;  %vm19319_vm15 = vcmask 195744   ;;  %v4038_v25 = vsel %vm19087_vm3, %v4035_v16, %v4037_v34  ;;  %v2331_v32 = vrot.slane %v12290_v14, 1  ;;  %v12292_v16 = vld [vmem:[%s12615_s21 + $0x88] sm:$0xff]  }
 0x214   : > { %1775 = vrot.lane.b32.xlu0 %v1734_v41, %s12525_s25  ;;  %v14537_v41 = vld [vmem:[%s12610_s18 + $0x88] sm:$0xff]   ;;  %v4515_v0 = vrot.slane %v12292_v16, 2  ;;  %v12297_v38 = vld [vmem:[%s12610_s18 + $0x90] ss:$0 sps:$4 sm:$0x11]   ;;  %v5102_v14 = vshrl.u32 %v12301_v50, 16 }
 0x215   : > { %v4544_v55 = vpop.permute.xlu1 %4543  ;;  %v14501_v61 = vpop.f32.mrb[4].mxu0  ;;  %v4277_v57 = vrot.slane %v14537_v41, 2  ;;  %v2332_v31 = vsel %vm19103_vm0, %v2329_v44, %v2331_v32  ;;  %v12294_v6 = vld [vmem:[%s12610_s18 + $0x88] sm:$0xff]   ;;  %v12324_v41 = vld [vmem:[%s12610_s18 + $0xa0] ss:$0 sps:$4 sm:$0x33]  }
 0x216   : > { %4588 = vst.msk [vmem:[#allocation2 + $0x50] sm:$0xff] %vm19316_vm11, %v4544_v55  ;;  %v2362_v30 = vpop.permute.xlu0 %2361  ;;  %v14511_v8 = vpop.f32.mrb[5].mxu0  ;;  %v12293_v55 = vld [vmem:[%s12615_s21 + $0x90] ss:$0 sps:$4 sm:$0x11]   ;;  %v4516_v3 = vsel %vm19087_vm3, %v4513_v21, %v4515_v0  ;;  %v2571_v44 = vrot.slane %v12294_v6, 1 }
 0x217   : > { %2403 = vst.msk [vmem:[#allocation2 + $0x68] sm:$0xff] %vm19317_vm8, %v2362_v30  ;;  %3832 = vrot.lane.b32.xlu1 %v3783_v9, %s12530_s30  ;;  %v14515_v10 = vpop.f32.mrb[6].mxu0  ;;  %vm19320_vm8 = vmmov %vm19318_vm10  ;;  %vm19321_vm10 = vcmask 458144   ;;  %v4278_v46 = vsel %vm19087_vm3, %v4275_v11, %v4277_v57  ;;  %v2333_v30 = vrot.slane %v12293_v55, 1  ;;  %v12299_v11 = vld [vmem:[%s12615_s21 + $0x90] sm:$0xff]  }
 0x218   : > { %4071 = vrot.lane.b32.xlu0 %v4036_v22, %s19265_s22  ;;  %v14518_v53 = vpop.f32.mrb[7].mxu0  ;;  %v2085_v40 = vsel %vm19320_vm8, %v2080_v18, %v2084_v56  ;;  %v12296_v56 = vld [vmem:[%s12610_s18 + $0x88] sm:$0xff]   ;;  %v2572_v21 = vsel %vm19103_vm0, %v2569_v47, %v2571_v44  ;;  %v5114_v47 = vshll.u32 %v12304_v15, 16  ;;  %v12302_v6 = vld [vmem:[%s12615_s21 + $0x98] ss:$0 sps:$4 sm:$0x11]  }
 0x219   : > { %v2600_v37 = vpop.permute.xlu1 %2599 }
 0x21a   : > { %2642 = vst.msk [vmem:[#allocation2 + $0x60] sm:$0xff] %vm19319_vm15, %v2600_v37  ;;  %v4546_v29 = vpop.permute.xlu0 %4545 }
 0x21b   : > { %4589 = vst.msk [vmem:[#allocation2 + $0x58] sm:$0xff] %vm19316_vm11, %v4546_v29  ;;  %6017 = vrot.lane.b32.xlu1 %v5982_v49, %s12538_s29  ;;  %vm19322_vm11 = vmmov %vm19320_vm8  ;;  %vm19323_vm8 = vcmask 228544   ;;  %v14562_v49 = vld [vmem:[%s12615_s21 + $0x90] sm:$0xff]  }
 0x21c   : > { %1777 = vrot.lane.b32.xlu0 %v1742_v5, %s12525_s25  ;;  %v2093_v42 = vsel %vm19322_vm11, %v2088_v33, %v2092_v52  ;;  %vm19325_vm11 = vmmov %vm19323_vm8  ;;  %v2334_v5 = vsel %vm19103_vm0, %v2331_v32, %v2333_v30  ;;  %v4517_v4 = vrot.slane %v14562_v49, 2  ;;  %v2573_v52 = vrot.slane %v12297_v38, 1  ;;  %v12306_v32 = vld [vmem:[%s12610_s18 + $0x88] sm:$0xff]   ;;  %v12309_v38 = vld [vmem:[%s12610_s18 + $0x90] sm:$0xff]  }
 0x21d   : > { %v4784_v27 = vpop.permute.xlu1 %4783  ;;  %v5475_v30 = vshrl.u32 %v12306_v32, 16  ;;  %v4761_v49 = vrot.slane %v12324_v41, 2 }
 0x21e   : > { %4828 = vst.msk [vmem:[#allocation2 + $0x50] sm:$0xff] %vm19321_vm10, %v4784_v27  ;;  %v2602_v24 = vpop.permute.xlu0 %2601  ;;  %v5105_v27 = vshll.u32 %v12301_v50, 16  ;;  %v4518_v33 = vsel %vm19087_vm3, %v4515_v0, %v4517_v4 }
 0x21f   : > { %2643 = vst.msk [vmem:[#allocation2 + $0x68] sm:$0xff] %vm19319_vm15, %v2602_v24  ;;  %2126 = vrot.lane.b32.xlu1 %v2085_v40, %s12526_s26  ;;  %vm19324_vm15 = vcmask 490944   ;;  %v4755_v40 = vrot.slane %v12296_v56, 2  ;;  %v14589_v24 = vld [vmem:[%s12610_s18 + $0x90] sm:$0xff]   ;;  %v5477_v15 = vrot.slane %v5475_v30, 2  ;;  %v12310_v30 = vld [vmem:[%s12615_s21 + $0x88] sm:$0xff]  }
 0x220   : > { %4073 = vrot.lane.b32.xlu0 %v4038_v25, %s19265_s22  ;;  %v5107_v55 = vrot.slane %v5105_v27, 3  ;;  %v4757_v0 = vrot.slane %v14589_v24, 2  ;;  %v12308_v56 = vld [vmem:[%s12615_s21 + $0x90] sm:$0xff]  }
 0x221   : > { %v2840_v9 = vpop.permute.xlu1 %2839  ;;  %v4756_v16 = vsel %vm19087_vm3, %v4753_v39, %v4755_v40  ;;  %v5113_v39 = vrot.slane %v5111_v20, 2  ;;  %v3415_v27 = vshll.u32 %v12308_v56, 16  ;;  %v12311_v20 = vld [vmem:[%s12615_s21 + $0x98] ss:$0 sps:$4 sm:$0x33]  }
 0x222   : > { %2882 = vst.msk [vmem:[#allocation2 + $0x60] sm:$0xff] %vm19323_vm8, %v2840_v9  ;;  %v4786_v22 = vpop.permute.xlu0 %4785  ;;  %vm19326_vm8 = vcmask 261344   ;;  %v2811_v9 = vrot.slane %v12299_v11, 1  ;;  %v12307_v11 = vld [vmem:[%s12610_s18 + $0x98] ss:$0 sps:$4 sm:$0x11]  }
 0x223   : > { %4829 = vst.msk [vmem:[#allocation2 + $0x58] sm:$0xff] %vm19321_vm10, %v4786_v22  ;;  %4311 = vrot.lane.b32.xlu1 %v4276_v17, %s19239_s11  ;;  %vm19327_vm10 = vmmov %vm19324_vm15  ;;  %v3421_v59 = vshrl.u32 %v12311_v20, 16 }
 0x224   : > { %2128 = vrot.lane.b32.xlu0 %v2093_v42, %s12526_s26  ;;  %v5104_v42 = vrot.slane %v5102_v14, 2  ;;  %v3412_v14 = vshrl.u32 %v12308_v56, 16 }
 0x225   : > { %v5158_v58 = vpop.permute.xlu1 %5157 }
 0x226   : > { %5202 = vst.msk [vmem:[#allocation2 + $0x50] sm:$0xff] %vm19324_vm15, %v5158_v58  ;;  %v2842_v18 = vpop.permute.xlu0 %2841  ;;  %vm19328_vm15 = vcmask 523744  }
 0x227   : > { %2883 = vst.msk [vmem:[#allocation2 + $0x68] sm:$0xff] %vm19325_vm11, %v2842_v18  ;;  %2367 = vrot.lane.b32.xlu1 %v2332_v31, %s19084_s23  ;;  %vm19329_vm11 = vmmov %vm19326_vm8  ;;  %v2574_v31 = vsel %vm19103_vm0, %v2571_v44, %v2573_v52  ;;  %v2812_v18 = vsel %vm19103_vm0, %v2809_v35, %v2811_v9  ;;  %v5478_v44 = vshll.u32 %v12306_v32, 16  ;;  %v5484_v52 = vshrl.u32 %v12309_v38, 16 }
 0x228   : > { %4313 = vrot.lane.b32.xlu0 %v4278_v46, %s19239_s11  ;;  %v5116_v46 = vrot.slane %v5114_v47, 3 }
 0x229   : > { %v3080_v37 = vpop.permute.xlu1 %3079 }
 0x22a   : > { %3122 = vst.msk [vmem:[#allocation2 + $0x60] sm:$0xff] %vm19326_vm8, %v3080_v37  ;;  %v5160_v29 = vpop.permute.xlu0 %5159  ;;  %vm19330_vm8 = vcmask 294144   ;;  %v4758_v37 = vsel %vm19087_vm3, %v4755_v40, %v4757_v0  ;;  %v14618_v35 = vor.u32 %v5116_v46, %v5113_v39  ;;  %v5480_v40 = vrot.slane %v5478_v44, 3 }
 0x22b   : > { %5203 = vst.msk [vmem:[#allocation2 + $0x58] sm:$0xff] %vm19327_vm10, %v5160_v29  ;;  %4551 = vrot.lane.b32.xlu1 %v4516_v3, %s19221_s12  ;;  %vm19331_vm10 = vmmov %vm19328_vm15  ;;  %v5108_v3 = vor.u32 %v5107_v55, %v5104_v42  ;;  %v3414_v42 = vrot.slane %v3412_v14, 1  ;;  %v3417_v55 = vrot.slane %v3415_v27, 2  ;;  %v3424_v39 = vshll.u32 %v12311_v20, 16  ;;  %v14656_v27 = vld [vmem:[%s12615_s21 + $0x90] sm:$0xff]  }
 0x22c   : > { %2369 = vrot.lane.b32.xlu0 %v2334_v5, %s19084_s23  ;;  %v2813_v5 = vrot.slane %v12302_v6, 1  ;;  %s19335_s23 = smov 56   ;;  %v5486_v6 = vrot.slane %v5484_v52, 2 }
 0x22d   : > { %v5531_v25 = vpop.permute.xlu1 %5530  ;;  %v5118_v32 = vsel %vm19086_vm4, %v5108_v3, %v14618_v35  ;;  %v3418_v46 = vor.u32 %v3417_v55, %v3414_v42 }
 0x22e   : > { %5575 = vst.msk [vmem:[#allocation2 + $0x50] sm:$0xff] %vm19328_vm15, %v5531_v25  ;;  %v3082_v17 = vpop.permute.xlu0 %3081  ;;  %vm19332_vm15 = vcmask 556544  }
 0x22f   : > { %3123 = vst.msk [vmem:[#allocation2 + $0x68] sm:$0xff] %vm19329_vm11, %v3082_v17  ;;  %2607 = vrot.lane.b32.xlu1 %v2572_v21, %s19204_s24  ;;  %vm19333_vm11 = vcmask 64544   ;;  %v5109_v21 = vsel %vm19086_vm4, %v14396_v7, %v5108_v3  ;;  %v5487_v17 = vshll.u32 %v12309_v38, 16  ;;  %v3052_v7 = vsel %vm19103_vm0, %v3049_v43, %v3051_v28  ;;  %v12315_v38 = vld [vmem:[%s12610_s18 + $0x98] ss:$0 sps:$4 sm:$0x33]  }
 0x230   : > { %4553 = vrot.lane.b32.xlu0 %v4518_v33, %s19221_s12  ;;  %v2814_v33 = vsel %vm19103_vm0, %v2811_v9, %v2813_v5  ;;  %v3053_v9 = vrot.slane %v12307_v11, 1  ;;  %v3426_v5 = vrot.slane %v3424_v39, 2 }
 0x231   : > { %v3454_v22 = vpop.permute.xlu1 %3453 }
 0x232   : > { %3496 = vst.msk [vmem:[#allocation2 + $0x60] sm:$0xff] %vm19330_vm8, %v3454_v22  ;;  %v5533_v58 = vpop.permute.xlu0 %5532  ;;  %v12312_v22 = vld [vmem:[%s12610_s18 + $0x90] sm:$0xff]   ;;  %v3054_v56 = vsel %vm19103_vm0, %v3051_v28, %v3053_v9 }
 0x233   : > { %5576 = vst.msk [vmem:[#allocation2 + $0x58] sm:$0xff] %vm19331_vm10, %v5533_v58  ;;  %4791 = vrot.lane.b32.xlu1 %v4756_v16, %s19205_s16  ;;  %vm19334_vm10 = vcmask 326944   ;;  %v5481_v16 = vor.u32 %v5480_v40, %v5477_v15  ;;  %v5489_v58 = vrot.slane %v5487_v17, 3  ;;  %v3788_v3 = vshll.u32 %v12312_v22, 16 }
 0x234   : > { %2609 = vrot.lane.b32.xlu0 %v2574_v31, %s19204_s24  ;;  %v5743_v15 = vrot.slane %v12310_v30, 3 }
 0x235   : > { %v5772_v50 = vpop.permute.xlu1 %5771  ;;  %v5482_v43 = vsel %vm19086_vm4, %v14425_v48, %v5481_v16  ;;  %v3419_v48 = vsel %vm19102_vm2, %v14445_v36, %v3418_v46 }
 0x236   : > { %5816 = vst.msk [vmem:[#allocation2 + $0x50] sm:$0xff] %vm19332_vm15, %v5772_v50  ;;  %v1420_v29 = vpop.permute.xlu0 %1419  ;;  %v14644_v50 = vor.u32 %v5489_v58, %v5486_v6  ;;  %v5744_v36 = vsel %vm19088_vm6, %v5741_v2, %v5743_v15 }
 0x237   : > { %1460 = vst.msk [vmem:[#allocation2 + $0x70] sm:$0xff] %vm19333_vm11, %v1420_v29  ;;  %2847 = vrot.lane.b32.xlu1 %v2812_v18, %s12527_s27  ;;  %v3785_v18 = vshrl.u32 %v12312_v22, 16  ;;  %v12316_v22 = vld [vmem:[%s12615_s21 + $0x90] sm:$0xff]  }
 0x238   : > { %4793 = vrot.lane.b32.xlu0 %v4758_v37, %s19205_s16  ;;  %v3423_v37 = vrot.slane %v3421_v59, 1  ;;  %v5491_v11 = vsel %vm19086_vm4, %v5481_v16, %v14644_v50  ;;  %v5745_v16 = vrot.slane %v14656_v27, 3  ;;  %v14680_v59 = vld [vmem:[%s12610_s18 + $0x90] sm:$0xff]  }
 0x239   : > { %v3456_v25 = vpop.permute.xlu1 %3455  ;;  %v3787_v28 = vrot.slane %v3785_v18, 1 }
 0x23a   : > { %3497 = vst.msk [vmem:[#allocation2 + $0x68] sm:$0xff] %vm19330_vm8, %v3456_v25  ;;  %v3827_v47 = vpop.permute.xlu0 %3826  ;;  %vm19336_vm8 = vcmask 97344   ;;  %v3427_v14 = vor.u32 %v3426_v5, %v3423_v37  ;;  %v3794_v25 = vshrl.u32 %v12315_v38, 16  ;;  %v5746_v6 = vsel %vm19088_vm6, %v5743_v15, %v5745_v16  ;;  %v12320_v37 = vld [vmem:[%s12610_s18 + $0x98] ss:$0 sps:$4 sm:$0x33]  }
 0x23b   : > { %3869 = vst.msk [vmem:[#allocation2 + $0x60] sm:$0xff] %vm19334_vm10, %v3827_v47  ;;  %5165 = vrot.lane.b32.xlu1 %v5109_v21, %s19335_s23  ;;  %v3790_v21 = vrot.slane %v3788_v3, 2  ;;  %v12314_v47 = vld [vmem:[%s12610_s18 + $0x88] sm:$0xff]   ;;  %v5985_v3 = vrot.slane %v14680_v59, 3  ;;  %v12321_v5 = vld [vmem:[%s12615_s21 + $0x98] sm:$0xff]  }
 0x23c   : > { %2849 = vrot.lane.b32.xlu0 %v2814_v33, %s12527_s27  ;;  %v3797_v33 = vshll.u32 %v12315_v38, 16  ;;  %v3796_v9 = vrot.slane %v3794_v25, 1  ;;  %v5983_v2 = vrot.slane %v12314_v47, 3  ;;  %v12325_v15 = vld [vmem:[%s12615_s21 + $0x98] sm:$0xff]  }
 0x23d   : > { %v5774_v31 = vpop.permute.xlu1 %5773  ;;  %v3791_v20 = vor.u32 %v3790_v21, %v3787_v28 }
 0x23e   : > { %5817 = vst.msk [vmem:[#allocation2 + $0x58] sm:$0xff] %vm19332_vm15, %v5774_v31  ;;  %v6012_v51 = vpop.permute.xlu0 %6011  ;;  %v3799_v42 = vrot.slane %v3797_v33, 2  ;;  %vm19337_vm15 = vmmov %vm19336_vm8 }
 0x23f   : > { %6056 = vst.msk [vmem:[#allocation2 + $0x50] sm:$0xff] %vm6045_vm12, %v6012_v51  ;;  %3087 = vrot.lane.b32.xlu1 %v3052_v7, %s19208_s15  ;;  %v3792_v45 = vsel %vm19102_vm2, %v14486_v54, %v3791_v20  ;;  %v5984_v54 = vsel %vm19088_vm6, %v5981_v12, %v5983_v2  ;;  %v4039_v51 = vrot.slane %v12316_v22, 2 }
 0x240   : > { %5167 = vrot.lane.b32.xlu0 %v5118_v32, %s19335_s23  ;;  %v3428_v32 = vsel %vm19102_vm2, %v3418_v46, %v3427_v14  ;;  %v3800_v58 = vor.u32 %v3799_v42, %v3796_v9  ;;  %v12326_v14 = vld [vmem:[%s12615_s21 + $0xa0] ss:$0 sps:$4 sm:$0x77]   ;;  %v4521_v9 = vrot.slane %v12322_v63, 2 }
 0x241   : > { %v1422_v44 = vpop.permute.xlu1 %1421  ;;  %v4040_v60 = vsel %vm19087_vm3, %v4037_v34, %v4039_v51  ;;  %v12323_v34 = vld [vmem:[%s12610_s18 + $0x98] sm:$0xff]   ;;  %v5132_v22 = vshll.u32 %v12326_v14, 16 }
 0x242   : > { %1461 = vst.msk [vmem:[#allocation2 + $0x78] sm:$0xff] %vm19333_vm11, %v1422_v44  ;;  %v1772_v29 = vpop.permute.xlu0 %1771  ;;  %v3801_v18 = vsel %vm19102_vm2, %v3791_v20, %v3800_v58  ;;  %v12319_v44 = vld [vmem:[%s12610_s18 + $0x90] sm:$0xff]   ;;  %vm19338_vm11 = vcmask 392544   ;;  %v12327_v20 = vld [vmem:[%s12610_s18 + $0x98] sm:$0xff]   ;;  %v4759_v42 = vrot.slane %v12323_v34, 2 }
 0x243   : > { %1812 = vst.msk [vmem:[#allocation2 + $0x70] sm:$0xff] %vm19336_vm8, %v1772_v29  ;;  %5538 = vrot.lane.b32.xlu1 %v5482_v43, %s19310_s17  ;;  %v12318_v43 = vld [vmem:[%s12615_s21 + $0x98] ss:$0 sps:$4 sm:$0x33]   ;;  %v5986_v29 = vsel %vm19088_vm6, %v5983_v2, %v5985_v3  ;;  %vm19339_vm8 = vcmask 162944   ;;  %v5129_v2 = vshrl.u32 %v12326_v14, 16 }
 0x244   : > { %3089 = vrot.lane.b32.xlu0 %v3054_v56, %s19208_s15  ;;  %v4041_v12 = vrot.slane %v12318_v43, 2  ;;  %v12329_v34 = vld [vmem:[%s12615_s21 + $0x98] sm:$0xff]   ;;  %v12330_v14 = vld [vmem:[%s12615_s21 + $0xa0] ss:$0 sps:$4 sm:$0x77]  }
 0x245   : > { %v3829_v40 = vpop.permute.xlu1 %3828 }
 0x246   : > { %3870 = vst.msk [vmem:[#allocation2 + $0x68] sm:$0xff] %vm19334_vm10, %v3829_v40  ;;  %v4068_v52 = vpop.permute.xlu0 %4067  ;;  %v6074_v17 = vld [vmem:[#allocation2 + $0x50] sm:$0xff]  ;;  %vm19340_vm10 = vmmov %vm19338_vm11  ;;  %v4042_v21 = vsel %vm19087_vm3, %v4039_v51, %v4041_v12  ;;  %v4281_v40 = vrot.slane %v12320_v37, 2  ;;  %v5496_v51 = vshll.u32 %v12327_v20, 16 }
 0x247   : > { %4110 = vst.msk [vmem:[#allocation2 + $0x60] sm:$0xff] %vm4097_vm7, %v4068_v52  ;;  %3461 = vrot.lane.b32.xlu1 %v3419_v48, %s19203_s28  ;;  %11829 = vmatprep.mubr.msk.bf16.mxu0 %vm6125_vm14, %v6074_v17  ;;  %v4279_v48 = vrot.slane %v12319_v44, 2  ;;  %v5120_v17 = vshrl.u32 %v12325_v15, 16 }
 0x248   : > { %5540 = vrot.lane.b32.xlu0 %v5491_v11, %s19310_s17  ;;  %v4519_v11 = vrot.slane %v12321_v5, 2  ;;  %v5498_v5 = vrot.slane %v5496_v51, 3 }
 0x249   : > { %v6014_v7 = vpop.permute.xlu1 %6013  ;;  %v4280_v52 = vsel %vm19087_vm3, %v4277_v57, %v4279_v48  ;;  %v4282_v57 = vsel %vm19087_vm3, %v4279_v48, %v4281_v40  ;;  %v5122_v58 = vrot.slane %v5120_v17, 2  ;;  %v12331_v17 = vld [vmem:[%s12610_s18 + $0x98] sm:$0xff]  }
 0x24a   : > { %6057 = vst.msk [vmem:[#allocation2 + $0x58] sm:$0xff] %vm6045_vm12, %v6014_v7  ;;  %v1774_v55 = vpop.permute.xlu0 %1773  ;;  %v5987_v41 = vrot.slane %v12331_v17, 3 }
 0x24b   : > { %1813 = vst.msk [vmem:[#allocation2 + $0x78] sm:$0xff] %vm19337_vm15, %v1774_v55  ;;  %5779 = vrot.lane.b32.xlu1 %v5744_v36, %s12537_s20  ;;  %v5123_v36 = vshll.u32 %v12325_v15, 16  ;;  %vm19341_vm15 = vcmask 425344  }
 0x24c   : > { %3463 = vrot.lane.b32.xlu0 %v3428_v32, %s19203_s28  ;;  %v5988_v27 = vsel %vm19088_vm6, %v5985_v3, %v5987_v41 }
 0x24d   : > { %v2123_v31 = vpop.permute.xlu1 %2122 }
 0x24e   : > { %2163 = vst.msk [vmem:[#allocation2 + $0x70] sm:$0xff] %vm19089_vm9, %v2123_v31  ;;  %v4070_v39 = vpop.permute.xlu0 %4069  ;;  %v12328_v31 = vld [vmem:[%s12610_s18 + $0xa0] ss:$0 sps:$4 sm:$0x77]  }
 0x24f   : > { %4111 = vst.msk [vmem:[#allocation2 + $0x68] sm:$0xff] %vm4097_vm7, %v4070_v39  ;;  %3834 = vrot.lane.b32.xlu1 %v3792_v45, %s12530_s30  ;;  %v4520_v45 = vsel %vm19087_vm3, %v4517_v4, %v4519_v11  ;;  %v5125_v39 = vrot.slane %v5123_v36, 3  ;;  %v5131_v4 = vrot.slane %v5129_v2, 2  ;;  %v5505_v44 = vshll.u32 %v12328_v31, 16 }
 0x250   : > { %5781 = vrot.lane.b32.xlu0 %v5746_v6, %s12537_s20 }
 0x251   : > { %v4308_v46 = vpop.permute.xlu1 %4307  ;;  %v6075_v30 = vld [vmem:[#allocation2 + $0x58] sm:$0xff]  ;;  %v5126_v12 = vor.u32 %v5125_v39, %v5122_v58  ;;  %v5507_v15 = vrot.slane %v5505_v44, 3 }
 0x252   : > { %4350 = vst.msk [vmem:[#allocation2 + $0x60] sm:$0xff] %vm19338_vm11, %v4308_v46  ;;  %v2125_v56 = vpop.permute.xlu0 %2124  ;;  %11830 = vmatmul.mubr.msk.bf16.gmra.mrb[20].mxu0 %vm6125_vm14, %v6075_v30  ;;  %vm19342_vm11 = vmmov %vm19339_vm8  ;;  %v4522_v46 = vsel %vm19087_vm3, %v4519_v11, %v4521_v9  ;;  %v5134_v30 = vrot.slane %v5132_v22, 3  ;;  %v12332_v9 = vld [vmem:[%s12610_s18 + $0xa0] ss:$0 sps:$4 sm:$0x77]  }
 0x253   : > { %2164 = vst.msk [vmem:[#allocation2 + $0x78] sm:$0xff] %vm19089_vm9, %v2125_v56  ;;  %6019 = vrot.lane.b32.xlu1 %v5984_v54, %s12538_s29  ;;  %v5493_v54 = vshrl.u32 %v12327_v20, 16  ;;  %v5989_v2 = vrot.slane %v12332_v9, 3 }
 0x254   : > { %3836 = vrot.lane.b32.xlu0 %v3801_v18, %s12530_s30  ;;  %v5502_v18 = vshrl.u32 %v12328_v31, 16  ;;  %v5135_v48 = vor.u32 %v5134_v30, %v5131_v4 }
 0x255   : > { %v2364_v38 = vpop.permute.xlu1 %2363  ;;  %v5495_v37 = vrot.slane %v5493_v54, 2  ;;  %v5990_v31 = vsel %vm19088_vm6, %v5987_v41, %v5989_v2 }
 0x256   : > { %2404 = vst.msk [vmem:[#allocation2 + $0x70] sm:$0xff] %vm19339_vm8, %v2364_v38  ;;  %v4310_v28 = vpop.permute.xlu0 %4309  ;;  %vm19343_vm8 = vcmask 195744   ;;  %v5504_v24 = vrot.slane %v5502_v18, 2  ;;  %v5136_v40 = vsel %vm19086_vm4, %v5126_v12, %v5135_v48 }
 0x257   : > { %4351 = vst.msk [vmem:[#allocation2 + $0x68] sm:$0xff] %vm19340_vm10, %v4310_v28  ;;  %4075 = vrot.lane.b32.xlu1 %v4040_v60, %s19265_s22  ;;  %vm19344_vm10 = vmmov %vm19341_vm15  ;;  %v4760_v60 = vsel %vm19087_vm3, %v4757_v0, %v4759_v42  ;;  %v5127_v28 = vsel %vm19086_vm4, %v14618_v35, %v5126_v12  ;;  %v5499_v63 = vor.u32 %v5498_v5, %v5495_v37 }
 0x258   : > { %6021 = vrot.lane.b32.xlu0 %v5986_v29, %s12538_s29  ;;  %v4762_v29 = vsel %vm19087_vm3, %v4759_v42, %v4761_v49  ;;  %v5508_v11 = vor.u32 %v5507_v15, %v5504_v24  ;;  %vm19360_vm3 = vcmask 326944  }
 0x259   : > { %v4548_v25 = vpop.permute.xlu1 %4547  ;;  %v14715_v33 = vpop.f32.mrb[8].mxu0  ;;  %v5500_v35 = vsel %vm19086_vm4, %v14644_v50, %v5499_v63 }
 0x25a   : > { %4590 = vst.msk [vmem:[#allocation2 + $0x60] sm:$0xff] %vm19341_vm15, %v4548_v25  ;;  %v2366_v47 = vpop.permute.xlu0 %2365  ;;  %v14722_v7 = vpop.f32.mrb[9].mxu0  ;;  %vm19345_vm15 = vcmask 458144   ;;  %v5509_v20 = vsel %vm19086_vm4, %v5499_v63, %v5508_v11  ;;  %vm19357_vm4 = vcmask 556544  }
 0x25b   : > { %2405 = vst.msk [vmem:[#allocation2 + $0x78] sm:$0xff] %vm19342_vm11, %v2366_v47  ;;  %4077 = vrot.lane.b32.xlu1 %v4042_v21, %s19265_s22  ;;  %v14726_v32 = vpop.f32.mrb[10].mxu0  ;;  %vm19346_vm11 = vmmov %vm19343_vm8  ;;  %v5749_v47 = vrot.slane %v12330_v14, 3 }
 0x25c   : > { %v14729_v55 = vpop.f32.mrb[11].mxu0  ;;  %4315 = vrot.lane.b32.xlu0 %v4280_v52, %s19239_s11  ;;  %v5747_v52 = vrot.slane %v12329_v34, 3 }
 0x25d   : > { %v2604_v6 = vpop.permute.xlu1 %2603 }
 0x25e   : > { %2644 = vst.msk [vmem:[#allocation2 + $0x70] sm:$0xff] %vm19343_vm8, %v2604_v6  ;;  %v4550_v43 = vpop.permute.xlu0 %4549  ;;  %vm19347_vm8 = vcmask 228544   ;;  %v5748_v50 = vsel %vm19088_vm6, %v5745_v16, %v5747_v52 }
 0x25f   : > { %4591 = vst.msk [vmem:[#allocation2 + $0x68] sm:$0xff] %vm19344_vm10, %v4550_v43  ;;  %4317 = vrot.lane.b32.xlu1 %v4282_v57, %s19239_s11  ;;  %vm19348_vm10 = vmmov %vm19345_vm15 }
 0x260   : > { %4555 = vrot.lane.b32.xlu0 %v4520_v45, %s19221_s12  ;;  %v5750_v45 = vsel %vm19088_vm6, %v5747_v52, %v5749_v47  ;;  %vm19361_vm6 = vmmov %vm19357_vm4 }
 0x261   : > { %v4788_v56 = vpop.permute.xlu1 %4787 }
 0x262   : > { %4830 = vst.msk [vmem:[#allocation2 + $0x60] sm:$0xff] %vm19345_vm15, %v4788_v56  ;;  %v2606_v38 = vpop.permute.xlu0 %2605  ;;  %vm19349_vm15 = vcmask 490944  }
 0x263   : > { %2645 = vst.msk [vmem:[#allocation2 + $0x78] sm:$0xff] %vm19346_vm11, %v2606_v38  ;;  %4557 = vrot.lane.b32.xlu1 %v4522_v46, %s19221_s12  ;;  %vm19350_vm11 = vmmov %vm19347_vm8 }
 0x264   : > { %4795 = vrot.lane.b32.xlu0 %v4760_v60, %s19205_s16 }
 0x265   : > { %v2844_v0 = vpop.permute.xlu1 %2843 }
 0x266   : > { %2884 = vst.msk [vmem:[#allocation2 + $0x70] sm:$0xff] %vm19347_vm8, %v2844_v0  ;;  %v4790_v21 = vpop.permute.xlu0 %4789  ;;  %vm19351_vm8 = vcmask 261344  }
 0x267   : > { %4831 = vst.msk [vmem:[#allocation2 + $0x68] sm:$0xff] %vm19348_vm10, %v4790_v21  ;;  %4797 = vrot.lane.b32.xlu1 %v4762_v29, %s19205_s16  ;;  %vm19352_vm10 = vmmov %vm19349_vm15 }
 0x268   : > { %5169 = vrot.lane.b32.xlu0 %v5127_v28, %s19335_s23 }
 0x269   : > { %v5162_v25 = vpop.permute.xlu1 %5161 }
 0x26a   : > { %5204 = vst.msk [vmem:[#allocation2 + $0x60] sm:$0xff] %vm19349_vm15, %v5162_v25  ;;  %v2846_v36 = vpop.permute.xlu0 %2845  ;;  %vm19353_vm15 = vcmask 523744  }
 0x26b   : > { %2885 = vst.msk [vmem:[#allocation2 + $0x78] sm:$0xff] %vm19350_vm11, %v2846_v36  ;;  %5171 = vrot.lane.b32.xlu1 %v5136_v40, %s19335_s23  ;;  %vm19354_vm11 = vmmov %vm19351_vm8 }
 0x26c   : > { %5542 = vrot.lane.b32.xlu0 %v5500_v35, %s19310_s17 }
 0x26d   : > { %v3084_v42 = vpop.permute.xlu1 %3083 }
 0x26e   : > { %3124 = vst.msk [vmem:[#allocation2 + $0x70] sm:$0xff] %vm19351_vm8, %v3084_v42  ;;  %v5164_v57 = vpop.permute.xlu0 %5163  ;;  %vm19355_vm8 = vcmask 294144  }
 0x26f   : > { %5205 = vst.msk [vmem:[#allocation2 + $0x68] sm:$0xff] %vm19352_vm10, %v5164_v57  ;;  %5544 = vrot.lane.b32.xlu1 %v5509_v20, %s19310_s17  ;;  %vm19356_vm10 = vmmov %vm19353_vm15  ;;  %s19686_s17 = smov 16  }
 0x270   : > { %5783 = vrot.lane.b32.xlu0 %v5748_v50, %s12537_s20 }
 0x271   : > { %v5535_v22 = vpop.permute.xlu1 %5534 }
 0x272   : > { %5577 = vst.msk [vmem:[#allocation2 + $0x60] sm:$0xff] %vm19353_vm15, %v5535_v22  ;;  %v3086_v16 = vpop.permute.xlu0 %3085  ;;  %vm19358_vm15 = vcmask 64544  }
 0x273   : > { %3125 = vst.msk [vmem:[#allocation2 + $0x78] sm:$0xff] %vm19354_vm11, %v3086_v16  ;;  %5785 = vrot.lane.b32.xlu1 %v5750_v45, %s12537_s20  ;;  %vm19359_vm11 = vmmov %vm19355_vm8 }
 0x274   : > { %6023 = vrot.lane.b32.xlu0 %v5988_v27, %s12538_s29 }
 0x275   : > { %v3458_v6 = vpop.permute.xlu1 %3457 }
 0x276   : > { %3498 = vst.msk [vmem:[#allocation2 + $0x70] sm:$0xff] %vm19355_vm8, %v3458_v6  ;;  %v5537_v58 = vpop.permute.xlu0 %5536  ;;  %vm19362_vm8 = vmmov %vm19358_vm15 }
 0x277   : > { %5578 = vst.msk [vmem:[#allocation2 + $0x68] sm:$0xff] %vm19356_vm10, %v5537_v58  ;;  %6025 = vrot.lane.b32.xlu1 %v5990_v31, %s12538_s29  ;;  %vm19364_vm10 = vmmov %vm19360_vm3 }
 0x279   : > { %v5776_v59 = vpop.permute.xlu1 %5775 }
 0x27a   : > { %5818 = vst.msk [vmem:[#allocation2 + $0x60] sm:$0xff] %vm19357_vm4, %v5776_v59  ;;  %v1424_v3 = vpop.permute.xlu0 %1423  ;;  %vm19363_vm4 = vcmask 97344  }
 0x27b   : > { %1462 = vst.msk [vmem:[#allocation2 + $0x80] sm:$0xff] %vm19358_vm15, %v1424_v3  ;;  %vm19367_vm15 = vcmask 162944  }
 0x27d   : > { %v3460_v39 = vpop.permute.xlu1 %3459 }
 0x27e   : > { %3499 = vst.msk [vmem:[#allocation2 + $0x78] sm:$0xff] %vm19359_vm11, %v3460_v39  ;;  %v3831_v54 = vpop.permute.xlu0 %3830 }
 0x27f   : > { %3871 = vst.msk [vmem:[#allocation2 + $0x70] sm:$0xff] %vm19360_vm3, %v3831_v54  ;;  %vm19365_vm3 = vmmov %vm19363_vm4 }
 0x281   : > { %v5778_v51 = vpop.permute.xlu1 %5777 }
 0x282   : > { %5819 = vst.msk [vmem:[#allocation2 + $0x68] sm:$0xff] %vm19361_vm6, %v5778_v51  ;;  %v6016_v43 = vpop.permute.xlu0 %6015  ;;  %vm19366_vm6 = vcmask 392544  }
 0x283   : > { %6058 = vst.msk [vmem:[#allocation2 + $0x60] sm:$0xff] %vm6045_vm12, %v6016_v43  ;;  %vm19368_vm11 = vmmov %vm19366_vm6 }
 0x285   : > { %v1426_v46 = vpop.permute.xlu1 %1425 }
 0x286   : > { %1463 = vst.msk [vmem:[#allocation2 + $0x88] sm:$0xff] %vm19362_vm8, %v1426_v46  ;;  %v1776_v49 = vpop.permute.xlu0 %1775  ;;  %vm19369_vm8 = vcmask 425344  }
 0x287   : > { %1814 = vst.msk [vmem:[#allocation2 + $0x80] sm:$0xff] %vm19363_vm4, %v1776_v49  ;;  %vm19370_vm4 = vmmov %vm19367_vm15 }
 0x289   : > { %v3833_v4 = vpop.permute.xlu1 %3832 }
 0x28a   : > { %3872 = vst.msk [vmem:[#allocation2 + $0x78] sm:$0xff] %vm19364_vm10, %v3833_v4  ;;  %v4072_v30 = vpop.permute.xlu0 %4071  ;;  %v6076_v18 = vld [vmem:[#allocation2 + $0x60] sm:$0xff]  ;;  %vm19371_vm10 = vcmask 195744  }
 0x28b   : > { %4112 = vst.msk [vmem:[#allocation2 + $0x70] sm:$0xff] %vm4097_vm7, %v4072_v30  ;;  %11833 = vmatprep.mubr.msk.bf16.mxu0 %vm6125_vm14, %v6076_v18 }
 0x28d   : > { %v6018_v44 = vpop.permute.xlu1 %6017 }
 0x28e   : > { %6059 = vst.msk [vmem:[#allocation2 + $0x68] sm:$0xff] %vm6045_vm12, %v6018_v44  ;;  %v1778_v56 = vpop.permute.xlu0 %1777 }
 0x28f   : > { %1815 = vst.msk [vmem:[#allocation2 + $0x88] sm:$0xff] %vm19365_vm3, %v1778_v56  ;;  %vm19372_vm3 = vmmov %vm19369_vm8 }
 0x291   : > { %v2127_v60 = vpop.permute.xlu1 %2126 }
 0x292   : > { %2165 = vst.msk [vmem:[#allocation2 + $0x80] sm:$0xff] %vm19089_vm9, %v2127_v60  ;;  %v4074_v12 = vpop.permute.xlu0 %4073 }
 0x293   : > { %4113 = vst.msk [vmem:[#allocation2 + $0x78] sm:$0xff] %vm4097_vm7, %v4074_v12 }
 0x295   : > { %v4312_v37 = vpop.permute.xlu1 %4311  ;;  %v6077_v5 = vld [vmem:[#allocation2 + $0x68] sm:$0xff] }
 0x296   : > { %4352 = vst.msk [vmem:[#allocation2 + $0x70] sm:$0xff] %vm19366_vm6, %v4312_v37  ;;  %v2129_v38 = vpop.permute.xlu0 %2128  ;;  %11834 = vmatmul.mubr.msk.bf16.gmra.mrb[24].mxu0 %vm6125_vm14, %v6077_v5  ;;  %vm19373_vm6 = vcmask 458144  }
 0x297   : > { %2166 = vst.msk [vmem:[#allocation2 + $0x88] sm:$0xff] %vm19089_vm9, %v2129_v38 }
 0x299   : > { %v2368_v29 = vpop.permute.xlu1 %2367 }
 0x29a   : > { %2406 = vst.msk [vmem:[#allocation2 + $0x80] sm:$0xff] %vm19367_vm15, %v2368_v29  ;;  %v4314_v48 = vpop.permute.xlu0 %4313  ;;  %vm19374_vm15 = vmmov %vm19371_vm10 }
 0x29b   : > { %4353 = vst.msk [vmem:[#allocation2 + $0x78] sm:$0xff] %vm19368_vm11, %v4314_v48  ;;  %vm19375_vm11 = vcmask 228544  }
 0x29d   : > { %v4552_v24 = vpop.permute.xlu1 %4551  ;;  %v14807_v15 = vpop.f32.mrb[12].mxu0 }
 0x29e   : > { %4592 = vst.msk [vmem:[#allocation2 + $0x70] sm:$0xff] %vm19369_vm8, %v4552_v24  ;;  %v2370_v0 = vpop.permute.xlu0 %2369  ;;  %v14810_v28 = vpop.f32.mrb[13].mxu0  ;;  %vm19376_vm8 = vmmov %vm19373_vm6 }
 0x29f   : > { %2407 = vst.msk [vmem:[#allocation2 + $0x88] sm:$0xff] %vm19370_vm4, %v2370_v0  ;;  %v14813_v63 = vpop.f32.mrb[14].mxu0  ;;  %vm19377_vm4 = vcmask 490944   ;;  %v381_v0 = vlaneseq }
 0x2a0   : > { %v14815_v34 = vpop.f32.mrb[15].mxu0 }
 0x2a1   : > { %v2608_v21 = vpop.permute.xlu1 %2607 }
 0x2a2   : > { %2646 = vst.msk [vmem:[#allocation2 + $0x80] sm:$0xff] %vm19371_vm10, %v2608_v21  ;;  %v4554_v40 = vpop.permute.xlu0 %4553  ;;  %vm19378_vm10 = vmmov %vm19375_vm11  ;;  %v14866_v21 = vshrl.u32 %v381_v0, 7 }
 0x2a3   : > { %4593 = vst.msk [vmem:[#allocation2 + $0x78] sm:$0xff] %vm19372_vm3, %v4554_v40  ;;  %vm19379_vm3 = vcmask 261344  }
 0x2a4   : > { %v384_v40 = vadd.s32 16, %v14866_v21 }
 0x2a5   : > { %v4792_v11 = vpop.permute.xlu1 %4791 }
 0x2a6   : > { %4832 = vst.msk [vmem:[#allocation2 + $0x70] sm:$0xff] %vm19373_vm6, %v4792_v11  ;;  %v2610_v14 = vpop.permute.xlu0 %2609  ;;  %vm19380_vm6 = vmmov %vm19377_vm4 }
 0x2a7   : > { %2647 = vst.msk [vmem:[#allocation2 + $0x88] sm:$0xff] %vm19374_vm15, %v2610_v14  ;;  %vm19381_vm15 = vcmask 523744   ;;  %v14870_v11 = vmul.u32.u64.low 3817748708, %v14866_v21  ;;  %v14871_v14 = vmul.u32.u64.high 3817748708, %v14866_v21, %v14870_v11 }
 0x2a9   : > { %v2848_v25 = vpop.permute.xlu1 %2847 }
 0x2aa   : > { %2886 = vst.msk [vmem:[#allocation2 + $0x80] sm:$0xff] %vm19375_vm11, %v2848_v25  ;;  %v4794_v35 = vpop.permute.xlu0 %4793  ;;  %vm19382_vm11 = vmmov %vm19379_vm3  ;;  %v383_v25 = vadd.s32 8, %v14866_v21 }
 0x2ab   : > { %4833 = vst.msk [vmem:[#allocation2 + $0x78] sm:$0xff] %vm19376_vm8, %v4794_v35  ;;  %vm19383_vm8 = vcmask 294144  }
 0x2ad   : > { %v5166_v52 = vpop.permute.xlu1 %5165 }
 0x2ae   : > { %5206 = vst.msk [vmem:[#allocation2 + $0x70] sm:$0xff] %vm19377_vm4, %v5166_v52  ;;  %v2850_v17 = vpop.permute.xlu0 %2849  ;;  %vm19384_vm4 = vmmov %vm19381_vm15  ;;  %v14874_v35 = vmul.u32.u64.low 3817748708, %v384_v40  ;;  %v14875_v52 = vmul.u32.u64.high 3817748708, %v384_v40, %v14874_v35 }
 0x2af   : > { %2887 = vst.msk [vmem:[#allocation2 + $0x88] sm:$0xff] %vm19378_vm10, %v2850_v17  ;;  %vm19385_vm10 = vcmask 556544   ;;  %v385_v17 = vadd.s32 24, %v14866_v21 }
 0x2b1   : > { %v3088_v36 = vpop.permute.xlu1 %3087 }
 0x2b2   : > { %3126 = vst.msk [vmem:[#allocation2 + $0x80] sm:$0xff] %vm19379_vm3, %v3088_v36  ;;  %v5168_v20 = vpop.permute.xlu0 %5167  ;;  %vm19386_vm3 = vmmov %vm19383_vm8 }
 0x2b3   : > { %5207 = vst.msk [vmem:[#allocation2 + $0x78] sm:$0xff] %vm19380_vm6, %v5168_v20  ;;  %vm19387_vm6 = vcmask 326944   ;;  %v14878_v36 = vmul.u32.u64.low 3817748708, %v383_v25  ;;  %v14879_v20 = vmul.u32.u64.high 3817748708, %v383_v25, %v14878_v36 }
 0x2b5   : > { %v5539_v47 = vpop.permute.xlu1 %5538 }
 0x2b6   : > { %5579 = vst.msk [vmem:[#allocation2 + $0x70] sm:$0xff] %vm19381_vm15, %v5539_v47  ;;  %v3090_v9 = vpop.permute.xlu0 %3089  ;;  %vm19388_vm15 = vmmov %vm19385_vm10  ;;  %v424_v47 = vshrl.u32 %v14871_v14, 4  ;;  %v14922_v14 = vadd.s32 64, %v14866_v21 }
 0x2b7   : > { %3127 = vst.msk [vmem:[#allocation2 + $0x88] sm:$0xff] %vm19382_vm11, %v3090_v9  ;;  %vm19389_vm11 = vmmov %vm19387_vm6 }
 0x2b9   : > { %v3462_v42 = vpop.permute.xlu1 %3461 }
 0x2ba   : > { %3500 = vst.msk [vmem:[#allocation2 + $0x80] sm:$0xff] %vm19383_vm8, %v3462_v42  ;;  %v5541_v50 = vpop.permute.xlu0 %5540  ;;  %vm19390_vm8 = vcmask 392544   ;;  %v14882_v9 = vmul.u32.u64.low 3817748708, %v385_v17  ;;  %v14883_v42 = vmul.u32.u64.high 3817748708, %v385_v17, %v14882_v9 }
 0x2bb   : > { %5580 = vst.msk [vmem:[#allocation2 + $0x78] sm:$0xff] %vm19384_vm4, %v5541_v50  ;;  %vm19391_vm4 = vmmov %vm19390_vm8  ;;  %v386_v50 = vadd.s32 32, %v14866_v21 }
 0x2bd   : > { %v5780_v41 = vpop.permute.xlu1 %5779 }
 0x2be   : > { %5820 = vst.msk [vmem:[#allocation2 + $0x70] sm:$0xff] %vm19385_vm10, %v5780_v41  ;;  %v3464_v57 = vpop.permute.xlu0 %3463  ;;  %vm19392_vm10 = vcmask 425344   ;;  %v388_v41 = vadd.s32 48, %v14866_v21 }
 0x2bf   : > { %3501 = vst.msk [vmem:[#allocation2 + $0x88] sm:$0xff] %vm19386_vm3, %v3464_v57  ;;  %vm19393_vm3 = vmmov %vm19392_vm10  ;;  %v446_v57 = vshrl.u32 %v14875_v52, 4 }
 0x2c1   : > { %v3835_v45 = vpop.permute.xlu1 %3834 }
 0x2c2   : > { %3873 = vst.msk [vmem:[#allocation2 + $0x80] sm:$0xff] %vm19387_vm6, %v3835_v45  ;;  %v5782_v2 = vpop.permute.xlu0 %5781  ;;  %vm19394_vm6 = vcmask 458144   ;;  %v425_v45 = vmul.u32 18, %v424_v47 }
 0x2c3   : > { %5821 = vst.msk [vmem:[#allocation2 + $0x78] sm:$0xff] %vm19388_vm15, %v5782_v2  ;;  %vm19396_vm15 = vcmask 490944   ;;  %v389_v2 = vadd.s32 56, %v14866_v21 }
 0x2c5   : > { %v6020_v22 = vpop.permute.xlu1 %6019 }
 0x2c6   : > { %6060 = vst.msk [vmem:[#allocation2 + $0x70] sm:$0xff] %vm6045_vm12, %v6020_v22  ;;  %v3837_v27 = vpop.permute.xlu0 %3836 }
 0x2c7   : > { %3874 = vst.msk [vmem:[#allocation2 + $0x88] sm:$0xff] %vm19389_vm11, %v3837_v27  ;;  %vm19397_vm11 = vmmov %vm19396_vm15  ;;  %v435_v27 = vshrl.u32 %v14879_v20, 4 }
 0x2c9   : > { %v4076_v16 = vpop.permute.xlu1 %4075 }
 0x2ca   : > { %4114 = vst.msk [vmem:[#allocation2 + $0x80] sm:$0xff] %vm4097_vm7, %v4076_v16  ;;  %v6022_v31 = vpop.permute.xlu0 %6021 }
 0x2cb   : > { %6061 = vst.msk [vmem:[#allocation2 + $0x78] sm:$0xff] %vm6045_vm12, %v6022_v31  ;;  %v14892_v16 = vmul.u32.u64.low 3817748708, %v386_v50  ;;  %v14893_v31 = vmul.u32.u64.high 3817748708, %v386_v50, %v14892_v16 }
 0x2cd   : > { %v4078_v6 = vpop.permute.xlu1 %4077  ;;  %v6078_v58 = vld [vmem:[#allocation2 + $0x70] sm:$0xff] }
 0x2ce   : > { %4115 = vst.msk [vmem:[#allocation2 + $0x88] sm:$0xff] %vm4097_vm7, %v4078_v6  ;;  %11837 = vmatprep.mubr.msk.bf16.mxu0 %vm6125_vm14, %v6078_v58  ;;  %v4316_v59 = vpop.permute.xlu0 %4315  ;;  %vm19395_vm7 = vmmov %vm19394_vm6  ;;  %v14896_v6 = vadd.s32 40, %v14866_v21 }
 0x2cf   : > { %4354 = vst.msk [vmem:[#allocation2 + $0x80] sm:$0xff] %vm19390_vm8, %v4316_v59  ;;  %vm19398_vm8 = vcmask 523744  }
 0x2d1   : > { %v4318_v3 = vpop.permute.xlu1 %4317 }
 0x2d2   : > { %4355 = vst.msk [vmem:[#allocation2 + $0x88] sm:$0xff] %vm19391_vm4, %v4318_v3  ;;  %v6079_v39 = vld [vmem:[#allocation2 + $0x78] sm:$0xff]  ;;  %v4556_v54 = vpop.permute.xlu0 %4555  ;;  %vm19399_vm4 = vmmov %vm19398_vm8  ;;  %v14900_v59 = vmul.u32.u64.low 3817748708, %v388_v41  ;;  %v14901_v3 = vmul.u32.u64.high 3817748708, %v388_v41, %v14900_v59 }
 0x2d3   : > { %11838 = vmatmul.mubr.msk.bf16.gmra.mrb[28].mxu0 %vm6125_vm14, %v6079_v39  ;;  %4594 = vst.msk [vmem:[#allocation2 + $0x80] sm:$0xff] %vm19392_vm10, %v4556_v54  ;;  %vm19400_vm10 = vcmask 556544   ;;  %v447_v54 = vmul.u32 18, %v446_v57  ;;  %v14935_v57 = vadd.s32 88, %v14866_v21 }
 0x2d4   : > { %v490_v0 = vshrl.u32 %v14901_v3, 4 }
 0x2d5   : > { %v4558_v51 = vpop.permute.xlu1 %4557 }
 0x2d6   : > { %4595 = vst.msk [vmem:[#allocation2 + $0x88] sm:$0xff] %vm19393_vm3, %v4558_v51  ;;  %v4796_v43 = vpop.permute.xlu0 %4795  ;;  %vm19401_vm3 = vmmov %vm19400_vm10 }
 0x2d7   : > { %4834 = vst.msk [vmem:[#allocation2 + $0x80] sm:$0xff] %vm19394_vm6, %v4796_v43  ;;  %v457_v43 = vshrl.u32 %v14883_v42, 4  ;;  %v491_v42 = vmul.u32 18, %v490_v0 }
 0x2d9   : > { %v4798_v46 = vpop.permute.xlu1 %4797 }
 0x2da   : > { %4835 = vst.msk [vmem:[#allocation2 + $0x88] sm:$0xff] %vm19395_vm7, %v4798_v46  ;;  %v5170_v49 = vpop.permute.xlu0 %5169 }
 0x2db   : > { %5208 = vst.msk [vmem:[#allocation2 + $0x80] sm:$0xff] %vm19396_vm15, %v5170_v49  ;;  %v14908_v46 = vmul.u32.u64.low 3817748708, %v389_v2  ;;  %v14909_v49 = vmul.u32.u64.high 3817748708, %v389_v2, %v14908_v46 }
 0x2dd   : > { %v5172_v4 = vpop.permute.xlu1 %5171  ;;  %v501_v52 = vshrl.u32 %v14909_v49, 4 }
 0x2de   : > { %5209 = vst.msk [vmem:[#allocation2 + $0x88] sm:$0xff] %vm19397_vm11, %v5172_v4  ;;  %v5543_v30 = vpop.permute.xlu0 %5542  ;;  %v426_v4 = vsub.s32 %v14866_v21, %v425_v45 }
 0x2df   : > { %5581 = vst.msk [vmem:[#allocation2 + $0x80] sm:$0xff] %vm19398_vm8, %v5543_v30  ;;  %v436_v30 = vmul.u32 18, %v435_v27  ;;  %v502_v3 = vmul.u32 18, %v501_v52 }
 0x2e0   : > { %v922_v11 = vadd.s32 18, %v426_v4 }
 0x2e1   : > { %v5545_v18 = vpop.permute.xlu1 %5544  ;;  %v14851_v44 = vpop.f32.mrb[16].mxu0  ;;  %v14971_v0 = vsub.s32 %v389_v2, %v502_v3  ;;  %v14990_v2 = vld [vmem:[%s19040_s3] ss:$0 sm:$0xff] }
 0x2e2   : > { %5582 = vst.msk [vmem:[#allocation2 + $0x88] sm:$0xff] %vm19399_vm4, %v5545_v18  ;;  %v14854_v56 = vpop.f32.mrb[17].mxu0  ;;  %v5784_v60 = vpop.permute.xlu0 %5783  ;;  %v15011_v45 = vadd.f32 %v14990_v2, %v14272_v13  ;;  %v15229_v62 = vadd.f32 %v14515_v10, %v14990_v2 }
 0x2e3   : > { %v14856_v12 = vpop.f32.mrb[18].mxu0  ;;  %5822 = vst.msk [vmem:[#allocation2 + $0x80] sm:$0xff] %vm19400_vm10, %v5784_v60  ;;  %v14913_v18 = vmul.u32.u64.low 3817748708, %v14896_v6  ;;  %v14914_v60 = vmul.u32.u64.high 3817748708, %v14896_v6, %v14913_v18  ;;  %v929_v13 = vadd.s32 18, %v14971_v0 }
 0x2e4   : > { %v14859_v37 = vpop.f32.mrb[19].mxu0 }
 0x2e5   : > { %v5786_v5 = vpop.permute.xlu1 %5785  ;;  %v479_v47 = vshrl.u32 %v14914_v60, 4 }
 0x2e6   : > { %5823 = vst.msk [vmem:[#allocation2 + $0x88] sm:$0xff] %vm19401_vm3, %v5786_v5  ;;  %v6024_v38 = vpop.permute.xlu0 %6023  ;;  %v448_v5 = vsub.s32 %v384_v40, %v447_v54  ;;  %v14953_v54 = vadd.s32 72, %v14866_v21 }
 0x2e7   : > { %6062 = vst.msk [vmem:[#allocation2 + $0x80] sm:$0xff] %vm6045_vm12, %v6024_v38  ;;  %v458_v38 = vmul.u32 18, %v457_v43  ;;  %v480_v46 = vmul.u32 18, %v479_v47 }
 0x2e8   : > { %vm816_vm6 = vcmp.ne.s32.totalorder %v448_v5, 0  ;;  %vm852_vm7 = vcmp.lt.s32.totalorder %v448_v5, 0  ;;  %v924_v9 = vadd.s32 18, %v448_v5 }
 0x2e9   : > { %v6026_v29 = vpop.permute.xlu1 %6025  ;;  %v459_v40 = vsub.s32 %v385_v17, %v458_v38  ;;  %vm14938_vm4 = vmand %vm852_vm7, %vm816_vm6 }
 0x2ea   : > { %6063 = vst.msk [vmem:[#allocation2 + $0x88] sm:$0xff] %vm6045_vm12, %v6026_v29  ;;  %v14917_v29 = vadd.s32 80, %v14866_v21  ;;  %vm850_vm12 = vcmp.lt.s32.totalorder %v426_v4, 0  ;;  %v960_v60 = vsel %vm14938_vm4, %v924_v9, %v448_v5  ;;  %v14979_v5 = vsub.s32 %v14896_v6, %v480_v46 }
 0x2eb   : > { %vm817_vm10 = vcmp.ne.s32.totalorder %v459_v40, 0  ;;  %vm853_vm3 = vcmp.lt.s32.totalorder %v459_v40, 0  ;;  %v925_v49 = vadd.s32 18, %v459_v40 }
 0x2ec   : > { %vm14965_vm6 = vmand %vm853_vm3, %vm817_vm10  ;;  %v927_v46 = vadd.s32 18, %v14979_v5 }
 0x2ee   : > { %v6080_v48 = vld [vmem:[#allocation2 + $0x80] sm:$0xff] }
 0x2ef   : > { %11841 = vmatprep.mubr.msk.bf16.mxu0 %vm6125_vm14, %v6080_v48  ;;  %v437_v48 = vsub.s32 %v383_v25, %v436_v30  ;;  %v14930_v36 = vmul.u32.u64.low 3817748708, %v14917_v29  ;;  %v14931_v25 = vmul.u32.u64.high 3817748708, %v14917_v29, %v14930_v36  ;;  %v492_v30 = vsub.s32 %v388_v41, %v491_v42 }
 0x2f0   : > { %v19090_v36 = vmov 0.0  }
 0x2f1   : > { %v6081_v24 = vld [vmem:[#allocation2 + $0x88] sm:$0xff]  ;;  %vm815_vm11 = vcmp.ne.s32.totalorder %v437_v48, 0  ;;  %vm851_vm8 = vcmp.lt.s32.totalorder %v437_v48, 0  ;;  %v923_v27 = vadd.s32 18, %v437_v48  ;;  %v534_v41 = vshrl.u32 %v14931_v25, 4 }
 0x2f2   : > { %11842 = vmatmul.mubr.msk.bf16.gmra.mrb[32].mxu0 %vm6125_vm14, %v6081_v24  ;;  %vm814_vm14 = vcmp.ne.s32.totalorder %v426_v4, 0  ;;  %v468_v24 = vshrl.u32 %v14893_v31, 4  ;;  %v14945_v16 = vmul.u32.u64.low 3817748708, %v14922_v14  ;;  %v14946_v31 = vmul.u32.u64.high 3817748708, %v14922_v14, %v14945_v16 }
 0x2f3   : > { %vm14924_vm15 = vmand %vm850_vm12, %vm814_vm14  ;;  %vm856_vm4 = vcmp.lt.s32.totalorder %v492_v30, 0  ;;  %v928_v47 = vadd.s32 18, %v492_v30  ;;  %v535_v9 = vmul.u32 18, %v534_v41 }
 0x2f4   : > { %v469_v20 = vmul.u32 18, %v468_v24  ;;  %v958_v17 = vsel %vm14924_vm15, %v922_v11, %v426_v4  ;;  %vm14948_vm14 = vmand %vm851_vm8, %vm815_vm11  ;;  %v14956_v4 = vmul.u32.u64.low 3817748708, %v14935_v57  ;;  %v14957_v18 = vmul.u32.u64.high 3817748708, %v14935_v57, %v14956_v4 }
 0x2f5   : > { %vm14961_vm12 = vcmp.lt.s32.totalorder %v958_v17, 16  ;;  %v14975_v11 = vmul.u32.u64.low 3817748708, %v14953_v54  ;;  %v14976_v35 = vmul.u32.u64.high 3817748708, %v14953_v54, %v14975_v11  ;;  %vm14981_vm11 = vcmp.lt.s32.totalorder %v960_v60, 16 }
 0x2f6   : > { %v470_v43 = vsub.s32 %v386_v50, %v469_v20  ;;  %v959_v50 = vsel %vm14948_vm14, %v923_v27, %v437_v48  ;;  %v961_v48 = vsel %vm14965_vm6, %v925_v49, %v459_v40  ;;  %vm820_vm8 = vcmp.ne.s32.totalorder %v492_v30, 0 }
 0x2f7   : > { %v14995_v6 = vsel %vm14961_vm12, 1.0, %v19090_v36  ;;  %vm995_vm10 = vcmp.lt.s32.totalorder %v959_v50, 16  ;;  %v512_v20 = vshrl.u32 %v14946_v31, 4  ;;  %vm821_vm14 = vcmp.ne.s32.totalorder %v14971_v0, 0  ;;  %vm15015_vm12 = vmand %vm856_vm4, %vm820_vm8 }
 0x2f8   : > { %vm818_vm7 = vcmp.ne.s32.totalorder %v470_v43, 0  ;;  %vm854_vm15 = vcmp.lt.s32.totalorder %v470_v43, 0  ;;  %19414 = vst [vmem:[#allocation6_spill] sm:$0xff] %v14995_v6  ;;  %v926_v25 = vadd.s32 18, %v470_v43  ;;  %vm857_vm6 = vcmp.lt.s32.totalorder %v14971_v0, 0 }
 0x2f9   : > { %vm14999_vm3 = vmand %vm854_vm15, %vm818_vm7  ;;  %vm15005_vm9 = vcmp.lt.s32.totalorder %v961_v48, 16  ;;  %vm819_vm7 = vcmp.ne.s32.totalorder %v14979_v5, 0  ;;  %vm855_vm15 = vcmp.lt.s32.totalorder %v14979_v5, 0  ;;  %v15023_v27 = vadd.f32 %v14990_v2, %v14265_v23 }
 0x2fa   : > { %v15026_v16 = vsel %vm995_vm10, 1.0, %v19090_v36  ;;  %v545_v31 = vshrl.u32 %v14957_v18, 4  ;;  %v962_v59 = vsel %vm14999_vm3, %v926_v25, %v470_v43  ;;  %vm15032_vm8 = vmand %vm857_vm6, %vm821_vm14  ;;  %v513_v49 = vmul.u32 18, %v512_v20 }
 0x2fb   : > { %19421 = vst [vmem:[#allocation7_spill] sm:$0xff] %v15026_v16  ;;  %v15038_v23 = vadd.s32 112, %v14866_v21  ;;  %v15042_v4 = vadd.f32 %v14251_v26, %v14990_v2  ;;  %v964_v18 = vsel %vm15015_vm12, %v928_v47, %v492_v30  ;;  %vm15046_vm4 = vmand %vm855_vm15, %vm819_vm7  ;;  %v536_v43 = vsub.s32 %v14917_v29, %v535_v9 }
 0x2fc   : > { %v523_v38 = vshrl.u32 %v14976_v35, 4  ;;  %v15055_v24 = vsel %vm14981_vm11, 1.0, %v19090_v36  ;;  %v15060_v26 = vsel %vm15005_vm9, 1.0, %v19090_v36  ;;  %v6362_v30 = vmul.f32 %v15026_v16, %v15011_v45 }
 0x2fd   : > { %19426 = vst [vmem:[#allocation8_spill] sm:$0xff] %v15055_v24  ;;  %19427 = vst [vmem:[#allocation9_spill] sm:$0xff] %v15060_v26  ;;  %v15065_v50 = vadd.s32 96, %v14866_v21  ;;  %v6361_v29 = vmul.f32 %v14995_v6, %v15023_v27  ;;  %vm998_vm10 = vcmp.lt.s32.totalorder %v962_v59, 16  ;;  %v965_v41 = vsel %vm15032_vm8, %v929_v13, %v14971_v0 }
 0x2fe   : > { %v546_v11 = vmul.u32 18, %v545_v31  ;;  %vm15072_vm11 = vcmp.lt.s32.totalorder %v964_v18, 16  ;;  %v963_v52 = vsel %vm15046_vm4, %v927_v46, %v14979_v5  ;;  %v514_v48 = vsub.s32 %v14922_v14, %v513_v49 }
 0x2ff   : > { %v15081_v25 = vmul.u32.u64.low 3817748708, %v15038_v23  ;;  %v15082_v20 = vmul.u32.u64.high 3817748708, %v15038_v23, %v15081_v25  ;;  %v6363_v47 = vmul.f32 %v15055_v24, %v15042_v4  ;;  %v15088_v0 = vadd.f32 %v14269_v19, %v14990_v2 }
 0x300   : > { %vm824_vm9 = vcmp.ne.s32.totalorder %v536_v43, 0  ;;  %v524_v40 = vmul.u32 18, %v523_v38  ;;  %v6398_v9 = vsel %vm19144_vm5, %v6362_v30, 0.0  ;;  %vm860_vm3 = vcmp.lt.s32.totalorder %v536_v43, 0 }
 0x301   : > { %v15092_v5 = vmul.u32.u64.low 3817748708, %v15065_v50  ;;  %v15093_v42 = vmul.u32.u64.high 3817748708, %v15065_v50, %v15092_v5  ;;  %v6397_v14 = vsel %vm19144_vm5, %v6361_v29, 0.0  ;;  %v15097_v17 = vsel %vm998_vm10, 1.0, %v19090_v36  ;;  %vm15117_vm15 = vmand %vm860_vm3, %vm824_vm9 }
 0x302   : > { %19430 = vst [vmem:[#allocation10_spill] sm:$0xff] %v15097_v17  ;;  %v15100_v13 = vsub.s32 %v14935_v57, %v546_v11  ;;  %v15103_v19 = vadd.s32 104, %v14866_v21  ;;  %v932_v31 = vadd.s32 18, %v536_v43  ;;  %vm822_vm14 = vcmp.ne.s32.totalorder %v514_v48, 0 }
 0x303   : > { %vm858_vm6 = vcmp.lt.s32.totalorder %v514_v48, 0  ;;  %v15106_v59 = vadd.s32 120, %v14866_v21  ;;  %v6399_v3 = vadd.f32 %v6398_v9, %v6397_v14  ;;  %vm15108_vm12 = vcmp.lt.s32.totalorder %v965_v41, 16 }
 0x304   : > { %vm15112_vm7 = vcmp.lt.s32.totalorder %v963_v52, 16  ;;  %v15122_v18 = vsub.s32 %v14953_v54, %v524_v40  ;;  %v6400_v60 = vsel %vm19144_vm5, %v6363_v47, 0.0  ;;  %v6364_v38 = vmul.f32 %v15060_v26, %v15088_v0  ;;  %vm15131_vm8 = vmand %vm858_vm6, %vm822_vm14 }
 0x305   : > { %v15129_v30 = vadd.f32 %v14990_v2, %v14511_v8  ;;  %v930_v29 = vadd.s32 18, %v514_v48  ;;  %vm825_vm4 = vcmp.ne.s32.totalorder %v15100_v13, 0  ;;  %vm861_vm10 = vcmp.lt.s32.totalorder %v15100_v13, 0 }
 0x306   : > { %v15138_v54 = vmul.u32.u64.low 3817748708, %v15103_v19  ;;  %v15139_v11 = vmul.u32.u64.high 3817748708, %v15103_v19, %v15138_v54  ;;  %v968_v52 = vsel %vm15117_vm15, %v932_v31, %v536_v43  ;;  %v578_v25 = vshrl.u32 %v15082_v20, 4  ;;  %vm15159_vm14 = vmand %vm861_vm10, %vm825_vm4 }
 0x307   : > { %v15145_v8 = vmul.u32.u64.low 3817748708, %v15106_v59  ;;  %v15146_v47 = vmul.u32.u64.high 3817748708, %v15106_v59, %v15145_v8  ;;  %v6401_v40 = vadd.f32 %v6400_v60, %v6399_v3  ;;  %v933_v9 = vadd.s32 18, %v15100_v13 }
 0x308   : > { %vm823_vm9 = vcmp.ne.s32.totalorder %v15122_v18, 0  ;;  %vm859_vm3 = vcmp.lt.s32.totalorder %v15122_v18, 0  ;;  %v6365_v5 = vmul.f32 %v15097_v17, %v15129_v30  ;;  %v15155_v14 = vadd.f32 %v14990_v2, %v14518_v53 }
 0x309   : > { %v966_v43 = vsel %vm15131_vm8, %v930_v29, %v514_v48  ;;  %v556_v31 = vshrl.u32 %v15093_v42, 4  ;;  %v15167_v3 = vsel %vm15072_vm11, 1.0, %v19090_v36  ;;  %v15172_v57 = vsel %vm15108_vm12, 1.0, %v19090_v36  ;;  %vm15185_vm11 = vmand %vm859_vm3, %vm823_vm9 }
 0x30a   : > { %19441 = vst [vmem:[#allocation11_spill] sm:$0xff] %v15167_v3  ;;  %19442 = vst [vmem:[#allocation12_spill] sm:$0xff] %v15172_v57  ;;  %v15177_v53 = vsel %vm15112_vm7, 1.0, %v19090_v36  ;;  %v931_v48 = vadd.s32 18, %v15122_v18  ;;  %v6402_v60 = vsel %vm19144_vm5, %v6364_v38, 0.0  ;;  %vm15181_vm6 = vcmp.lt.s32.totalorder %v968_v52, 16 }
 0x30b   : > { %19443 = vst [vmem:[#allocation13_spill] sm:$0xff] %v15177_v53  ;;  %v579_v46 = vmul.u32 18, %v578_v25  ;;  %v15190_v29 = vadd.s32 128, %v14866_v21  ;;  %v6403_v41 = vadd.f32 %v6402_v60, %v6401_v40  ;;  %vm15192_vm12 = vcmp.lt.s32.totalorder %v966_v43, 16 }
 0x30c   : > { %v969_v38 = vsel %vm15159_vm14, %v933_v9, %v15100_v13  ;;  %v15200_v54 = vadd.s32 136, %v14866_v21  ;;  %v6404_v52 = vsel %vm19144_vm5, %v6365_v5, 0.0  ;;  %v6366_v25 = vmul.f32 %v15177_v53, %v15155_v14 }
 0x30d   : > { %v557_v8 = vmul.u32 18, %v556_v31  ;;  %v15206_v36 = vadd.s32 144, %v14866_v21  ;;  %v15210_v40 = vadd.f32 %v14501_v61, %v14990_v2  ;;  %v967_v13 = vsel %vm15185_vm11, %v931_v48, %v15122_v18 }
 0x30e   : > { %v567_v9 = vshrl.u32 %v15139_v11, 4  ;;  %v15217_v43 = vadd.s32 152, %v14866_v21  ;;  %v15220_v5 = vsub.s32 %v15038_v23, %v579_v46  ;;  %v589_v20 = vshrl.u32 %v15146_v47, 4 }
 0x30f   : > { %v15224_v31 = vmul.u32.u64.low 3817748708, %v15190_v29  ;;  %v15225_v60 = vmul.u32.u64.high 3817748708, %v15190_v29, %v15224_v31  ;;  %v6405_v61 = vadd.f32 %v6404_v52, %v6403_v41  ;;  %v6406_v48 = vsel %vm19144_vm5, %v6366_v25, 0.0 }
 0x310   : > { %v15232_v18 = vmul.u32.u64.low 3817748708, %v15200_v54  ;;  %v15233_v11 = vmul.u32.u64.high 3817748708, %v15200_v54, %v15232_v18  ;;  %v558_v23 = vsub.s32 %v15065_v50, %v557_v8  ;;  %vm15241_vm7 = vcmp.lt.s32.totalorder %v969_v38, 16 }
 0x311   : > { %v15238_v35 = vmul.u32.u64.low 3817748708, %v15206_v36  ;;  %v15239_v47 = vmul.u32.u64.high 3817748708, %v15206_v36, %v15238_v35  ;;  %v568_v41 = vmul.u32 18, %v567_v9  ;;  %v6367_v31 = vmul.f32 %v15167_v3, %v15210_v40 }
 0x312   : > { %v15246_v10 = vmul.u32.u64.low 3817748708, %v15217_v43  ;;  %v15247_v52 = vmul.u32.u64.high 3817748708, %v15217_v43, %v15246_v10  ;;  %vm828_vm15 = vcmp.ne.s32.totalorder %v15220_v5, 0  ;;  %vm864_vm8 = vcmp.lt.s32.totalorder %v15220_v5, 0 }
 0x313   : > { %v590_v50 = vmul.u32 18, %v589_v20  ;;  %v6368_v25 = vmul.f32 %v15172_v57, %v15229_v62  ;;  %v6407_v38 = vadd.f32 %v6406_v48, %v6405_v61  ;;  %vm15255_vm4 = vcmp.lt.s32.totalorder %v967_v13, 16  ;;  %vm15283_vm3 = vmand %vm864_vm8, %vm828_vm15 }
 0x314   : > { %v15261_v9 = vadd.f32 %v14990_v2, %v14722_v7  ;;  %v936_v18 = vadd.s32 18, %v15220_v5  ;;  %vm826_vm10 = vcmp.ne.s32.totalorder %v558_v23, 0  ;;  %vm862_vm9 = vcmp.lt.s32.totalorder %v558_v23, 0 }
 0x315   : > { %v19455_v35 = vmov 0.0   ;;  %v569_v42 = vsub.s32 %v15103_v19, %v568_v41  ;;  %v6408_v48 = vsel %vm19144_vm5, %v6367_v31, 0.0  ;;  %v934_v49 = vadd.s32 18, %v558_v23  ;;  %vm15301_vm14 = vmand %vm862_vm9, %vm826_vm10 }
 0x316   : > { %19454 = vst [vmem:[#allocation14_spill] sm:$0xff] %v15261_v9  ;;  %v15267_v20 = vsel %vm15181_vm6, 1.0, %v19455_v35  ;;  %v15272_v13 = vsel %vm15192_vm12, 1.0, %v19455_v35  ;;  %v15277_v61 = vsel %vm15241_vm7, 1.0, %v19455_v35  ;;  %v15290_v10 = vsub.s32 %v15106_v59, %v590_v50 }
 0x317   : > { %19456 = vst [vmem:[#allocation15_spill] sm:$0xff] %v15267_v20  ;;  %19457 = vst [vmem:[#allocation16_spill] sm:$0xff] %v15272_v13  ;;  %v600_v46 = vshrl.u32 %v15225_v60, 4  ;;  %v6410_v1 = vsel %vm19144_vm5, %v6368_v25, 0.0  ;;  %v6409_v57 = vadd.f32 %v6408_v48, %v6407_v38  ;;  %v15297_v3 = vsel %vm15255_vm4, 1.0, %v19455_v35 }
 0x318   : > { %19458 = vst [vmem:[#allocation17_spill] sm:$0xff] %v15277_v61  ;;  %19461 = vst [vmem:[#allocation18_spill] sm:$0xff] %v15297_v3  ;;  %v611_v41 = vshrl.u32 %v15233_v11, 4  ;;  %v6369_v59 = vmul.f32 %v15272_v13, %v15261_v9  ;;  %v15310_v60 = vadd.f32 %v14990_v2, %v14729_v55  ;;  %v972_v31 = vsel %vm15283_vm3, %v936_v18, %v15220_v5 }
 0x319   : > { %v622_v50 = vshrl.u32 %v15239_v47, 4  ;;  %vm827_vm6 = vcmp.ne.s32.totalorder %v569_v42, 0  ;;  %vm863_vm11 = vcmp.lt.s32.totalorder %v569_v42, 0  ;;  %v633_v25 = vshrl.u32 %v15247_v52, 4 }
 0x31a   : > { %19464 = vst [vmem:[#allocation19_spill] sm:$0xff] %v15310_v60  ;;  %v15318_v38 = vadd.s32 176, %v14866_v21  ;;  %v970_v11 = vsel %vm15301_vm14, %v934_v49, %v558_v23  ;;  %vm829_vm12 = vcmp.ne.s32.totalorder %v15290_v10, 0  ;;  %v601_v55 = vmul.u32 18, %v600_v46  ;;  %vm15335_vm15 = vmand %vm863_vm11, %vm827_vm6 }
 0x31b   : > { %v15324_v8 = vadd.s32 160, %v14866_v21  ;;  %v6411_v7 = vadd.f32 %v6410_v1, %v6409_v57  ;;  %vm865_vm7 = vcmp.lt.s32.totalorder %v15290_v10, 0  ;;  %v935_v5 = vadd.s32 18, %v569_v42 }
 0x31c   : > { %v612_v47 = vmul.u32 18, %v611_v41  ;;  %v15329_v52 = vadd.f32 %v14715_v33, %v14990_v2  ;;  %v6412_v18 = vsel %vm19144_vm5, %v6369_v59, 0.0  ;;  %v6370_v23 = vmul.f32 %v15297_v3, %v15310_v60  ;;  %vm15407_vm11 = vmand %vm865_vm7, %vm829_vm12 }
 0x31d   : > { %v623_v49 = vmul.u32 18, %v622_v50  ;;  %v634_v1 = vmul.u32 18, %v633_v25  ;;  %v15344_v19 = vadd.s32 168, %v14866_v21  ;;  %vm1006_vm8 = vcmp.lt.s32.totalorder %v970_v11, 16 }
 0x31e   : > { %19465 = vst [vmem:[#allocation20_spill] sm:$0xff] %v15329_v52  ;;  %v15340_v57 = vmul.u32.u64.low 3817748708, %v15318_v38  ;;  %v15341_v46 = vmul.u32.u64.high 3817748708, %v15318_v38, %v15340_v57  ;;  %v15347_v33 = vsub.s32 %v15190_v29, %v601_v55  ;;  %v6413_v3 = vadd.f32 %v6412_v18, %v6411_v7 }
 0x31f   : > { %v15350_v41 = vmul.u32.u64.low 3817748708, %v15324_v8  ;;  %v15351_v59 = vmul.u32.u64.high 3817748708, %v15324_v8, %v15350_v41  ;;  %v937_v13 = vadd.s32 18, %v15290_v10  ;;  %v971_v50 = vsel %vm15335_vm15, %v935_v5, %v569_v42 }
 0x320   : > { %v15357_v25 = vsub.s32 %v15200_v54, %v612_v47  ;;  %v6371_v57 = vmul.f32 %v15267_v20, %v15329_v52  ;;  %v15363_v29 = vadd.f32 %v14726_v32, %v14990_v2  ;;  %v6414_v11 = vsel %vm19144_vm5, %v6370_v23, 0.0 }
 0x321   : > { %vm15366_vm4 = vcmp.lt.s32.totalorder %v972_v31, 16  ;;  %v15371_v7 = vsub.s32 %v15206_v36, %v623_v49  ;;  %v15374_v42 = vsel %vm1006_vm8, 1.0, %v19455_v35  ;;  %v15377_v54 = vsub.s32 %v15217_v43, %v634_v1 }
 0x322   : > { %19468 = vst [vmem:[#allocation21_spill] sm:$0xff] %v15363_v29  ;;  %19471 = vst [vmem:[#allocation22_spill] sm:$0xff] %v15374_v42  ;;  %v15380_v5 = vmul.u32.u64.low 3817748708, %v15344_v19  ;;  %v15381_v47 = vmul.u32.u64.high 3817748708, %v15344_v19, %v15380_v5  ;;  %v15385_v32 = vadd.f32 %v14990_v2, %v14810_v28  ;;  %vm15387_vm10 = vcmp.lt.s32.totalorder %v971_v50, 16 }
 0x323   : > { %vm830_vm9 = vcmp.ne.s32.totalorder %v15347_v33, 0  ;;  %vm866_vm3 = vcmp.lt.s32.totalorder %v15347_v33, 0  ;;  %v6415_v36 = vadd.f32 %v6414_v11, %v6413_v3  ;;  %vm831_vm14 = vcmp.ne.s32.totalorder %v15357_v25, 0 }
 0x324   : > { %19472 = vst [vmem:[#allocation23_spill] sm:$0xff] %v15385_v32  ;;  %vm867_vm6 = vcmp.lt.s32.totalorder %v15357_v25, 0  ;;  %v15396_v43 = vadd.s32 184, %v14866_v21  ;;  %v6416_v28 = vsel %vm19144_vm5, %v6371_v57, 0.0  ;;  %v6372_v23 = vmul.f32 %v15277_v61, %v15363_v29  ;;  %vm15415_vm2 = vmand %vm866_vm3, %vm830_vm9 }
 0x325   : > { %v14889_v22 = vpop.f32.mrb[20].mxu0  ;;  %vm832_vm15 = vcmp.ne.s32.totalorder %v15371_v7, 0  ;;  %vm868_vm8 = vcmp.lt.s32.totalorder %v15371_v7, 0  ;;  %v938_v1 = vadd.s32 18, %v15347_v33  ;;  %vm833_vm0 = vcmp.ne.s32.totalorder %v15377_v54, 0  ;;  %vm15436_vm7 = vmand %vm867_vm6, %vm831_vm14 }
 0x326   : > { %v14898_v58 = vpop.f32.mrb[21].mxu0  ;;  %v939_v41 = vadd.s32 18, %v15357_v25  ;;  %v666_v50 = vshrl.u32 %v15341_v46, 4  ;;  %v6373_v11 = vmul.f32 %v15374_v42, %v15385_v32  ;;  %v15429_v5 = vadd.f32 %v14990_v2, %v14815_v34  ;;  %vm15460_vm9 = vmand %vm868_vm8, %vm832_vm15 }
 0x327   : > { %v14903_v39 = vpop.f32.mrb[22].mxu0  ;;  %vm869_vm12 = vcmp.lt.s32.totalorder %v15377_v54, 0  ;;  %v644_v46 = vshrl.u32 %v15351_v59, 4  ;;  %v6417_v29 = vadd.f32 %v6416_v28, %v6415_v36  ;;  %v15446_v34 = vsel %vm15387_vm10, 1.0, %v19455_v35 }
 0x328   : > { %v14905_v51 = vpop.f32.mrb[23].mxu0  ;;  %19481 = vst [vmem:[#allocation24_spill] sm:$0xff] %v15446_v34  ;;  %v15449_v42 = vmul.u32.u64.low 3817748708, %v15396_v43  ;;  %v15450_v32 = vmul.u32.u64.high 3817748708, %v15396_v43, %v15449_v42  ;;  %v6418_v52 = vsel %vm19144_vm5, %v6372_v23, 0.0  ;;  %v973_v60 = vsel %vm15407_vm11, %v937_v13, %v15290_v10  ;;  %vm15471_vm10 = vmand %vm869_vm12, %vm833_vm0 }
 0x329   : > { %v940_v31 = vadd.s32 18, %v15371_v7  ;;  %v941_v36 = vadd.s32 18, %v15377_v54  ;;  %v974_v42 = vsel %vm15415_vm2, %v938_v1, %v15347_v33  ;;  %v975_v10 = vsel %vm15436_vm7, %v939_v41, %v15357_v25 }
 0x32a   : > { %v667_v28 = vmul.u32 18, %v666_v50  ;;  %v655_v23 = vshrl.u32 %v15381_v47, 4  ;;  %v6420_v3 = vsel %vm19144_vm5, %v6373_v11, 0.0  ;;  %v6374_v9 = vmul.f32 %v15446_v34, %v15429_v5 }
 0x32b   : > { %v645_v49 = vmul.u32 18, %v644_v46  ;;  %v15483_v33 = vadd.s32 192, %v14866_v21  ;;  %v15488_v1 = vsel %vm15366_vm4, 1.0, %v19455_v35  ;;  %v6419_v53 = vadd.f32 %v6418_v52, %v6417_v29 }
 0x32c   : > { %19486 = vst [vmem:[#allocation25_spill] sm:$0xff] %v15488_v1  ;;  %vm1009_vm0 = vcmp.lt.s32.totalorder %v973_v60, 16  ;;  %v15492_v61 = vadd.f32 %v14807_v15, %v14990_v2  ;;  %v976_v25 = vsel %vm15460_vm9, %v940_v31, %v15371_v7  ;;  %vm1010_vm2 = vcmp.lt.s32.totalorder %v974_v42, 16 }
 0x32d   : > { %v977_v47 = vsel %vm15471_vm10, %v941_v36, %v15377_v54  ;;  %v6421_v41 = vadd.f32 %v6420_v3, %v6419_v53  ;;  %vm15500_vm3 = vcmp.lt.s32.totalorder %v975_v10, 16  ;;  %v15505_v60 = vsub.s32 %v15318_v38, %v667_v28 }
 0x32e   : > { %v656_v52 = vmul.u32 18, %v655_v23  ;;  %v6422_v15 = vsel %vm19144_vm5, %v6374_v9, 0.0  ;;  %v646_v29 = vsub.s32 %v15324_v8, %v645_v49  ;;  %v15514_v11 = vsel %vm1009_vm0, 1.0, %v19455_v35 }
 0x32f   : > { %v15510_v7 = vmul.u32.u64.low 3817748708, %v15483_v33  ;;  %v15511_v50 = vmul.u32.u64.high 3817748708, %v15483_v33, %v15510_v7  ;;  %19489 = vst [vmem:[#allocation26_spill] sm:$0xff] %v15514_v11  ;;  %vm15516_vm4 = vcmp.lt.s32.totalorder %v976_v25, 16  ;;  %v677_v54 = vshrl.u32 %v15450_v32, 4 }
 0x330   : > { %v15522_v38 = vadd.s32 200, %v14866_v21  ;;  %v6375_v9 = vmul.f32 %v15488_v1, %v15492_v61  ;;  %v15528_v8 = vadd.f32 %v14813_v63, %v14990_v2  ;;  %v15531_v46 = vsel %vm1010_vm2, 1.0, %v19455_v35 }
 0x331   : > { %19492 = vst [vmem:[#allocation27_spill] sm:$0xff] %v15531_v46  ;;  %vm15533_vm14 = vcmp.lt.s32.totalorder %v977_v47, 16  ;;  %v6423_v31 = vadd.f32 %v6422_v15, %v6421_v41  ;;  %v15539_v32 = vadd.f32 %v14990_v2, %v14854_v56  ;;  %v15544_v36 = vsel %vm15500_vm3, 1.0, %v19455_v35 }
 0x332   : > { %19495 = vst [vmem:[#allocation28_spill] sm:$0xff] %v15544_v36  ;;  %v657_v63 = vsub.s32 %v15344_v19, %v656_v52  ;;  %vm836_vm6 = vcmp.ne.s32.totalorder %v15505_v60, 0  ;;  %vm834_vm11 = vcmp.ne.s32.totalorder %v646_v29, 0  ;;  %vm870_vm15 = vcmp.lt.s32.totalorder %v646_v29, 0 }
 0x333   : > { %v15549_v42 = vadd.s32 208, %v14866_v21  ;;  %vm872_vm8 = vcmp.lt.s32.totalorder %v15505_v60, 0  ;;  %v678_v13 = vmul.u32 18, %v677_v54  ;;  %v6424_v28 = vsel %vm19144_vm5, %v6375_v9, 0.0  ;;  %vm15565_vm12 = vmand %vm870_vm15, %vm834_vm11 }
 0x334   : > { %v15553_v56 = vmul.u32.u64.low 3817748708, %v15522_v38  ;;  %v15554_v10 = vmul.u32.u64.high 3817748708, %v15522_v38, %v15553_v56  ;;  %v6376_v23 = vmul.f32 %v15514_v11, %v15528_v8  ;;  %v15561_v19 = vadd.f32 %v14990_v2, %v14859_v37  ;;  %vm15592_vm10 = vmand %vm872_vm8, %vm836_vm6 }
 0x335   : > { %v942_v3 = vadd.s32 18, %v646_v29  ;;  %v6425_v49 = vadd.f32 %v6424_v28, %v6423_v31  ;;  %v6377_v25 = vmul.f32 %v15531_v46, %v15539_v32  ;;  %vm835_vm7 = vcmp.ne.s32.totalorder %v657_v63, 0 }
 0x336   : > { %vm871_vm9 = vcmp.lt.s32.totalorder %v657_v63, 0  ;;  %v15570_v41 = vmul.u32.u64.low 3817748708, %v15549_v42  ;;  %v15571_v55 = vmul.u32.u64.high 3817748708, %v15549_v42, %v15570_v41  ;;  %v688_v52 = vshrl.u32 %v15511_v50, 4 }
 0x337   : > { %v15575_v37 = vadd.s32 216, %v14866_v21  ;;  %v944_v15 = vadd.s32 18, %v15505_v60  ;;  %v15579_v7 = vsub.s32 %v15396_v43, %v678_v13  ;;  %v15584_v54 = vsel %vm15516_vm4, 1.0, %v19455_v35  ;;  %vm15607_vm0 = vmand %vm871_vm9, %vm835_vm7 }
 0x338   : > { %19498 = vst [vmem:[#allocation29_spill] sm:$0xff] %v15584_v54  ;;  %v6378_v9 = vmul.f32 %v15544_v36, %v15561_v19  ;;  %v978_v43 = vsel %vm15565_vm12, %v942_v3, %v646_v29  ;;  %v943_v31 = vadd.s32 18, %v657_v63  ;;  %v6426_v13 = vsel %vm19144_vm5, %v6376_v23, 0.0 }
 0x339   : > { %v6428_v53 = vsel %vm19144_vm5, %v6377_v25, 0.0  ;;  %v15603_v56 = vsel %vm15533_vm14, 1.0, %v19455_v35  ;;  %v15612_v41 = vadd.s32 224, %v14866_v21  ;;  %v6427_v29 = vadd.f32 %v6426_v13, %v6425_v49 }
 0x33a   : > { %19501 = vst [vmem:[#allocation30_spill] sm:$0xff] %v15603_v56  ;;  %v689_v3 = vmul.u32 18, %v688_v52  ;;  %v15615_v23 = vmul.u32.u64.low 3817748708, %v15575_v37  ;;  %v15616_v47 = vmul.u32.u64.high 3817748708, %v15575_v37, %v15615_v23  ;;  %v980_v59 = vsel %vm15592_vm10, %v944_v15, %v15505_v60 }
 0x33b   : > { %vm15621_vm2 = vcmp.lt.s32.totalorder %v978_v43, 16  ;;  %vm837_vm3 = vcmp.ne.s32.totalorder %v15579_v7, 0  ;;  %v699_v36 = vshrl.u32 %v15554_v10, 4  ;;  %v15629_v49 = vadd.f32 %v14851_v44, %v14990_v2 }
 0x33c   : > { %v6429_v52 = vadd.f32 %v6428_v53, %v6427_v29  ;;  %v6430_v13 = vsel %vm19144_vm5, %v6378_v9, 0.0  ;;  %v979_v23 = vsel %vm15607_vm0, %v943_v31, %v657_v63  ;;  %v15635_v60 = vadd.s32 240, %v14866_v21 }
 0x33d   : > { %19506 = vst [vmem:[#allocation31_spill] sm:$0xff] %v15629_v49  ;;  %v15638_v15 = vmul.u32.u64.low 3817748708, %v15612_v41  ;;  %v15639_v50 = vmul.u32.u64.high 3817748708, %v15612_v41, %v15638_v15  ;;  %v15642_v43 = vadd.s32 232, %v14866_v21  ;;  %vm873_vm4 = vcmp.lt.s32.totalorder %v15579_v7, 0 }
 0x33e   : > { %v945_v44 = vadd.s32 18, %v15579_v7  ;;  %v710_v10 = vshrl.u32 %v15571_v55, 4  ;;  %v690_v9 = vsub.s32 %v15483_v33, %v689_v3  ;;  %v15650_v63 = vadd.f32 %v14856_v12, %v14990_v2  ;;  %vm15685_vm15 = vmand %vm873_vm4, %vm837_vm3 }
 0x33f   : > { %v15655_v31 = vsel %vm15621_vm2, 1.0, %v19455_v35  ;;  %v700_v53 = vmul.u32 18, %v699_v36  ;;  %v15658_v28 = vadd.s32 248, %v14866_v21  ;;  %v6379_v29 = vmul.f32 %v15584_v54, %v15629_v49 }
 0x340   : > { %19507 = vst [vmem:[#allocation32_spill] sm:$0xff] %v15650_v63  ;;  %19508 = vst [vmem:[#allocation33_spill] sm:$0xff] %v15655_v31  ;;  %v6431_v15 = vadd.f32 %v6430_v13, %v6429_v52  ;;  %v15664_v33 = vadd.f32 %v14990_v2, %v14898_v58  ;;  %vm15666_vm14 = vcmp.lt.s32.totalorder %v979_v23, 16  ;;  %v711_v46 = vmul.u32 18, %v710_v10 }
 0x341   : > { %v15671_v55 = vmul.u32.u64.low 3817748708, %v15635_v60  ;;  %v15672_v3 = vmul.u32.u64.high 3817748708, %v15635_v60, %v15671_v55  ;;  %v15675_v36 = vmul.u32.u64.low 3817748708, %v15642_v43  ;;  %v15676_v25 = vmul.u32.u64.high 3817748708, %v15642_v43, %v15675_v36 }
 0x342   : > { %19509 = vst [vmem:[#allocation34_spill] sm:$0xff] %v15664_v33  ;;  %vm838_vm6 = vcmp.ne.s32.totalorder %v690_v9, 0  ;;  %vm874_vm11 = vcmp.lt.s32.totalorder %v690_v9, 0  ;;  %v721_v52 = vshrl.u32 %v15616_v47, 4  ;;  %v6380_v58 = vmul.f32 %v15603_v56, %v15650_v63 }
 0x343   : > { %v701_v23 = vsub.s32 %v15522_v38, %v700_v53  ;;  %v15691_v55 = vmul.u32.u64.low 3817748708, %v15658_v28  ;;  %v15692_v10 = vmul.u32.u64.high 3817748708, %v15658_v28, %v15691_v55  ;;  %v6432_v36 = vsel %vm19144_vm5, %v6379_v29, 0.0  ;;  %vm15706_vm8 = vmand %vm874_vm11, %vm838_vm6 }
 0x344   : > { %v6381_v47 = vmul.f32 %v15655_v31, %v15664_v33  ;;  %v15699_v56 = vadd.f32 %v14990_v2, %v14905_v51  ;;  %v946_v54 = vadd.s32 18, %v690_v9  ;;  %v6433_v63 = vadd.f32 %v6432_v36, %v6431_v15 }
 0x345   : > { %v15704_v49 = vsel %vm15666_vm14, 1.0, %v19455_v35  ;;  %v732_v53 = vshrl.u32 %v15639_v50, 4  ;;  %vm15711_vm12 = vcmp.lt.s32.totalorder %v980_v59, 16  ;;  %v981_v51 = vsel %vm15685_vm15, %v945_v44, %v15579_v7 }
 0x346   : > { %19514 = vst [vmem:[#allocation35_spill] sm:$0xff] %v15704_v49  ;;  %v712_v15 = vsub.s32 %v15549_v42, %v711_v46  ;;  %v6434_v12 = vsel %vm19144_vm5, %v6380_v58, 0.0  ;;  %v722_v55 = vmul.u32 18, %v721_v52  ;;  %vm839_vm7 = vcmp.ne.s32.totalorder %v701_v23, 0 }
 0x347   : > { %vm875_vm9 = vcmp.lt.s32.totalorder %v701_v23, 0  ;;  %v6436_v36 = vsel %vm19144_vm5, %v6381_v47, 0.0  ;;  %v6382_v50 = vmul.f32 %v15704_v49, %v15699_v56  ;;  %v982_v59 = vsel %vm15706_vm8, %v946_v54, %v690_v9 }
 0x348   : > { %v947_v31 = vadd.s32 18, %v701_v23  ;;  %v6435_v33 = vadd.f32 %v6434_v12, %v6433_v63  ;;  %v754_v13 = vshrl.u32 %v15672_v3, 4  ;;  %v733_v7 = vmul.u32 18, %v732_v53  ;;  %vm15731_vm2 = vmand %vm875_vm9, %vm839_vm7 }
 0x349   : > { %v743_v46 = vshrl.u32 %v15676_v25, 4  ;;  %v15729_v42 = vadd.f32 %v14889_v22, %v14990_v2  ;;  %vm840_vm10 = vcmp.ne.s32.totalorder %v712_v15, 0  ;;  %vm876_vm0 = vcmp.lt.s32.totalorder %v712_v15, 0 }
 0x34a   : > { %v15738_v54 = vsel %vm15711_vm12, 1.0, %v19455_v35  ;;  %v6437_v9 = vadd.f32 %v6436_v36, %v6435_v33  ;;  %vm1017_vm3 = vcmp.lt.s32.totalorder %v981_v51, 16  ;;  %v765_v63 = vshrl.u32 %v15692_v10, 4  ;;  %vm15743_vm14 = vmand %vm876_vm0, %vm840_vm10 }
 0x34b   : > { %19521 = vst [vmem:[#allocation36_spill] sm:$0xff] %v15738_v54  ;;  %v6438_v3 = vsel %vm19144_vm5, %v6382_v50, 0.0  ;;  %v948_v25 = vadd.s32 18, %v712_v15  ;;  %vm1018_vm4 = vcmp.lt.s32.totalorder %v982_v59, 16  ;;  %v723_v22 = vsub.s32 %v15575_v37, %v722_v55 }
 0x34c   : > { %v983_v58 = vsel %vm15731_vm2, %v947_v31, %v701_v23  ;;  %v755_v47 = vmul.u32 18, %v754_v13  ;;  %v734_v38 = vsub.s32 %v15612_v41, %v733_v7  ;;  %v744_v33 = vmul.u32 18, %v743_v46 }
 0x34d   : > { %v6383_v10 = vmul.f32 %v15738_v54, %v15729_v42  ;;  %v15754_v53 = vadd.f32 %v14903_v39, %v14990_v2  ;;  %v15761_v29 = vsel %vm1017_vm3, 1.0, %v19455_v35  ;;  %v6439_v51 = vadd.f32 %v6438_v3, %v6437_v9 }
 0x34e   : > { %19524 = vst [vmem:[#allocation37_spill] sm:$0xff] %v15761_v29  ;;  %v15764_v31 = vsel %vm1018_vm4, 1.0, %v19455_v35  ;;  %v766_v41 = vmul.u32 18, %v765_v63  ;;  %v984_v23 = vsel %vm15743_vm14, %v948_v25, %v712_v15  ;;  %vm841_vm6 = vcmp.ne.s32.totalorder %v723_v22, 0 }
 0x34f   : > { %19525 = vst [vmem:[#allocation38_spill] sm:$0xff] %v15764_v31  ;;  %vm877_vm11 = vcmp.lt.s32.totalorder %v723_v22, 0  ;;  %vm1019_vm15 = vcmp.lt.s32.totalorder %v983_v58, 16  ;;  %v756_v39 = vsub.s32 %v15635_v60, %v755_v47  ;;  %vm842_vm8 = vcmp.ne.s32.totalorder %v734_v38, 0 }
 0x350   : > { %vm878_vm12 = vcmp.lt.s32.totalorder %v734_v38, 0  ;;  %v6440_v12 = vsel %vm19144_vm5, %v6383_v10, 0.0  ;;  %v6384_v55 = vmul.f32 %v15761_v29, %v15754_v53  ;;  %v949_v59 = vadd.s32 18, %v723_v22  ;;  %vm15784_vm7 = vmand %vm877_vm11, %vm841_vm6 }
 0x351   : > { %v6441_v50 = vadd.f32 %v6440_v12, %v6439_v51  ;;  %v15780_v60 = vsel %vm1019_vm15, 1.0, %v19455_v35  ;;  %v767_v13 = vsub.s32 %v15658_v28, %v766_v41  ;;  %v950_v7 = vadd.s32 18, %v734_v38  ;;  %vm15794_vm2 = vmand %vm878_vm12, %vm842_vm8 }
 0x352   : > { %19526 = vst [vmem:[#allocation39_spill] sm:$0xff] %v15780_v60  ;;  %vm15788_vm9 = vcmp.lt.s32.totalorder %v984_v23, 16  ;;  %vm844_vm10 = vcmp.ne.s32.totalorder %v756_v39, 0  ;;  %vm880_vm0 = vcmp.lt.s32.totalorder %v756_v39, 0  ;;  %v6442_v28 = vsel %vm19144_vm5, %v6384_v55, 0.0 }
 0x353   : > { %v6443_v63 = vadd.f32 %v6442_v28, %v6441_v50  ;;  %v985_v3 = vsel %vm15784_vm7, %v949_v59, %v723_v22  ;;  %v952_v25 = vadd.s32 18, %v756_v39  ;;  %vm845_vm14 = vcmp.ne.s32.totalorder %v767_v13, 0  ;;  %vm15808_vm6 = vmand %vm880_vm0, %vm844_vm10 }
 0x354   : > { %v986_v47 = vsel %vm15794_vm2, %v950_v7, %v734_v38  ;;  %vm881_vm11 = vcmp.lt.s32.totalorder %v767_v13, 0  ;;  %v15817_v10 = vsel %vm15788_vm9, 1.0, %v19455_v35  ;;  %vm1021_vm8 = vcmp.lt.s32.totalorder %v985_v3, 16 }
 0x355   : > { %19535 = vst [vmem:[#allocation40_spill] sm:$0xff] %v15817_v10  ;;  %v953_v41 = vadd.s32 18, %v767_v13  ;;  %v988_v38 = vsel %vm15808_vm6, %v952_v25, %v756_v39  ;;  %vm1022_vm12 = vcmp.lt.s32.totalorder %v986_v47, 16  ;;  %vm15827_vm7 = vmand %vm881_vm11, %vm845_vm14  ;;  %v414_v50 = vadd.s32 256, %v14866_v21 }
 0x356   : > { %v15841_v59 = vsel %vm1021_vm8, 1.0, %v19455_v35  ;;  %v415_v46 = vadd.s32 264, %v14866_v21  ;;  %vm15847_vm9 = vcmp.lt.s32.totalorder %v988_v38, 16 }
 0x357   : > { %19540 = vst [vmem:[#allocation41_spill] sm:$0xff] %v15841_v59  ;;  %v989_v7 = vsel %vm15827_vm7, %v953_v41, %v767_v13  ;;  %v15880_v38 = vsel %vm15847_vm9, 1.0, %v19455_v35 }
 0x358   : > { %vm15861_vm0 = vcmp.lt.s32.totalorder %v989_v7, 16  ;;  %19546 = vst [vmem:[#allocation43_spill] sm:$0xff] %v15880_v38 }
 0x369   : > { %v15398_v18 = vpop.f32.mrb[24].mxu0 }
 0x36a   : > { %v15413_v48 = vpop.f32.mrb[25].mxu0  ;;  %v15806_v52 = vadd.f32 %v15398_v18, %v14990_v2 }
 0x36b   : > { %v15423_v57 = vpop.f32.mrb[26].mxu0  ;;  %v15758_v37 = vadd.f32 %v14990_v2, %v15413_v48  ;;  %v745_v48 = vsub.s32 %v15642_v43, %v744_v33  ;;  %v416_v43 = vadd.s32 272, %v14866_v21 }
 0x36c   : > { %v15441_v20 = vpop.f32.mrb[27].mxu0  ;;  %v6387_v12 = vmul.f32 %v15817_v10, %v15806_v52  ;;  %v15835_v55 = vadd.f32 %v15423_v57, %v14990_v2  ;;  %v15852_v57 = vsel %vm1022_vm12, 1.0, %v19455_v35 }
 0x36d   : > { %v6385_v36 = vmul.f32 %v15764_v31, %v15758_v37  ;;  %v15777_v15 = vadd.f32 %v14990_v2, %v15441_v20  ;;  %vm843_vm3 = vcmp.ne.s32.totalorder %v745_v48, 0  ;;  %vm879_vm4 = vcmp.lt.s32.totalorder %v745_v48, 0  ;;  %19543 = vst [vmem:[#allocation42_spill] sm:$0xff] %v15852_v57 }
 0x36e   : > { %v951_v33 = vadd.s32 18, %v745_v48  ;;  %vm15820_vm15 = vmand %vm879_vm4, %vm843_vm3  ;;  %v6448_v28 = vsel %vm19144_vm5, %v6387_v12, 0.0 }
 0x36f   : > { %v6444_v44 = vsel %vm19144_vm5, %v6385_v36, 0.0  ;;  %v6386_v9 = vmul.f32 %v15780_v60, %v15777_v15 }
 0x370   : > { %v6445_v22 = vadd.f32 %v6444_v44, %v6443_v63  ;;  %v987_v36 = vsel %vm15820_vm15, %v951_v33, %v745_v48  ;;  %v417_v48 = vadd.s32 280, %v14866_v21  ;;  %v6388_v44 = vmul.f32 %v15841_v59, %v15835_v55 }
 0x371   : > { %v6446_v18 = vsel %vm19144_vm5, %v6386_v9, 0.0  ;;  %vm1023_vm10 = vcmp.lt.s32.totalorder %v987_v36, 16  ;;  %v15858_v63 = vmul.u32.u64.low 3817748708, %v414_v50  ;;  %v15859_v13 = vmul.u32.u64.high 3817748708, %v414_v50, %v15858_v63 }
 0x372   : > { %v6447_v39 = vadd.f32 %v6446_v18, %v6445_v22  ;;  %v15865_v47 = vmul.u32.u64.low 3817748708, %v416_v43  ;;  %v15866_v33 = vmul.u32.u64.high 3817748708, %v416_v43, %v15865_v47  ;;  %v15883_v23 = vsel %vm1023_vm10, 1.0, %v19455_v35 }
 0x373   : > { %v15874_v18 = vmul.u32.u64.low 3817748708, %v415_v46  ;;  %v15875_v41 = vmul.u32.u64.high 3817748708, %v415_v46, %v15874_v18  ;;  %19547 = vst [vmem:[#allocation44_spill] sm:$0xff] %v15883_v23  ;;  %v6450_v7 = vsel %vm19144_vm5, %v6388_v44, 0.0 }
 0x374   : > { %v6449_v3 = vadd.f32 %v6448_v28, %v6447_v39  ;;  %v15885_v36 = vmul.u32.u64.low 3817748708, %v417_v48  ;;  %v15886_v39 = vmul.u32.u64.high 3817748708, %v417_v48, %v15885_v36  ;;  %v798_v58 = vshrl.u32 %v15866_v33, 4 }
 0x376   : > { %v6451_v20 = vadd.f32 %v6450_v7, %v6449_v3  ;;  %v776_v3 = vshrl.u32 %v15859_v13, 4 }
 0x378   : > { %v777_v59 = vmul.u32 18, %v776_v3 }
 0x37a   : > { %v778_v10 = vsub.s32 %v414_v50, %v777_v59 }
 0x37c   : > { %vm846_vm2 = vcmp.ne.s32.totalorder %v778_v10, 0  ;;  %vm882_vm3 = vcmp.lt.s32.totalorder %v778_v10, 0 }
 0x37d   : > { %vm918_vm15 = vmand %vm882_vm3, %vm846_vm2  ;;  %vm19553_vm3 = vcmask 31744  }
 0x3a6   : > { %v11839_v9 = vpop.f32.mrb[28].mxu0 }
 0x3a7   : > { %v6330_v25 = vpop.f32.mrb[29].mxu0  ;;  %v15869_v21 = vadd.f32 %v11839_v9, %v14990_v2 }
 0x3a8   : > { %v15872_v22 = vadd.f32 %v14990_v2, %v6330_v25  ;;  %v11840_v51 = vpop.f32.mrb[30].mxu0  ;;  %v15900_v25 = vsel %vm15861_vm0, 1.0, %v19455_v35 }
 0x3a9   : > { %v6333_v12 = vpop.f32.mrb[31].mxu0  ;;  %v15892_v9 = vadd.f32 %v11840_v51, %v14990_v2  ;;  %19548 = vst [vmem:[#allocation45_spill] sm:$0xff] %v15900_v25  ;;  %v6391_v47 = vmul.f32 %v15880_v38, %v15869_v21  ;;  %v787_v38 = vshrl.u32 %v15875_v41, 4 }
 0x3aa   : > { %v6389_v28 = vmul.f32 %v15852_v57, %v15872_v22  ;;  %v15895_v63 = vadd.f32 %v14990_v2, %v6333_v12 }
 0x3ab   : > { %v6392_v51 = vmul.f32 %v15900_v25, %v15892_v9  ;;  %v6456_v7 = vsel %vm19144_vm5, %v6391_v47, 0.0  ;;  %v788_v25 = vmul.u32 18, %v787_v38  ;;  %v954_v47 = vadd.s32 18, %v778_v10 }
 0x3ac   : > { %v6452_v44 = vsel %vm19144_vm5, %v6389_v28, 0.0  ;;  %v6390_v18 = vmul.f32 %v15883_v23, %v15895_v63 }
 0x3ad   : > { %v6453_v36 = vadd.f32 %v6452_v44, %v6451_v20  ;;  %v6458_v28 = vsel %vm19144_vm5, %v6392_v51, 0.0  ;;  %v809_v20 = vshrl.u32 %v15886_v39, 4  ;;  %v799_v44 = vmul.u32 18, %v798_v58 }
 0x3ae   : > { %v6454_v2 = vsel %vm19144_vm5, %v6390_v18, 0.0  ;;  %v789_v13 = vsub.s32 %v415_v46, %v788_v25 }
 0x3af   : > { %v6455_v12 = vadd.f32 %v6454_v2, %v6453_v36  ;;  %v810_v18 = vmul.u32 18, %v809_v20  ;;  %v800_v60 = vsub.s32 %v416_v43, %v799_v44  ;;  %v12512_v36 = vld [vmem:[%s19040_s3] ss:$0 sm:$0xff] }
 0x3b0   : > { %vm847_vm6 = vcmp.ne.s32.totalorder %v789_v13, 0  ;;  %vm883_vm11 = vcmp.lt.s32.totalorder %v789_v13, 0  ;;  %v955_v39 = vadd.s32 18, %v789_v13 }
 0x3b1   : > { %v6457_v57 = vadd.f32 %v6456_v7, %v6455_v12  ;;  %v811_v33 = vsub.s32 %v417_v48, %v810_v18  ;;  %vm848_vm4 = vcmp.ne.s32.totalorder %v800_v60, 0  ;;  %vm884_vm14 = vcmp.lt.s32.totalorder %v800_v60, 0  ;;  %vm919_vm9 = vmand %vm883_vm11, %vm847_vm6 }
 0x3b2   : > { %vm920_vm8 = vmand %vm884_vm14, %vm848_vm4  ;;  %v956_v41 = vadd.s32 18, %v800_v60  ;;  %v991_v43 = vsel %vm919_vm9, %v955_v39, %v789_v13 }
 0x3b3   : > { %v6459_v23 = vadd.f32 %v6458_v28, %v6457_v57  ;;  %vm849_vm12 = vcmp.ne.s32.totalorder %v811_v33, 0  ;;  %vm885_vm7 = vcmp.lt.s32.totalorder %v811_v33, 0  ;;  %v990_v57 = vsel %vm918_vm15, %v954_v47, %v778_v10  ;;  %vm19556_vm4 = vmmov %vm19553_vm3 }
 0x3b4   : > { %v957_v50 = vadd.s32 18, %v811_v33  ;;  %vm921_vm10 = vmand %vm885_vm7, %vm849_vm12  ;;  %v992_v59 = vsel %vm920_vm8, %v956_v41, %v800_v60  ;;  %vm1026_vm0 = vcmp.lt.s32.totalorder %v990_v57, 16  ;;  %vm1027_vm13 = vcmp.lt.s32.totalorder %v991_v43, 16 }
 0x3b5   : > { %vm1028_vm5 = vcmp.lt.s32.totalorder %v992_v59, 16  ;;  %v15917_v38 = vsel %vm1026_vm0, 1.0, %v19455_v35  ;;  %v15926_v3 = vsel %vm1027_vm13, 1.0, %v19455_v35  ;;  %vm19555_vm13 = vmmov %vm19553_vm3  ;;  %vm19169_vm12 = vcmask 27648  }
 0x3b6   : > { %v993_v46 = vsel %vm921_vm10, %v957_v50, %v811_v33  ;;  %19549 = vst [vmem:[#allocation46_spill] sm:$0xff] %v15917_v38  ;;  %v15923_v60 = vsel %vm1028_vm5, 1.0, %v19455_v35  ;;  %19551 = vst [vmem:[#allocation48_spill] sm:$0xff] %v15926_v3 }
 0x3b7   : > { %vm1029_vm2 = vcmp.lt.s32.totalorder %v993_v46, 16  ;;  %19550 = vst [vmem:[#allocation47_spill] sm:$0xff] %v15923_v60  ;;  %vm19554_vm5 = vmmov %vm19553_vm3 }
 0x3b8   : > { %v15930_v20 = vsel %vm1029_vm2, 1.0, %v19455_v35  ;;  %vm19558_vm14 = vmmov %vm19553_vm3 }
 0x3b9   : > { %19552 = vst [vmem:[#allocation49_spill] sm:$0xff] %v15930_v20  ;;  %vm19559_vm6 = vmmov %vm19553_vm3 }
 0x3ba   : > { %vm19562_vm11 = vmmov %vm19553_vm3 }
 0x3bb   : > { %vm19565_vm15 = vmmov %vm19553_vm3 }
 0x3bc   : > { %vm19568_vm8 = vmmov %vm19553_vm3 }
 0x3bd   : > { %vm19571_vm7 = vmmov %vm19553_vm3 }
 0x3be   : > { %vm19574_vm9 = vmmov %vm19553_vm3 }
 0x3bf   : > { %vm19576_vm10 = vmmov %vm19553_vm3 }
 0x3c0   : > { %vm19578_vm0 = vmmov %vm19553_vm3 }
 0x3c1   : > { %vm19579_vm2 = vmmov %vm19578_vm0 }
 0x3c5   : > { %v11843_v48 = vpop.f32.mrb[32].mxu0 }
 0x3c6   : > { %v6346_v25 = vpop.f32.mrb[33].mxu0  ;;  %v6355_v51 = vadd.f32 %v12512_v36, %v11843_v48 }
 0x3c7   : > { %v6347_v2 = vadd.f32 %v12512_v36, %v6346_v25  ;;  %v11844_v10 = vpop.f32.mrb[34].mxu0 }
 0x3c8   : > { %v6349_v12 = vpop.f32.mrb[35].mxu0  ;;  %v6358_v7 = vadd.f32 %v12512_v36, %v11844_v10  ;;  %v6395_v44 = vmul.f32 %v15923_v60, %v6355_v51 }
 0x3c9   : > { %v6393_v58 = vmul.f32 %v15917_v38, %v6347_v2  ;;  %v6350_v28 = vadd.f32 %v12512_v36, %v6349_v12 }
 0x3ca   : > { %v6396_v47 = vmul.f32 %v15930_v20, %v6358_v7  ;;  %v6464_v57 = vsel %vm19555_vm13, %v6395_v44, 0.0  ;;  %vm19584_vm13 = vmmov %vm19578_vm0 }
 0x3cb   : > { %v6460_v18 = vsel %vm19553_vm3, %v6393_v58, 0.0  ;;  %v6394_v13 = vmul.f32 %v15926_v3, %v6350_v28  ;;  %vm19580_vm3 = vmmov %vm19578_vm0 }
 0x3cc   : > { %v6461_v33 = vadd.f32 %v6460_v18, %v6459_v23  ;;  %v6466_v59 = vsel %vm19556_vm4, %v6396_v47, 0.0  ;;  %vm19587_vm4 = vmmov %vm19578_vm0 }
 0x3cd   : > { %v6462_v41 = vsel %vm19554_vm5, %v6394_v13, 0.0  ;;  %vm19581_vm5 = vmmov %vm19578_vm0 }
 0x3ce   : > { %v6463_v39 = vadd.f32 %v6462_v41, %v6461_v33 }
 0x3d0   : > { %v6465_v50 = vadd.f32 %v6464_v57, %v6463_v39 }
 0x3d2   : > { %v6467_v43 = vadd.f32 %v6466_v59, %v6465_v50 }
 0x3d4   : > { %v6468_v35 = vrot.slane %v6467_v43, 4 }
 0x3d6   : > { %v6469_v46 = vadd.f32 %v6468_v35, %v6467_v43 }
 0x3d8   : > { %v6470_v48 = vrot.slane %v6469_v46, 2 }
 0x3da   : > { %v6471_v25 = vadd.f32 %v6470_v48, %v6469_v46 }
 0x3dc   : > { %v6472_v36 = vrot.slane %v6471_v25, 1 }
 0x3de   : > { %v6473_v10 = vadd.f32 %v6472_v36, %v6471_v25  ;;  %v19561_v36 = vld [vmem:[#allocation11_spill] sm:$0xff] }
 0x3e0   : > { %v15939_v12 = vmul.f32 0.00390625, %v6473_v10 }
 0x3e2   : > { %v15943_v23 = vsub.f32 %v15872_v22, %v15939_v12  ;;  %v15947_v58 = vsub.f32 %v15895_v63, %v15939_v12  ;;  %v15951_v44 = vsub.f32 %v15869_v21, %v15939_v12  ;;  %v15955_v18 = vsub.f32 %v15892_v9, %v15939_v12 }
 0x3e3   : > { %v15958_v13 = vsub.f32 %v6347_v2, %v15939_v12  ;;  %v15961_v33 = vsub.f32 %v6350_v28, %v15939_v12  ;;  %v15964_v22 = vsub.f32 %v6355_v51, %v15939_v12  ;;  %v15967_v63 = vsub.f32 %v6358_v7, %v15939_v12 }
 0x3e4   : > { %v15971_v21 = vsub.f32 %v15023_v27, %v15939_v12  ;;  %v15975_v9 = vsub.f32 %v15011_v45, %v15939_v12  ;;  %v15979_v2 = vsub.f32 %v15042_v4, %v15939_v12  ;;  %v15983_v28 = vsub.f32 %v15088_v0, %v15939_v12 }
 0x3e5   : > { %v15991_v27 = vsub.f32 %v15129_v30, %v15939_v12  ;;  %v15997_v4 = vsub.f32 %v15155_v14, %v15939_v12  ;;  %v16003_v39 = vsub.f32 %v15210_v40, %v15939_v12  ;;  %v16009_v50 = vsub.f32 %v15229_v62, %v15939_v12  ;;  %v19557_v14 = vld [vmem:[#allocation13_spill] sm:$0xff]  ;;  %v19560_v40 = vld [vmem:[#allocation14_spill] sm:$0xff] }
 0x3e6   : > { %v6511_v51 = vmul.f32 %v14995_v6, %v15971_v21  ;;  %v6512_v7 = vmul.f32 %v15026_v16, %v15975_v9  ;;  %v6513_v45 = vmul.f32 %v15055_v24, %v15979_v2  ;;  %v6514_v0 = vmul.f32 %v15060_v26, %v15983_v28 }
 0x3e7   : > { %v6515_v30 = vmul.f32 %v15097_v17, %v15991_v27  ;;  %v6516_v59 = vmul.f32 %v19557_v14, %v15997_v4  ;;  %v16017_v25 = vsub.f32 %v19560_v40, %v15939_v12  ;;  %v6517_v10 = vmul.f32 %v19561_v36, %v16003_v39  ;;  %v19566_v40 = vld [vmem:[#allocation20_spill] sm:$0xff] }
 0x3e8   : > { %v6547_v47 = vmul.f32 %v6511_v51, %v6511_v51  ;;  %v6548_v41 = vmul.f32 %v6512_v7, %v6512_v7  ;;  %v6549_v57 = vmul.f32 %v6513_v45, %v6513_v45  ;;  %v6550_v43 = vmul.f32 %v6514_v0, %v6514_v0  ;;  %v19563_v45 = vld [vmem:[#allocation19_spill] sm:$0xff]  ;;  %v19564_v0 = vld [vmem:[#allocation12_spill] sm:$0xff] }
 0x3e9   : > { %v6551_v51 = vmul.f32 %v6515_v30, %v6515_v30  ;;  %v16024_v14 = vsub.f32 %v19563_v45, %v15939_v12  ;;  %v16031_v17 = vsub.f32 %v19566_v40, %v15939_v12  ;;  %v19567_v30 = vld [vmem:[#allocation16_spill] sm:$0xff]  ;;  %v19569_v45 = vld [vmem:[#allocation21_spill] sm:$0xff]  ;;  %v19572_v40 = vld [vmem:[#allocation23_spill] sm:$0xff] }
 0x3ea   : > { %v6583_v35 = vsel %vm19558_vm14, %v6547_v47, 0.0  ;;  %v6584_v46 = vsel %vm19559_vm6, %v6548_v41, 0.0  ;;  %v6586_v62 = vsel %vm19562_vm11, %v6549_v57, 0.0  ;;  %v6518_v47 = vmul.f32 %v19564_v0, %v16009_v50  ;;  %vm19590_vm14 = vmmov %vm19578_vm0 }
 0x3eb   : > { %v6585_v48 = vadd.f32 %v6584_v46, %v6583_v35  ;;  %v6552_v41 = vmul.f32 %v6516_v59, %v6516_v59  ;;  %v6588_v35 = vsel %vm19565_vm15, %v6550_v43, 0.0  ;;  %v6519_v36 = vmul.f32 %v19567_v30, %v16017_v25  ;;  %v19570_v59 = vld [vmem:[#allocation18_spill] sm:$0xff]  ;;  %vm19592_vm6 = vmmov %vm19578_vm0 }
 0x3ec   : > { %v6553_v57 = vmul.f32 %v6517_v10, %v6517_v10  ;;  %v16038_v26 = vsub.f32 %v19569_v45, %v15939_v12  ;;  %v6520_v43 = vmul.f32 %v19570_v59, %v16024_v14  ;;  %v16045_v0 = vsub.f32 %v19572_v40, %v15939_v12  ;;  %v19573_v10 = vld [vmem:[#allocation15_spill] sm:$0xff]  ;;  %v19577_v40 = vld [vmem:[#allocation22_spill] sm:$0xff]  ;;  %vm19594_vm11 = vmmov %vm19578_vm0 }
 0x3ed   : > { %v6587_v7 = vadd.f32 %v6586_v62, %v6585_v48  ;;  %v6590_v48 = vsel %vm19568_vm8, %v6551_v51, 0.0  ;;  %v6521_v51 = vmul.f32 %v19573_v10, %v16031_v17  ;;  %v6555_v24 = vmul.f32 %v6519_v36, %v6519_v36  ;;  %vm19595_vm15 = vmmov %vm19578_vm0 }
 0x3ee   : > { %v19152_v45 = vmov 0   ;;  %vm19596_vm8 = vmmov %vm19578_vm0 }
 0x3ef   : > { %v6589_v46 = vadd.f32 %v6588_v35, %v6587_v7  ;;  %v6554_v7 = vmul.f32 %v6518_v47, %v6518_v47  ;;  %v6592_v35 = vsel %vm19571_vm7, %v6552_v41, 0.0  ;;  %6894 = vst.msk [vmem:[#allocation3] sm:$0xf] %vm19169_vm12, %v19152_v45  ;;  %6895 = vst.msk [vmem:[#allocation3 + $0x4] sm:$0xf] %vm19169_vm12, %v19152_v45  ;;  %v16058_v47 = vsub.f32 %v15429_v5, %v15939_v12  ;;  %v19575_v41 = vld [vmem:[#allocation17_spill] sm:$0xff] }
 0x3f0   : > { %6908 = vst.msk [vmem:[#allocation3 + $0x9c] sm:$0xf] %vm19169_vm12, %v19152_v45  ;;  %v6522_v36 = vmul.f32 %v19575_v41, %v16038_v26  ;;  %v6557_v10 = vmul.f32 %v6521_v51, %v6521_v51  ;;  %v6598_v45 = vsel %vm19578_vm0, %v6555_v24, 0.0  ;;  %v16072_v5 = vsub.f32 %v15528_v8, %v15939_v12  ;;  %vm19597_vm7 = vmmov %vm19578_vm0 }
 0x3f1   : > { %v6591_v62 = vadd.f32 %v6590_v48, %v6589_v46  ;;  %v6594_v46 = vsel %vm19574_vm9, %v6553_v57, 0.0  ;;  %v16086_v8 = vsub.f32 %v15561_v19, %v15939_v12  ;;  %v19585_v19 = vld [vmem:[#allocation32_spill] sm:$0xff]  ;;  %vm19598_vm9 = vmmov %vm19578_vm0 }
 0x3f3   : > { %v6593_v30 = vadd.f32 %v6592_v35, %v6591_v62  ;;  %v6556_v62 = vmul.f32 %v6520_v43, %v6520_v43  ;;  %v16065_v35 = vsub.f32 %v15492_v61, %v15939_v12  ;;  %v6524_v43 = vmul.f32 %v15446_v34, %v16058_v47 }
 0x3f4   : > { %v16079_v61 = vsub.f32 %v15539_v32, %v15939_v12  ;;  %v19582_v32 = vld [vmem:[#allocation31_spill] sm:$0xff] }
 0x3f5   : > { %v6595_v48 = vadd.f32 %v6594_v46, %v6593_v30  ;;  %v6596_v30 = vsel %vm19576_vm10, %v6554_v7, 0.0  ;;  %v6523_v46 = vmul.f32 %v19577_v40, %v16045_v0  ;;  %v6558_v7 = vmul.f32 %v6522_v36, %v6522_v36  ;;  %vm19600_vm10 = vmmov %vm19578_vm0 }
 0x3f6   : > { %v6525_v51 = vmul.f32 %v15488_v1, %v16065_v35  ;;  %v6526_v36 = vmul.f32 %v15514_v11, %v16072_v5  ;;  %v16093_v34 = vsub.f32 %v19582_v32, %v15939_v12  ;;  %v16100_v40 = vsub.f32 %v19585_v19, %v15939_v12  ;;  %v19588_v32 = vld [vmem:[#allocation34_spill] sm:$0xff] }
 0x3f7   : > { %v6597_v57 = vadd.f32 %v6596_v30, %v6595_v48  ;;  %v6600_v48 = vsel %vm19579_vm2, %v6556_v62, 0.0  ;;  %v6559_v24 = vmul.f32 %v6523_v46, %v6523_v46  ;;  %v6560_v62 = vmul.f32 %v6524_v43, %v6524_v43  ;;  %v19583_v46 = vld [vmem:[#allocation27_spill] sm:$0xff]  ;;  %v19586_v43 = vld [vmem:[#allocation28_spill] sm:$0xff]  ;;  %vm19603_vm2 = vmmov %vm19578_vm0 }
 0x3f8   : > { %v6527_v1 = vmul.f32 %v19583_v46, %v16079_v61  ;;  %v6528_v11 = vmul.f32 %v19586_v43, %v16086_v8  ;;  %v16107_v41 = vsub.f32 %v19588_v32, %v15939_v12  ;;  %v16114_v19 = vsub.f32 %v15699_v56, %v15939_v12 }
 0x3f9   : > { %v6599_v59 = vadd.f32 %v6598_v45, %v6597_v57  ;;  %v6602_v45 = vsel %vm19580_vm3, %v6557_v10, 0.0  ;;  %v6561_v10 = vmul.f32 %v6525_v51, %v6525_v51  ;;  %v19589_v51 = vld [vmem:[#allocation29_spill] sm:$0xff]  ;;  %v16121_v32 = vsub.f32 %v15729_v42, %v15939_v12  ;;  %vm19605_vm3 = vmmov %vm19578_vm0 }
 0x3fa   : > { %v6529_v46 = vmul.f32 %v19589_v51, %v16093_v34  ;;  %v16128_v56 = vsub.f32 %v15754_v53, %v15939_v12  ;;  %v16135_v42 = vsub.f32 %v15758_v37, %v15939_v12  ;;  %v16142_v53 = vsub.f32 %v15777_v15, %v15939_v12 }
 0x3fb   : > { %v6601_v30 = vadd.f32 %v6600_v48, %v6599_v59  ;;  %v6604_v59 = vsel %vm19581_vm5, %v6558_v7, 0.0  ;;  %v6562_v7 = vmul.f32 %v6526_v36, %v6526_v36  ;;  %v19591_v36 = vld [vmem:[#allocation30_spill] sm:$0xff]  ;;  %v16149_v37 = vsub.f32 %v15806_v52, %v15939_v12  ;;  %v19601_v52 = vld [vmem:[#allocation40_spill] sm:$0xff]  ;;  %vm19607_vm5 = vmmov %vm19578_vm0 }
 0x3fc   : > { %v6530_v43 = vmul.f32 %v19591_v36, %v16100_v40  ;;  %v16156_v15 = vsub.f32 %v15835_v55, %v15939_v12 }
 0x3fd   : > { %v6603_v57 = vadd.f32 %v6602_v45, %v6601_v30  ;;  %v6606_v30 = vsel %vm19584_vm13, %v6559_v24, 0.0  ;;  %v6563_v24 = vmul.f32 %v6527_v1, %v6527_v1  ;;  %v19593_v1 = vld [vmem:[#allocation33_spill] sm:$0xff]  ;;  %vm19609_vm13 = vmmov %vm19578_vm0 }
 0x3fe   : > { %v6531_v51 = vmul.f32 %v19593_v1, %v16107_v41 }
 0x3ff   : > { %v6605_v48 = vadd.f32 %v6604_v59, %v6603_v57  ;;  %v6608_v57 = vsel %vm19587_vm4, %v6560_v62, 0.0  ;;  %v6564_v62 = vmul.f32 %v6528_v11, %v6528_v11  ;;  %v6532_v11 = vmul.f32 %v15704_v49, %v16114_v19  ;;  %vm19611_vm4 = vmmov %vm19578_vm0 }
 0x401   : > { %v6607_v45 = vadd.f32 %v6606_v30, %v6605_v48  ;;  %v6610_v48 = vsel %vm19590_vm14, %v6561_v10, 0.0  ;;  %v6565_v10 = vmul.f32 %v6529_v46, %v6529_v46  ;;  %v6533_v46 = vmul.f32 %v15738_v54, %v16121_v32  ;;  %vm19612_vm14 = vmmov %vm19578_vm0 }
 0x402   : > { %v6537_v54 = vmul.f32 %v19601_v52, %v16149_v37 }
 0x403   : > { %v6609_v59 = vadd.f32 %v6608_v57, %v6607_v45  ;;  %v6612_v45 = vsel %vm19592_vm6, %v6562_v7, 0.0  ;;  %v6566_v7 = vmul.f32 %v6530_v43, %v6530_v43  ;;  %v6534_v43 = vmul.f32 %v15761_v29, %v16128_v56  ;;  %vm19613_vm6 = vmmov %vm19578_vm0 }
 0x404   : > { %v6573_v1 = vmul.f32 %v6537_v54, %v6537_v54 }
 0x405   : > { %v6611_v30 = vadd.f32 %v6610_v48, %v6609_v59  ;;  %v6614_v59 = vsel %vm19594_vm11, %v6563_v24, 0.0  ;;  %v6567_v24 = vmul.f32 %v6531_v51, %v6531_v51  ;;  %v6535_v51 = vmul.f32 %v15764_v31, %v16135_v42  ;;  %vm19614_vm11 = vmmov %vm19578_vm0 }
 0x407   : > { %v6613_v57 = vadd.f32 %v6612_v45, %v6611_v30  ;;  %v6616_v30 = vsel %vm19595_vm15, %v6564_v62, 0.0  ;;  %v6568_v62 = vmul.f32 %v6532_v11, %v6532_v11  ;;  %v19599_v11 = vld [vmem:[#allocation39_spill] sm:$0xff]  ;;  %v6571_v49 = vmul.f32 %v6535_v51, %v6535_v51  ;;  %vm19615_vm15 = vmmov %vm19578_vm0 }
 0x408   : > { %v6536_v29 = vmul.f32 %v19599_v11, %v16142_v53  ;;  %v19604_v11 = vld [vmem:[#allocation42_spill] sm:$0xff] }
 0x409   : > { %v6615_v48 = vadd.f32 %v6614_v59, %v6613_v57  ;;  %v6618_v57 = vsel %vm19596_vm8, %v6565_v10, 0.0  ;;  %v6569_v10 = vmul.f32 %v6533_v46, %v6533_v46  ;;  %vm19616_vm8 = vmmov %vm19578_vm0 }
 0x40b   : > { %v6617_v45 = vadd.f32 %v6616_v30, %v6615_v48  ;;  %v6620_v48 = vsel %vm19597_vm7, %v6566_v7, 0.0  ;;  %v6570_v7 = vmul.f32 %v6534_v43, %v6534_v43  ;;  %v6626_v46 = vsel %vm19578_vm0, %v6569_v10, 0.0  ;;  %vm19617_vm7 = vmmov %vm19578_vm0 }
 0x40c   : > { %v6539_v43 = vmul.f32 %v19604_v11, %v15943_v23 }
 0x40d   : > { %v6619_v59 = vadd.f32 %v6618_v57, %v6617_v45  ;;  %v6622_v45 = vsel %vm19598_vm9, %v6567_v24, 0.0  ;;  %v19602_v24 = vld [vmem:[#allocation41_spill] sm:$0xff]  ;;  %v6628_v55 = vsel %vm19603_vm2, %v6570_v7, 0.0  ;;  %vm19618_vm9 = vmmov %vm19578_vm0 }
 0x40f   : > { %v6621_v30 = vadd.f32 %v6620_v48, %v6619_v59  ;;  %v6624_v59 = vsel %vm19600_vm10, %v6568_v62, 0.0  ;;  %v6630_v62 = vsel %vm19605_vm3, %v6571_v49, 0.0  ;;  %vm19619_vm10 = vmmov %vm19578_vm0 }
 0x411   : > { %v6623_v57 = vadd.f32 %v6622_v45, %v6621_v30  ;;  %v6538_v30 = vmul.f32 %v19602_v24, %v16156_v15  ;;  %v6572_v45 = vmul.f32 %v6536_v29, %v6536_v29  ;;  %v6575_v24 = vmul.f32 %v6539_v43, %v6539_v43 }
 0x412   : > { %v6544_v43 = vmul.f32 %v15926_v3, %v15961_v33 }
 0x413   : > { %v6625_v48 = vadd.f32 %v6624_v59, %v6623_v57  ;;  %v19606_v59 = vld [vmem:[#allocation44_spill] sm:$0xff]  ;;  %v6574_v52 = vmul.f32 %v6538_v30, %v6538_v30  ;;  %v6632_v10 = vsel %vm19607_vm5, %v6572_v45, 0.0  ;;  %v6543_v30 = vmul.f32 %v15917_v38, %v15958_v13 }
 0x414   : > { %v6540_v51 = vmul.f32 %v19606_v59, %v15947_v58  ;;  %v6638_v45 = vsel %vm19612_vm14, %v6575_v24, 0.0  ;;  %vm7055_vm5 = vsmask.f32 5392 }
 0x415   : > { %v6627_v31 = vadd.f32 %v6626_v46, %v6625_v48  ;;  %v19608_v46 = vld [vmem:[#allocation43_spill] sm:$0xff]  ;;  %v6636_v49 = vsel %vm19611_vm4, %v6574_v52, 0.0 }
 0x416   : > { %v6541_v29 = vmul.f32 %v19608_v46, %v15951_v44  ;;  %v6576_v11 = vmul.f32 %v6540_v51, %v6540_v51  ;;  %v6545_v51 = vmul.f32 %v15923_v60, %v15964_v22 }
 0x417   : > { %v6629_v12 = vadd.f32 %v6628_v55, %v6627_v31  ;;  %v6634_v31 = vsel %vm19609_vm13, %v6573_v1, 0.0  ;;  %v19610_v55 = vld [vmem:[#allocation45_spill] sm:$0xff]  ;;  %vm19621_vm13 = vsmask.f32 1280 }
 0x418   : > { %v6542_v54 = vmul.f32 %v19610_v55, %v15955_v18  ;;  %v6640_v1 = vsel %vm19613_vm6, %v6576_v11, 0.0  ;;  %vm16364_vm4 = vmor %vm19621_vm13, %vm7055_vm5 }
 0x419   : > { %v6631_v57 = vadd.f32 %v6630_v62, %v6629_v12  ;;  %v6577_v62 = vmul.f32 %v6541_v29, %v6541_v29  ;;  %v6546_v29 = vmul.f32 %v15930_v20, %v15967_v63 }
 0x41b   : > { %v6633_v48 = vadd.f32 %v6632_v10, %v6631_v57  ;;  %v6578_v10 = vmul.f32 %v6542_v54, %v6542_v54  ;;  %v6642_v52 = vsel %vm19614_vm11, %v6577_v62, 0.0  ;;  %v6582_v11 = vmul.f32 %v6546_v29, %v6546_v29 }
 0x41d   : > { %v6635_v7 = vadd.f32 %v6634_v31, %v6633_v48  ;;  %v6579_v31 = vmul.f32 %v6543_v30, %v6543_v30  ;;  %v6644_v24 = vsel %vm19615_vm15, %v6578_v10, 0.0  ;;  %v6652_v62 = vsel %vm19619_vm10, %v6582_v11, 0.0 }
 0x41f   : > { %v6637_v12 = vadd.f32 %v6636_v49, %v6635_v7  ;;  %v6580_v49 = vmul.f32 %v6544_v43, %v6544_v43  ;;  %v6646_v54 = vsel %vm19616_vm8, %v6579_v31, 0.0  ;;  %v16195_v31 = vld [vmem:[#allocation3] sm:$0xff]   ;;  %vm19630_vm8 = vcmask 1046528  }
 0x420   : > { %v7789_v29 = vshll.u32 %v16195_v31, 16 }
 0x421   : > { %v6639_v57 = vadd.f32 %v6638_v45, %v6637_v12  ;;  %v6581_v45 = vmul.f32 %v6545_v51, %v6545_v51 }
 0x423   : > { %v6641_v48 = vadd.f32 %v6640_v1, %v6639_v57  ;;  %v6648_v57 = vsel %vm19617_vm7, %v6580_v49, 0.0  ;;  %v6650_v30 = vsel %vm19618_vm9, %v6581_v45, 0.0  ;;  %v16203_v49 = vld [vmem:[%s19041_s4] ss:$0 sm:$0xff]  ;;  %v16212_v45 = vrot.slane %v7789_v29, 1 }
 0x425   : > { %v6643_v7 = vadd.f32 %v6642_v52, %v6641_v48 }
 0x427   : > { %v6645_v12 = vadd.f32 %v6644_v24, %v6643_v7 }
 0x429   : > { %v6647_v55 = vadd.f32 %v6646_v54, %v6645_v12  ;;  %v16217_v54 = vld [vmem:[%s19042_s5] ss:$0 sm:$0xff] }
 0x42b   : > { %v6649_v1 = vadd.f32 %v6648_v57, %v6647_v55 }
 0x42d   : > { %v6651_v46 = vadd.f32 %v6650_v30, %v6649_v1 }
 0x42f   : > { %v6653_v48 = vadd.f32 %v6652_v62, %v6651_v46  ;;  %v7787_v46 = vshrl.u32 %v16195_v31, 16 }
 0x431   : > { %v6654_v52 = vrot.slane %v6653_v48, 4 }
 0x433   : > { %v6655_v20 = vadd.f32 %v6654_v52, %v6653_v48 }
 0x435   : > { %v6656_v43 = vrot.slane %v6655_v20, 2 }
 0x437   : > { %v6657_v59 = vadd.f32 %v6656_v43, %v6655_v20 }
 0x439   : > { %v6658_v10 = vrot.slane %v6657_v59, 1 }
 0x43b   : > { %v6659_v7 = vadd.f32 %v6658_v10, %v6657_v59 }
 0x43d   : > { %v6660_v51 = vmul.f32 0.00390625, %v6659_v7 }
 0x43f   : > { %v6661_v24 = vadd.f32 1e-05, %v6660_v51 }
 0x441   : > { %12508 = vrsqrt.f32 %v6661_v24 }
 0x44b   : > { %v16198_v55 = vpop.eup %12508 }
 0x44c   : > { %v6695_v20 = vmul.f32 %v16198_v55, %v15958_v13  ;;  %v6696_v59 = vmul.f32 %v16198_v55, %v15961_v33  ;;  %v6697_v12 = vmul.f32 %v16198_v55, %v15964_v22  ;;  %v16221_v11 = vmul.f32 %v16198_v55, %v15971_v21 }
 0x44d   : > { %v16225_v13 = vmul.f32 %v16198_v55, %v15975_v9  ;;  %v16229_v33 = vmul.f32 %v16198_v55, %v15979_v2  ;;  %v16233_v22 = vmul.f32 %v16198_v55, %v15983_v28  ;;  %v16240_v21 = vmul.f32 %v16198_v55, %v15991_v27 }
 0x44e   : > { %v6738_v57 = vmul.f32 %v16203_v49, %v6695_v20  ;;  %v6739_v1 = vmul.f32 %v16203_v49, %v6696_v59  ;;  %v6740_v30 = vmul.f32 %v16203_v49, %v6697_v12  ;;  %v16244_v9 = vmul.f32 %v16198_v55, %v15997_v4 }
 0x44f   : > { %v16248_v2 = vmul.f32 %v16198_v55, %v16003_v39  ;;  %v16252_v28 = vmul.f32 %v16198_v55, %v16009_v50  ;;  %v16256_v62 = vmul.f32 %v16198_v55, %v16017_v25  ;;  %v16263_v4 = vmul.f32 %v16198_v55, %v16024_v14 }
 0x450   : > { %v6781_v48 = vadd.f32 %v16217_v54, %v6738_v57  ;;  %v6782_v27 = vadd.f32 %v16217_v54, %v6739_v1  ;;  %v6783_v52 = vadd.f32 %v16217_v54, %v6740_v30  ;;  %v16267_v39 = vmul.f32 %v16198_v55, %v16031_v17 }
 0x451   : > { %v16271_v50 = vmul.f32 %v16198_v55, %v16038_v26  ;;  %v16275_v25 = vmul.f32 %v16198_v55, %v16045_v0  ;;  %v16279_v43 = vmul.f32 %v16198_v55, %v16058_v47  ;;  %v16283_v7 = vmul.f32 %v16198_v55, %v16065_v35 }
 0x452   : > { %vm6817_vm0 = vcmp.gt.f32.partialorder %v6781_v48, 0.0  ;;  %vm6818_vm2 = vcmp.gt.f32.partialorder %v6782_v27, 0.0  ;;  %vm6819_vm3 = vcmp.gt.f32.partialorder %v6783_v52, 0.0  ;;  %v6853_v14 = vmul.f32 0.1, %v6781_v48 }
 0x453   : > { %v6854_v10 = vmul.f32 0.1, %v6782_v27  ;;  %v6855_v17 = vmul.f32 0.1, %v6783_v52  ;;  %v16287_v26 = vmul.f32 %v16198_v55, %v16072_v5  ;;  %v16291_v47 = vmul.f32 %v16198_v55, %v16079_v61 }
 0x454   : > { %v6889_v0 = vsel %vm6817_vm0, %v6781_v48, %v6853_v14  ;;  %v16295_v51 = vmul.f32 %v16198_v55, %v16086_v8  ;;  %v16299_v24 = vmul.f32 %v16198_v55, %v16093_v34  ;;  %v16304_v5 = vmul.f32 %v16198_v55, %v16100_v40 }
 0x455   : > { %v6890_v29 = vsel %vm6818_vm2, %v6782_v27, %v6854_v10  ;;  %v6891_v35 = vsel %vm6819_vm3, %v6783_v52, %v6855_v17  ;;  %v6943_v20 = vmul.f32 %v15917_v38, %v6889_v0  ;;  %v16310_v8 = vmul.f32 %v16198_v55, %v16107_v41 }
 0x456   : > { %v6944_v59 = vmul.f32 %v15926_v3, %v6890_v29  ;;  %v6945_v61 = vmul.f32 %v15923_v60, %v6891_v35  ;;  %v16314_v34 = vmul.f32 %v16198_v55, %v16114_v19  ;;  %v16318_v57 = vmul.f32 %v16198_v55, %v16121_v32 }
 0x457   : > { %v11715_v12 = vpack.c.bf16 %v6943_v20, %v6943_v20  ;;  %v16322_v40 = vmul.f32 %v16198_v55, %v16128_v56  ;;  %v16326_v1 = vmul.f32 %v16198_v55, %v16135_v42  ;;  %v16330_v48 = vmul.f32 %v16198_v55, %v16142_v53 }
 0x458   : > { %v11716_v30 = vpack.c.bf16 %v6944_v59, %v6944_v59  ;;  %v11717_v41 = vpack.c.bf16 %v6945_v61, %v6945_v61  ;;  %v16334_v19 = vmul.f32 %v16198_v55, %v16149_v37  ;;  %v16338_v56 = vmul.f32 %v16198_v55, %v16156_v15 }
 0x459   : > { %v7377_v32 = vshrl.u32 %v11715_v12, 16  ;;  %v7380_v27 = vshll.u32 %v11715_v12, 16  ;;  %v16342_v42 = vmul.f32 %v16198_v55, %v15943_v23  ;;  %v16346_v37 = vmul.f32 %v16198_v55, %v15947_v58 }
 0x45a   : > { %v7387_v52 = vshrl.u32 %v11716_v30, 16  ;;  %v7390_v14 = vshll.u32 %v11716_v30, 16  ;;  %v7397_v10 = vshrl.u32 %v11717_v41, 16  ;;  %v7400_v17 = vshll.u32 %v11717_v41, 16 }
 0x45b   : > { %v7379_v53 = vrot.slane %v7377_v32, 6  ;;  %v7382_v0 = vrot.slane %v7380_v27, 7  ;;  %v16350_v29 = vmul.f32 %v16198_v55, %v15951_v44  ;;  %v16356_v61 = vmul.f32 %v16198_v55, %v15955_v18 }
 0x45c   : > { %v7389_v15 = vrot.slane %v7387_v52, 6  ;;  %v7392_v35 = vrot.slane %v7390_v14, 7  ;;  %v7399_v20 = vrot.slane %v7397_v10, 6  ;;  %v7402_v59 = vrot.slane %v7400_v17, 7 }
 0x45d   : > { %v16352_v23 = vor.u32 %v7382_v0, %v7379_v53  ;;  %v6706_v12 = vmul.f32 %v16203_v49, %v16221_v11  ;;  %v6707_v58 = vmul.f32 %v16203_v49, %v16225_v13  ;;  %v19622_v44 = vmov 0 }
 0x45e   : > { %v19623_v44 = vsel %vm16364_vm4, 4294967295, %v19622_v44  ;;  %v7393_v30 = vor.u32 %v7392_v35, %v7389_v15  ;;  %v16368_v41 = vor.u32 %v7402_v59, %v7399_v20  ;;  %v6698_v32 = vmul.f32 %v16198_v55, %v15967_v63 }
 0x45f   : > { %19620 = vst [vmem:[#allocation14_spill] sm:$0xff] %v16352_v23  ;;  %19624 = vst [vmem:[#allocation19_spill] sm:$0xff] %v19623_v44  ;;  %v6708_v18 = vmul.f32 %v16203_v49, %v16229_v33  ;;  %v7385_v11 = vrot.slane %v16352_v23, 4  ;;  %v6749_v27 = vadd.f32 %v16217_v54, %v6706_v12  ;;  %v6750_v13 = vadd.f32 %v16217_v54, %v6707_v58 }
 0x460   : > { %19625 = vst [vmem:[#allocation20_spill] sm:$0xff] %v16368_v41  ;;  %v6710_v52 = vmul.f32 %v16203_v49, %v16240_v21  ;;  %v7395_v14 = vrot.slane %v7393_v30, 4  ;;  %v6709_v10 = vmul.f32 %v16203_v49, %v16233_v22  ;;  %v6711_v17 = vmul.f32 %v16203_v49, %v16244_v9 }
 0x461   : > { %v16385_v63 = vmul.f32 %v16203_v49, %v16248_v2  ;;  %v7394_v55 = vsel %vm16364_vm4, %v7385_v11, %v7393_v30  ;;  %vm6785_vm14 = vcmp.gt.f32.partialorder %v6749_v27, 0.0  ;;  %vm6786_vm6 = vcmp.gt.f32.partialorder %v6750_v13, 0.0 }
 0x462   : > { %v6821_v33 = vmul.f32 0.1, %v6749_v27  ;;  %v7404_v21 = vsel %vm16364_vm4, %v7395_v14, %v16368_v41  ;;  %7488 = vst.msk [vmem:[#allocation3 + $0x8c] sm:$0xf] %vm19169_vm12, %v7394_v55  ;;  %v6822_v22 = vmul.f32 0.1, %v6750_v13  ;;  %v6713_v9 = vmul.f32 %v16203_v49, %v16252_v28 }
 0x463   : > { %v6714_v2 = vmul.f32 %v16203_v49, %v16256_v62  ;;  %7489 = vst.msk [vmem:[#allocation3 + $0x90] sm:$0xf] %vm19169_vm12, %v7404_v21  ;;  %v6715_v0 = vmul.f32 %v16203_v49, %v16263_v4  ;;  %v6716_v15 = vmul.f32 %v16203_v49, %v16267_v39  ;;  %v6717_v35 = vmul.f32 %v16203_v49, %v16271_v50  ;;  %v7453_v14 = vld [vmem:[#allocation3 + $0x8] sm:$0xe] }
 0x464   : > { %v6857_v53 = vsel %vm6785_vm14, %v6749_v27, %v6821_v33  ;;  %v6858_v20 = vsel %vm6786_vm6, %v6750_v13, %v6822_v22  ;;  %v6718_v28 = vmul.f32 %v16203_v49, %v16275_v25  ;;  %v6719_v62 = vmul.f32 %v16203_v49, %v16279_v43 }
 0x465   : > { %v6911_v59 = vmul.f32 %v14995_v6, %v6857_v53  ;;  %v6912_v12 = vmul.f32 %v15026_v16, %v6858_v20  ;;  %v6720_v4 = vmul.f32 %v16203_v49, %v16283_v7  ;;  %v6721_v39 = vmul.f32 %v16203_v49, %v16287_v26 }
 0x466   : > { %v6722_v50 = vmul.f32 %v16203_v49, %v16291_v47  ;;  %v6723_v30 = vmul.f32 %v16203_v49, %v16295_v51  ;;  %v6724_v25 = vmul.f32 %v16203_v49, %v16299_v24  ;;  %v6725_v43 = vmul.f32 %v16203_v49, %v16304_v5 }
 0x467   : > { %v11683_v58 = vpack.c.bf16 %v6911_v59, %v6911_v59  ;;  %v11684_v11 = vpack.c.bf16 %v6912_v12, %v6912_v12  ;;  %v6726_v7 = vmul.f32 %v16203_v49, %v16310_v8  ;;  %v6727_v26 = vmul.f32 %v16203_v49, %v16314_v34 }
 0x468   : > { %v6728_v47 = vmul.f32 %v16203_v49, %v16318_v57  ;;  %v6729_v51 = vmul.f32 %v16203_v49, %v16322_v40  ;;  %v6730_v24 = vmul.f32 %v16203_v49, %v16326_v1  ;;  %v6731_v8 = vmul.f32 %v16203_v49, %v16330_v48 }
 0x469   : > { %v7058_v27 = vshrl.u32 %v11683_v58, 16  ;;  %v7061_v13 = vshll.u32 %v11683_v58, 16  ;;  %v7067_v5 = vshrl.u32 %v11684_v11, 16  ;;  %v7070_v55 = vshll.u32 %v11684_v11, 16 }
 0x46a   : > { %v6732_v34 = vmul.f32 %v16203_v49, %v16334_v19  ;;  %v6733_v57 = vmul.f32 %v16203_v49, %v16338_v56  ;;  %v6734_v40 = vmul.f32 %v16203_v49, %v16342_v42  ;;  %v6735_v1 = vmul.f32 %v16203_v49, %v16346_v37 }
 0x46b   : > { %v7060_v33 = vrot.slane %v7058_v27, 6  ;;  %v7063_v21 = vrot.slane %v7061_v13, 7  ;;  %v7069_v22 = vrot.slane %v7067_v5, 6  ;;  %v7072_v53 = vrot.slane %v7070_v55, 7  ;;  %v19627_v5 = vld [vmem:[#allocation8_spill] sm:$0xff] }
 0x46c   : > { %v6736_v20 = vmul.f32 %v16203_v49, %v16350_v29  ;;  %v6737_v19 = vmul.f32 %v16203_v49, %v16356_v61  ;;  %v16447_v59 = vmul.f32 %v16203_v49, %v6698_v32  ;;  %v6751_v56 = vadd.f32 %v16217_v54, %v6708_v18 }
 0x46d   : > { %v7064_v48 = vor.u32 %v7063_v21, %v7060_v33  ;;  %v7073_v12 = vor.u32 %v7072_v53, %v7069_v22  ;;  %v6752_v42 = vadd.f32 %v16217_v54, %v6709_v10  ;;  %v16452_v58 = vadd.f32 %v16217_v54, %v6710_v52  ;;  %v19628_v21 = vld [vmem:[#allocation9_spill] sm:$0xff] }
 0x46e   : > { %v16455_v37 = vadd.f32 %v16217_v54, %v6711_v17  ;;  %vm6787_vm11 = vcmp.gt.f32.partialorder %v6751_v56, 0.0  ;;  %v6823_v61 = vmul.f32 0.1, %v6751_v56  ;;  %v16461_v18 = vadd.f32 %v16217_v54, %v16385_v63 }
 0x46f   : > { %v7065_v11 = vrot.slane %v7064_v48, 4  ;;  %v7454_v27 = vsel %vm13805_vm1, %v7064_v48, %v7453_v14  ;;  %v7075_v49 = vrot.slane %v7073_v12, 4  ;;  %vm6788_vm15 = vcmp.gt.f32.partialorder %v6752_v42, 0.0 }
 0x470   : > { %7455 = vst [vmem:[#allocation3 + $0x8] sm:$0xe] %v7454_v27  ;;  %v6824_v32 = vmul.f32 0.1, %v6752_v42  ;;  %v6859_v10 = vsel %vm6787_vm11, %v6751_v56, %v6823_v61  ;;  %v16466_v17 = vadd.f32 %v16217_v54, %v6713_v9  ;;  %v16469_v13 = vadd.f32 %v16217_v54, %v6714_v2 }
 0x471   : > { %v7074_v52 = vsel %vm16364_vm4, %v7065_v11, %v7073_v12  ;;  %v6913_v55 = vmul.f32 %v19627_v5, %v6859_v10  ;;  %v16474_v33 = vadd.f32 %v16217_v54, %v6715_v0  ;;  %v16477_v63 = vadd.f32 %v16217_v54, %v6716_v15 }
 0x472   : > { %7456 = vst.msk [vmem:[#allocation3 + $0xc] sm:$0xf] %vm19169_vm12, %v7074_v52  ;;  %v6860_v14 = vsel %vm6788_vm15, %v6752_v42, %v6824_v32  ;;  %v16481_v53 = vadd.f32 %v16217_v54, %v6717_v35  ;;  %v16484_v9 = vadd.f32 %v16217_v54, %v6718_v28  ;;  %v16487_v2 = vadd.f32 %v16217_v54, %v6719_v62 }
 0x473   : > { %v6914_v22 = vmul.f32 %v19628_v21, %v6860_v14  ;;  %v11685_v48 = vpack.c.bf16 %v6913_v55, %v6913_v55  ;;  %v16490_v56 = vadd.f32 %v16217_v54, %v6720_v4  ;;  %v16493_v0 = vadd.f32 %v16217_v54, %v6721_v39 }
 0x474   : > { %v16496_v15 = vadd.f32 %v16217_v54, %v6722_v50  ;;  %v16499_v35 = vadd.f32 %v16217_v54, %v6723_v30  ;;  %v16502_v28 = vadd.f32 %v16217_v54, %v6724_v25  ;;  %v16505_v62 = vadd.f32 %v16217_v54, %v6725_v43 }
 0x475   : > { %v11686_v12 = vpack.c.bf16 %v6914_v22, %v6914_v22  ;;  %v7077_v42 = vshrl.u32 %v11685_v48, 16  ;;  %v7080_v11 = vshll.u32 %v11685_v48, 16  ;;  %v16508_v4 = vadd.f32 %v16217_v54, %v6726_v7 }
 0x476   : > { %v16511_v39 = vadd.f32 %v16217_v54, %v6727_v26  ;;  %v16514_v27 = vadd.f32 %v16217_v54, %v6728_v47  ;;  %v16517_v30 = vadd.f32 %v16217_v54, %v6729_v51  ;;  %v16520_v43 = vadd.f32 %v16217_v54, %v6730_v24 }
 0x477   : > { %v7087_v50 = vshrl.u32 %v11686_v12, 16  ;;  %v7090_v29 = vshll.u32 %v11686_v12, 16  ;;  %v7079_v25 = vrot.slane %v7077_v42, 6  ;;  %v7082_v61 = vrot.slane %v7080_v11, 7 }
 0x478   : > { %v16523_v32 = vadd.f32 %v16217_v54, %v6731_v8  ;;  %v16526_v10 = vadd.f32 %v16217_v54, %v6732_v34  ;;  %v16529_v47 = vadd.f32 %v16217_v54, %v6733_v57  ;;  %v16532_v51 = vadd.f32 %v16217_v54, %v6734_v40  ;;  %v12338_v57 = vld [vmem:[#allocation3] sm:$0xfe]  }
 0x479   : > { %v12336_v7 = vld [vmem:[#allocation3 + $0x8] sm:$0xff]   ;;  %v7089_v52 = vrot.slane %v7087_v50, 6  ;;  %v7092_v26 = vrot.slane %v7090_v29, 7  ;;  %v7083_v14 = vor.u32 %v7082_v61, %v7079_v25  ;;  %v16535_v55 = vadd.f32 %v16217_v54, %v6735_v1 }
 0x47a   : > { %v16538_v24 = vadd.f32 %v16217_v54, %v6736_v20  ;;  %v7792_v8 = vor.u32 %v16212_v45, %v7787_v46  ;;  %v7794_v22 = vshll.u32 %v12336_v7, 16  ;;  %v16544_v34 = vadd.f32 %v16217_v54, %v6737_v19  ;;  %v16546_v48 = vld [vmem:[#allocation3 + $0x8] sm:$0xff]  }
 0x47b   : > { %v7084_v40 = vsel %vm16364_vm4, %v7075_v49, %v7083_v14  ;;  %v7085_v12 = vrot.slane %v7083_v14, 4  ;;  %v16550_v1 = vor.u32 %v7092_v26, %v7089_v52  ;;  %v16554_v20 = vadd.f32 %v16217_v54, %v16447_v59 }
 0x47c   : > { %v7796_v31 = vrot.slane %v7794_v22, 1  ;;  %7457 = vst.msk [vmem:[#allocation3 + $0x10] sm:$0xf] %vm19169_vm12, %v7084_v40  ;;  %vm19629_vm1 = vsmask.f32 7424  ;;  %v8136_v19 = vrot.slane %v12338_v57, 1 }
 0x47d   : > { %v7094_v46 = vsel %vm16364_vm4, %v7085_v12, %v16550_v1  ;;  %v8137_v49 = vrot.slane %v16546_v48, 1  ;;  %v7798_v54 = vshrl.u32 %v12336_v7, 16  ;;  %vm6789_vm7 = vcmp.gt.f32.partialorder %v16452_v58, 0.0 }
 0x47e   : > { %v7797_v45 = vsel %vm19629_vm1, %v7792_v8, %v7796_v31  ;;  %7458 = vst.msk [vmem:[#allocation3 + $0x14] sm:$0xf] %vm19169_vm12, %v7094_v46  ;;  %vm6790_vm9 = vcmp.gt.f32.partialorder %v16455_v37, 0.0  ;;  %vm6791_vm10 = vcmp.gt.f32.partialorder %v16461_v18, 0.0  ;;  %vm6792_vm0 = vcmp.gt.f32.partialorder %v16466_v17, 0.0 }
 0x47f   : > { %7934 = vrot.lane.b32.xlu0 %v7797_v45, %s19285_s19  ;;  %v8138_v11 = vsel %vm19630_vm8, %v8136_v19, %v8137_v49  ;;  %vm6793_vm2 = vcmp.gt.f32.partialorder %v16469_v13, 0.0  ;;  %vm6794_vm3 = vcmp.gt.f32.partialorder %v16474_v33, 0.0  ;;  %vm6795_vm5 = vcmp.gt.f32.partialorder %v16477_v63, 0.0 }
 0x480   : > { %v6825_v50 = vmul.f32 0.1, %v16452_v58  ;;  %vm6796_vm13 = vcmp.gt.f32.partialorder %v16481_v53, 0.0  ;;  %v6826_v25 = vmul.f32 0.1, %v16455_v37  ;;  %v7800_v7 = vor.u32 %v7798_v54, %v7796_v31 }
 0x481   : > { %v6827_v52 = vmul.f32 0.1, %v16461_v18  ;;  %v6828_v26 = vmul.f32 0.1, %v16466_v17  ;;  %v6829_v14 = vmul.f32 0.1, %v16469_v13 }
 0x482   : > { %vm6805_vm6 = vcmp.gt.f32.partialorder %v16508_v4, 0.0  ;;  %vm6806_vm14 = vcmp.gt.f32.partialorder %v16511_v39, 0.0  ;;  %v6830_v22 = vmul.f32 0.1, %v16474_v33  ;;  %v6831_v57 = vmul.f32 0.1, %v16477_v63 }
 0x483   : > { %8173 = vrot.lane.b32.xlu0 %v8138_v11, %s12525_s25  ;;  %v6832_v40 = vmul.f32 0.1, %v16481_v53  ;;  %v6833_v12 = vmul.f32 0.1, %v16484_v9  ;;  %v6834_v31 = vmul.f32 0.1, %v16487_v2  ;;  %v16607_v46 = vsel %vm6789_vm7, %v16452_v58, %v6825_v50 }
 0x484   : > { %vm6812_vm12 = vcmp.gt.f32.partialorder %v16529_v47, 0.0  ;;  %vm6813_vm8 = vcmp.gt.f32.partialorder %v16532_v51, 0.0  ;;  %v6835_v19 = vmul.f32 0.1, %v16490_v56  ;;  %v6836_v54 = vmul.f32 0.1, %v16493_v0 }
 0x485   : > { %v12337_v29 = vld [vmem:[#allocation3 + $0x10] sm:$0xff]   ;;  %v6862_v11 = vsel %vm6790_vm9, %v16455_v37, %v6826_v25  ;;  %vm6816_vm7 = vcmp.gt.f32.partialorder %v16544_v34, 0.0  ;;  %vm6820_vm15 = vcmp.gt.f32.partialorder %v16554_v20, 0.0  ;;  %v6837_v58 = vmul.f32 0.1, %v16496_v15 }
 0x486   : > { %v16581_v61 = vld [vmem:[#allocation3 + $0x10] sm:$0xff]   ;;  %v7802_v8 = vshll.u32 %v12337_v29, 16  ;;  %v6838_v50 = vmul.f32 0.1, %v16499_v35  ;;  %v6839_v29 = vmul.f32 0.1, %v16502_v28  ;;  %v6868_v23 = vsel %vm6796_vm13, %v16481_v53, %v6832_v40 }
 0x487   : > { %19631 = vst [vmem:[#allocation21_spill] sm:$0xff] %v16581_v61  ;;  %v19176_v48 = vrot.slane %v16581_v61, 1  ;;  %vm19633_vm11 = vcmask 1046528   ;;  %v6840_v59 = vmul.f32 0.1, %v16505_v62  ;;  %vm19634_vm9 = vcmp.gt.f32.partialorder %v16484_v9, 0.0 }
 0x488   : > { %v16609_v45 = vrot.slane %v7802_v8, 1  ;;  %v6841_v37 = vmul.f32 0.1, %v16508_v4  ;;  %v6842_v25 = vmul.f32 0.1, %v16511_v39  ;;  %vm19640_vm13 = vcmp.gt.f32.partialorder %v16502_v28, 0.0 }
 0x489   : > { %v8140_v8 = vsel %vm19633_vm11, %v8137_v49, %v19176_v48  ;;  %v6843_v3 = vmul.f32 0.1, %v16514_v27  ;;  %v6844_v60 = vmul.f32 0.1, %v16517_v30  ;;  %v6845_v38 = vmul.f32 0.1, %v16520_v43 }
 0x48a   : > { %19632 = vst [vmem:[#allocation23_spill] sm:$0xff] %v16609_v45  ;;  %v7805_v42 = vsel %vm19629_vm1, %v7800_v7, %v16609_v45  ;;  %v6863_v49 = vsel %vm6791_vm10, %v16461_v18, %v6827_v52  ;;  %v6846_v7 = vmul.f32 0.1, %v16523_v32  ;;  %v6847_v48 = vmul.f32 0.1, %v16526_v10  ;;  %v19656_v40 = vld [vmem:[#allocation15_spill] sm:$0xff] }
 0x48b   : > { %7936 = vrot.lane.b32.xlu1 %v7805_v42, %s19285_s19  ;;  %v6848_v21 = vmul.f32 0.1, %v16529_v47  ;;  %v6864_v42 = vsel %vm6792_vm0, %v16466_v17, %v6828_v26  ;;  %v6849_v5 = vmul.f32 0.1, %v16532_v51  ;;  %v6850_v6 = vmul.f32 0.1, %v16535_v55 }
 0x48c   : > { %v6851_v16 = vmul.f32 0.1, %v16538_v24  ;;  %v6865_v18 = vsel %vm6793_vm2, %v16469_v13, %v6829_v14  ;;  %v6852_v52 = vmul.f32 0.1, %v16544_v34  ;;  %v6856_v61 = vmul.f32 0.1, %v16554_v20 }
 0x48d   : > { %v6866_v45 = vsel %vm6794_vm3, %v16474_v33, %v6830_v22  ;;  %v6867_v17 = vsel %vm6795_vm5, %v16477_v63, %v6831_v57  ;;  %v12341_v26 = vld [vmem:[#allocation3 + $0x8] sm:$0xfe]   ;;  %v6869_v13 = vsel %vm19634_vm9, %v16484_v9, %v6833_v12  ;;  %vm19635_vm10 = vcmp.gt.f32.partialorder %v16487_v2, 0.0  ;;  %v16685_v22 = vld [vmem:[#allocation3 + $0x10] sm:$0xff]  }
 0x48e   : > { %v6870_v14 = vsel %vm19635_vm10, %v16487_v2, %v6834_v31  ;;  %vm19636_vm0 = vcmp.gt.f32.partialorder %v16490_v56, 0.0  ;;  %vm19637_vm2 = vcmp.gt.f32.partialorder %v16493_v0, 0.0  ;;  %vm19638_vm3 = vcmp.gt.f32.partialorder %v16496_v15, 0.0  ;;  %v19654_v57 = vld [vmem:[#allocation16_spill] sm:$0xff]  ;;  %v19657_v31 = vld [vmem:[#allocation17_spill] sm:$0xff] }
 0x48f   : > { %8175 = vrot.lane.b32.xlu1 %v8140_v8, %s12525_s25  ;;  %v6871_v33 = vsel %vm19636_vm0, %v16490_v56, %v6835_v19  ;;  %v6872_v63 = vsel %vm19637_vm2, %v16493_v0, %v6836_v54  ;;  %v6873_v53 = vsel %vm19638_vm3, %v16496_v15, %v6837_v58  ;;  %vm19639_vm5 = vcmp.gt.f32.partialorder %v16499_v35, 0.0  ;;  %v19658_v19 = vld [vmem:[#allocation22_spill] sm:$0xff] }
 0x490   : > { %v6874_v9 = vsel %vm19639_vm5, %v16499_v35, %v6838_v50  ;;  %v6875_v2 = vsel %vm19640_vm13, %v16502_v28, %v6839_v29  ;;  %vm19641_vm11 = vcmp.gt.f32.partialorder %v16505_v62, 0.0  ;;  %v6877_v0 = vsel %vm6805_vm6, %v16508_v4, %v6841_v37  ;;  %v19660_v50 = vld [vmem:[#allocation25_spill] sm:$0xff]  ;;  %v19662_v8 = vld [vmem:[#allocation26_spill] sm:$0xff] }
 0x491   : > { %v6876_v56 = vsel %vm19641_vm11, %v16505_v62, %v6840_v59  ;;  %v6878_v15 = vsel %vm6806_vm14, %v16511_v39, %v6842_v25  ;;  %vm19642_vm1 = vcmp.gt.f32.partialorder %v16514_v27, 0.0  ;;  %vm19643_vm9 = vcmp.gt.f32.partialorder %v16517_v30, 0.0  ;;  %v19652_v59 = vld [vmem:[#allocation12_spill] sm:$0xff]  ;;  %v19663_v25 = vld [vmem:[#allocation27_spill] sm:$0xff] }
 0x492   : > { %v6879_v35 = vsel %vm19642_vm1, %v16514_v27, %v6843_v3  ;;  %v6880_v28 = vsel %vm19643_vm9, %v16517_v30, %v6844_v60  ;;  %vm19644_vm10 = vcmp.gt.f32.partialorder %v16520_v43, 0.0  ;;  %vm19645_vm0 = vcmp.gt.f32.partialorder %v16523_v32, 0.0 }
 0x493   : > { %v6881_v62 = vsel %vm19644_vm10, %v16520_v43, %v6845_v38  ;;  %v6882_v4 = vsel %vm19645_vm0, %v16523_v32, %v6846_v7  ;;  %vm19646_vm6 = vcmp.gt.f32.partialorder %v16526_v10, 0.0  ;;  %v6884_v3 = vsel %vm6812_vm12, %v16529_v47, %v6848_v21  ;;  %v19650_v47 = vld [vmem:[#allocation13_spill] sm:$0xff]  ;;  %v19664_v7 = vld [vmem:[#allocation28_spill] sm:$0xff] }
 0x494   : > { %v6883_v39 = vsel %vm19646_vm6, %v16526_v10, %v6847_v48  ;;  %v6885_v60 = vsel %vm6813_vm8, %v16532_v51, %v6849_v5  ;;  %vm19647_vm14 = vcmp.gt.f32.partialorder %v16535_v55, 0.0  ;;  %vm19648_vm2 = vcmp.gt.f32.partialorder %v16538_v24, 0.0  ;;  %v19649_v5 = vld [vmem:[#allocation10_spill] sm:$0xff]  ;;  %v19651_v51 = vld [vmem:[#allocation11_spill] sm:$0xff] }
 0x495   : > { %v6886_v38 = vsel %vm19647_vm14, %v16535_v55, %v6850_v6  ;;  %v6887_v27 = vsel %vm19648_vm2, %v16538_v24, %v6851_v16  ;;  %v6888_v30 = vsel %vm6816_vm7, %v16544_v34, %v6852_v52  ;;  %v6892_v21 = vsel %vm6820_vm15, %v16554_v20, %v6856_v61  ;;  %v12402_v24 = vld [vmem:[#allocation3 + $0x8] sm:$0xff]   ;;  %v19655_v20 = vld [vmem:[#allocation18_spill] sm:$0xff] }
 0x496   : > { %v8375_v43 = vrot.slane %v12341_v26, 1  ;;  %v19184_v32 = vrot.slane %v16685_v22, 1  ;;  %v6915_v10 = vmul.f32 %v19649_v5, %v16607_v46  ;;  %v6916_v6 = vmul.f32 %v19650_v47, %v6862_v11  ;;  %v19659_v11 = vld [vmem:[#allocation24_spill] sm:$0xff]  ;;  %v19667_v26 = vld [vmem:[#allocation35_spill] sm:$0xff] }
 0x497   : > { %v6917_v55 = vmul.f32 %v19651_v51, %v6863_v49  ;;  %v6918_v16 = vmul.f32 %v19652_v59, %v6864_v42  ;;  %vm19653_vm12 = vcmask 1046528   ;;  %v6919_v48 = vmul.f32 %v19654_v57, %v6865_v18  ;;  %v19665_v42 = vld [vmem:[#allocation29_spill] sm:$0xff] }
 0x498   : > { %v8377_v34 = vsel %vm19653_vm12, %v8375_v43, %v19184_v32  ;;  %v6920_v61 = vmul.f32 %v19655_v20, %v6866_v45  ;;  %v6921_v12 = vmul.f32 %v19656_v40, %v6867_v17  ;;  %v6922_v46 = vmul.f32 %v19657_v31, %v6868_v23  ;;  %v19666_v17 = vld [vmem:[#allocation33_spill] sm:$0xff]  ;;  %v19668_v43 = vld [vmem:[#allocation36_spill] sm:$0xff]  ;;  %v19670_v32 = vld [vmem:[#allocation38_spill] sm:$0xff] }
 0x499   : > { %8412 = vrot.lane.b32.xlu0 %v8377_v34, %s12526_s26  ;;  %v6923_v54 = vmul.f32 %v19658_v19, %v6869_v13  ;;  %v6924_v58 = vmul.f32 %v19659_v11, %v6870_v14  ;;  %v6925_v29 = vmul.f32 %v19660_v50, %v6871_v33  ;;  %vm19661_vm15 = vcmask 31744   ;;  %v19669_v34 = vld [vmem:[#allocation37_spill] sm:$0xff]  ;;  %v19671_v50 = vld [vmem:[#allocation39_spill] sm:$0xff]  ;;  %vm19688_vm13 = vmmov %vm19653_vm12 }
 0x49a   : > { %7639 = vst.msk [vmem:[#allocation2 + $0x8] sm:$0xff] %vm19661_vm15, %v12402_v24  ;;  %v6926_v37 = vmul.f32 %v19662_v8, %v6872_v63  ;;  %v6927_v49 = vmul.f32 %v19663_v25, %v6873_v53  ;;  %v6928_v45 = vmul.f32 %v19664_v7, %v6874_v9  ;;  %v6929_v18 = vmul.f32 %v19665_v42, %v6875_v2  ;;  %v19672_v8 = vld [vmem:[#allocation40_spill] sm:$0xff]  ;;  %v19673_v25 = vld [vmem:[#allocation41_spill] sm:$0xff]  ;;  %v19674_v7 = vld [vmem:[#allocation42_spill] sm:$0xff] }
 0x49b   : > { %v6930_v52 = vmul.f32 %v19591_v36, %v6876_v56  ;;  %v6931_v23 = vmul.f32 %v19666_v17, %v6877_v0  ;;  %v6932_v13 = vmul.f32 %v19667_v26, %v6878_v15  ;;  %v6933_v14 = vmul.f32 %v19668_v43, %v6879_v35  ;;  %v19675_v42 = vld [vmem:[#allocation44_spill] sm:$0xff]  ;;  %v19676_v36 = vld [vmem:[#allocation43_spill] sm:$0xff]  ;;  %v19677_v17 = vld [vmem:[#allocation45_spill] sm:$0xff] }
 0x49c   : > { %v6934_v33 = vmul.f32 %v19669_v34, %v6880_v28  ;;  %v6935_v24 = vmul.f32 %v19670_v32, %v6881_v62  ;;  %v6936_v63 = vmul.f32 %v19671_v50, %v6882_v4  ;;  %v6937_v53 = vmul.f32 %v19672_v8, %v6883_v39  ;;  %v19678_v26 = vld [vmem:[#allocation49_spill] sm:$0xff]  ;;  %vm19679_vm8 = vmmov %vm19661_vm15 }
 0x49d   : > { %v6938_v9 = vmul.f32 %v19673_v25, %v6884_v3  ;;  %v6939_v2 = vmul.f32 %v19674_v7, %v6885_v60  ;;  %v6940_v56 = vmul.f32 %v19675_v42, %v6886_v38  ;;  %v6941_v0 = vmul.f32 %v19676_v36, %v6887_v27  ;;  %vm19726_vm1 = vmmov %vm19679_vm8 }
 0x49e   : > { %v6942_v15 = vmul.f32 %v19677_v17, %v6888_v30  ;;  %v16765_v35 = vmul.f32 %v19678_v26, %v6892_v21  ;;  %v11687_v28 = vpack.c.bf16 %v6915_v10, %v6915_v10  ;;  %v11688_v34 = vpack.c.bf16 %v6916_v6, %v6916_v6  ;;  %v12418_v6 = vld [vmem:[#allocation3 + $0x10] sm:$0xff]   ;;  %vm19727_vm9 = vmmov %vm19726_vm1 }
 0x49f   : > { %v16767_v62 = vpack.c.bf16 %v6917_v55, %v6917_v55  ;;  %v16769_v4 = vpack.c.bf16 %v6918_v16, %v6918_v16  ;;  %v16771_v39 = vpack.c.bf16 %v6919_v48, %v6919_v48  ;;  %v16773_v3 = vpack.c.bf16 %v6920_v61, %v6920_v61  ;;  %7640 = vst.msk [vmem:[#allocation2 + $0x10] sm:$0xff] %vm19679_vm8, %v12418_v6 }
 0x4a0   : > { %v7097_v60 = vshrl.u32 %v11687_v28, 16  ;;  %v7100_v7 = vshll.u32 %v11687_v28, 16  ;;  %v7107_v38 = vshrl.u32 %v11688_v34, 16  ;;  %v7110_v42 = vshll.u32 %v11688_v34, 16 }
 0x4a1   : > { %v16775_v27 = vpack.c.bf16 %v6921_v12, %v6921_v12  ;;  %v16777_v30 = vpack.c.bf16 %v6922_v46, %v6922_v46  ;;  %v16779_v21 = vpack.c.bf16 %v6923_v54, %v6923_v54  ;;  %v16781_v10 = vpack.c.bf16 %v6924_v58, %v6924_v58 }
 0x4a2   : > { %v7099_v55 = vrot.slane %v7097_v60, 6  ;;  %v7102_v16 = vrot.slane %v7100_v7, 7  ;;  %v7109_v26 = vrot.slane %v7107_v38, 6  ;;  %v7112_v48 = vrot.slane %v7110_v42, 7 }
 0x4a3   : > { %v16783_v17 = vpack.c.bf16 %v6925_v29, %v6925_v29  ;;  %v16785_v61 = vpack.c.bf16 %v6926_v37, %v6926_v37  ;;  %v16787_v28 = vpack.c.bf16 %v6927_v49, %v6927_v49  ;;  %v16789_v34 = vpack.c.bf16 %v6928_v45, %v6928_v45  ;;  %v12344_v49 = vld [vmem:[#allocation3 + $0x8] sm:$0xfe]   ;;  %v12345_v45 = vld [vmem:[#allocation3 + $0x10] sm:$0xff]  }
 0x4a4   : > { %v7103_v12 = vor.u32 %v7102_v16, %v7099_v55  ;;  %v16792_v46 = vor.u32 %v7112_v48, %v7109_v26  ;;  %v16794_v54 = vpack.c.bf16 %v6929_v18, %v6929_v18  ;;  %v16796_v58 = vpack.c.bf16 %v6930_v52, %v6930_v52 }
 0x4a5   : > { %v16798_v7 = vpack.c.bf16 %v6931_v23, %v6931_v23  ;;  %v16800_v42 = vpack.c.bf16 %v6932_v13, %v6932_v13  ;;  %v16802_v29 = vpack.c.bf16 %v6933_v14, %v6933_v14  ;;  %v16804_v37 = vpack.c.bf16 %v6934_v33, %v6934_v33 }
 0x4a6   : > { %19680 = vst [vmem:[#allocation31_spill] sm:$0xff] %v16792_v46  ;;  %v19681_v60 = vrot.slane %v16550_v1, 4  ;;  %v7105_v38 = vrot.slane %v7103_v12, 4  ;;  %v16810_v18 = vpack.c.bf16 %v6935_v24, %v6935_v24  ;;  %v16812_v52 = vpack.c.bf16 %v6936_v63, %v6936_v63 }
 0x4a7   : > { %vm19682_vm7 = vcmask 27648   ;;  %v16815_v23 = vpack.c.bf16 %v6937_v53, %v6937_v53  ;;  %v16817_v13 = vpack.c.bf16 %v6938_v9, %v6938_v9  ;;  %v16819_v14 = vpack.c.bf16 %v6939_v2, %v6939_v2 }
 0x4a8   : > { %v7104_v26 = vsel %vm16364_vm4, %v19681_v60, %v7103_v12  ;;  %v16821_v33 = vpack.c.bf16 %v6940_v56, %v6940_v56  ;;  %v7114_v1 = vsel %vm16364_vm4, %v7105_v38, %v16792_v46  ;;  %v16826_v6 = vpack.c.bf16 %v6941_v0, %v6941_v0  ;;  %vm19683_vm3 = vmmov %vm19682_vm7 }
 0x4a9   : > { %7459 = vst.msk [vmem:[#allocation3 + $0x18] sm:$0xf] %vm19682_vm7, %v7104_v26  ;;  %v16828_v24 = vpack.c.bf16 %v6942_v15, %v6942_v15  ;;  %v8615_v53 = vshrl.u32 %v12344_v49, 16  ;;  %v8618_v55 = vshll.u32 %v12344_v49, 16  ;;  %v8623_v9 = vshrl.u32 %v12345_v45, 16  ;;  %vm19751_vm0 = vmmov %vm19683_vm3 }
 0x4aa   : > { %7460 = vst.msk [vmem:[#allocation3 + $0x1c] sm:$0xf] %vm19683_vm3, %v7114_v1  ;;  %v8626_v16 = vshll.u32 %v12345_v45, 16  ;;  %vm19684_vm5 = vsmask.f32 6400  ;;  %v7290_v45 = vshll.u32 %v16804_v37, 16  ;;  %vm19755_vm14 = vmmov %vm19751_vm0 }
 0x4ab   : > { %v8617_v0 = vrot.slane %v8615_v53, 1  ;;  %v8620_v60 = vrot.slane %v8618_v55, 2  ;;  %v8625_v15 = vrot.slane %v8623_v9, 1  ;;  %v7200_v9 = vshll.u32 %v16783_v17, 16  ;;  %vm19710_vm11 = vmmov %vm19684_vm5 }
 0x4ac   : > { %v8628_v26 = vrot.slane %v8626_v16, 2  ;;  %v7207_v16 = vshrl.u32 %v16785_v61, 16  ;;  %v19687_v55 = vrot.slane %v16685_v22, 1  ;;  %v7300_v56 = vshll.u32 %v16810_v18, 16  ;;  %vm19756_vm2 = vmmov %vm19751_vm0 }
 0x4ad   : > { %v8621_v63 = vor.u32 %v8620_v60, %v8617_v0  ;;  %v7297_v0 = vshrl.u32 %v16810_v18, 16  ;;  %v19690_v18 = vshll.u32 %v16767_v62, 16  ;;  %v19701_v32 = vshll.u32 %v16775_v27, 16  ;;  %vm19758_vm15 = vmmov %vm19751_vm0 }
 0x4ae   : > { %v16840_v2 = vor.u32 %v8628_v26, %v8625_v15  ;;  %v16857_v26 = vpack.c.bf16 %v16765_v35, %v16765_v35  ;;  %v19707_v19 = vshrl.u32 %v16781_v10, 16  ;;  %v19709_v31 = vshrl.u32 %v16783_v17, 16  ;;  %vm19759_vm8 = vmmov %vm19751_vm0 }
 0x4af   : > { %v16910_v38 = vrot.slane %v19690_v18, 7  ;;  %v19698_v18 = vshrl.u32 %v16773_v3, 16  ;;  %v7162_v43 = vrot.slane %v19701_v32, 7  ;;  %v7202_v40 = vrot.slane %v7200_v9, 7  ;;  %vm19760_vm7 = vmmov %vm19751_vm0 }
 0x4b0   : > { %v8630_v49 = vsel %vm19684_vm5, %v8621_v63, %v16840_v2  ;;  %v7287_v63 = vshrl.u32 %v16804_v37, 16  ;;  %v19689_v37 = vshrl.u32 %v16767_v62, 16  ;;  %v19714_v17 = vshrl.u32 %v16789_v34, 16  ;;  %vm19761_vm3 = vmmov %vm19751_vm0 }
 0x4b1   : > { %v16853_v15 = vld [vmem:[#allocation3 + $0x18] sm:$0xff]   ;;  %8784 = vrot.lane.b32.xlu0 %v8630_v49, %s19686_s17  ;;  %v19692_v49 = vshll.u32 %v16769_v4, 16  ;;  %v7149_v8 = vrot.slane %v19698_v18, 6  ;;  %v19722_v59 = vshrl.u32 %v16800_v42, 16  ;;  %v19724_v51 = vshrl.u32 %v16802_v29, 16  ;;  %vm19762_vm5 = vmmov %vm19751_vm0 }
 0x4b2   : > { %19685 = vst [vmem:[#allocation32_spill] sm:$0xff] %v16853_v15  ;;  %v19186_v53 = vrot.slane %v16853_v15, 1  ;;  %v12346_v1 = vld [vmem:[#allocation3 + $0x18] sm:$0xff]   ;;  %v16906_v36 = vrot.slane %v19689_v37, 6  ;;  %v7289_v47 = vrot.slane %v7287_v63, 6  ;;  %v7292_v5 = vrot.slane %v7290_v45, 7 }
 0x4b3   : > { %v8632_v12 = vshrl.u32 %v12346_v1, 16  ;;  %v8635_v35 = vshll.u32 %v12346_v1, 16  ;;  %v19696_v1 = vshll.u32 %v16771_v39, 16  ;;  %v12348_v45 = vld [vmem:[#allocation3 + $0x10] sm:$0xff]   ;;  %vm19747_vm10 = vcmask 1045504  }
 0x4b4   : > { %v8379_v60 = vsel %vm19688_vm13, %v19687_v55, %v19186_v53  ;;  %v19691_v55 = vshrl.u32 %v16769_v4, 16  ;;  %v16918_v53 = vrot.slane %v19692_v49, 7  ;;  %v19700_v4 = vshrl.u32 %v16775_v27, 16  ;;  %vm19752_vm6 = vmmov %vm19747_vm10 }
 0x4b5   : > { %8414 = vrot.lane.b32.xlu1 %v8379_v60, %s12526_s26  ;;  %v19694_v60 = vshrl.u32 %v16771_v39, 16  ;;  %v16926_v37 = vrot.slane %v19696_v1, 7  ;;  %v8634_v25 = vrot.slane %v8632_v12, 1  ;;  %v8637_v62 = vrot.slane %v8635_v35, 2  ;;  %vm19757_vm12 = vmmov %vm19752_vm6 }
 0x4b6   : > { %v16914_v22 = vrot.slane %v19691_v55, 6  ;;  %19693 = vst [vmem:[#allocation34_spill] sm:$0xff] %v16918_v53  ;;  %v19699_v55 = vshll.u32 %v16773_v3, 16  ;;  %v7159_v49 = vrot.slane %v19700_v4, 6  ;;  %v19703_v39 = vshll.u32 %v16777_v30, 16  ;;  %vm19763_vm13 = vmmov %vm19751_vm0 }
 0x4b7   : > { %v16922_v48 = vrot.slane %v19694_v60, 6  ;;  %19697 = vst [vmem:[#allocation50_spill] sm:$0xff] %v16926_v37  ;;  %v19702_v60 = vshrl.u32 %v16777_v30, 16  ;;  %v16940_v12 = vor.u32 %v8637_v62, %v8634_v25  ;;  %v19705_v35 = vshrl.u32 %v16779_v21, 16 }
 0x4b8   : > { %v7152_v50 = vrot.slane %v19699_v55, 7  ;;  %v7172_v1 = vrot.slane %v19703_v39, 7  ;;  %v19706_v3 = vshll.u32 %v16779_v21, 16  ;;  %v7189_v4 = vrot.slane %v19707_v19, 6 }
 0x4b9   : > { %19695 = vst [vmem:[#allocation5_spill] sm:$0xff] %v16922_v48  ;;  %v7169_v11 = vrot.slane %v19702_v60, 6  ;;  %19704 = vst [vmem:[#allocation51_spill] sm:$0xff] %v16940_v12  ;;  %v7179_v18 = vrot.slane %v19705_v35, 6  ;;  %v19708_v27 = vshll.u32 %v16781_v10, 16  ;;  %v7199_v60 = vrot.slane %v19709_v31, 6 }
 0x4ba   : > { %v7182_v55 = vrot.slane %v19706_v3, 7  ;;  %v7209_v30 = vrot.slane %v7207_v16, 6  ;;  %v8639_v25 = vsel %vm19710_vm11, %v16840_v2, %v16940_v12  ;;  %v19711_v62 = vshll.u32 %v16785_v61, 16  ;;  %vm19764_vm11 = vmmov %vm19751_vm0 }
 0x4bb   : > { %v7192_v32 = vrot.slane %v19708_v27, 7  ;;  %v19712_v21 = vshrl.u32 %v16787_v28, 16  ;;  %v19713_v19 = vshll.u32 %v16787_v28, 16  ;;  %8786 = vrot.lane.b32.xlu1 %v8639_v25, %s19686_s17  ;;  %v7229_v31 = vrot.slane %v19714_v17, 6 }
 0x4bc   : > { %v7212_v39 = vrot.slane %v19711_v62, 7  ;;  %v19715_v10 = vshll.u32 %v16789_v34, 16  ;;  %v19716_v16 = vshrl.u32 %v16794_v54, 16  ;;  %v19717_v61 = vshll.u32 %v16794_v54, 16  ;;  %v12401_v34 = vld [vmem:[#allocation3] sm:$0xff]  }
 0x4bd   : > { %v7219_v35 = vrot.slane %v19712_v21, 6  ;;  %v7222_v3 = vrot.slane %v19713_v19, 7  ;;  %v19718_v62 = vshrl.u32 %v16796_v58, 16  ;;  %v19719_v28 = vshll.u32 %v16796_v58, 16  ;;  %7638 = vst.msk [vmem:[#allocation2] sm:$0xff] %vm19726_vm1, %v12401_v34  ;;  %vm19765_vm1 = vmmov %vm19751_vm0 }
 0x4be   : > { %v7232_v9 = vrot.slane %v19715_v10, 7  ;;  %v7239_v2 = vrot.slane %v19716_v16, 6  ;;  %v7242_v27 = vrot.slane %v19717_v61, 7  ;;  %v19720_v25 = vshrl.u32 %v16798_v7, 16  ;;  %v12422_v10 = vld [vmem:[#allocation3 + $0x18] sm:$0xff]  }
 0x4bf   : > { %v7249_v21 = vrot.slane %v19718_v62, 6  ;;  %v7252_v19 = vrot.slane %v19719_v28, 7  ;;  %v19721_v17 = vshll.u32 %v16798_v7, 16  ;;  %v7269_v16 = vrot.slane %v19722_v59, 6  ;;  %v12347_v7 = vld [vmem:[#allocation3 + $0x8] sm:$0xfc]  }
 0x4c0   : > { %v7259_v20 = vrot.slane %v19720_v25, 6  ;;  %v19723_v54 = vshll.u32 %v16800_v42, 16  ;;  %v7279_v62 = vrot.slane %v19724_v51, 6  ;;  %v19725_v58 = vshll.u32 %v16802_v29, 16  ;;  %7641 = vst.msk [vmem:[#allocation2 + $0x18] sm:$0xff] %vm19727_vm9, %v12422_v10  ;;  %vm19766_vm9 = vmmov %vm19751_vm0 }
 0x4c1   : > { %v7262_v57 = vrot.slane %v19721_v17, 7  ;;  %v7299_v25 = vrot.slane %v7297_v0, 6  ;;  %v7302_v12 = vrot.slane %v7300_v56, 7  ;;  %v19728_v59 = vshrl.u32 %v16812_v52, 16 }
 0x4c2   : > { %v7272_v61 = vrot.slane %v19723_v54, 7  ;;  %v7282_v28 = vrot.slane %v19725_v58, 7  ;;  %v19729_v42 = vshll.u32 %v16812_v52, 16  ;;  %v19730_v51 = vshrl.u32 %v16815_v23, 16 }
 0x4c3   : > { %v7309_v17 = vrot.slane %v19728_v59, 6  ;;  %v19731_v29 = vshll.u32 %v16815_v23, 16  ;;  %v19732_v56 = vshrl.u32 %v16817_v13, 16  ;;  %v19733_v34 = vshll.u32 %v16817_v13, 16 }
 0x4c4   : > { %v7312_v54 = vrot.slane %v19729_v42, 7  ;;  %v7319_v15 = vrot.slane %v19730_v51, 6  ;;  %v19734_v10 = vshrl.u32 %v16819_v14, 16  ;;  %v19735_v59 = vshll.u32 %v16819_v14, 16 }
 0x4c5   : > { %v7322_v63 = vrot.slane %v19731_v29, 7  ;;  %v7329_v0 = vrot.slane %v19732_v56, 6  ;;  %v7332_v58 = vrot.slane %v19733_v34, 7  ;;  %v19736_v42 = vshrl.u32 %v16821_v33, 16 }
 0x4c6   : > { %v7339_v41 = vrot.slane %v19734_v10, 6  ;;  %v7342_v52 = vrot.slane %v19735_v59, 7  ;;  %v19737_v51 = vshll.u32 %v16821_v33, 16  ;;  %v19738_v29 = vshrl.u32 %v16826_v6, 16 }
 0x4c7   : > { %v7349_v44 = vrot.slane %v19736_v42, 6  ;;  %v19739_v56 = vshll.u32 %v16826_v6, 16  ;;  %v19740_v13 = vshrl.u32 %v16828_v24, 16  ;;  %v19741_v10 = vshll.u32 %v16828_v24, 16  ;;  %v19744_v6 = vld [vmem:[#allocation34_spill] sm:$0xff] }
 0x4c8   : > { %v7352_v23 = vrot.slane %v19737_v51, 7  ;;  %v7359_v46 = vrot.slane %v19738_v29, 6  ;;  %v19742_v14 = vshrl.u32 %v16857_v26, 16  ;;  %v19743_v42 = vshll.u32 %v16857_v26, 16  ;;  %v19746_v24 = vld [vmem:[#allocation50_spill] sm:$0xff] }
 0x4c9   : > { %v7362_v37 = vrot.slane %v19739_v56, 7  ;;  %v7369_v34 = vrot.slane %v19740_v13, 6  ;;  %v7372_v48 = vrot.slane %v19741_v10, 7  ;;  %v8986_v33 = vrot.slane %v12347_v7, 2  ;;  %v19745_v13 = vld [vmem:[#allocation5_spill] sm:$0xff] }
 0x4ca   : > { %v7409_v59 = vrot.slane %v19742_v14, 6  ;;  %v7412_v53 = vrot.slane %v19743_v42, 7  ;;  %v8987_v51 = vrot.slane %v12348_v45, 2  ;;  %v17022_v29 = vor.u32 %v16910_v38, %v16906_v36 }
 0x4cb   : > { %v17026_v56 = vor.u32 %v19744_v6, %v16914_v22  ;;  %v17030_v10 = vor.u32 %v19746_v24, %v19745_v13  ;;  %v17032_v14 = vor.u32 %v7152_v50, %v7149_v8  ;;  %v17034_v26 = vor.u32 %v7162_v43, %v7159_v49  ;;  %v19753_v13 = vld [vmem:[#allocation20_spill] sm:$0xff] }
 0x4cc   : > { %v17036_v42 = vor.u32 %v7172_v1, %v7169_v11  ;;  %v8988_v7 = vsel %vm19747_vm10, %v8986_v33, %v8987_v51  ;;  %v17039_v45 = vor.u32 %v7182_v55, %v7179_v18  ;;  %v17041_v36 = vor.u32 %v7192_v32, %v7189_v4  ;;  %v17054_v11 = vld [vmem:[#allocation3 + $0x18] sm:$0xff]   ;;  %vm19767_vm10 = vmmov %vm19751_vm0 }
 0x4cd   : > { %v17043_v38 = vor.u32 %v7202_v40, %v7199_v60  ;;  %9023 = vrot.lane.b32.xlu0 %v8988_v7, %s19204_s24  ;;  %v17046_v22 = vor.u32 %v7212_v39, %v7209_v30  ;;  %v17048_v6 = vor.u32 %v7222_v3, %v7219_v35  ;;  %v17050_v50 = vor.u32 %v7232_v9, %v7229_v31 }
 0x4ce   : > { %v17052_v8 = vor.u32 %v7242_v27, %v7239_v2  ;;  %v17056_v43 = vor.u32 %v7252_v19, %v7249_v21  ;;  %v17058_v49 = vor.u32 %v7262_v57, %v7259_v20  ;;  %v17060_v1 = vor.u32 %v7272_v61, %v7269_v16  ;;  %v12350_v16 = vld [vmem:[#allocation3 + $0x10] sm:$0xfc]  }
 0x4cf   : > { %v17062_v40 = vor.u32 %v7282_v28, %v7279_v62  ;;  %v17064_v18 = vor.u32 %v7292_v5, %v7289_v47  ;;  %v17066_v55 = vor.u32 %v7302_v12, %v7299_v25  ;;  %v17068_v4 = vor.u32 %v7312_v54, %v7309_v17  ;;  %v19748_v47 = vld [vmem:[#allocation31_spill] sm:$0xff] }
 0x4d0   : > { %v17070_v32 = vor.u32 %v7322_v63, %v7319_v15  ;;  %v17072_v60 = vor.u32 %v7332_v58, %v7329_v0  ;;  %v17074_v30 = vor.u32 %v7342_v52, %v7339_v41  ;;  %v17076_v39 = vor.u32 %v7352_v23, %v7349_v44  ;;  %v17110_v17 = vld [vmem:[#allocation3 + $0x18] sm:$0xff]  }
 0x4d1   : > { %v17078_v57 = vor.u32 %v7362_v37, %v7359_v46  ;;  %v17080_v20 = vor.u32 %v7372_v48, %v7369_v34  ;;  %v17082_v35 = vor.u32 %v7412_v53, %v7409_v59  ;;  %v19193_v5 = vrot.slane %v17054_v11, 2 }
 0x4d2   : > { %v19749_v12 = vrot.slane %v19748_v47, 4  ;;  %v7125_v31 = vrot.slane %v17022_v29, 4  ;;  %v7135_v41 = vrot.slane %v17026_v56, 4  ;;  %v7145_v44 = vrot.slane %v17030_v10, 4 }
 0x4d3   : > { %v7155_v46 = vrot.slane %v17032_v14, 4  ;;  %v8990_v48 = vsel %vm19752_vm6, %v8987_v51, %v19193_v5  ;;  %v7165_v53 = vrot.slane %v17034_v26, 4  ;;  %v7175_v37 = vrot.slane %v17036_v42, 4  ;;  %vm19768_vm6 = vmmov %vm19751_vm0 }
 0x4d4   : > { %v7124_v15 = vsel %vm16364_vm4, %v19749_v12, %v17022_v29  ;;  %v7185_v9 = vrot.slane %v17039_v45, 4  ;;  %9025 = vrot.lane.b32.xlu1 %v8990_v48, %s19204_s24  ;;  %v7195_v2 = vrot.slane %v17041_v36, 4  ;;  %v7205_v27 = vrot.slane %v17043_v38, 4 }
 0x4d5   : > { %7461 = vst.msk [vmem:[#allocation3 + $0x20] sm:$0xf] %vm19751_vm0, %v7124_v15  ;;  %v7215_v21 = vrot.slane %v17046_v22, 4  ;;  %v7225_v19 = vrot.slane %v17048_v6, 4  ;;  %v7235_v61 = vrot.slane %v17050_v50, 4  ;;  %v7245_v62 = vrot.slane %v17052_v8, 4 }
 0x4d6   : > { %v7255_v28 = vrot.slane %v17056_v43, 4  ;;  %v7265_v25 = vrot.slane %v17058_v49, 4  ;;  %v7275_v54 = vrot.slane %v17060_v1, 4  ;;  %v7285_v63 = vrot.slane %v17062_v40, 4 }
 0x4d7   : > { %v7295_v0 = vrot.slane %v17064_v18, 4  ;;  %v7305_v58 = vrot.slane %v17066_v55, 4  ;;  %v7315_v52 = vrot.slane %v17068_v4, 4  ;;  %v7325_v23 = vrot.slane %v17070_v32, 4 }
 0x4d8   : > { %v7335_v34 = vrot.slane %v17072_v60, 4  ;;  %v7345_v59 = vrot.slane %v17074_v30, 4  ;;  %v7355_v33 = vrot.slane %v17076_v39, 4  ;;  %v7365_v51 = vrot.slane %v17078_v57, 4 }
 0x4d9   : > { %v7375_v29 = vrot.slane %v17080_v20, 4  ;;  %v19754_v24 = vrot.slane %v19753_v13, 4  ;;  %v7415_v47 = vrot.slane %v17082_v35, 4  ;;  %v9225_v12 = vrot.slane %v12350_v16, 2 }
 0x4da   : > { %v9226_v15 = vrot.slane %v17110_v17, 2  ;;  %v7134_v48 = vsel %vm16364_vm4, %v7125_v31, %v17026_v56  ;;  %v7144_v5 = vsel %vm16364_vm4, %v7135_v41, %v17030_v10  ;;  %v7154_v13 = vsel %vm16364_vm4, %v7145_v44, %v17032_v14  ;;  %v19777_v44 = vld [vmem:[#allocation4_spill] sm:$0xff]  ;;  %v12513_v17 = vld [vmem:[#allocation3 + $0x10] sm:$0xff]  }
 0x4db   : > { %v7414_v7 = vsel %vm16364_vm4, %v19754_v24, %v17082_v35  ;;  %v7164_v35 = vsel %vm16364_vm4, %v7155_v46, %v17034_v26  ;;  %v7174_v16 = vsel %vm16364_vm4, %v7165_v53, %v17036_v42  ;;  %7462 = vst.msk [vmem:[#allocation3 + $0x24] sm:$0xf] %vm19756_vm2, %v7134_v48  ;;  %v7184_v10 = vsel %vm16364_vm4, %v7175_v37, %v17039_v45  ;;  %vm19770_vm2 = vmmov %vm19751_vm0 }
 0x4dc   : > { %7490 = vst.msk [vmem:[#allocation3 + $0x94] sm:$0xf] %vm19755_vm14, %v7414_v7  ;;  %v9227_v56 = vsel %vm19757_vm12, %v9225_v12, %v9226_v15  ;;  %v7194_v14 = vsel %vm16364_vm4, %v7185_v9, %v17041_v36  ;;  %v7204_v26 = vsel %vm16364_vm4, %v7195_v2, %v17043_v38  ;;  %v7214_v42 = vsel %vm16364_vm4, %v7205_v27, %v17046_v22  ;;  %v7491_v22 = vld [vmem:[#allocation3 + $0x98] sm:$0x3]  ;;  %vm19769_vm14 = vmmov %vm19751_vm0  ;;  %v12356_v2 = vld [vmem:[#allocation3 + $0x10] sm:$0xf8]  }
 0x4dd   : > { %7463 = vst.msk [vmem:[#allocation3 + $0x28] sm:$0xf] %vm19758_vm15, %v7144_v5  ;;  %9262 = vrot.lane.b32.xlu0 %v9227_v56, %s12527_s27  ;;  %v7224_v45 = vsel %vm16364_vm4, %v7215_v21, %v17048_v6  ;;  %v7234_v36 = vsel %vm16364_vm4, %v7225_v19, %v17050_v50  ;;  %v7244_v38 = vsel %vm16364_vm4, %v7235_v61, %v17052_v8  ;;  %v12353_v5 = vld [vmem:[#allocation3 + $0x10] sm:$0xfc]   ;;  %vm19771_vm12 = vmmov %vm19751_vm0  ;;  %v12357_v27 = vld [vmem:[#allocation3 + $0x18] sm:$0xff]   ;;  %v7806_v12 = vshrl.u32 %v12513_v17, 16 }
 0x4de   : > { %7464 = vst.msk [vmem:[#allocation3 + $0x2c] sm:$0xf] %vm19759_vm8, %v7154_v13  ;;  %v7254_v6 = vsel %vm16364_vm4, %v7245_v62, %v17056_v43  ;;  %v7264_v50 = vsel %vm16364_vm4, %v7255_v28, %v17058_v49  ;;  %v7274_v8 = vsel %vm16364_vm4, %v7265_v25, %v17060_v1  ;;  %v7284_v31 = vsel %vm16364_vm4, %v7275_v54, %v17062_v40  ;;  %v12354_v43 = vld [vmem:[#allocation3 + $0x18] sm:$0xff]   ;;  %vm19772_vm15 = vmmov %vm19751_vm0 }
 0x4df   : > { %7465 = vst.msk [vmem:[#allocation3 + $0x30] sm:$0xf] %vm19760_vm7, %v7164_v35  ;;  %v7294_v49 = vsel %vm16364_vm4, %v7285_v63, %v17064_v18  ;;  %v7304_v1 = vsel %vm16364_vm4, %v7295_v0, %v17066_v55  ;;  %v7314_v40 = vsel %vm16364_vm4, %v7305_v58, %v17068_v4  ;;  %v7324_v41 = vsel %vm16364_vm4, %v7315_v52, %v17070_v32  ;;  %vm19773_vm8 = vmmov %vm19751_vm0  ;;  %v12358_v61 = vld [vmem:[#allocation3 + $0x18] sm:$0xff]  }
 0x4e0   : > { %7466 = vst.msk [vmem:[#allocation3 + $0x34] sm:$0xf] %vm19761_vm3, %v7174_v16  ;;  %v7334_v18 = vsel %vm16364_vm4, %v7325_v23, %v17072_v60  ;;  %v7344_v55 = vsel %vm16364_vm4, %v7335_v34, %v17074_v30  ;;  %v7354_v4 = vsel %vm16364_vm4, %v7345_v59, %v17076_v39  ;;  %v7364_v32 = vsel %vm16364_vm4, %v7355_v33, %v17078_v57  ;;  %vm19774_vm7 = vmmov %vm19751_vm0  ;;  %v12417_v60 = vld [vmem:[%s19043_s6] sm:$0xff]   ;;  %v19787_v13 = vld [vmem:[#allocation23_spill] sm:$0xff] }
 0x4e1   : > { %7467 = vst.msk [vmem:[#allocation3 + $0x38] sm:$0xf] %vm19762_vm5, %v7184_v10  ;;  %vm19775_vm3 = vmmov %vm19751_vm0  ;;  %v7374_v30 = vsel %vm16364_vm4, %v7365_v51, %v17080_v20  ;;  %v19776_v39 = vld [vmem:[#allocation14_spill] sm:$0xff]  ;;  %vm19778_vm5 = vnez %v19777_v44  ;;  %v9465_v53 = vshrl.u32 %v12353_v5, 16  ;;  %v9468_v20 = vshll.u32 %v12353_v5, 16  ;;  %11845 = vmatprep.subr.bf16.mxu1 %v12417_v60 }
 0x4e2   : > { %7468 = vst.msk [vmem:[#allocation3 + $0x3c] sm:$0xf] %vm19763_vm13, %v7194_v14  ;;  %v7384_v57 = vsel %vm16364_vm4, %v7375_v29, %v19776_v39  ;;  %v7492_v46 = vsel %vm19778_vm5, %v7415_v47, %v7491_v22  ;;  %vm19779_vm13 = vmmov %vm19751_vm0  ;;  %v17242_v37 = vld [vmem:[#allocation3 + $0x20] sm:$0xff]   ;;  %v9473_v3 = vshrl.u32 %v12354_v43, 16  ;;  %v9476_v9 = vshll.u32 %v12354_v43, 16  ;;  %11846 = vmatpush3.bf16.msra.mxu1 %v12417_v60  ;;  %v12361_v56 = vld [vmem:[#allocation3 + $0x18] sm:$0xff]  }
 0x4e3   : > { %7469 = vst.msk [vmem:[#allocation3 + $0x40] sm:$0xf] %vm19764_vm11, %v7204_v26  ;;  %vm19780_vm11 = vmmov %vm19751_vm0  ;;  %v9467_v21 = vrot.slane %v9465_v53, 2  ;;  %v12355_v19 = vld [vmem:[#allocation3 + $0x20] sm:$0xff]   ;;  %v9228_v62 = vrot.slane %v17242_v37, 2  ;;  %v9470_v28 = vrot.slane %v9468_v20, 3  ;;  %v7808_v35 = vor.u32 %v7806_v12, %v19787_v13 }
 0x4e4   : > { %7470 = vst.msk [vmem:[#allocation3 + $0x44] sm:$0xf] %vm19765_vm1, %v7214_v42  ;;  %vm19781_vm1 = vmmov %vm19751_vm0  ;;  %v9475_v25 = vrot.slane %v9473_v3, 2  ;;  %v9478_v54 = vrot.slane %v9476_v9, 3  ;;  %v9482_v63 = vshrl.u32 %v12355_v19, 16  ;;  %v9485_v0 = vshll.u32 %v12355_v19, 16 }
 0x4e5   : > { %7471 = vst.msk [vmem:[#allocation3 + $0x48] sm:$0xf] %vm19766_vm9, %v7224_v45  ;;  %vm19782_vm9 = vmmov %vm19751_vm0  ;;  %vm19784_vm4 = vcmask 1045504   ;;  %v9471_v52 = vor.u32 %v9470_v28, %v9467_v21  ;;  %v7810_v33 = vshll.u32 %v12358_v61, 16  ;;  %v9836_v29 = vrot.slane %v12356_v2, 3  ;;  %v17254_v7 = vld [vmem:[#allocation3 + $0x20] sm:$0xff]  }
 0x4e6   : > { %7472 = vst.msk [vmem:[#allocation3 + $0x4c] sm:$0xf] %vm19767_vm10, %v7234_v36  ;;  %vm19783_vm10 = vmmov %vm19751_vm0  ;;  %v9229_v58 = vsel %vm19784_vm4, %v9226_v15, %v9228_v62  ;;  %v9479_v23 = vor.u32 %v9478_v54, %v9475_v25  ;;  %v9484_v34 = vrot.slane %v9482_v63, 2  ;;  %v9487_v59 = vrot.slane %v9485_v0, 3  ;;  %v17259_v15 = vld [vmem:[#allocation3 + $0x20] sm:$0xff]   ;;  %v17300_v25 = vld [vmem:[#allocation3 + $0x28] sm:$0xff]  }
 0x4e7   : > { %7473 = vst.msk [vmem:[#allocation3 + $0x50] sm:$0xf] %vm19751_vm0, %v7244_v38  ;;  %7487 = vst.msk [vmem:[#allocation3 + $0x88] sm:$0xf] %vm19751_vm0, %v7384_v57  ;;  %9264 = vrot.lane.b32.xlu1 %v9229_v58, %s12527_s27  ;;  %v9837_v24 = vrot.slane %v12357_v27, 3  ;;  %v7812_v16 = vrot.slane %v7810_v33, 1 }
 0x4e8   : > { %7474 = vst.msk [vmem:[#allocation3 + $0x54] sm:$0xf] %vm19768_vm6, %v7254_v6  ;;  %7493 = vst [vmem:[#allocation3 + $0x98] sm:$0x3] %v7492_v46  ;;  %vm19785_vm6 = vsmask.f32 5376  ;;  %v17257_v47 = vor.u32 %v9487_v59, %v9484_v34 }
 0x4e9   : > { %7475 = vst.msk [vmem:[#allocation3 + $0x58] sm:$0xf] %vm19769_vm14, %v7264_v50  ;;  %v9480_v51 = vsel %vm19785_vm6, %v9471_v52, %v9479_v23  ;;  %vm19786_vm14 = vmmov %vm19785_vm6  ;;  %v9839_v14 = vrot.slane %v17254_v7, 3  ;;  %v12365_v26 = vld [vmem:[#allocation3 + $0x20] sm:$0xff]   ;;  %v7814_v42 = vshrl.u32 %v12358_v61, 16  ;;  %v7818_v45 = vshll.u32 %v17259_v15, 16 }
 0x4ea   : > { %7476 = vst.msk [vmem:[#allocation3 + $0x5c] sm:$0xf] %vm19770_vm2, %v7274_v8  ;;  %9634 = vrot.lane.b32.xlu0 %v9480_v51, %s19208_s15  ;;  %v9489_v48 = vsel %vm19786_vm14, %v9479_v23, %v17257_v47  ;;  %vm19788_vm2 = vcmask 1044480   ;;  %v17269_v36 = vld [vmem:[#allocation3 + $0x20] sm:$0xff]   ;;  %v8141_v22 = vrot.slane %v12361_v56, 1  ;;  %v12366_v50 = vld [vmem:[#allocation3 + $0x28] sm:$0xff]   ;;  %vm19806_vm0 = vmmov %vm19784_vm4 }
 0x4eb   : > { %7477 = vst.msk [vmem:[#allocation3 + $0x60] sm:$0xf] %vm19771_vm12, %v7284_v31  ;;  %9636 = vrot.lane.b32.xlu1 %v9489_v48, %s19208_s15  ;;  %v9838_v10 = vsel %vm19788_vm2, %v9836_v29, %v9837_v24  ;;  %vm19789_vm12 = vsmask.f32 7424  ;;  %v7816_v5 = vor.u32 %v7814_v42, %v7812_v16  ;;  %v12363_v6 = vld [vmem:[#allocation3 + $0x20] sm:$0xff]   ;;  %v8641_v31 = vshrl.u32 %v12365_v26, 16  ;;  %vm19808_vm6 = vmmov %vm19806_vm0 }
 0x4ec   : > { %7478 = vst.msk [vmem:[#allocation3 + $0x64] sm:$0xf] %vm19772_vm15, %v7294_v49  ;;  %v7813_v38 = vsel %vm19789_vm12, %v7808_v35, %v7812_v16  ;;  %vm19790_vm15 = vmmov %vm19788_vm2  ;;  %v8644_v43 = vshll.u32 %v12365_v26, 16  ;;  %v17277_v49 = vrot.slane %v7818_v45, 1  ;;  %v12367_v53 = vld [vmem:[#allocation3 + $0x20] sm:$0xff]   ;;  %v12371_v61 = vld [vmem:[#allocation3 + $0x28] sm:$0xff]  }
 0x4ed   : > { %7479 = vst.msk [vmem:[#allocation3 + $0x68] sm:$0xf] %vm19773_vm8, %v7304_v1  ;;  %v9840_v8 = vsel %vm19790_vm15, %v9837_v24, %v9839_v14  ;;  %v8143_v1 = vrot.slane %v17269_v36, 1  ;;  %vm19791_vm8 = vmmov %vm19789_vm12  ;;  %v8643_v39 = vrot.slane %v8641_v31, 1  ;;  %v19797_v2 = vld [vmem:[#allocation32_spill] sm:$0xff]  ;;  %v8991_v58 = vrot.slane %v12367_v53, 2 }
 0x4ee   : > { %7480 = vst.msk [vmem:[#allocation3 + $0x6c] sm:$0xf] %vm19774_vm7, %v7314_v40  ;;  %9873 = vrot.lane.b32.xlu0 %v9838_v10, %s19203_s28  ;;  %v17280_v40 = vld [vmem:[#allocation3 + $0x28] sm:$0xff]   ;;  %vm19794_vm7 = vcmask 1046528   ;;  %v8646_v57 = vrot.slane %v8644_v43, 2  ;;  %v19798_v27 = vrot.slane %v19797_v2, 1  ;;  %vm19809_vm14 = vmmov %vm19806_vm0 }
 0x4ef   : > { %7481 = vst.msk [vmem:[#allocation3 + $0x70] sm:$0xf] %vm19775_vm3, %v7324_v41  ;;  %7938 = vrot.lane.b32.xlu1 %v7813_v38, %s19285_s19  ;;  %v7821_v41 = vsel %vm19791_vm8, %v7816_v5, %v17277_v49  ;;  %vm19795_vm3 = vcmask 64544   ;;  %v8382_v46 = vrot.slane %v17280_v40, 1  ;;  %vm19796_vm5 = vmmov %vm19794_vm7  ;;  %v12369_v54 = vld [vmem:[#allocation3 + $0x28] sm:$0xff]   ;;  %v12372_v52 = vld [vmem:[#allocation3 + $0x30] sm:$0xff]  }
 0x4f0   : > { %7482 = vst.msk [vmem:[#allocation3 + $0x74] sm:$0xf] %vm19779_vm13, %v7334_v18  ;;  %v8380_v18 = vrot.slane %v12363_v6, 1  ;;  %v8144_v20 = vsel %vm19796_vm5, %v8141_v22, %v8143_v1  ;;  %vm19799_vm13 = vmmov %vm19796_vm5  ;;  %v8647_v19 = vor.u32 %v8646_v57, %v8643_v39  ;;  %v19802_v23 = vld [vmem:[#allocation51_spill] sm:$0xff]  ;;  %v9491_v59 = vshrl.u32 %v12371_v61, 16  ;;  %v17312_v29 = vld [vmem:[#allocation3 + $0x30] sm:$0xff]  }
 0x4f1   : > { %7483 = vst.msk [vmem:[#allocation3 + $0x78] sm:$0xf] %vm19780_vm11, %v7344_v55  ;;  %v8650_v55 = vshrl.u32 %v12366_v50, 16  ;;  %v7935_v44 = vpop.permute.xlu0 %7934  ;;  %vm19800_vm11 = vcmask 97344   ;;  %v9494_v33 = vshll.u32 %v12371_v61, 16  ;;  %v8993_v51 = vrot.slane %v17300_v25, 2  ;;  %vm19807_vm4 = vmmov %vm19795_vm3 }
 0x4f2   : > { %7484 = vst.msk [vmem:[#allocation3 + $0x7c] sm:$0xf] %vm19781_vm1, %v7354_v4  ;;  %9875 = vrot.lane.b32.xlu0 %v9840_v8, %s19203_s28  ;;  %v8653_v4 = vshll.u32 %v12366_v50, 16  ;;  %v8381_v21 = vsel %vm19799_vm13, %v19798_v27, %v8380_v18  ;;  %vm19801_vm1 = vmmov %vm19796_vm5  ;;  %v9230_v17 = vrot.slane %v12369_v54, 2  ;;  %v9500_v12 = vshrl.u32 %v12372_v52, 16  ;;  %v12374_v42 = vld [vmem:[#allocation3 + $0x28] sm:$0xff]  }
 0x4f3   : > { %7485 = vst.msk [vmem:[#allocation3 + $0x80] sm:$0xf] %vm19782_vm9, %v7364_v32  ;;  %7940 = vrot.lane.b32.xlu1 %v7821_v41, %s19285_s19  ;;  %v19792_v32 = vld [vmem:[#allocation21_spill] sm:$0xff]  ;;  %v8652_v3 = vrot.slane %v8650_v55, 1  ;;  %v8383_v63 = vsel %vm19801_vm1, %v8380_v18, %v8382_v46  ;;  %vm19803_vm9 = vsmask.f32 6400  ;;  %v8994_v45 = vsel %vm19808_vm6, %v8991_v58, %v8993_v51  ;;  %vm19810_vm2 = vmmov %vm19800_vm11 }
 0x4f4   : > { %7486 = vst.msk [vmem:[#allocation3 + $0x84] sm:$0xf] %vm19783_vm10, %v7374_v30  ;;  %v19793_v60 = vrot.slane %v19792_v32, 1  ;;  %v8655_v9 = vrot.slane %v8653_v4, 2  ;;  %v8648_v34 = vsel %vm19803_vm9, %v19802_v23, %v8647_v19  ;;  %vm19804_vm10 = vmmov %vm19803_vm9  ;;  %v9503_v48 = vshll.u32 %v12372_v52, 16  ;;  %v12373_v6 = vld [vmem:[#allocation3 + $0x28] sm:$0xff]  }
 0x4f5   : > { %7988 = vst.msk [vmem:[#allocation2] sm:$0xff] %vm19795_vm3, %v7935_v44  ;;  %v8174_v28 = vpop.permute.xlu0 %8173  ;;  %v19805_v13 = vrot.slane %v17054_v11, 2  ;;  %v9493_v16 = vrot.slane %v9491_v59, 2  ;;  %v9496_v56 = vrot.slane %v9494_v33, 3  ;;  %v9232_v26 = vrot.slane %v17312_v29, 2  ;;  %vm19811_vm12 = vmmov %vm19806_vm0  ;;  %v17340_v41 = vld [vmem:[#allocation3 + $0x30] sm:$0xff]  }
 0x4f6   : > { %v8142_v30 = vsel %vm19794_vm7, %v19793_v60, %v8141_v22  ;;  %8227 = vst.msk [vmem:[#allocation2] sm:$0xff] %vm19800_vm11, %v8174_v28  ;;  %v17305_v0 = vor.u32 %v8655_v9, %v8652_v3  ;;  %v9502_v38 = vrot.slane %v9500_v12, 2  ;;  %v9505_v5 = vrot.slane %v9503_v48, 3  ;;  %v17344_v55 = vld [vmem:[#allocation3 + $0x30] sm:$0xff]   ;;  %v12382_v2 = vld [vmem:[#allocation3 + $0x38] sm:$0xff]   ;;  %vm19819_vm9 = vmmov %vm19801_vm1 }
 0x4f7   : > { %8177 = vrot.lane.b32.xlu0 %v8142_v30, %s12525_s25  ;;  %8179 = vrot.lane.b32.xlu1 %v8144_v20, %s12525_s25  ;;  %v8992_v35 = vsel %vm19806_vm0, %v19805_v13, %v8991_v58  ;;  %v9231_v11 = vsel %vm19809_vm14, %v9228_v62, %v9230_v17  ;;  %v9497_v22 = vor.u32 %v9496_v56, %v9493_v16  ;;  %v7826_v43 = vshll.u32 %v12374_v42, 16  ;;  %v12377_v30 = vld [vmem:[#allocation3 + $0x28] sm:$0xff]   ;;  %v12381_v57 = vld [vmem:[#allocation3 + $0x30] sm:$0xff]   ;;  %v17368_v28 = vld [vmem:[#allocation3 + $0x38] sm:$0xff]  }
 0x4f8   : > { %v8657_v24 = vsel %vm19804_vm10, %v8647_v19, %v17305_v0  ;;  %v9233_v8 = vsel %vm19811_vm12, %v9230_v17, %v9232_v26  ;;  %v17335_v31 = vor.u32 %v9505_v5, %v9502_v38  ;;  %vm19812_vm15 = vsmask.f32 5376  ;;  %v17356_v20 = vld [vmem:[#allocation3 + $0x30] sm:$0xff]   ;;  %vm19820_vm10 = vmmov %vm19801_vm1  ;;  %v12387_v13 = vld [vmem:[#allocation3 + $0x38] sm:$0xff]  }
 0x4f9   : > { %v9498_v37 = vsel %vm19812_vm15, %v17257_v47, %v9497_v22  ;;  %v9841_v62 = vrot.slane %v12373_v6, 3  ;;  %v7822_v18 = vshrl.u32 %v17259_v15, 16  ;;  %vm19813_vm8 = vmmov %vm19812_vm15  ;;  %v7828_v60 = vrot.slane %v7826_v43, 1  ;;  %v12385_v16 = vld [vmem:[#allocation3 + $0x38] sm:$0xff]  }
 0x4fa   : > { %v9507_v4 = vsel %vm19813_vm8, %v9497_v22, %v17335_v31  ;;  %vm19814_vm7 = vcmask 1044480   ;;  %v9843_v39 = vrot.slane %v17340_v41, 3  ;;  %v7830_v15 = vshrl.u32 %v12374_v42, 16  ;;  %vm19821_vm0 = vmmov %vm19801_vm1  ;;  %v17398_v22 = vld [vmem:[#allocation3 + $0x40] sm:$0xff]  }
 0x4fb   : > { %8416 = vrot.lane.b32.xlu0 %v8381_v21, %s12526_s26  ;;  %8418 = vrot.lane.b32.xlu1 %v8383_v63, %s12526_s26  ;;  %v7824_v32 = vor.u32 %v7822_v18, %v17277_v49  ;;  %v9842_v47 = vsel %vm19814_vm7, %v9839_v14, %v9841_v62  ;;  %v7834_v44 = vshll.u32 %v17344_v55, 16  ;;  %v12379_v49 = vld [vmem:[#allocation3 + $0x30] sm:$0xff]   ;;  %vm19815_vm3 = vcmask 130144   ;;  %vm19817_vm13 = vmmov %vm19814_vm7 }
 0x4fc   : > { %vm19816_vm5 = vsmask.f32 7424  ;;  %v7832_v9 = vor.u32 %v7830_v15, %v7828_v60  ;;  %v8145_v7 = vrot.slane %v12377_v30, 1  ;;  %v9844_v14 = vsel %vm19817_vm13, %v9841_v62, %v9843_v39  ;;  %vm19824_vm14 = vmmov %vm19811_vm12  ;;  %v12389_v62 = vld [vmem:[#allocation3 + $0x38] sm:$0xff]  }
 0x4fd   : > { %v7937_v10 = vpop.permute.xlu1 %7936  ;;  %v7829_v3 = vsel %vm19816_vm5, %v7824_v32, %v7828_v60  ;;  %v8659_v27 = vshrl.u32 %v12381_v57, 16  ;;  %v8662_v21 = vshll.u32 %v12381_v57, 16  ;;  %v17365_v19 = vrot.slane %v7834_v44, 1  ;;  %vm19818_vm11 = vmmov %vm19816_vm5  ;;  %v12421_v57 = vld [vmem:[%s19043_s6 + $0x8] sm:$0xff]  }
 0x4fe   : > { %7989 = vst.msk [vmem:[#allocation2 + $0x8] sm:$0xff] %vm19807_vm4, %v7937_v10  ;;  %v8147_v61 = vrot.slane %v17356_v20, 1  ;;  %v8384_v63 = vrot.slane %v12379_v49, 1  ;;  %v8668_v58 = vshrl.u32 %v12382_v2, 16  ;;  %v8671_v52 = vshll.u32 %v12382_v2, 16  ;;  %11847 = vmatprep.subr.bf16.mxu1 %v12421_v57 }
 0x4ff   : > { %8788 = vrot.lane.b32.xlu0 %v8648_v34, %s19686_s17  ;;  %8790 = vrot.lane.b32.xlu1 %v8657_v24, %s19686_s17  ;;  %v7837_v54 = vsel %vm19818_vm11, %v7832_v9, %v17365_v19  ;;  %v8146_v23 = vsel %vm19801_vm1, %v8143_v1, %v8145_v7  ;;  %v8661_v34 = vrot.slane %v8659_v27, 1  ;;  %v8664_v59 = vrot.slane %v8662_v21, 2  ;;  %v12383_v24 = vld [vmem:[#allocation3 + $0x30] sm:$0xff]   ;;  %v17432_v9 = vld [vmem:[#allocation3 + $0x40] sm:$0xff]   ;;  %v12393_v27 = vld [vmem:[#allocation3 + $0x38] sm:$0xff]  }
 0x500   : > { %v8386_v33 = vrot.slane %v17368_v28, 1  ;;  %v8148_v17 = vsel %vm19819_vm9, %v8145_v7, %v8147_v61  ;;  %v8670_v12 = vrot.slane %v8668_v58, 1  ;;  %v8673_v48 = vrot.slane %v8671_v52, 2  ;;  %11848 = vmatpush3.bf16.msra.mxu1 %v12421_v57  ;;  %v12425_v2 = vld [vmem:[%s19043_s6 + $0x10] ss:$0 sps:$4 sm:$0x33]  }
 0x501   : > { %v8176_v50 = vpop.permute.xlu1 %8175  ;;  %v8385_v36 = vsel %vm19820_vm10, %v8382_v46, %v8384_v63  ;;  %v8665_v1 = vor.u32 %v8664_v59, %v8661_v34  ;;  %v8995_v42 = vrot.slane %v12383_v24, 2  ;;  %vm19822_vm4 = vsmask.f32 6400  ;;  %v12397_v58 = vld [vmem:[#allocation3 + $0x40] sm:$0xff]  }
 0x502   : > { %8228 = vst.msk [vmem:[#allocation2 + $0x8] sm:$0xff] %vm19810_vm2, %v8176_v50  ;;  %v8387_v56 = vsel %vm19821_vm0, %v8384_v63, %v8386_v33  ;;  %v17391_v10 = vor.u32 %v8673_v48, %v8670_v12  ;;  %v9509_v46 = vshrl.u32 %v12387_v13, 16  ;;  %v9512_v38 = vshll.u32 %v12387_v13, 16  ;;  %vm19823_vm6 = vmmov %vm19822_vm4  ;;  %v17448_v34 = vld [vmem:[#allocation3 + $0x40] sm:$0xff]   ;;  %v12398_v12 = vld [vmem:[#allocation3 + $0x48] sm:$0xff]  }
 0x503   : > { %9027 = vrot.lane.b32.xlu0 %v8992_v35, %s19204_s24  ;;  %9029 = vrot.lane.b32.xlu1 %v8994_v45, %s19204_s24  ;;  %v17386_v35 = vld [vmem:[#allocation3 + $0x38] sm:$0xff]   ;;  %v12388_v45 = vld [vmem:[#allocation3 + $0x40] sm:$0xff]   ;;  %v8666_v40 = vsel %vm19822_vm4, %v17305_v0, %v8665_v1  ;;  %v8996_v0 = vsel %vm19824_vm14, %v8993_v51, %v8995_v42  ;;  %v9236_v18 = vrot.slane %v17398_v22, 2  ;;  %vm19825_vm2 = vmmov %vm19811_vm12  ;;  %vm19827_vm15 = vcmask 162944  }
 0x504   : > { %v8997_v5 = vrot.slane %v17386_v35, 2  ;;  %v8675_v6 = vsel %vm19823_vm6, %v8665_v1, %v17391_v10  ;;  %v9518_v50 = vshrl.u32 %v12388_v45, 16  ;;  %v9511_v43 = vrot.slane %v9509_v46, 2  ;;  %vm19826_vm12 = vmmov %vm19825_vm2  ;;  %v17459_v13 = vld [vmem:[#allocation3 + $0x48] sm:$0xff]  }
 0x505   : > { %vm19828_vm8 = vmmov %vm19825_vm2  ;;  %v9845_v29 = vrot.slane %v12389_v62, 3  ;;  %vm19829_vm7 = vsmask.f32 5376  ;;  %vm19830_vm5 = vcmask 130144   ;;  %vm19832_vm11 = vcmask 1044480   ;;  %v12405_v62 = vld [vmem:[#allocation3 + $0x48] sm:$0xff]  }
 0x506   : > { %v8998_v32 = vsel %vm19825_vm2, %v8995_v42, %v8997_v5  ;;  %v9520_v60 = vrot.slane %v9518_v50, 2  ;;  %vm19831_vm13 = vmmov %vm19829_vm7  ;;  %vm19833_vm1 = vsmask.f32 7424  ;;  %v8680_v48 = vshll.u32 %v12397_v58, 16  ;;  %v12438_v50 = vld [vmem:[#allocation3 + $0x20] sm:$0xff]  }
 0x507   : > { %9266 = vrot.lane.b32.xlu0 %v9231_v11, %s12527_s27  ;;  %9268 = vrot.lane.b32.xlu1 %v9233_v8, %s12527_s27  ;;  %v9234_v11 = vrot.slane %v12385_v16, 2  ;;  %v9521_v8 = vshll.u32 %v12388_v45, 16  ;;  %vm19834_vm9 = vmmov %vm19832_vm11  ;;  %v8151_v1 = vrot.slane %v17448_v34, 1  ;;  %v8689_v42 = vshll.u32 %v12398_v12, 16 }
 0x508   : > { %vm19835_vm10 = vmmov %vm19833_vm1  ;;  %vm19839_vm2 = vcmask 31744   ;;  %v9530_v57 = vshll.u32 %v12405_v62, 16 }
 0x509   : > { %v9523_v30 = vrot.slane %v9521_v8, 3  ;;  %v9235_v25 = vsel %vm19826_vm12, %v9232_v26, %v9234_v11  ;;  %v9237_v44 = vsel %vm19828_vm8, %v9234_v11, %v9236_v18  ;;  %v7838_v26 = vshrl.u32 %v17344_v55, 16  ;;  %v12399_v11 = vld [vmem:[#allocation3 + $0x40] sm:$0xff]   ;;  %vm19836_vm4 = vmmov %vm19827_vm15  ;;  %7642 = vst.msk [vmem:[#allocation2 + $0x20] sm:$0xff] %vm19839_vm2, %v12438_v50 }
 0x50a   : > { %vm19837_vm6 = vmmov %vm19821_vm0  ;;  %v8691_v20 = vrot.slane %v8689_v42, 2 }
 0x50b   : > { %9638 = vrot.lane.b32.xlu0 %v9498_v37, %s19208_s15  ;;  %9640 = vrot.lane.b32.xlu1 %v9507_v4, %s19208_s15  ;;  %v8413_v53 = vpop.permute.xlu0 %8412  ;;  %v9514_v37 = vrot.slane %v9512_v38, 3  ;;  %v12390_v4 = vld [vmem:[#allocation3 + $0x38] sm:$0xff]   ;;  %v8682_v38 = vrot.slane %v8680_v48, 2  ;;  %vm19838_vm14 = vmmov %vm19821_vm0  ;;  %v12411_v48 = vld [vmem:[#allocation3 + $0x48] sm:$0xff]  }
 0x50c   : > { %8466 = vst.msk [vmem:[#allocation2] sm:$0xff] %vm19815_vm3, %v8413_v53  ;;  %v7842_v15 = vshll.u32 %v12390_v4, 16  ;;  %v17423_v53 = vor.u32 %v9523_v30, %v9520_v60  ;;  %vm10045_vm3 = vcmask 1041408   ;;  %v7846_v52 = vshrl.u32 %v12390_v4, 16  ;;  %v17479_v4 = vld [vmem:[#allocation3 + $0x48] sm:$0xff]   ;;  %vm19840_vm12 = vmmov %vm19821_vm0 }
 0x50d   : > { %v9515_v51 = vor.u32 %v9514_v37, %v9511_v43  ;;  %11888 = vmatprep.subr.msk.bf16.mxu1 %vm10045_vm3, %v12425_v2  ;;  %v10047_v21 = vsel %vm10045_vm3, %v12425_v2, 0  ;;  %v8999_v60 = vrot.slane %v12399_v11, 2  ;;  %v12403_v30 = vld [vmem:[#allocation3 + $0x48] sm:$0xff]   ;;  %vm19842_vm8 = vmmov %vm19839_vm2  ;;  %v17537_v11 = vld [vmem:[#allocation3 + $0x50] sm:$0xff]  }
 0x50e   : > { %v7844_v55 = vrot.slane %v7842_v15, 1  ;;  %11850 = vmatpush3.bf16.msra.mxu1 %v10047_v21  ;;  %v9001_v15 = vrot.slane %v17479_v4, 2  ;;  %v9238_v2 = vrot.slane %v12403_v30, 2  ;;  %v17550_v30 = vld [vmem:[#allocation3 + $0x58] sm:$0xff]   ;;  %v12477_v4 = vld [vmem:[#allocation3 + $0x48] sm:$0xff]  }
 0x50f   : > { %9877 = vrot.lane.b32.xlu0 %v9842_v47, %s19203_s28  ;;  %7942 = vrot.lane.b32.xlu1 %v7829_v3, %s19285_s19  ;;  %v9516_v49 = vsel %vm19829_vm7, %v17335_v31, %v9515_v51  ;;  %v17429_v3 = vld [vmem:[#allocation3 + $0x40] sm:$0xff]   ;;  %v7840_v31 = vor.u32 %v7838_v26, %v17365_v19  ;;  %vm6909_vm7 = vcmask 26624  }
 0x510   : > { %v9847_v63 = vrot.slane %v17429_v3, 3  ;;  %v12395_v19 = vld [vmem:[#allocation3 + $0x40] sm:$0xff]   ;;  %v7848_v24 = vor.u32 %v7846_v52, %v7844_v55  ;;  %v12408_v52 = vld [vmem:[#allocation3 + $0x48] sm:$0xff]  }
 0x511   : > { %v7845_v59 = vsel %vm19833_vm1, %v7840_v31, %v7844_v55 }
 0x512   : > { %v9848_v41 = vsel %vm19834_vm9, %v9845_v29, %v9847_v63 }
 0x513   : > { %9879 = vrot.lane.b32.xlu0 %v9844_v14, %s19203_s28  ;;  %7944 = vrot.lane.b32.xlu1 %v7837_v54, %s19285_s19  ;;  %v9525_v14 = vsel %vm19831_vm13, %v9515_v51, %v17423_v53  ;;  %v9846_v54 = vsel %vm19832_vm11, %v9843_v39, %v9845_v29  ;;  %v8677_v39 = vshrl.u32 %v12397_v58, 16  ;;  %v19843_v29 = vmov 0  }
 0x514   : > { %6910 = vst.msk [vmem:[#allocation3 + $0xa0] sm:$0x7] %vm6909_vm7, %v19843_v29  ;;  %vm19846_vm13 = vcmask 195744  }
 0x515   : > { %v8679_v46 = vrot.slane %v8677_v39, 1  ;;  %v17525_v39 = vld [vmem:[#allocation3 + $0x50] sm:$0xff]  }
 0x517   : > { %8181 = vrot.lane.b32.xlu0 %v8146_v23, %s12525_s25  ;;  %8183 = vrot.lane.b32.xlu1 %v8148_v17, %s12525_s25  ;;  %v7850_v23 = vshll.u32 %v17432_v9, 16  ;;  %v8149_v17 = vrot.slane %v12393_v27, 1  ;;  %v8683_v37 = vor.u32 %v8682_v38, %v8679_v46  ;;  %v7862_v46 = vshrl.u32 %v12408_v52, 16 }
 0x518   : > { %v7866_v38 = vshll.u32 %v17525_v39, 16 }
 0x519   : > { %v8150_v45 = vsel %vm19821_vm0, %v8147_v61, %v8149_v17  ;;  %v8152_v8 = vsel %vm19837_vm6, %v8149_v17, %v8151_v1  ;;  %vm19851_vm0 = vmmov %vm19846_vm13  ;;  %vm19853_vm6 = vcmask 1044480  }
 0x51b   : > { %8420 = vrot.lane.b32.xlu0 %v8385_v36, %s12526_s26  ;;  %8422 = vrot.lane.b32.xlu1 %v8387_v56, %s12526_s26  ;;  %v17456_v36 = vrot.slane %v7850_v23, 1  ;;  %v8686_v56 = vshrl.u32 %v12398_v12, 16  ;;  %v12407_v23 = vld [vmem:[#allocation3 + $0x48] sm:$0xff]  }
 0x51c   : > { %v9849_v22 = vrot.slane %v12407_v23, 3 }
 0x51d   : > { %v7853_v16 = vsel %vm19835_vm10, %v7848_v24, %v17456_v36  ;;  %v8688_v43 = vrot.slane %v8686_v56, 1  ;;  %v7858_v24 = vshll.u32 %v12408_v52, 16  ;;  %vm19850_vm10 = vsmask.f32 5376  ;;  %v12427_v52 = vld [vmem:[#allocation3 + $0x60] sm:$0xff]  }
 0x51f   : > { %8792 = vrot.lane.b32.xlu0 %v8666_v40, %s19686_s17  ;;  %8794 = vrot.lane.b32.xlu1 %v8675_v6, %s19686_s17  ;;  %v8388_v40 = vrot.slane %v12395_v19, 1  ;;  %v7860_v42 = vrot.slane %v7858_v24, 1  ;;  %v17583_v24 = vld [vmem:[#allocation3 + $0x60] sm:$0xff]  }
 0x521   : > { %v8389_v61 = vsel %vm19838_vm14, %v8386_v33, %v8388_v40  ;;  %v9527_v33 = vshrl.u32 %v12405_v62, 16  ;;  %vm19854_vm14 = vmmov %vm19839_vm2  ;;  %vm19855_vm2 = vsmask.f32 7424  ;;  %v17547_v62 = vrot.slane %v7866_v38, 1 }
 0x522   : > { %vm19858_vm7 = vmmov %vm19855_vm2 }
 0x523   : > { %9031 = vrot.lane.b32.xlu0 %v8996_v0, %s19204_s24  ;;  %9033 = vrot.lane.b32.xlu1 %v8998_v32, %s19204_s24  ;;  %v8785_v47 = vpop.permute.xlu0 %8784  ;;  %v8390_v0 = vrot.slane %v17459_v13, 1  ;;  %v12406_v32 = vld [vmem:[#allocation3 + $0x50] sm:$0xff]   ;;  %v9529_v55 = vrot.slane %v9527_v33, 2 }
 0x524   : > { %8838 = vst.msk [vmem:[#allocation2] sm:$0xff] %vm19827_vm15, %v8785_v47  ;;  %v17484_v47 = vor.u32 %v8691_v20, %v8688_v43  ;;  %vm19841_vm15 = vsmask.f32 6400 }
 0x525   : > { %v8391_v51 = vsel %vm19840_vm12, %v8388_v40, %v8390_v0  ;;  %v8684_v28 = vsel %vm19841_vm15, %v17391_v10, %v8683_v37  ;;  %vm19844_vm3 = vmmov %vm19841_vm15  ;;  %vm19857_vm15 = vcmask 228544  }
 0x526   : > { %v8693_v26 = vsel %vm19844_vm3, %v8683_v37, %v17484_v47  ;;  %vm19856_vm12 = vmmov %vm19853_vm6  ;;  %v12459_v37 = vld [vmem:[#allocation3 + $0x38] sm:$0xff]   ;;  %vm19859_vm3 = vcmask 1046528  }
 0x527   : > { %9270 = vrot.lane.b32.xlu0 %v9235_v25, %s12527_s27  ;;  %9272 = vrot.lane.b32.xlu1 %v9237_v44, %s12527_s27  ;;  %v8415_v7 = vpop.permute.xlu1 %8414  ;;  %v12441_v25 = vld [vmem:[#allocation3 + $0x28] sm:$0xff]   ;;  %v17492_v44 = vld [vmem:[#allocation3 + $0x50] sm:$0xff]   ;;  %7645 = vst.msk [vmem:[#allocation2 + $0x38] sm:$0xff] %vm19842_vm8, %v12459_v37 }
 0x528   : > { %8467 = vst.msk [vmem:[#allocation2 + $0x8] sm:$0xff] %vm19830_vm5, %v8415_v7  ;;  %v9539_v7 = vshll.u32 %v12406_v32, 16  ;;  %vm19845_vm5 = vcmask 1045504   ;;  %v9240_v21 = vrot.slane %v17492_v44, 2 }
 0x529   : > { %7643 = vst.msk [vmem:[#allocation2 + $0x28] sm:$0xff] %vm19842_vm8, %v12441_v25  ;;  %v9000_v10 = vsel %vm19845_vm5, %v8997_v5, %v8999_v60  ;;  %vm19847_vm11 = vmmov %vm19845_vm5 }
 0x52a   : > { %v9002_v27 = vsel %vm19847_vm11, %v8999_v60, %v9001_v15  ;;  %v9541_v58 = vrot.slane %v9539_v7, 3  ;;  %vm19848_vm1 = vmmov %vm19845_vm5  ;;  %v8394_v7 = vrot.slane %v17550_v30, 1 }
 0x52b   : > { %9642 = vrot.lane.b32.xlu0 %v9516_v49, %s19208_s15  ;;  %9644 = vrot.lane.b32.xlu1 %v9525_v14, %s19208_s15  ;;  %v9536_v49 = vshrl.u32 %v12406_v32, 16  ;;  %v9532_v14 = vrot.slane %v9530_v57, 3  ;;  %v9239_v35 = vsel %vm19848_vm1, %v9236_v18, %v9238_v2  ;;  %vm19849_vm9 = vmmov %vm19848_vm1  ;;  %v7854_v18 = vshrl.u32 %v17432_v9, 16  ;;  %v12456_v9 = vld [vmem:[#allocation3 + $0x30] sm:$0xff]  }
 0x52c   : > { %v9241_v19 = vsel %vm19849_vm9, %v9238_v2, %v9240_v21  ;;  %7644 = vst.msk [vmem:[#allocation2 + $0x30] sm:$0xff] %vm19854_vm14, %v12456_v9  ;;  %v8155_v32 = vrot.slane %v17537_v11, 1  ;;  %vm19860_vm5 = vmmov %vm19859_vm3  ;;  %vm19864_vm9 = vcmask 261344   ;;  %vm19869_vm14 = vcmask 1045504  }
 0x52d   : > { %v8787_v6 = vpop.permute.xlu1 %8786  ;;  %v9533_v5 = vor.u32 %v9532_v14, %v9529_v55  ;;  %v7856_v56 = vor.u32 %v7854_v18, %v17456_v36  ;;  %v12413_v36 = vld [vmem:[#allocation3 + $0x50] sm:$0xff]   ;;  %vm19862_vm11 = vmmov %vm19857_vm15 }
 0x52e   : > { %8839 = vst.msk [vmem:[#allocation2 + $0x8] sm:$0xff] %vm19836_vm4, %v8787_v6  ;;  %vm19852_vm4 = vmmov %vm19850_vm10  ;;  %v8153_v6 = vrot.slane %v12411_v48, 1  ;;  %v8392_v60 = vrot.slane %v12413_v36, 1  ;;  %v12419_v55 = vld [vmem:[#allocation3 + $0x50] sm:$0xff]  }
 0x52f   : > { %9881 = vrot.lane.b32.xlu0 %v9846_v54, %s19203_s28  ;;  %7946 = vrot.lane.b32.xlu1 %v7845_v59, %s19285_s19  ;;  %v9538_v54 = vrot.slane %v9536_v49, 2  ;;  %v9534_v12 = vsel %vm19850_vm10, %v17423_v53, %v9533_v5  ;;  %v9850_v53 = vsel %vm19853_vm6, %v9847_v63, %v9849_v22  ;;  %v7861_v50 = vsel %vm19855_vm2, %v7856_v56, %v7860_v42  ;;  %v12416_v63 = vld [vmem:[#allocation3 + $0x58] sm:$0xff]   ;;  %vm19863_vm1 = vmmov %vm19859_vm3 }
 0x530   : > { %v8154_v33 = vsel %vm19859_vm3, %v8151_v1, %v8153_v6  ;;  %v8156_v49 = vsel %vm19860_vm5, %v8153_v6, %v8155_v32  ;;  %vm19865_vm10 = vsmask.f32 6400  ;;  %v9003_v23 = vrot.slane %v12419_v55, 2  ;;  %vm19870_vm2 = vmmov %vm19842_vm8  ;;  %v12492_v55 = vld [vmem:[#allocation3 + $0x50] sm:$0xff]  }
 0x531   : > { %v17515_v59 = vor.u32 %v9541_v58, %v9538_v54  ;;  %v9554_v56 = vshrl.u32 %v12427_v52, 16  ;;  %vm19868_vm6 = vcmask 294144   ;;  %vm19875_vm5 = vmmov %vm19870_vm2 }
 0x532   : > { %vm19873_vm8 = vmmov %vm19868_vm6  ;;  %7647 = vst.msk [vmem:[#allocation2 + $0x48] sm:$0xff] %vm19875_vm5, %v12477_v4 }
 0x533   : > { %9883 = vrot.lane.b32.xlu0 %v9848_v41, %s19203_s28  ;;  %7948 = vrot.lane.b32.xlu1 %v7853_v16, %s19285_s19  ;;  %v17520_v41 = vld [vmem:[#allocation3 + $0x50] sm:$0xff]   ;;  %v9543_v16 = vsel %vm19852_vm4, %v9533_v5, %v17515_v59  ;;  %vm19867_vm4 = vmmov %vm19865_vm10  ;;  %v9556_v6 = vrot.slane %v9554_v56, 2 }
 0x534   : > { %v9851_v40 = vrot.slane %v17520_v41, 3 }
 0x536   : > { %v9852_v20 = vsel %vm19856_vm12, %v9849_v22, %v9851_v40  ;;  %vm19871_vm12 = vcmask 64544  }
 0x537   : > { %8185 = vrot.lane.b32.xlu0 %v8150_v45, %s12525_s25  ;;  %8187 = vrot.lane.b32.xlu1 %v8152_v8, %s12525_s25  ;;  %v12415_v45 = vld [vmem:[#allocation3 + $0x50] sm:$0xff]   ;;  %v7864_v8 = vor.u32 %v7862_v46, %v7860_v42  ;;  %v9557_v42 = vshll.u32 %v12427_v52, 16 }
 0x538   : > { %v8695_v43 = vshrl.u32 %v12415_v45, 16 }
 0x539   : > { %v7869_v25 = vsel %vm19858_vm7, %v7864_v8, %v17547_v62  ;;  %v9559_v36 = vrot.slane %v9557_v42, 3  ;;  %vm19874_vm7 = vmmov %vm19869_vm14 }
 0x53a   : > { %v8697_v57 = vrot.slane %v8695_v43, 1 }
 0x53b   : > { %8424 = vrot.lane.b32.xlu0 %v8389_v61, %s12526_s26  ;;  %8426 = vrot.lane.b32.xlu1 %v8391_v51, %s12526_s26  ;;  %v8698_v61 = vshll.u32 %v12415_v45, 16  ;;  %v8704_v51 = vshrl.u32 %v12416_v63, 16  ;;  %v9004_v45 = vsel %vm19869_vm14, %v9001_v15, %v9003_v23  ;;  %v17611_v37 = vor.u32 %v9559_v36, %v9556_v6  ;;  %v12439_v6 = vld [vmem:[#allocation3 + $0x60] sm:$0xff]  }
 0x53d   : > { %v8700_v29 = vrot.slane %v8698_v61, 2 }
 0x53f   : > { %8796 = vrot.lane.b32.xlu0 %v8684_v28, %s19686_s17  ;;  %8798 = vrot.lane.b32.xlu1 %v8693_v26, %s19686_s17  ;;  %v9024_v31 = vpop.permute.xlu0 %9023  ;;  %v8707_v28 = vshll.u32 %v12416_v63, 16  ;;  %v12426_v26 = vld [vmem:[#allocation3 + $0x58] sm:$0xff]   ;;  %v8701_v1 = vor.u32 %v8700_v29, %v8697_v57 }
 0x540   : > { %9077 = vst.msk [vmem:[#allocation2] sm:$0xff] %vm19846_vm13, %v9024_v31  ;;  %vm19861_vm13 = vmmov %vm19859_vm3  ;;  %v17569_v31 = vld [vmem:[#allocation3 + $0x58] sm:$0xff]   ;;  %v9545_v54 = vshrl.u32 %v12426_v26, 16  ;;  %v9548_v58 = vshll.u32 %v12426_v26, 16  ;;  %vm9990_vm3 = vcmask 293888  }
 0x541   : > { %v8709_v2 = vrot.slane %v8707_v28, 2  ;;  %v8393_v34 = vsel %vm19861_vm13, %v8390_v0, %v8392_v60  ;;  %v8702_v0 = vsel %vm19865_vm10, %v17484_v47, %v8701_v1  ;;  %v12474_v47 = vld [vmem:[#allocation3 + $0x40] sm:$0xff]   ;;  %vm19876_vm13 = vmmov %vm19871_vm12 }
 0x542   : > { %v9547_v22 = vrot.slane %v9545_v54, 2  ;;  %7646 = vst.msk [vmem:[#allocation2 + $0x40] sm:$0xff] %vm19870_vm2, %v12474_v47  ;;  %v17622_v28 = vld [vmem:[#allocation3 + $0x60] sm:$0xff]   ;;  %vm19885_vm2 = vsmask.f32 7424 }
 0x543   : > { %9035 = vrot.lane.b32.xlu0 %v9000_v10, %s19204_s24  ;;  %9037 = vrot.lane.b32.xlu1 %v9002_v27, %s19204_s24  ;;  %v8706_v10 = vrot.slane %v8704_v51, 1  ;;  %v12423_v27 = vld [vmem:[#allocation3 + $0x58] sm:$0xff]   ;;  %v7870_v51 = vshrl.u32 %v17525_v39, 16 }
 0x545   : > { %v17575_v5 = vor.u32 %v8709_v2, %v8706_v10  ;;  %v12432_v10 = vld [vmem:[#allocation3 + $0x58] sm:$0xff]  }
 0x546   : > { %v9026_v17 = vpop.permute.xlu1 %9025  ;;  %v8157_v52 = vrot.slane %v12432_v10, 1 }
 0x547   : > { %9274 = vrot.lane.b32.xlu0 %v9239_v35, %s12527_s27  ;;  %9276 = vrot.lane.b32.xlu1 %v9241_v19, %s12527_s27  ;;  %9078 = vst.msk [vmem:[#allocation2 + $0x8] sm:$0xff] %vm19851_vm0, %v9026_v17  ;;  %v8395_v35 = vsel %vm19863_vm1, %v8392_v60, %v8394_v7  ;;  %v9005_v19 = vrot.slane %v17569_v31, 2  ;;  %vm19866_vm0 = vmmov %vm19864_vm9  ;;  %v8711_v18 = vsel %vm19867_vm4, %v8701_v1, %v17575_v5  ;;  %vm19878_vm1 = vcmask 97344  }
 0x548   : > { %vm19880_vm10 = vmmov %vm19878_vm1  ;;  %vm19882_vm4 = vcmask 130144  }
 0x54b   : > { %9646 = vrot.lane.b32.xlu0 %v9534_v12, %s19208_s15  ;;  %9648 = vrot.lane.b32.xlu1 %v9543_v16, %s19208_s15  ;;  %v9242_v12 = vrot.slane %v12423_v27, 2  ;;  %v9550_v16 = vrot.slane %v9548_v58, 3  ;;  %v17637_v27 = vld [vmem:[#allocation3 + $0x60] sm:$0xff]  }
 0x54d   : > { %v9243_v15 = vsel %vm19874_vm7, %v9240_v21, %v9242_v12  ;;  %v9551_v8 = vor.u32 %v9550_v16, %v9547_v22 }
 0x54f   : > { %9885 = vrot.lane.b32.xlu0 %v9850_v53, %s19203_s28  ;;  %v9263_v3 = vpop.permute.xlu0 %9262  ;;  %7950 = vrot.lane.b32.xlu1 %v7861_v50, %s19285_s19  ;;  %v9244_v53 = vrot.slane %v17583_v24, 2  ;;  %v12429_v50 = vld [vmem:[#allocation3 + $0x58] sm:$0xff]  }
 0x550   : > { %9316 = vst.msk [vmem:[#allocation2] sm:$0xff] %vm19857_vm15, %v9263_v3  ;;  %vm19872_vm15 = vmmov %vm19869_vm14  ;;  %v12428_v3 = vld [vmem:[#allocation3 + $0x58] sm:$0xff]   ;;  %v7874_v44 = vshll.u32 %v12429_v50, 16  ;;  %v7878_v1 = vshrl.u32 %v12429_v50, 16  ;;  %v12502_v50 = vld [vmem:[#allocation3 + $0x60] sm:$0xff]  }
 0x551   : > { %v9006_v9 = vsel %vm19872_vm15, %v9003_v23, %v9005_v19  ;;  %v9853_v60 = vrot.slane %v12428_v3, 3  ;;  %vm19884_vm14 = vmmov %vm19882_vm4  ;;  %vm19887_vm15 = vcmask 162944  }
 0x553   : > { %9887 = vrot.lane.b32.xlu0 %v9852_v20, %s19203_s28  ;;  %7952 = vrot.lane.b32.xlu1 %v7869_v25, %s19285_s19  ;;  %v17618_v25 = vld [vmem:[#allocation3 + $0x60] sm:$0xff]  }
 0x554   : > { %v9855_v2 = vrot.slane %v17618_v25, 3  ;;  %v12455_v25 = vld [vmem:[#allocation3 + $0x78] sm:$0xff]  }
 0x557   : > { %8189 = vrot.lane.b32.xlu0 %v8154_v33, %s12525_s25  ;;  %8191 = vrot.lane.b32.xlu1 %v8156_v49, %s12525_s25  ;;  %v7872_v49 = vor.u32 %v7870_v51, %v17547_v62  ;;  %v7882_v62 = vshll.u32 %v17622_v28, 16  ;;  %v12442_v51 = vld [vmem:[#allocation3 + $0x68] sm:$0xff]  }
 0x559   : > { %v9265_v14 = vpop.permute.xlu1 %9264 }
 0x55a   : > { %9317 = vst.msk [vmem:[#allocation2 + $0x8] sm:$0xff] %vm19862_vm11, %v9265_v14  ;;  %vm19877_vm11 = vmmov %vm19874_vm7 }
 0x55b   : > { %8428 = vrot.lane.b32.xlu0 %v8393_v34, %s12526_s26  ;;  %8430 = vrot.lane.b32.xlu1 %v8395_v35, %s12526_s26  ;;  %v9245_v63 = vsel %vm19877_vm11, %v9242_v12, %v9244_v53  ;;  %v12436_v34 = vld [vmem:[#allocation3 + $0x60] sm:$0xff]   ;;  %v12437_v35 = vld [vmem:[#allocation3 + $0x68] sm:$0xff]   ;;  %v12495_v12 = vld [vmem:[#allocation3 + $0x58] sm:$0xff]   ;;  %vm19892_vm11 = vcmask 195744  }
 0x55c   : > { %v9635_v13 = vpop.permute.xlu0 %9634  ;;  %v8716_v23 = vshll.u32 %v12436_v34, 16  ;;  %vm19889_vm7 = vmmov %vm19887_vm15  ;;  %v8722_v42 = vshrl.u32 %v12437_v35, 16  ;;  %v8725_v47 = vshll.u32 %v12437_v35, 16 }
 0x55d   : > { %9688 = vst.msk [vmem:[#allocation2] sm:$0xff] %vm19864_vm9, %v9635_v13  ;;  %v9637_v17 = vpop.permute.xlu1 %9636  ;;  %vm19879_vm9 = vsmask.f32 5376 }
 0x55e   : > { %9689 = vst.msk [vmem:[#allocation2 + $0x8] sm:$0xff] %vm19866_vm0, %v9637_v17  ;;  %v9552_v21 = vsel %vm19879_vm9, %v17515_v59, %v9551_v8  ;;  %vm19881_vm0 = vmmov %vm19879_vm9  ;;  %v7876_v59 = vrot.slane %v7874_v44, 1  ;;  %v17648_v17 = vrot.slane %v7882_v62, 1  ;;  %v8724_v11 = vrot.slane %v8722_v42, 1  ;;  %v17675_v44 = vld [vmem:[#allocation3 + $0x68] sm:$0xff]  }
 0x55f   : > { %8800 = vrot.lane.b32.xlu0 %v8702_v0, %s19686_s17  ;;  %8802 = vrot.lane.b32.xlu1 %v8711_v18, %s19686_s17  ;;  %v9561_v57 = vsel %vm19881_vm0, %v9551_v8, %v17611_v37  ;;  %v8713_v0 = vshrl.u32 %v12436_v34, 16  ;;  %v8159_v18 = vrot.slane %v17637_v27, 1  ;;  %vm19894_vm9 = vmmov %vm19892_vm11  ;;  %v8727_v3 = vrot.slane %v8725_v47, 2  ;;  %v12507_v34 = vld [vmem:[#allocation3 + $0x88] sm:$0xff]  }
 0x560   : > { %v9874_v48 = vpop.permute.xlu0 %9873  ;;  %v7877_v54 = vsel %vm19885_vm2, %v7872_v49, %v7876_v59  ;;  %v7880_v41 = vor.u32 %v7878_v1, %v7876_v59  ;;  %vm19896_vm0 = vcmask 228544   ;;  %v12505_v49 = vld [vmem:[#allocation3 + $0x78] sm:$0xff]  }
 0x561   : > { %9927 = vst.msk [vmem:[#allocation2] sm:$0xff] %vm19868_vm6, %v9874_v48  ;;  %v7939_v46 = vpop.permute.xlu1 %7938  ;;  %vm19883_vm6 = vcmask 1044480   ;;  %v17651_v48 = vld [vmem:[#allocation3 + $0x68] sm:$0xff]  }
 0x562   : > { %7990 = vst.msk [vmem:[#allocation2 + $0x10] sm:$0xff] %vm19871_vm12, %v7939_v46  ;;  %v9854_v39 = vsel %vm19883_vm6, %v9851_v40, %v9853_v60  ;;  %v12434_v40 = vld [vmem:[#allocation3 + $0x60] sm:$0xff]   ;;  %vm19886_vm12 = vmmov %vm19875_vm5  ;;  %v8398_v8 = vrot.slane %v17651_v48, 1 }
 0x563   : > { %9039 = vrot.lane.b32.xlu0 %v9004_v45, %s19204_s24  ;;  %9041 = vrot.lane.b32.xlu1 %v9006_v9, %s19204_s24  ;;  %7648 = vst.msk [vmem:[#allocation2 + $0x50] sm:$0xff] %vm19886_vm12, %v12492_v55  ;;  %vm19890_vm5 = vmmov %vm19885_vm2  ;;  %v8396_v46 = vrot.slane %v12434_v40, 1  ;;  %v8715_v9 = vrot.slane %v8713_v0, 1  ;;  %v9009_v55 = vrot.slane %v17675_v44, 2  ;;  %v12463_v48 = vld [vmem:[#allocation3 + $0x80] sm:$0xff]   ;;  %v12465_v44 = vld [vmem:[#allocation3 + $0x78] sm:$0xff]  }
 0x564   : > { %v9876_v38 = vpop.permute.xlu0 %9875  ;;  %v7885_v16 = vsel %vm19890_vm5, %v7880_v41, %v17648_v17  ;;  %vm19900_vm2 = vmmov %vm19896_vm0  ;;  %v9246_v41 = vrot.slane %v12442_v51, 2 }
 0x565   : > { %9928 = vst.msk [vmem:[#allocation2 + $0x8] sm:$0xff] %vm19873_vm8, %v9876_v38  ;;  %v7941_v43 = vpop.permute.xlu1 %7940  ;;  %vm19888_vm8 = vmmov %vm19883_vm6  ;;  %v8718_v38 = vrot.slane %v8716_v23, 2 }
 0x566   : > { %7991 = vst.msk [vmem:[#allocation2 + $0x18] sm:$0xff] %vm19876_vm13, %v7941_v43  ;;  %v9856_v13 = vsel %vm19888_vm8, %v9853_v60, %v9855_v2  ;;  %vm19891_vm13 = vmmov %vm19886_vm12  ;;  %vm19903_vm8 = vcmask 261344  }
 0x567   : > { %9278 = vrot.lane.b32.xlu0 %v9243_v15, %s12527_s27  ;;  %9280 = vrot.lane.b32.xlu1 %v9245_v63, %s12527_s27  ;;  %7649 = vst.msk [vmem:[#allocation2 + $0x58] sm:$0xff] %vm19891_vm13, %v12495_v12  ;;  %v8719_v63 = vor.u32 %v8718_v38, %v8715_v9  ;;  %vm19898_vm6 = vmmov %vm19886_vm12  ;;  %v12447_v12 = vld [vmem:[#allocation3 + $0x68] sm:$0xff]  }
 0x568   : > { %v9945_v61 = vld [vmem:[#allocation2] sm:$0xff]  ;;  %7650 = vst.msk [vmem:[#allocation2 + $0x60] sm:$0xff] %vm19898_vm6, %v12502_v50  ;;  %vm19905_vm5 = vmmov %vm19898_vm6  ;;  %v7890_v38 = vshll.u32 %v12447_v12, 16 }
 0x569   : > { %v8178_v20 = vpop.permute.xlu0 %8177  ;;  %11851 = vmatprep.mubr.msk.bf16.mxu1 %vm9990_vm3, %v9945_v61  ;;  %v8180_v33 = vpop.permute.xlu1 %8179  ;;  %v9007_v61 = vrot.slane %v12439_v6, 2  ;;  %7653 = vst.msk [vmem:[#allocation2 + $0x78] sm:$0xff] %vm19905_vm5, %v12505_v49  ;;  %vm19906_vm13 = vmmov %vm19903_vm8  ;;  %v17727_v6 = vld [vmem:[#allocation3 + $0x70] sm:$0xff]  }
 0x56a   : > { %8229 = vst.msk [vmem:[#allocation2 + $0x10] sm:$0xff] %vm19878_vm1, %v8178_v20  ;;  %vm19893_vm1 = vcmask 1046528   ;;  %v12503_v20 = vld [vmem:[#allocation3 + $0x68] sm:$0xff]   ;;  %v17731_v50 = vld [vmem:[#allocation3 + $0x70] sm:$0xff]  }
 0x56b   : > { %9650 = vrot.lane.b32.xlu0 %v9552_v21, %s19208_s15  ;;  %8230 = vst.msk [vmem:[#allocation2 + $0x18] sm:$0xff] %vm19880_vm10, %v8180_v33  ;;  %9652 = vrot.lane.b32.xlu1 %v9561_v57, %s19208_s15  ;;  %v8158_v45 = vsel %vm19893_vm1, %v8155_v32, %v8157_v52  ;;  %vm19895_vm10 = vmmov %vm19893_vm1  ;;  %v12444_v32 = vld [vmem:[#allocation3 + $0x68] sm:$0xff]   ;;  %v12504_v21 = vld [vmem:[#allocation3 + $0x70] sm:$0xff]   ;;  %v17682_v33 = vor.u32 %v8727_v3, %v8724_v11 }
 0x56c   : > { %v9946_v26 = vld [vmem:[#allocation2 + $0x8] sm:$0xff]  ;;  %v8160_v4 = vsel %vm19895_vm10, %v8157_v52, %v8159_v18  ;;  %vm19901_vm12 = vmmov %vm19893_vm1  ;;  %v9563_v57 = vshrl.u32 %v12444_v32, 16 }
 0x56d   : > { %v8417_v29 = vpop.permute.xlu0 %8416  ;;  %11852 = vmatmul.mubr.msk.bf16.vlgmr.msra.gmra.mrb[0].mxu1 %vm9990_vm3, %v9946_v26  ;;  %v8419_v14 = vpop.permute.xlu1 %8418  ;;  %v8399_v30 = vsel %vm19901_vm12, %v8396_v46, %v8398_v8  ;;  %v12445_v26 = vld [vmem:[#allocation3 + $0x70] sm:$0xff]   ;;  %vm19910_vm10 = vmmov %vm19905_vm5 }
 0x56e   : > { %8468 = vst.msk [vmem:[#allocation2 + $0x10] sm:$0xff] %vm19882_vm4, %v8417_v29  ;;  %vm19897_vm4 = vmmov %vm19893_vm1  ;;  %v9566_v29 = vshll.u32 %v12444_v32, 16  ;;  %vm19908_vm1 = vcmask 294144   ;;  %v9565_v52 = vrot.slane %v9563_v57, 2 }
 0x56f   : > { %9889 = vrot.lane.b32.xlu0 %v9854_v39, %s19203_s28  ;;  %8469 = vst.msk [vmem:[#allocation2 + $0x18] sm:$0xff] %vm19884_vm14, %v8419_v14  ;;  %7954 = vrot.lane.b32.xlu1 %v7877_v54, %s19285_s19  ;;  %v8397_v43 = vsel %vm19897_vm4, %v8394_v7, %v8396_v46  ;;  %vm19899_vm14 = vmmov %vm19898_vm6  ;;  %v12506_v39 = vld [vmem:[#allocation3 + $0x80] sm:$0xff]   ;;  %v17695_v14 = vld [vmem:[#allocation3 + $0x70] sm:$0xff]   ;;  %v9572_v54 = vshrl.u32 %v12445_v26, 16  ;;  %vm19912_vm4 = vcmask 64544  }
 0x570   : > { %7651 = vst.msk [vmem:[#allocation2 + $0x68] sm:$0xff] %vm19899_vm14, %v12503_v20  ;;  %v9568_v40 = vrot.slane %v9566_v29, 3  ;;  %v9248_v31 = vrot.slane %v17695_v14, 2  ;;  %vm19914_vm14 = vmmov %vm19908_vm1  ;;  %v12454_v20 = vld [vmem:[#allocation3 + $0x70] sm:$0xff]  }
 0x571   : > { %v8789_v58 = vpop.permute.xlu0 %8788  ;;  %v8791_v22 = vpop.permute.xlu1 %8790  ;;  %7654 = vst.msk [vmem:[#allocation2 + $0x80] sm:$0xff] %vm19910_vm10, %v12506_v39  ;;  %vm19916_vm12 = vmmov %vm19912_vm4  ;;  %vm19925_vm10 = vsmask.f32 7424  ;;  %v12452_v29 = vld [vmem:[#allocation3 + $0x70] sm:$0xff]   ;;  %v8734_v49 = vshll.u32 %v12454_v20, 16 }
 0x572   : > { %8840 = vst.msk [vmem:[#allocation2 + $0x10] sm:$0xff] %vm19887_vm15, %v8789_v58  ;;  %vm19902_vm15 = vmmov %vm19898_vm6  ;;  %v9575_v58 = vshll.u32 %v12445_v26, 16  ;;  %v8731_v26 = vshrl.u32 %v12454_v20, 16 }
 0x573   : > { %9891 = vrot.lane.b32.xlu0 %v9856_v13, %s19203_s28  ;;  %8841 = vst.msk [vmem:[#allocation2 + $0x18] sm:$0xff] %vm19889_vm7, %v8791_v22  ;;  %7956 = vrot.lane.b32.xlu1 %v7885_v16, %s19285_s19  ;;  %vm19904_vm7 = vsmask.f32 6400  ;;  %v9569_v16 = vor.u32 %v9568_v40, %v9565_v52  ;;  %v8736_v40 = vrot.slane %v8734_v49, 2 }
 0x574   : > { %7652 = vst.msk [vmem:[#allocation2 + $0x70] sm:$0xff] %vm19902_vm15, %v12504_v21  ;;  %v8720_v59 = vsel %vm19904_vm7, %v17575_v5, %v8719_v63  ;;  %v9577_v23 = vrot.slane %v9575_v58, 3  ;;  %v8743_v58 = vshll.u32 %v12455_v25, 16  ;;  %v8733_v52 = vrot.slane %v8731_v26, 1 }
 0x575   : > { %v9028_v56 = vpop.permute.xlu0 %9027  ;;  %v9030_v36 = vpop.permute.xlu1 %9029 }
 0x576   : > { %9079 = vst.msk [vmem:[#allocation2 + $0x10] sm:$0xff] %vm19892_vm11, %v9028_v56  ;;  %vm19907_vm11 = vmmov %vm19904_vm7  ;;  %v12446_v56 = vld [vmem:[#allocation3 + $0x68] sm:$0xff]   ;;  %vm19919_vm7 = vsmask.f32 5376 }
 0x577   : > { %8193 = vrot.lane.b32.xlu0 %v8158_v45, %s12525_s25  ;;  %9080 = vst.msk [vmem:[#allocation2 + $0x18] sm:$0xff] %vm19894_vm9, %v9030_v36  ;;  %8195 = vrot.lane.b32.xlu1 %v8160_v4, %s12525_s25  ;;  %v8729_v1 = vsel %vm19907_vm11, %v8719_v63, %v17682_v33  ;;  %vm19909_vm9 = vcmask 1045504   ;;  %v9570_v24 = vsel %vm19919_vm7, %v17611_v37, %v9569_v16  ;;  %v7886_v36 = vshrl.u32 %v17622_v28, 16  ;;  %v12450_v63 = vld [vmem:[#allocation3 + $0x68] sm:$0xff]  }
 0x578   : > { %v9008_v5 = vsel %vm19909_vm9, %v9005_v19, %v9007_v61  ;;  %vm19913_vm6 = vmmov %vm19909_vm9  ;;  %v9574_v19 = vrot.slane %v9572_v54, 2  ;;  %v7892_v37 = vrot.slane %v7890_v38, 1  ;;  %vm19922_vm11 = vcmask 130144  }
 0x579   : > { %v9267_v15 = vpop.permute.xlu0 %9266  ;;  %v9269_v60 = vpop.permute.xlu1 %9268  ;;  %v9010_v13 = vsel %vm19913_vm6, %v9007_v61, %v9009_v55  ;;  %v7888_v32 = vor.u32 %v7886_v36, %v17648_v17  ;;  %v7894_v61 = vshrl.u32 %v12447_v12, 16  ;;  %v7898_v17 = vshll.u32 %v17731_v50, 16  ;;  %vm19924_vm9 = vmmov %vm19922_vm11 }
 0x57a   : > { %9318 = vst.msk [vmem:[#allocation2 + $0x10] sm:$0xff] %vm19896_vm0, %v9267_v15  ;;  %vm19911_vm0 = vmmov %vm19905_vm5  ;;  %v17720_v9 = vor.u32 %v9577_v23, %v9574_v19  ;;  %v8161_v57 = vrot.slane %v12450_v63, 1  ;;  %v8740_v54 = vshrl.u32 %v12455_v25, 16  ;;  %v8745_v12 = vrot.slane %v8743_v58, 2 }
 0x57b   : > { %8432 = vrot.lane.b32.xlu0 %v8397_v43, %s12526_s26  ;;  %9319 = vst.msk [vmem:[#allocation2 + $0x18] sm:$0xff] %vm19900_vm2, %v9269_v60  ;;  %8434 = vrot.lane.b32.xlu1 %v8399_v30, %s12526_s26  ;;  %vm19915_vm2 = vmmov %vm19913_vm6  ;;  %v9859_v43 = vrot.slane %v17727_v6, 3  ;;  %v7893_v60 = vsel %vm19925_vm10, %v7888_v32, %v7892_v37  ;;  %v7896_v30 = vor.u32 %v7894_v61, %v7892_v37  ;;  %v17798_v32 = vld [vmem:[#allocation3 + $0x80] sm:$0xff]   ;;  %v9590_v37 = vshrl.u32 %v12463_v48, 16  ;;  %v12473_v6 = vld [vmem:[#allocation3 + $0x88] sm:$0xff]  }
 0x57c   : > { %7655 = vst.msk [vmem:[#allocation2 + $0x88] sm:$0xff] %vm19911_vm0, %v12507_v34  ;;  %v9247_v22 = vsel %vm19915_vm2, %v9244_v53, %v9246_v41  ;;  %vm19917_vm15 = vmmov %vm19915_vm2  ;;  %v9857_v53 = vrot.slane %v12446_v56, 3  ;;  %vm19926_vm0 = vcmask 162944   ;;  %vm19930_vm2 = vcmask 195744  }
 0x57d   : > { %v9639_v7 = vpop.permute.xlu0 %9638  ;;  %v9641_v10 = vpop.permute.xlu1 %9640  ;;  %v9249_v47 = vsel %vm19917_vm15, %v9246_v41, %v9248_v31  ;;  %vm19928_vm6 = vmmov %vm19926_vm0  ;;  %v8400_v41 = vrot.slane %v12452_v29, 1  ;;  %v8742_v23 = vrot.slane %v8740_v54, 1  ;;  %v17828_v54 = vld [vmem:[#allocation3 + $0x80] sm:$0xff]   ;;  %v7902_v58 = vshrl.u32 %v17731_v50, 16 }
 0x57e   : > { %9690 = vst.msk [vmem:[#allocation2 + $0x10] sm:$0xff] %vm19903_vm8, %v9639_v7  ;;  %vm19918_vm8 = vcmask 97344   ;;  %v17748_v7 = vld [vmem:[#allocation3 + $0x70] sm:$0xff]   ;;  %vm19932_vm15 = vmmov %vm19930_vm2 }
 0x57f   : > { %8804 = vrot.lane.b32.xlu0 %v8720_v59, %s19686_s17  ;;  %9691 = vst.msk [vmem:[#allocation2 + $0x18] sm:$0xff] %vm19906_vm13, %v9641_v10  ;;  %8806 = vrot.lane.b32.xlu1 %v8729_v1, %s19686_s17  ;;  %vm19920_vm5 = vmmov %vm19918_vm8  ;;  %v17756_v59 = vrot.slane %v7898_v17, 1  ;;  %v8163_v1 = vrot.slane %v17748_v7, 1 }
 0x580   : > { %vm19921_vm13 = vmmov %vm19919_vm7  ;;  %vm19934_vm7 = vcmask 228544  }
 0x581   : > { %v9878_v62 = vpop.permute.xlu0 %9877  ;;  %v7943_v35 = vpop.permute.xlu1 %7942  ;;  %v9579_v15 = vsel %vm19921_vm13, %v9569_v16, %v17720_v9  ;;  %v12462_v16 = vld [vmem:[#allocation3 + $0x78] sm:$0xff]   ;;  %vm19936_vm13 = vmmov %vm19934_vm7 }
 0x582   : > { %9929 = vst.msk [vmem:[#allocation2 + $0x10] sm:$0xff] %vm19908_vm1, %v9878_v62  ;;  %vm19923_vm1 = vcmask 1044480   ;;  %v17762_v62 = vld [vmem:[#allocation3 + $0x78] sm:$0xff]   ;;  %v9584_v36 = vshll.u32 %v12462_v16, 16 }
 0x583   : > { %9043 = vrot.lane.b32.xlu0 %v9008_v5, %s19204_s24  ;;  %7992 = vst.msk [vmem:[#allocation2 + $0x20] sm:$0xff] %vm19912_vm4, %v7943_v35  ;;  %9045 = vrot.lane.b32.xlu1 %v9010_v13, %s19204_s24  ;;  %v9858_v28 = vsel %vm19923_vm1, %v9855_v2, %v9857_v53  ;;  %vm19927_vm4 = vmmov %vm19923_vm1  ;;  %v8402_v19 = vrot.slane %v17762_v62, 1  ;;  %vm19938_vm1 = vcmask 261344   ;;  %v12481_v62 = vld [vmem:[#allocation3 + $0x90] sm:$0xff]  }
 0x584   : > { %v9860_v2 = vsel %vm19927_vm4, %v9857_v53, %v9859_v43  ;;  %v9581_v53 = vshrl.u32 %v12462_v16, 16  ;;  %vm19942_vm4 = vcmask 294144   ;;  %v9586_v61 = vrot.slane %v9584_v36, 3 }
 0x585   : > { %v9880_v0 = vpop.permute.xlu0 %9879  ;;  %v7945_v42 = vpop.permute.xlu1 %7944 }
 0x586   : > { %9930 = vst.msk [vmem:[#allocation2 + $0x18] sm:$0xff] %vm19914_vm14, %v9880_v0  ;;  %vm19929_vm14 = vmmov %vm19925_vm10  ;;  %v9583_v20 = vrot.slane %v9581_v53, 2 }
 0x587   : > { %9282 = vrot.lane.b32.xlu0 %v9247_v22, %s12527_s27  ;;  %7993 = vst.msk [vmem:[#allocation2 + $0x28] sm:$0xff] %vm19916_vm12, %v7945_v42  ;;  %9284 = vrot.lane.b32.xlu1 %v9249_v47, %s12527_s27  ;;  %v7901_v39 = vsel %vm19929_vm14, %v7896_v30, %v17756_v59  ;;  %vm19931_vm12 = vcmask 1046528   ;;  %v12457_v22 = vld [vmem:[#allocation3 + $0x70] sm:$0xff]   ;;  %vm19940_vm10 = vmmov %vm19938_vm1  ;;  %vm19944_vm14 = vcmask 64544   ;;  %v9592_v30 = vrot.slane %v9590_v37, 2 }
 0x588   : > { %v8162_v5 = vsel %vm19931_vm12, %v8159_v18, %v8161_v57  ;;  %v8737_v18 = vor.u32 %v8736_v40, %v8733_v52  ;;  %v9011_v38 = vrot.slane %v12457_v22, 2  ;;  %v8758_v37 = vshrl.u32 %v12473_v6, 16 }
 0x589   : > { %v8182_v45 = vpop.permute.xlu0 %8181  ;;  %v9947_v46 = vld [vmem:[#allocation2 + $0x10] sm:$0xff]  ;;  %v8184_v4 = vpop.permute.xlu1 %8183 }
 0x58a   : > { %8231 = vst.msk [vmem:[#allocation2 + $0x20] sm:$0xff] %vm19918_vm8, %v8182_v45  ;;  %11855 = vmatprep.mubr.msk.bf16.mxu1 %vm9990_vm3, %v9947_v46  ;;  %vm19933_vm8 = vmmov %vm19931_vm12  ;;  %v17785_v45 = vor.u32 %v8745_v12, %v8742_v23  ;;  %v17787_v46 = vld [vmem:[#allocation3 + $0x78] sm:$0xff]   ;;  %v12472_v12 = vld [vmem:[#allocation3 + $0x80] sm:$0xff]  }
 0x58b   : > { %9654 = vrot.lane.b32.xlu0 %v9570_v24, %s19208_s15  ;;  %8232 = vst.msk [vmem:[#allocation2 + $0x28] sm:$0xff] %vm19920_vm5, %v8184_v4  ;;  %9656 = vrot.lane.b32.xlu1 %v9579_v15, %s19208_s15  ;;  %v8164_v13 = vsel %vm19933_vm8, %v8161_v57, %v8163_v1  ;;  %vm19935_vm5 = vmmov %vm19933_vm8  ;;  %v12460_v24 = vld [vmem:[#allocation3 + $0x78] sm:$0xff]  }
 0x58c   : > { %v8401_v27 = vsel %vm19935_vm5, %v8398_v8, %v8400_v41  ;;  %v9250_v63 = vrot.slane %v12460_v24, 2  ;;  %vm19946_vm12 = vmmov %vm19942_vm4  ;;  %v12464_v57 = vld [vmem:[#allocation3 + $0x78] sm:$0xff]  }
 0x58d   : > { %v8421_v11 = vpop.permute.xlu0 %8420  ;;  %v9948_v3 = vld [vmem:[#allocation2 + $0x18] sm:$0xff]  ;;  %v8423_v21 = vpop.permute.xlu1 %8422  ;;  %vm19948_vm8 = vmmov %vm19944_vm14  ;;  %v12468_v23 = vld [vmem:[#allocation3 + $0x78] sm:$0xff]  }
 0x58e   : > { %8470 = vst.msk [vmem:[#allocation2 + $0x20] sm:$0xff] %vm19922_vm11, %v8421_v11  ;;  %11856 = vmatmul.mubr.msk.bf16.gmra.mrb[4].mxu1 %vm9990_vm3, %v9948_v3  ;;  %vm19937_vm11 = vmmov %vm19935_vm5  ;;  %v9013_v3 = vrot.slane %v17787_v46, 2  ;;  %vm19950_vm5 = vcmask 97344   ;;  %v12483_v46 = vld [vmem:[#allocation3 + $0x88] sm:$0xff]  }
 0x58f   : > { %9893 = vrot.lane.b32.xlu0 %v9858_v28, %s19203_s28  ;;  %8471 = vst.msk [vmem:[#allocation2 + $0x28] sm:$0xff] %vm19924_vm9, %v8423_v21  ;;  %7958 = vrot.lane.b32.xlu1 %v7893_v60, %s19285_s19  ;;  %v8403_v42 = vsel %vm19937_vm11, %v8400_v41, %v8402_v19  ;;  %vm19939_vm9 = vsmask.f32 6400  ;;  %v9593_v28 = vshll.u32 %v12463_v48, 16  ;;  %vm19952_vm11 = vmmov %vm19950_vm5  ;;  %v12470_v48 = vld [vmem:[#allocation3 + $0x80] sm:$0xff]  }
 0x590   : > { %v8738_v8 = vsel %vm19939_vm9, %v17682_v33, %v8737_v18 }
 0x591   : > { %v8793_v51 = vpop.permute.xlu0 %8792  ;;  %v8795_v10 = vpop.permute.xlu1 %8794  ;;  %v9595_v25 = vrot.slane %v9593_v28, 3  ;;  %v8761_v28 = vshll.u32 %v12473_v6, 16 }
 0x592   : > { %8842 = vst.msk [vmem:[#allocation2 + $0x20] sm:$0xff] %vm19926_vm0, %v8793_v51  ;;  %vm19941_vm0 = vmmov %vm19939_vm9  ;;  %v9252_v51 = vrot.slane %v17798_v32, 2  ;;  %vm19954_vm9 = vcmask 130144  }
 0x593   : > { %9895 = vrot.lane.b32.xlu0 %v9860_v2, %s19203_s28  ;;  %8843 = vst.msk [vmem:[#allocation2 + $0x28] sm:$0xff] %vm19928_vm6, %v8795_v10  ;;  %7960 = vrot.lane.b32.xlu1 %v7901_v39, %s19285_s19  ;;  %v8747_v15 = vsel %vm19941_vm0, %v8737_v18, %v17785_v45  ;;  %vm19943_vm6 = vcmask 1045504   ;;  %v9587_v2 = vor.u32 %v9586_v61, %v9583_v20  ;;  %vm19956_vm0 = vmmov %vm19954_vm9 }
 0x594   : > { %v9012_v33 = vsel %vm19943_vm6, %v9009_v55, %v9011_v38  ;;  %v17821_v39 = vor.u32 %v9595_v25, %v9592_v30  ;;  %v8760_v25 = vrot.slane %v8758_v37, 1  ;;  %v17929_v37 = vld [vmem:[#allocation3 + $0x90] sm:$0xff]  }
 0x595   : > { %v9032_v34 = vpop.permute.xlu0 %9031  ;;  %v9034_v35 = vpop.permute.xlu1 %9033 }
 0x596   : > { %9081 = vst.msk [vmem:[#allocation2 + $0x20] sm:$0xff] %vm19930_vm2, %v9032_v34  ;;  %vm19945_vm2 = vmmov %vm19943_vm6  ;;  %v7906_v34 = vshll.u32 %v12465_v44, 16  ;;  %vm19958_vm6 = vcmask 162944  }
 0x597   : > { %8197 = vrot.lane.b32.xlu0 %v8162_v5, %s12525_s25  ;;  %9082 = vst.msk [vmem:[#allocation2 + $0x28] sm:$0xff] %vm19932_vm15, %v9034_v35  ;;  %8199 = vrot.lane.b32.xlu1 %v8164_v13, %s12525_s25  ;;  %v9014_v21 = vsel %vm19945_vm2, %v9011_v38, %v9013_v3  ;;  %vm19947_vm15 = vmmov %vm19945_vm2  ;;  %v17832_v5 = vld [vmem:[#allocation3 + $0x80] sm:$0xff]   ;;  %v7904_v13 = vor.u32 %v7902_v58, %v17756_v59  ;;  %v8752_v38 = vshll.u32 %v12472_v12, 16 }
 0x598   : > { %v9251_v55 = vsel %vm19947_vm15, %v9248_v31, %v9250_v63  ;;  %v9861_v31 = vrot.slane %v12464_v57, 3  ;;  %v7914_v59 = vshll.u32 %v17832_v5, 16  ;;  %vm19962_vm15 = vcmask 195744  }
 0x599   : > { %v9271_v0 = vpop.permute.xlu0 %9270  ;;  %v9273_v56 = vpop.permute.xlu1 %9272  ;;  %v8754_v61 = vrot.slane %v8752_v38, 2 }
 0x59a   : > { %9320 = vst.msk [vmem:[#allocation2 + $0x20] sm:$0xff] %vm19934_vm7, %v9271_v0  ;;  %vm19949_vm7 = vmmov %vm19945_vm2  ;;  %v9863_v0 = vrot.slane %v17828_v54, 3  ;;  %v17857_v24 = vrot.slane %v7914_v59, 1 }
 0x59b   : > { %8436 = vrot.lane.b32.xlu0 %v8401_v27, %s12526_s26  ;;  %9321 = vst.msk [vmem:[#allocation2 + $0x28] sm:$0xff] %vm19936_vm13, %v9273_v56  ;;  %8438 = vrot.lane.b32.xlu1 %v8403_v42, %s12526_s26  ;;  %v9253_v26 = vsel %vm19949_vm7, %v9250_v63, %v9252_v51  ;;  %vm19951_vm13 = vsmask.f32 5376  ;;  %v7910_v27 = vshrl.u32 %v12465_v44, 16  ;;  %v17849_v42 = vld [vmem:[#allocation3 + $0x80] sm:$0xff]   ;;  %vm19960_vm2 = vmmov %vm19958_vm6  ;;  %v8404_v63 = vrot.slane %v12470_v48, 1 }
 0x59c   : > { %v9588_v14 = vsel %vm19951_vm13, %v17720_v9, %v9587_v2  ;;  %v7908_v9 = vrot.slane %v7906_v34, 1  ;;  %vm19964_vm7 = vmmov %vm19962_vm15  ;;  %v8763_v44 = vrot.slane %v8761_v28, 2  ;;  %v7918_v28 = vshrl.u32 %v17832_v5, 16 }
 0x59d   : > { %v9643_v47 = vpop.permute.xlu0 %9642  ;;  %v9645_v4 = vpop.permute.xlu1 %9644  ;;  %v9867_v5 = vrot.slane %v17929_v37, 3 }
 0x59e   : > { %9692 = vst.msk [vmem:[#allocation2 + $0x20] sm:$0xff] %vm19938_vm1, %v9643_v47  ;;  %vm19953_vm1 = vmmov %vm19951_vm13  ;;  %v7912_v56 = vor.u32 %v7910_v27, %v7908_v9  ;;  %v8165_v47 = vrot.slane %v12468_v23, 1  ;;  %vm19966_vm13 = vcmask 228544  }
 0x59f   : > { %8808 = vrot.lane.b32.xlu0 %v8738_v8, %s19686_s17  ;;  %9693 = vst.msk [vmem:[#allocation2 + $0x28] sm:$0xff] %vm19940_vm10, %v9645_v4  ;;  %8810 = vrot.lane.b32.xlu1 %v8747_v15, %s19686_s17  ;;  %v9597_v52 = vsel %vm19953_vm1, %v9587_v2, %v17821_v39  ;;  %vm19955_vm10 = vcmask 1044480   ;;  %v8749_v8 = vshrl.u32 %v12472_v12, 16  ;;  %v8167_v15 = vrot.slane %v17849_v42, 1  ;;  %v12480_v2 = vld [vmem:[#allocation3 + $0x88] sm:$0xff]   ;;  %vm19968_vm1 = vmmov %vm19966_vm13 }
 0x5a0   : > { %v9862_v50 = vsel %vm19955_vm10, %v9859_v43, %v9861_v31  ;;  %v9602_v58 = vshll.u32 %v12480_v2, 16 }
 0x5a1   : > { %v9882_v11 = vpop.permute.xlu0 %9881  ;;  %v7947_v17 = vpop.permute.xlu1 %7946  ;;  %v8751_v20 = vrot.slane %v8749_v8, 1 }
 0x5a2   : > { %9931 = vst.msk [vmem:[#allocation2 + $0x20] sm:$0xff] %vm19942_vm4, %v9882_v11  ;;  %vm19957_vm4 = vsmask.f32 7424  ;;  %v17863_v11 = vld [vmem:[#allocation3 + $0x88] sm:$0xff]   ;;  %v9604_v27 = vrot.slane %v9602_v58, 3 }
 0x5a3   : > { %9047 = vrot.lane.b32.xlu0 %v9012_v33, %s19204_s24  ;;  %7994 = vst.msk [vmem:[#allocation2 + $0x30] sm:$0xff] %vm19944_vm14, %v7947_v17  ;;  %9049 = vrot.lane.b32.xlu1 %v9014_v21, %s19204_s24  ;;  %v7909_v22 = vsel %vm19957_vm4, %v7904_v13, %v7908_v9  ;;  %vm19959_vm14 = vmmov %vm19955_vm10  ;;  %v8406_v30 = vrot.slane %v17863_v11, 1  ;;  %vm19970_vm10 = vcmask 261344   ;;  %v17899_v13 = vld [vmem:[#allocation3 + $0x90] sm:$0xff]   ;;  %v9608_v9 = vshrl.u32 %v12481_v62, 16 }
 0x5a4   : > { %v9864_v43 = vsel %vm19959_vm14, %v9861_v31, %v9863_v0  ;;  %v9599_v31 = vshrl.u32 %v12480_v2, 16  ;;  %vm19974_vm14 = vcmask 294144  }
 0x5a5   : > { %v9884_v60 = vpop.permute.xlu0 %9883  ;;  %v7949_v29 = vpop.permute.xlu1 %7948 }
 0x5a6   : > { %9932 = vst.msk [vmem:[#allocation2 + $0x28] sm:$0xff] %vm19946_vm12, %v9884_v60  ;;  %vm19961_vm12 = vmmov %vm19957_vm4  ;;  %v9601_v12 = vrot.slane %v9599_v31, 2 }
 0x5a7   : > { %9286 = vrot.lane.b32.xlu0 %v9251_v55, %s12527_s27  ;;  %7995 = vst.msk [vmem:[#allocation2 + $0x38] sm:$0xff] %vm19948_vm8, %v7949_v29  ;;  %9288 = vrot.lane.b32.xlu1 %v9253_v26, %s12527_s27  ;;  %v7917_v36 = vsel %vm19961_vm12, %v7912_v56, %v17857_v24  ;;  %vm19963_vm8 = vcmask 1046528   ;;  %v12475_v55 = vld [vmem:[#allocation3 + $0x80] sm:$0xff]   ;;  %vm19972_vm4 = vmmov %vm19970_vm10  ;;  %vm19976_vm12 = vcmask 64544   ;;  %v9610_v56 = vrot.slane %v9608_v9, 2 }
 0x5a8   : > { %v8166_v33 = vsel %vm19963_vm8, %v8163_v1, %v8165_v47  ;;  %v8755_v1 = vor.u32 %v8754_v61, %v8751_v20  ;;  %v9015_v34 = vrot.slane %v12475_v55, 2 }
 0x5a9   : > { %v8186_v49 = vpop.permute.xlu0 %8185  ;;  %v9949_v10 = vld [vmem:[#allocation2 + $0x20] sm:$0xff]  ;;  %v8188_v41 = vpop.permute.xlu1 %8187 }
 0x5aa   : > { %8233 = vst.msk [vmem:[#allocation2 + $0x30] sm:$0xff] %vm19950_vm5, %v8186_v49  ;;  %11859 = vmatprep.mubr.msk.bf16.mxu1 %vm9990_vm3, %v9949_v10  ;;  %vm19965_vm5 = vmmov %vm19963_vm8  ;;  %v17886_v49 = vor.u32 %v8763_v44, %v8760_v25  ;;  %v17888_v10 = vld [vmem:[#allocation3 + $0x88] sm:$0xff]   ;;  %v12490_v44 = vld [vmem:[#allocation3 + $0x90] sm:$0xff]  }
 0x5ab   : > { %9658 = vrot.lane.b32.xlu0 %v9588_v14, %s19208_s15  ;;  %8234 = vst.msk [vmem:[#allocation2 + $0x38] sm:$0xff] %vm19952_vm11, %v8188_v41  ;;  %9660 = vrot.lane.b32.xlu1 %v9597_v52, %s19208_s15  ;;  %v8168_v21 = vsel %vm19965_vm5, %v8165_v47, %v8167_v15  ;;  %vm19967_vm11 = vmmov %vm19965_vm5  ;;  %v12478_v14 = vld [vmem:[#allocation3 + $0x88] sm:$0xff]  }
 0x5ac   : > { %v8405_v7 = vsel %vm19967_vm11, %v8402_v19, %v8404_v63  ;;  %v9254_v23 = vrot.slane %v12478_v14, 2  ;;  %vm19978_vm8 = vmmov %vm19974_vm14  ;;  %v12482_v47 = vld [vmem:[#allocation3 + $0x88] sm:$0xff]   ;;  %vm19982_vm11 = vcmask 97344  }
 0x5ad   : > { %v8425_v40 = vpop.permute.xlu0 %8424  ;;  %v9950_v35 = vld [vmem:[#allocation2 + $0x28] sm:$0xff]  ;;  %v8427_v18 = vpop.permute.xlu1 %8426  ;;  %v12486_v25 = vld [vmem:[#allocation3 + $0x88] sm:$0xff]  }
 0x5ae   : > { %8472 = vst.msk [vmem:[#allocation2 + $0x30] sm:$0xff] %vm19954_vm9, %v8425_v40  ;;  %11860 = vmatmul.mubr.msk.bf16.gmra.mrb[8].mxu1 %vm9990_vm3, %v9950_v35  ;;  %vm19969_vm9 = vmmov %vm19965_vm5  ;;  %v9017_v35 = vrot.slane %v17888_v10, 2 }
 0x5af   : > { %9897 = vrot.lane.b32.xlu0 %v9862_v50, %s19203_s28  ;;  %8473 = vst.msk [vmem:[#allocation2 + $0x38] sm:$0xff] %vm19956_vm0, %v8427_v18  ;;  %7962 = vrot.lane.b32.xlu1 %v7909_v22, %s19285_s19  ;;  %v8407_v29 = vsel %vm19969_vm9, %v8404_v63, %v8406_v30  ;;  %vm19971_vm0 = vsmask.f32 6400  ;;  %v9611_v50 = vshll.u32 %v12481_v62, 16  ;;  %vm19980_vm5 = vmmov %vm19976_vm12  ;;  %v12488_v62 = vld [vmem:[#allocation3 + $0x90] sm:$0xff]  }
 0x5b0   : > { %v8756_v19 = vsel %vm19971_vm0, %v17785_v45, %v8755_v1  ;;  %vm19984_vm9 = vmmov %vm19982_vm11 }
 0x5b1   : > { %v8797_v16 = vpop.permute.xlu0 %8796  ;;  %v8799_v53 = vpop.permute.xlu1 %8798  ;;  %v9613_v6 = vrot.slane %v9611_v50, 3 }
 0x5b2   : > { %8844 = vst.msk [vmem:[#allocation2 + $0x30] sm:$0xff] %vm19958_vm6, %v8797_v16  ;;  %vm19973_vm6 = vmmov %vm19971_vm0  ;;  %v9256_v16 = vrot.slane %v17899_v13, 2  ;;  %vm19986_vm0 = vcmask 130144  }
 0x5b3   : > { %9899 = vrot.lane.b32.xlu0 %v9864_v43, %s19203_s28  ;;  %8845 = vst.msk [vmem:[#allocation2 + $0x38] sm:$0xff] %vm19960_vm2, %v8799_v53  ;;  %7964 = vrot.lane.b32.xlu1 %v7917_v36, %s19285_s19  ;;  %v8765_v52 = vsel %vm19973_vm6, %v8755_v1, %v17886_v49  ;;  %vm19975_vm2 = vcmask 1045504   ;;  %v9605_v43 = vor.u32 %v9604_v27, %v9601_v12  ;;  %vm19988_vm6 = vmmov %vm19986_vm0 }
 0x5b4   : > { %v9016_v45 = vsel %vm19975_vm2, %v9013_v3, %v9015_v34  ;;  %v17922_v36 = vor.u32 %v9613_v6, %v9610_v56 }
 0x5b5   : > { %v9036_v4 = vpop.permute.xlu0 %9035  ;;  %v9038_v17 = vpop.permute.xlu1 %9037 }
 0x5b6   : > { %9083 = vst.msk [vmem:[#allocation2 + $0x30] sm:$0xff] %vm19962_vm15, %v9036_v4  ;;  %vm19977_vm15 = vmmov %vm19975_vm2  ;;  %v7922_v4 = vshll.u32 %v12483_v46, 16 }
 0x5b7   : > { %8201 = vrot.lane.b32.xlu0 %v8166_v33, %s12525_s25  ;;  %9084 = vst.msk [vmem:[#allocation2 + $0x38] sm:$0xff] %vm19964_vm7, %v9038_v17  ;;  %8203 = vrot.lane.b32.xlu1 %v8168_v21, %s12525_s25  ;;  %v9018_v18 = vsel %vm19977_vm15, %v9015_v34, %v9017_v35  ;;  %vm19979_vm7 = vmmov %vm19975_vm2  ;;  %v12485_v33 = vld [vmem:[#allocation3 + $0x90] ss:$0 sps:$4 sm:$0x11]   ;;  %v7920_v21 = vor.u32 %v7918_v28, %v17857_v24  ;;  %v8770_v34 = vshll.u32 %v12490_v44, 16 }
 0x5b8   : > { %v9255_v3 = vsel %vm19979_vm7, %v9252_v51, %v9254_v23  ;;  %v9865_v51 = vrot.slane %v12482_v47, 3  ;;  %v7930_v1 = vshll.u32 %v12485_v33, 16  ;;  %vm19994_vm7 = vcmask 195744  }
 0x5b9   : > { %v9275_v60 = vpop.permute.xlu0 %9274  ;;  %v9277_v57 = vpop.permute.xlu1 %9276  ;;  %v8772_v27 = vrot.slane %v8770_v34, 2  ;;  %v12501_v34 = vld [vmem:[#allocation3 + $0xa0] ss:$0 sps:$4 sm:$0x77]  }
 0x5ba   : > { %9322 = vst.msk [vmem:[#allocation2 + $0x30] sm:$0xff] %vm19966_vm13, %v9275_v60  ;;  %vm19981_vm13 = vmmov %vm19975_vm2  ;;  %v7924_v60 = vrot.slane %v7922_v4, 1  ;;  %vm19990_vm2 = vcmask 162944   ;;  %v7932_v14 = vrot.slane %v7930_v1, 1 }
 0x5bb   : > { %8440 = vrot.lane.b32.xlu0 %v8405_v7, %s12526_s26  ;;  %9323 = vst.msk [vmem:[#allocation2 + $0x38] sm:$0xff] %vm19968_vm1, %v9277_v57  ;;  %8442 = vrot.lane.b32.xlu1 %v8407_v29, %s12526_s26  ;;  %v9257_v8 = vsel %vm19981_vm13, %v9254_v23, %v9256_v16  ;;  %vm19983_vm1 = vsmask.f32 5376  ;;  %v7926_v7 = vshrl.u32 %v12483_v46, 16  ;;  %vm19992_vm15 = vmmov %vm19990_vm2  ;;  %v8408_v23 = vrot.slane %v12488_v62, 1 }
 0x5bc   : > { %v9606_v32 = vsel %vm19983_vm1, %v17821_v39, %v9605_v43  ;;  %v12487_v29 = vld [vmem:[#allocation3 + $0x90] ss:$0 sps:$4 sm:$0x11]   ;;  %vm19996_vm13 = vmmov %vm19994_vm7  ;;  %v12499_v4 = vld [vmem:[#allocation3 + $0xa0] ss:$0 sps:$4 sm:$0x77]  }
 0x5bd   : > { %v9647_v26 = vpop.permute.xlu0 %9646  ;;  %v9649_v41 = vpop.permute.xlu1 %9648  ;;  %v7928_v57 = vor.u32 %v7926_v7, %v7924_v60 }
 0x5be   : > { %9694 = vst.msk [vmem:[#allocation2 + $0x30] sm:$0xff] %vm19970_vm10, %v9647_v26  ;;  %vm19985_vm10 = vmmov %vm19983_vm1  ;;  %v12491_v26 = vld [vmem:[#allocation3 + $0x98] ss:$0 sps:$4 sm:$0x33]   ;;  %vm19998_vm1 = vcmask 228544  }
 0x5bf   : > { %8812 = vrot.lane.b32.xlu0 %v8756_v19, %s19686_s17  ;;  %9695 = vst.msk [vmem:[#allocation2 + $0x38] sm:$0xff] %vm19972_vm4, %v9649_v41  ;;  %8814 = vrot.lane.b32.xlu1 %v8765_v52, %s19686_s17  ;;  %v9615_v20 = vsel %vm19985_vm10, %v9605_v43, %v17922_v36  ;;  %vm19987_vm4 = vcmask 1044480   ;;  %v8767_v19 = vshrl.u32 %v12490_v44, 16  ;;  %v8171_v52 = vrot.slane %v12487_v29, 1  ;;  %v12498_v43 = vld [vmem:[#allocation3 + $0x98] sm:$0xff]   ;;  %vm20000_vm10 = vmmov %vm19998_vm1 }
 0x5c0   : > { %v9866_v39 = vsel %vm19987_vm4, %v9863_v0, %v9865_v51  ;;  %v8169_v0 = vrot.slane %v12486_v25, 1  ;;  %v8776_v9 = vshrl.u32 %v12491_v26, 16  ;;  %v8779_v50 = vshll.u32 %v12491_v26, 16  ;;  %v12500_v29 = vld [vmem:[#allocation3 + $0x98] sm:$0xff]  }
 0x5c1   : > { %v9886_v40 = vpop.permute.xlu0 %9885  ;;  %v7951_v59 = vpop.permute.xlu1 %7950  ;;  %v8769_v12 = vrot.slane %v8767_v19, 1  ;;  %v9620_v28 = vshll.u32 %v12498_v43, 16 }
 0x5c2   : > { %9933 = vst.msk [vmem:[#allocation2 + $0x30] sm:$0xff] %vm19974_vm14, %v9886_v40  ;;  %vm19989_vm14 = vsmask.f32 7424  ;;  %v12489_v40 = vld [vmem:[#allocation3 + $0x98] ss:$0 sps:$4 sm:$0x11]  }
 0x5c3   : > { %9051 = vrot.lane.b32.xlu0 %v9016_v45, %s19204_s24  ;;  %7996 = vst.msk [vmem:[#allocation2 + $0x40] sm:$0xff] %vm19976_vm12, %v7951_v59  ;;  %9053 = vrot.lane.b32.xlu1 %v9018_v18, %s19204_s24  ;;  %v7925_v55 = vsel %vm19989_vm14, %v7920_v21, %v7924_v60  ;;  %vm19991_vm12 = vmmov %vm19987_vm4  ;;  %v8410_v56 = vrot.slane %v12489_v40, 1  ;;  %v8778_v6 = vrot.slane %v8776_v9, 1  ;;  %v8781_v46 = vrot.slane %v8779_v50, 2 }
 0x5c4   : > { %v9868_v54 = vsel %vm19991_vm12, %v9865_v51, %v9867_v5  ;;  %vm20002_vm4 = vcmask 261344   ;;  %v9617_v51 = vshrl.u32 %v12498_v43, 16  ;;  %v9626_v21 = vshrl.u32 %v12499_v4, 16 }
 0x5c5   : > { %v9888_v22 = vpop.permute.xlu0 %9887  ;;  %v7953_v48 = vpop.permute.xlu1 %7952  ;;  %v9629_v60 = vshll.u32 %v12499_v4, 16  ;;  %vm20006_vm12 = vcmask 294144   ;;  %v9622_v44 = vrot.slane %v9620_v28, 3 }
 0x5c6   : > { %9934 = vst.msk [vmem:[#allocation2 + $0x38] sm:$0xff] %vm19978_vm8, %v9888_v22  ;;  %vm19993_vm8 = vmmov %vm19989_vm14  ;;  %v9619_v25 = vrot.slane %v9617_v51, 2 }
 0x5c7   : > { %9290 = vrot.lane.b32.xlu0 %v9255_v3, %s12527_s27  ;;  %7997 = vst.msk [vmem:[#allocation2 + $0x48] sm:$0xff] %vm19980_vm5, %v7953_v48  ;;  %9292 = vrot.lane.b32.xlu1 %v9257_v8, %s12527_s27  ;;  %v7933_v58 = vsel %vm19993_vm8, %v7928_v57, %v7932_v14  ;;  %vm19995_vm5 = vcmask 1046528   ;;  %v12493_v3 = vld [vmem:[#allocation3 + $0x90] sm:$0xff]   ;;  %vm20004_vm14 = vmmov %vm20002_vm4  ;;  %vm20008_vm8 = vcmask 64544   ;;  %v9631_v57 = vrot.slane %v9629_v60, 3 }
 0x5c8   : > { %v8170_v45 = vsel %vm19995_vm5, %v8167_v15, %v8169_v0  ;;  %v8773_v15 = vor.u32 %v8772_v27, %v8769_v12 }
 0x5c9   : > { %v8190_v38 = vpop.permute.xlu0 %8189  ;;  %v9951_v53 = vld [vmem:[#allocation2 + $0x30] sm:$0xff]  ;;  %v8192_v63 = vpop.permute.xlu1 %8191 }
 0x5ca   : > { %8235 = vst.msk [vmem:[#allocation2 + $0x40] sm:$0xff] %vm19982_vm11, %v8190_v38  ;;  %11863 = vmatprep.mubr.msk.bf16.mxu1 %vm9990_vm3, %v9951_v53  ;;  %vm19997_vm11 = vmmov %vm19995_vm5  ;;  %v8782_v38 = vor.u32 %v8781_v46, %v8778_v6  ;;  %v12494_v53 = vld [vmem:[#allocation3 + $0x98] ss:$0 sps:$4 sm:$0x33]  }
 0x5cb   : > { %9662 = vrot.lane.b32.xlu0 %v9606_v32, %s19208_s15  ;;  %8236 = vst.msk [vmem:[#allocation2 + $0x48] sm:$0xff] %vm19984_vm9, %v8192_v63  ;;  %9664 = vrot.lane.b32.xlu1 %v9615_v20, %s19208_s15  ;;  %v8172_v18 = vsel %vm19997_vm11, %v8169_v0, %v8171_v52  ;;  %vm19999_vm9 = vmmov %vm19995_vm5  ;;  %v12496_v32 = vld [vmem:[#allocation3 + $0x98] sm:$0xff]   ;;  %v9871_v52 = vrot.slane %v12501_v34, 3 }
 0x5cc   : > { %v8409_v42 = vsel %vm19999_vm9, %v8406_v30, %v8408_v23  ;;  %v9019_v30 = vrot.slane %v12493_v3, 2  ;;  %vm20012_vm11 = vmmov %vm20008_vm8  ;;  %vm20014_vm9 = vcmask 97344  }
 0x5cd   : > { %v8429_v61 = vpop.permute.xlu0 %8428  ;;  %v9952_v17 = vld [vmem:[#allocation2 + $0x38] sm:$0xff]  ;;  %v8431_v24 = vpop.permute.xlu1 %8430 }
 0x5ce   : > { %8474 = vst.msk [vmem:[#allocation2 + $0x40] sm:$0xff] %vm19986_vm0, %v8429_v61  ;;  %11864 = vmatmul.mubr.msk.bf16.gmra.mrb[12].mxu1 %vm9990_vm3, %v9952_v17  ;;  %vm20001_vm0 = vmmov %vm19995_vm5  ;;  %v9021_v61 = vrot.slane %v12494_v53, 2  ;;  %v12497_v17 = vld [vmem:[#allocation3 + $0xa0] ss:$0 sps:$4 sm:$0x33]  }
 0x5cf   : > { %9901 = vrot.lane.b32.xlu0 %v9866_v39, %s19203_s28  ;;  %8475 = vst.msk [vmem:[#allocation2 + $0x48] sm:$0xff] %vm19988_vm6, %v8431_v24  ;;  %7966 = vrot.lane.b32.xlu1 %v7925_v55, %s19285_s19  ;;  %v8411_v48 = vsel %vm20001_vm0, %v8408_v23, %v8410_v56  ;;  %vm20003_vm6 = vsmask.f32 6400  ;;  %v9258_v39 = vrot.slane %v12496_v32, 2  ;;  %v9260_v55 = vrot.slane %v12497_v17, 2  ;;  %vm20010_vm5 = vmmov %vm20006_vm12 }
 0x5d0   : > { %v8774_v11 = vsel %vm20003_vm6, %v17886_v49, %v8773_v15  ;;  %vm20016_vm0 = vmmov %vm20014_vm9 }
 0x5d1   : > { %v8801_v2 = vpop.permute.xlu0 %8800  ;;  %v8803_v31 = vpop.permute.xlu1 %8802 }
 0x5d2   : > { %8846 = vst.msk [vmem:[#allocation2 + $0x40] sm:$0xff] %vm19990_vm2, %v8801_v2  ;;  %vm20005_vm2 = vmmov %vm20003_vm6  ;;  %v9628_v2 = vrot.slane %v9626_v21, 2  ;;  %vm20018_vm6 = vcmask 130144  }
 0x5d3   : > { %9903 = vrot.lane.b32.xlu0 %v9868_v54, %s19203_s28  ;;  %8847 = vst.msk [vmem:[#allocation2 + $0x48] sm:$0xff] %vm19992_vm15, %v8803_v31  ;;  %7968 = vrot.lane.b32.xlu1 %v7933_v58, %s19285_s19  ;;  %v8783_v63 = vsel %vm20005_vm2, %v8773_v15, %v8782_v38  ;;  %vm20007_vm15 = vcmask 1045504   ;;  %vm20020_vm2 = vmmov %vm20018_vm6 }
 0x5d4   : > { %v9020_v49 = vsel %vm20007_vm15, %v9017_v35, %v9019_v30  ;;  %v9623_v35 = vor.u32 %v9622_v44, %v9619_v25  ;;  %v9632_v19 = vor.u32 %v9631_v57, %v9628_v2 }
 0x5d5   : > { %v9040_v41 = vpop.permute.xlu0 %9039  ;;  %v9042_v59 = vpop.permute.xlu1 %9041 }
 0x5d6   : > { %9085 = vst.msk [vmem:[#allocation2 + $0x40] sm:$0xff] %vm19994_vm7, %v9040_v41  ;;  %vm20009_vm7 = vmmov %vm20007_vm15  ;;  %vm20022_vm15 = vcmask 162944  }
 0x5d7   : > { %8205 = vrot.lane.b32.xlu0 %v8170_v45, %s12525_s25  ;;  %9086 = vst.msk [vmem:[#allocation2 + $0x48] sm:$0xff] %vm19996_vm13, %v9042_v59  ;;  %8207 = vrot.lane.b32.xlu1 %v8172_v18, %s12525_s25  ;;  %v9022_v1 = vsel %vm20009_vm7, %v9019_v30, %v9021_v61  ;;  %vm20011_vm13 = vmmov %vm20009_vm7 }
 0x5d8   : > { %v9259_v10 = vsel %vm20011_vm13, %v9256_v16, %v9258_v39  ;;  %v9869_v16 = vrot.slane %v12500_v29, 3  ;;  %vm20026_vm13 = vcmask 228544  }
 0x5d9   : > { %v9279_v22 = vpop.permute.xlu0 %9278  ;;  %v9281_v47 = vpop.permute.xlu1 %9280 }
 0x5da   : > { %9324 = vst.msk [vmem:[#allocation2 + $0x40] sm:$0xff] %vm19998_vm1, %v9279_v22  ;;  %vm20013_vm1 = vmmov %vm20009_vm7  ;;  %vm20024_vm7 = vcmask 195744  }
 0x5db   : > { %8444 = vrot.lane.b32.xlu0 %v8409_v42, %s12526_s26  ;;  %9325 = vst.msk [vmem:[#allocation2 + $0x48] sm:$0xff] %vm20000_vm10, %v9281_v47  ;;  %8446 = vrot.lane.b32.xlu1 %v8411_v48, %s12526_s26  ;;  %v9261_v54 = vsel %vm20013_vm1, %v9258_v39, %v9260_v55  ;;  %vm20015_vm10 = vsmask.f32 5376  ;;  %vm20028_vm1 = vcmask 261344  }
 0x5dc   : > { %v9624_v13 = vsel %vm20015_vm10, %v17922_v36, %v9623_v35 }
 0x5dd   : > { %v9651_v8 = vpop.permute.xlu0 %9650  ;;  %v9653_v33 = vpop.permute.xlu1 %9652 }
 0x5de   : > { %9696 = vst.msk [vmem:[#allocation2 + $0x40] sm:$0xff] %vm20002_vm4, %v9651_v8  ;;  %vm20017_vm4 = vmmov %vm20015_vm10  ;;  %vm20030_vm10 = vcmask 294144  }
 0x5df   : > { %8816 = vrot.lane.b32.xlu0 %v8774_v11, %s19686_s17  ;;  %9697 = vst.msk [vmem:[#allocation2 + $0x48] sm:$0xff] %vm20004_vm14, %v9653_v33  ;;  %8818 = vrot.lane.b32.xlu1 %v8783_v63, %s19686_s17  ;;  %v9633_v31 = vsel %vm20017_vm4, %v9623_v35, %v9632_v19  ;;  %vm20019_vm14 = vcmask 1044480   ;;  %vm20032_vm4 = vmmov %vm20030_vm10 }
 0x5e0   : > { %v9870_v36 = vsel %vm20019_vm14, %v9867_v5, %v9869_v16 }
 0x5e1   : > { %v9890_v20 = vpop.permute.xlu0 %9889  ;;  %v7955_v7 = vpop.permute.xlu1 %7954 }
 0x5e2   : > { %9935 = vst.msk [vmem:[#allocation2 + $0x40] sm:$0xff] %vm20006_vm12, %v9890_v20  ;;  %vm20021_vm12 = vmmov %vm20019_vm14  ;;  %vm20034_vm14 = vcmask 97344  }
 0x5e3   : > { %9055 = vrot.lane.b32.xlu0 %v9020_v49, %s19204_s24  ;;  %7998 = vst.msk [vmem:[#allocation2 + $0x50] sm:$0xff] %vm20008_vm8, %v7955_v7  ;;  %9057 = vrot.lane.b32.xlu1 %v9022_v1, %s19204_s24  ;;  %v9872_v9 = vsel %vm20021_vm12, %v9869_v16, %v9871_v52  ;;  %vm20023_vm8 = vmmov %vm20022_vm15  ;;  %vm20036_vm12 = vcmask 130144   ;;  %s11890_s24 = smul.u32 144, %s20265_s14 }
 0x5e5   : > { %v9892_v24 = vpop.permute.xlu0 %9891  ;;  %v7957_v26 = vpop.permute.xlu1 %7956  ;;  %s18870_s30 = scalar_lea.vmem %s19047_s10, %s11890_s24 }
 0x5e6   : > { %9936 = vst.msk [vmem:[#allocation2 + $0x48] sm:$0xff] %vm20010_vm5, %v9892_v24  ;;  %vm20025_vm5 = vmmov %vm20024_vm7 }
 0x5e7   : > { %9294 = vrot.lane.b32.xlu0 %v9259_v10, %s12527_s27  ;;  %7999 = vst.msk [vmem:[#allocation2 + $0x58] sm:$0xff] %vm20012_vm11, %v7957_v26  ;;  %9296 = vrot.lane.b32.xlu1 %v9261_v54, %s12527_s27  ;;  %vm20027_vm11 = vmmov %vm20026_vm13 }
 0x5e9   : > { %v8194_v0 = vpop.permute.xlu0 %8193  ;;  %v9953_v62 = vld [vmem:[#allocation2 + $0x40] sm:$0xff]  ;;  %v8196_v14 = vpop.permute.xlu1 %8195 }
 0x5ea   : > { %8237 = vst.msk [vmem:[#allocation2 + $0x50] sm:$0xff] %vm20014_vm9, %v8194_v0  ;;  %11867 = vmatprep.mubr.msk.bf16.mxu1 %vm9990_vm3, %v9953_v62  ;;  %vm20029_vm9 = vmmov %vm20028_vm1 }
 0x5eb   : > { %9666 = vrot.lane.b32.xlu0 %v9624_v13, %s19208_s15  ;;  %8238 = vst.msk [vmem:[#allocation2 + $0x58] sm:$0xff] %vm20016_vm0, %v8196_v14  ;;  %9668 = vrot.lane.b32.xlu1 %v9633_v31, %s19208_s15  ;;  %vm20031_vm0 = vcmask 64544  }
 0x5ed   : > { %v8433_v58 = vpop.permute.xlu0 %8432  ;;  %v9954_v41 = vld [vmem:[#allocation2 + $0x48] sm:$0xff]  ;;  %v8435_v40 = vpop.permute.xlu1 %8434 }
 0x5ee   : > { %8476 = vst.msk [vmem:[#allocation2 + $0x50] sm:$0xff] %vm20018_vm6, %v8433_v58  ;;  %11868 = vmatmul.mubr.msk.bf16.gmra.mrb[16].mxu1 %vm9990_vm3, %v9954_v41  ;;  %vm20033_vm6 = vmmov %vm20031_vm0 }
 0x5ef   : > { %9905 = vrot.lane.b32.xlu0 %v9870_v36, %s19203_s28  ;;  %8477 = vst.msk [vmem:[#allocation2 + $0x58] sm:$0xff] %vm20020_vm2, %v8435_v40  ;;  %9907 = vrot.lane.b32.xlu1 %v9872_v9, %s19203_s28  ;;  %vm20035_vm2 = vmmov %vm20034_vm14 }
 0x5f1   : > { %v8805_v50 = vpop.permute.xlu0 %8804  ;;  %v8807_v45 = vpop.permute.xlu1 %8806 }
 0x5f2   : > { %8848 = vst.msk [vmem:[#allocation2 + $0x50] sm:$0xff] %vm20022_vm15, %v8805_v50  ;;  %vm20037_vm15 = vmmov %vm20036_vm12 }
 0x5f3   : > { %8849 = vst.msk [vmem:[#allocation2 + $0x58] sm:$0xff] %vm20023_vm8, %v8807_v45 }
 0x5f5   : > { %v9044_v23 = vpop.permute.xlu0 %9043  ;;  %v9046_v37 = vpop.permute.xlu1 %9045 }
 0x5f6   : > { %9087 = vst.msk [vmem:[#allocation2 + $0x50] sm:$0xff] %vm20024_vm7, %v9044_v23  ;;  %vm20038_vm7 = vmmov %vm20023_vm8 }
 0x5f7   : > { %9088 = vst.msk [vmem:[#allocation2 + $0x58] sm:$0xff] %vm20025_vm5, %v9046_v37 }
 0x5f9   : > { %v9283_v5 = vpop.permute.xlu0 %9282  ;;  %v9285_v12 = vpop.permute.xlu1 %9284 }
 0x5fa   : > { %9326 = vst.msk [vmem:[#allocation2 + $0x50] sm:$0xff] %vm20026_vm13, %v9283_v5  ;;  %vm20039_vm13 = vmmov %vm20025_vm5 }
 0x5fb   : > { %9327 = vst.msk [vmem:[#allocation2 + $0x58] sm:$0xff] %vm20027_vm11, %v9285_v12 }
 0x5fd   : > { %v9655_v27 = vpop.permute.xlu0 %9654  ;;  %v9657_v59 = vpop.permute.xlu1 %9656 }
 0x5fe   : > { %9698 = vst.msk [vmem:[#allocation2 + $0x50] sm:$0xff] %vm20028_vm1, %v9655_v27  ;;  %vm20040_vm1 = vmmov %vm20027_vm11 }
 0x5ff   : > { %9699 = vst.msk [vmem:[#allocation2 + $0x58] sm:$0xff] %vm20029_vm9, %v9657_v59 }
 0x601   : > { %v9894_v18 = vpop.permute.xlu0 %9893  ;;  %v7959_v22 = vpop.permute.xlu1 %7958 }
 0x602   : > { %9937 = vst.msk [vmem:[#allocation2 + $0x50] sm:$0xff] %vm20030_vm10, %v9894_v18  ;;  %vm20041_vm10 = vmmov %vm20029_vm9 }
 0x603   : > { %8000 = vst.msk [vmem:[#allocation2 + $0x60] sm:$0xff] %vm20031_vm0, %v7959_v22  ;;  %vm20042_vm0 = vmmov %vm20032_vm4 }
 0x605   : > { %v9896_v56 = vpop.permute.xlu0 %9895  ;;  %v7961_v6 = vpop.permute.xlu1 %7960 }
 0x606   : > { %9938 = vst.msk [vmem:[#allocation2 + $0x58] sm:$0xff] %vm20032_vm4, %v9896_v56  ;;  %vm20043_vm4 = vmmov %vm20033_vm6 }
 0x607   : > { %8001 = vst.msk [vmem:[#allocation2 + $0x68] sm:$0xff] %vm20033_vm6, %v7961_v6  ;;  %vm20044_vm6 = vmmov %vm20042_vm0 }
 0x609   : > { %v8198_v46 = vpop.permute.xlu0 %8197  ;;  %v9955_v42 = vld [vmem:[#allocation2 + $0x50] sm:$0xff]  ;;  %v8200_v15 = vpop.permute.xlu1 %8199 }
 0x60a   : > { %8239 = vst.msk [vmem:[#allocation2 + $0x60] sm:$0xff] %vm20034_vm14, %v8198_v46  ;;  %11871 = vmatprep.mubr.msk.bf16.mxu1 %vm9990_vm3, %v9955_v42  ;;  %vm20045_vm14 = vmmov %vm20043_vm4 }
 0x60b   : > { %8240 = vst.msk [vmem:[#allocation2 + $0x68] sm:$0xff] %vm20035_vm2, %v8200_v15 }
 0x60d   : > { %v8437_v3 = vpop.permute.xlu0 %8436  ;;  %v9956_v43 = vld [vmem:[#allocation2 + $0x58] sm:$0xff]  ;;  %v8439_v47 = vpop.permute.xlu1 %8438 }
 0x60e   : > { %8478 = vst.msk [vmem:[#allocation2 + $0x60] sm:$0xff] %vm20036_vm12, %v8437_v3  ;;  %11872 = vmatmul.mubr.msk.bf16.gmra.mrb[20].mxu1 %vm9990_vm3, %v9956_v43  ;;  %vm20046_vm12 = vmmov %vm20035_vm2 }
 0x60f   : > { %8479 = vst.msk [vmem:[#allocation2 + $0x68] sm:$0xff] %vm20037_vm15, %v8439_v47 }
 0x611   : > { %v8809_v48 = vpop.permute.xlu0 %8808  ;;  %v8811_v8 = vpop.permute.xlu1 %8810 }
 0x612   : > { %8850 = vst.msk [vmem:[#allocation2 + $0x60] sm:$0xff] %vm20023_vm8, %v8809_v48  ;;  %vm20047_vm8 = vmmov %vm20037_vm15  ;;  %v18089_v48 = vld [vmem:[%s19044_s7] ss:$0 sm:$0xff] }
 0x613   : > { %8851 = vst.msk [vmem:[#allocation2 + $0x68] sm:$0xff] %vm20038_vm7, %v8811_v8 }
 0x615   : > { %v9048_v38 = vpop.permute.xlu0 %9047  ;;  %v9050_v53 = vpop.permute.xlu1 %9049 }
 0x616   : > { %9089 = vst.msk [vmem:[#allocation2 + $0x60] sm:$0xff] %vm20025_vm5, %v9048_v38  ;;  %vm20048_vm5 = vmmov %vm20038_vm7 }
 0x617   : > { %9090 = vst.msk [vmem:[#allocation2 + $0x68] sm:$0xff] %vm20039_vm13, %v9050_v53 }
 0x619   : > { %v9287_v4 = vpop.permute.xlu0 %9286  ;;  %v9289_v11 = vpop.permute.xlu1 %9288 }
 0x61a   : > { %9328 = vst.msk [vmem:[#allocation2 + $0x60] sm:$0xff] %vm20027_vm11, %v9287_v4  ;;  %vm20049_vm11 = vmmov %vm20039_vm13 }
 0x61b   : > { %9329 = vst.msk [vmem:[#allocation2 + $0x68] sm:$0xff] %vm20040_vm1, %v9289_v11  ;;  %v20064_v11 = vld [vmem:[#allocation7_spill] sm:$0xff] }
 0x61d   : > { %v9659_v30 = vpop.permute.xlu0 %9658  ;;  %v9661_v32 = vpop.permute.xlu1 %9660 }
 0x61e   : > { %9700 = vst.msk [vmem:[#allocation2 + $0x60] sm:$0xff] %vm20029_vm9, %v9659_v30  ;;  %vm20050_vm9 = vmmov %vm20040_vm1 }
 0x61f   : > { %9701 = vst.msk [vmem:[#allocation2 + $0x68] sm:$0xff] %vm20041_vm10, %v9661_v32 }
 0x621   : > { %v9898_v51 = vpop.permute.xlu0 %9897  ;;  %v7963_v28 = vpop.permute.xlu1 %7962 }
 0x622   : > { %9939 = vst.msk [vmem:[#allocation2 + $0x60] sm:$0xff] %vm20042_vm0, %v9898_v51  ;;  %vm20051_vm0 = vmmov %vm20041_vm10 }
 0x623   : > { %8002 = vst.msk [vmem:[#allocation2 + $0x70] sm:$0xff] %vm20043_vm4, %v7963_v28  ;;  %vm20052_vm4 = vmmov %vm20044_vm6 }
 0x625   : > { %v9900_v33 = vpop.permute.xlu0 %9899  ;;  %v7965_v63 = vpop.permute.xlu1 %7964 }
 0x626   : > { %9940 = vst.msk [vmem:[#allocation2 + $0x68] sm:$0xff] %vm20044_vm6, %v9900_v33  ;;  %vm20053_vm6 = vmmov %vm20045_vm14  ;;  %v20065_v33 = vld [vmem:[#allocation6_spill] sm:$0xff] }
 0x627   : > { %8003 = vst.msk [vmem:[#allocation2 + $0x78] sm:$0xff] %vm20045_vm14, %v7965_v63  ;;  %vm20054_vm14 = vmmov %vm20052_vm4 }
 0x629   : > { %v8202_v20 = vpop.permute.xlu0 %8201  ;;  %v9957_v61 = vld [vmem:[#allocation2 + $0x60] sm:$0xff]  ;;  %v8204_v17 = vpop.permute.xlu1 %8203 }
 0x62a   : > { %8241 = vst.msk [vmem:[#allocation2 + $0x70] sm:$0xff] %vm20035_vm2, %v8202_v20  ;;  %11875 = vmatprep.mubr.msk.bf16.mxu1 %vm9990_vm3, %v9957_v61  ;;  %vm20055_vm2 = vmmov %vm20053_vm6  ;;  %v20067_v61 = vld [vmem:[#allocation8_spill] sm:$0xff] }
 0x62b   : > { %8242 = vst.msk [vmem:[#allocation2 + $0x78] sm:$0xff] %vm20046_vm12, %v8204_v17 }
 0x62d   : > { %v8441_v21 = vpop.permute.xlu0 %8440  ;;  %v9958_v60 = vld [vmem:[#allocation2 + $0x68] sm:$0xff]  ;;  %v8443_v49 = vpop.permute.xlu1 %8442 }
 0x62e   : > { %8480 = vst.msk [vmem:[#allocation2 + $0x70] sm:$0xff] %vm20037_vm15, %v8441_v21  ;;  %11876 = vmatmul.mubr.msk.bf16.gmra.mrb[24].mxu1 %vm9990_vm3, %v9958_v60  ;;  %vm20056_vm15 = vmmov %vm20046_vm12 }
 0x62f   : > { %8481 = vst.msk [vmem:[#allocation2 + $0x78] sm:$0xff] %vm20047_vm8, %v8443_v49 }
 0x631   : > { %v8813_v39 = vpop.permute.xlu0 %8812  ;;  %v8815_v25 = vpop.permute.xlu1 %8814 }
 0x632   : > { %8852 = vst.msk [vmem:[#allocation2 + $0x70] sm:$0xff] %vm20038_vm7, %v8813_v39  ;;  %vm20057_vm7 = vmmov %vm20047_vm8 }
 0x633   : > { %8853 = vst.msk [vmem:[#allocation2 + $0x78] sm:$0xff] %vm20048_vm5, %v8815_v25 }
 0x635   : > { %v9052_v44 = vpop.permute.xlu0 %9051  ;;  %v9054_v7 = vpop.permute.xlu1 %9053 }
 0x636   : > { %9091 = vst.msk [vmem:[#allocation2 + $0x70] sm:$0xff] %vm20039_vm13, %v9052_v44  ;;  %vm20058_vm13 = vmmov %vm20048_vm5  ;;  %v20070_v44 = vld [vmem:[#allocation9_spill] sm:$0xff] }
 0x637   : > { %9092 = vst.msk [vmem:[#allocation2 + $0x78] sm:$0xff] %vm20049_vm11, %v9054_v7 }
 0x639   : > { %v9291_v1 = vpop.permute.xlu0 %9290  ;;  %v9293_v24 = vpop.permute.xlu1 %9292 }
 0x63a   : > { %9330 = vst.msk [vmem:[#allocation2 + $0x70] sm:$0xff] %vm20040_vm1, %v9291_v1  ;;  %vm20059_vm1 = vmmov %vm20049_vm11  ;;  %v20071_v1 = vld [vmem:[#allocation10_spill] sm:$0xff] }
 0x63b   : > { %9331 = vst.msk [vmem:[#allocation2 + $0x78] sm:$0xff] %vm20050_vm9, %v9293_v24 }
 0x63d   : > { %v9663_v55 = vpop.permute.xlu0 %9662  ;;  %v9665_v2 = vpop.permute.xlu1 %9664 }
 0x63e   : > { %9702 = vst.msk [vmem:[#allocation2 + $0x70] sm:$0xff] %vm20041_vm10, %v9663_v55  ;;  %vm20060_vm10 = vmmov %vm20050_vm9 }
 0x63f   : > { %9703 = vst.msk [vmem:[#allocation2 + $0x78] sm:$0xff] %vm20051_vm0, %v9665_v2 }
 0x640   : > { %v18056_v10 = vpop.f32.mrb[0].mxu1 }
 0x641   : > { %v9902_v57 = vpop.permute.xlu0 %9901  ;;  %v10083_v35 = vpop.f32.mrb[1].mxu1  ;;  %v18107_v28 = vadd.f32 %v18056_v10, %v18089_v48 }
 0x642   : > { %9941 = vst.msk [vmem:[#allocation2 + $0x70] sm:$0xff] %vm20052_vm4, %v9902_v57  ;;  %v18059_v29 = vpop.f32.mrb[2].mxu1  ;;  %v7967_v26 = vpop.permute.xlu1 %7966  ;;  %vm20061_vm4 = vmmov %vm20051_vm0  ;;  %v18095_v38 = vadd.f32 %v18089_v48, %v10083_v35  ;;  %v20074_v35 = vld [vmem:[#allocation13_spill] sm:$0xff] }
 0x643   : > { %v10086_v54 = vpop.f32.mrb[3].mxu1  ;;  %8004 = vst.msk [vmem:[#allocation2 + $0x80] sm:$0xff] %vm20053_vm6, %v7967_v26  ;;  %vm20062_vm6 = vmmov %vm20054_vm14  ;;  %v10228_v17 = vmul.f32 %v20067_v61, %v18107_v28  ;;  %v18117_v60 = vadd.f32 %v18059_v29, %v18089_v48 }
 0x644   : > { %v18092_v8 = vadd.f32 %v18089_v48, %v10086_v54  ;;  %v10226_v63 = vmul.f32 %v20065_v33, %v18095_v38 }
 0x645   : > { %v9904_v0 = vpop.permute.xlu0 %9903  ;;  %v10229_v7 = vmul.f32 %v20070_v44, %v18117_v60 }
 0x646   : > { %9942 = vst.msk [vmem:[#allocation2 + $0x78] sm:$0xff] %vm20054_vm14, %v9904_v0  ;;  %v7969_v62 = vpop.permute.xlu1 %7968  ;;  %vm20063_vm14 = vmmov %vm20062_vm6  ;;  %v10227_v30 = vmul.f32 %v20064_v11, %v18092_v8 }
 0x647   : > { %8005 = vst.msk [vmem:[#allocation2 + $0x88] sm:$0xff] %vm20055_vm2, %v7969_v62 }
 0x649   : > { %v8206_v19 = vpop.permute.xlu0 %8205  ;;  %v9959_v34 = vld [vmem:[#allocation2 + $0x70] sm:$0xff] }
 0x64a   : > { %8243 = vst.msk [vmem:[#allocation2 + $0x80] sm:$0xff] %vm20046_vm12, %v8206_v19  ;;  %11879 = vmatprep.mubr.msk.bf16.mxu1 %vm9990_vm3, %v9959_v34  ;;  %v8208_v13 = vpop.permute.xlu1 %8207  ;;  %v20076_v19 = vld [vmem:[#allocation11_spill] sm:$0xff] }
 0x64b   : > { %8244 = vst.msk [vmem:[#allocation2 + $0x88] sm:$0xff] %vm20056_vm15, %v8208_v13 }
 0x64d   : > { %v8445_v16 = vpop.permute.xlu0 %8444  ;;  %v9960_v14 = vld [vmem:[#allocation2 + $0x78] sm:$0xff] }
 0x64e   : > { %8482 = vst.msk [vmem:[#allocation2 + $0x80] sm:$0xff] %vm20047_vm8, %v8445_v16  ;;  %11880 = vmatmul.mubr.msk.bf16.gmra.mrb[28].mxu1 %vm9990_vm3, %v9960_v14  ;;  %v8447_v31 = vpop.permute.xlu1 %8446 }
 0x64f   : > { %8483 = vst.msk [vmem:[#allocation2 + $0x88] sm:$0xff] %vm20057_vm7, %v8447_v31 }
 0x651   : > { %v8817_v58 = vpop.permute.xlu0 %8816 }
 0x652   : > { %8854 = vst.msk [vmem:[#allocation2 + $0x80] sm:$0xff] %vm20048_vm5, %v8817_v58  ;;  %v8819_v41 = vpop.permute.xlu1 %8818  ;;  %v20078_v58 = vld [vmem:[#allocation12_spill] sm:$0xff] }
 0x653   : > { %8855 = vst.msk [vmem:[#allocation2 + $0x88] sm:$0xff] %vm20058_vm13, %v8819_v41 }
 0x655   : > { %v9056_v52 = vpop.permute.xlu0 %9055 }
 0x656   : > { %9093 = vst.msk [vmem:[#allocation2 + $0x80] sm:$0xff] %vm20049_vm11, %v9056_v52  ;;  %v9058_v36 = vpop.permute.xlu1 %9057  ;;  %v20079_v52 = vld [vmem:[#allocation16_spill] sm:$0xff] }
 0x657   : > { %9094 = vst.msk [vmem:[#allocation2 + $0x88] sm:$0xff] %vm20059_vm1, %v9058_v36 }
 0x659   : > { %v9295_v40 = vpop.permute.xlu0 %9294 }
 0x65a   : > { %9332 = vst.msk [vmem:[#allocation2 + $0x80] sm:$0xff] %vm20050_vm9, %v9295_v40  ;;  %v9297_v9 = vpop.permute.xlu1 %9296 }
 0x65b   : > { %9333 = vst.msk [vmem:[#allocation2 + $0x88] sm:$0xff] %vm20060_vm10, %v9297_v9 }
 0x65d   : > { %v9667_v50 = vpop.permute.xlu0 %9666 }
 0x65e   : > { %9704 = vst.msk [vmem:[#allocation2 + $0x80] sm:$0xff] %vm20051_vm0, %v9667_v50  ;;  %v9669_v45 = vpop.permute.xlu1 %9668 }
 0x65f   : > { %9705 = vst.msk [vmem:[#allocation2 + $0x88] sm:$0xff] %vm20061_vm4, %v9669_v45 }
 0x661   : > { %v9906_v23 = vpop.permute.xlu0 %9905  ;;  %v11857_v37 = vpop.f32.mrb[4].mxu1 }
 0x662   : > { %9943 = vst.msk [vmem:[#allocation2 + $0x80] sm:$0xff] %vm20062_vm6, %v9906_v23  ;;  %v10099_v5 = vpop.f32.mrb[5].mxu1  ;;  %v9908_v27 = vpop.permute.xlu1 %9907  ;;  %v18135_v54 = vadd.f32 %v11857_v37, %v18089_v48  ;;  %v20082_v23 = vld [vmem:[#allocation18_spill] sm:$0xff] }
 0x663   : > { %v11858_v12 = vpop.f32.mrb[6].mxu1  ;;  %9944 = vst.msk [vmem:[#allocation2 + $0x88] sm:$0xff] %vm20063_vm14, %v9908_v27  ;;  %v18120_v49 = vadd.f32 %v18089_v48, %v10099_v5 }
 0x664   : > { %v10102_v59 = vpop.f32.mrb[7].mxu1  ;;  %v10232_v34 = vmul.f32 %v20076_v19, %v18135_v54  ;;  %v18141_v13 = vadd.f32 %v11858_v12, %v18089_v48 }
 0x665   : > { %v10230_v24 = vmul.f32 %v20071_v1, %v18120_v49  ;;  %v18128_v55 = vadd.f32 %v18089_v48, %v10102_v59 }
 0x666   : > { %v10233_v41 = vmul.f32 %v20078_v58, %v18141_v13 }
 0x667   : > { %v10231_v29 = vmul.f32 %v20074_v35, %v18128_v55 }
 0x669   : > { %v9961_v18 = vld [vmem:[#allocation2 + $0x80] sm:$0xff] }
 0x66a   : > { %11883 = vmatprep.mubr.msk.bf16.mxu1 %vm9990_vm3, %v9961_v18  ;;  %v9962_v22 = vld [vmem:[#allocation2 + $0x88] sm:$0xff] }
 0x66b   : > { %11884 = vmatmul.mubr.msk.bf16.gmra.mrb[32].mxu1 %vm9990_vm3, %v9962_v22  ;;  %vm20066_vm3 = vcmask 31744  }
 0x66c   : > { %v10263_v20 = vsel %vm20066_vm3, %v10227_v30, 0.0  ;;  %vm20068_vm2 = vmmov %vm20066_vm3  ;;  %v20084_v30 = vld [vmem:[#allocation15_spill] sm:$0xff] }
 0x66d   : > { %v10262_v21 = vsel %vm20068_vm2, %v10226_v63, 0.0  ;;  %vm20069_vm12 = vmmov %vm20068_vm2 }
 0x66e   : > { %v10264_v39 = vadd.f32 %v10263_v20, %v10262_v21  ;;  %v10265_v25 = vsel %vm20069_vm12, %v10228_v17, 0.0  ;;  %vm20072_vm15 = vmmov %vm20068_vm2 }
 0x66f   : > { %v10267_v57 = vsel %vm20072_vm15, %v10229_v7, 0.0  ;;  %vm20073_vm8 = vmmov %vm20068_vm2  ;;  %v20087_v7 = vld [vmem:[#allocation22_spill] sm:$0xff] }
 0x670   : > { %v10266_v2 = vadd.f32 %v10265_v25, %v10264_v39  ;;  %v10269_v10 = vsel %vm20073_vm8, %v10230_v24, 0.0  ;;  %vm20075_vm7 = vmmov %vm20068_vm2  ;;  %v20086_v39 = vld [vmem:[#allocation17_spill] sm:$0xff] }
 0x671   : > { %v10271_v62 = vsel %vm20075_vm7, %v10231_v29, 0.0  ;;  %vm20077_vm5 = vmmov %vm20068_vm2 }
 0x672   : > { %v10268_v26 = vadd.f32 %v10267_v57, %v10266_v2  ;;  %v10273_v31 = vsel %vm20077_vm5, %v10232_v34, 0.0  ;;  %vm20080_vm13 = vmmov %vm20068_vm2 }
 0x673   : > { %v10275_v50 = vsel %vm20080_vm13, %v10233_v41, 0.0  ;;  %vm20081_vm11 = vmmov %vm20068_vm2 }
 0x674   : > { %v10270_v0 = vadd.f32 %v10269_v10, %v10268_v26  ;;  %vm20083_vm1 = vmmov %vm20068_vm2 }
 0x675   : > { %vm20085_vm9 = vmmov %vm20083_vm1 }
 0x676   : > { %v10272_v14 = vadd.f32 %v10271_v62, %v10270_v0  ;;  %vm20088_vm10 = vmmov %vm20083_vm1 }
 0x677   : > { %vm20089_vm0 = vmmov %vm20083_vm1 }
 0x678   : > { %v10274_v9 = vadd.f32 %v10273_v31, %v10272_v14  ;;  %vm20091_vm4 = vmmov %vm20089_vm0  ;;  %v20092_v14 = vld [vmem:[#allocation25_spill] sm:$0xff] }
 0x679   : > { %vm20093_vm6 = vmmov %vm20089_vm0 }
 0x67a   : > { %v10276_v5 = vadd.f32 %v10275_v50, %v10274_v9  ;;  %v20094_v50 = vld [vmem:[#allocation26_spill] sm:$0xff]  ;;  %vm20096_vm14 = vmmov %vm20089_vm0 }
 0x67b   : > { %vm20097_vm3 = vmmov %vm20089_vm0 }
 0x67c   : > { %vm20099_vm2 = vmmov %vm20089_vm0 }
 0x67d   : > { %vm20103_vm12 = vmmov %vm20089_vm0 }
 0x67e   : > { %vm20107_vm15 = vmmov %vm20089_vm0 }
 0x67f   : > { %vm20108_vm8 = vmmov %vm20089_vm0 }
 0x680   : > { %vm20111_vm7 = vmmov %vm20089_vm0 }
 0x681   : > { %v11861_v56 = vpop.f32.mrb[8].mxu1  ;;  %vm20115_vm5 = vmmov %vm20089_vm0 }
 0x682   : > { %v10115_v6 = vpop.f32.mrb[9].mxu1  ;;  %v18159_v12 = vadd.f32 %v11861_v56, %v18089_v48  ;;  %vm20119_vm13 = vmmov %vm20089_vm0 }
 0x683   : > { %v11862_v46 = vpop.f32.mrb[10].mxu1  ;;  %v18144_v16 = vadd.f32 %v18089_v48, %v10115_v6 }
 0x684   : > { %v10118_v42 = vpop.f32.mrb[11].mxu1  ;;  %v10236_v63 = vmul.f32 %v20084_v30, %v18159_v12  ;;  %v18165_v20 = vadd.f32 %v11862_v46, %v18089_v48 }
 0x685   : > { %v10234_v36 = vmul.f32 %v20079_v52, %v18144_v16  ;;  %v18152_v40 = vadd.f32 %v18089_v48, %v10118_v42 }
 0x686   : > { %v10281_v56 = vsel %vm20085_vm9, %v10236_v63, 0.0  ;;  %v10237_v25 = vmul.f32 %v20086_v39, %v18165_v20  ;;  %vm20126_vm9 = vmmov %vm20089_vm0 }
 0x687   : > { %v10277_v45 = vsel %vm20081_vm11, %v10234_v36, 0.0  ;;  %v10235_v37 = vmul.f32 %v20082_v23, %v18152_v40  ;;  %vm20120_vm11 = vmmov %vm20089_vm0 }
 0x688   : > { %v10278_v59 = vadd.f32 %v10277_v45, %v10276_v5  ;;  %v10283_v10 = vsel %vm20088_vm10, %v10237_v25, 0.0  ;;  %v20095_v45 = vld [vmem:[#allocation27_spill] sm:$0xff]  ;;  %vm20128_vm10 = vmmov %vm20089_vm0 }
 0x689   : > { %v10279_v22 = vsel %vm20083_vm1, %v10235_v37, 0.0  ;;  %vm20123_vm1 = vmmov %vm20089_vm0 }
 0x68a   : > { %v10280_v21 = vadd.f32 %v10279_v22, %v10278_v59 }
 0x68c   : > { %v10282_v57 = vadd.f32 %v10281_v56, %v10280_v21 }
 0x68e   : > { %v10284_v26 = vadd.f32 %v10283_v10, %v10282_v57  ;;  %v20100_v57 = vld [vmem:[#allocation29_spill] sm:$0xff] }
 0x6a1   : > { %v18082_v15 = vpop.f32.mrb[12].mxu1 }
 0x6a2   : > { %v10131_v3 = vpop.f32.mrb[13].mxu1  ;;  %v18184_v0 = vadd.f32 %v18082_v15, %v18089_v48 }
 0x6a3   : > { %v18084_v43 = vpop.f32.mrb[14].mxu1  ;;  %v18168_v17 = vadd.f32 %v18089_v48, %v10131_v3  ;;  %v20090_v3 = vld [vmem:[#allocation24_spill] sm:$0xff] }
 0x6a4   : > { %v10134_v47 = vpop.f32.mrb[15].mxu1  ;;  %v18191_v31 = vadd.f32 %v18084_v43, %v18089_v48 }
 0x6a5   : > { %v10238_v24 = vmul.f32 %v20087_v7, %v18168_v17  ;;  %v18176_v2 = vadd.f32 %v18089_v48, %v10134_v47  ;;  %v10240_v47 = vmul.f32 %v20092_v14, %v18184_v0 }
 0x6a6   : > { %v10241_v15 = vmul.f32 %v20094_v50, %v18191_v31 }
 0x6a7   : > { %v10285_v46 = vsel %vm20089_vm0, %v10238_v24, 0.0  ;;  %v10239_v29 = vmul.f32 %v20090_v3, %v18176_v2  ;;  %v10289_v9 = vsel %vm20093_vm6, %v10240_v47, 0.0  ;;  %vm20134_vm6 = vmmov %vm20089_vm0 }
 0x6a8   : > { %v10286_v62 = vadd.f32 %v10285_v46, %v10284_v26  ;;  %v10291_v43 = vsel %vm20096_vm14, %v10241_v15, 0.0  ;;  %v20105_v15 = vld [vmem:[#allocation33_spill] sm:$0xff]  ;;  %vm20135_vm14 = vmmov %vm20089_vm0 }
 0x6a9   : > { %v10287_v34 = vsel %vm20091_vm4, %v10239_v29, 0.0  ;;  %vm20133_vm4 = vmmov %vm20089_vm0 }
 0x6aa   : > { %v10288_v36 = vadd.f32 %v10287_v34, %v10286_v62 }
 0x6ac   : > { %v10290_v59 = vadd.f32 %v10289_v9, %v10288_v36  ;;  %v20104_v36 = vld [vmem:[#allocation30_spill] sm:$0xff] }
 0x6ae   : > { %v10292_v21 = vadd.f32 %v10291_v43, %v10290_v59 }
 0x6c1   : > { %v18097_v53 = vpop.f32.mrb[16].mxu1 }
 0x6c2   : > { %v10147_v4 = vpop.f32.mrb[17].mxu1  ;;  %v18211_v56 = vadd.f32 %v18097_v53, %v18089_v48 }
 0x6c3   : > { %v18101_v32 = vpop.f32.mrb[18].mxu1  ;;  %v18194_v41 = vadd.f32 %v18089_v48, %v10147_v4  ;;  %v20098_v4 = vld [vmem:[#allocation28_spill] sm:$0xff] }
 0x6c4   : > { %v18103_v51 = vpop.f32.mrb[19].mxu1  ;;  %v18218_v10 = vadd.f32 %v18101_v32, %v18089_v48 }
 0x6c5   : > { %v10242_v37 = vmul.f32 %v20095_v45, %v18194_v41  ;;  %v18203_v5 = vadd.f32 %v18089_v48, %v18103_v51  ;;  %v10244_v51 = vmul.f32 %v20100_v57, %v18211_v56 }
 0x6c6   : > { %20101 = vst [vmem:[#allocation34_spill] sm:$0xff] %v18218_v10  ;;  %v10245_v9 = vmul.f32 %v20104_v36, %v18218_v10 }
 0x6c7   : > { %v10293_v22 = vsel %vm20097_vm3, %v10242_v37, 0.0  ;;  %v10243_v63 = vmul.f32 %v20098_v4, %v18203_v5  ;;  %v10297_v53 = vsel %vm20103_vm12, %v10244_v51, 0.0  ;;  %vm20138_vm3 = vmmov %vm20089_vm0 }
 0x6c8   : > { %v10294_v25 = vadd.f32 %v10293_v22, %v10292_v21  ;;  %v20109_v22 = vld [vmem:[#allocation35_spill] sm:$0xff]  ;;  %vm20142_vm12 = vmmov %vm20089_vm0 }
 0x6c9   : > { %v10295_v24 = vsel %vm20099_vm2, %v10243_v63, 0.0  ;;  %vm20141_vm2 = vmmov %vm20089_vm0 }
 0x6ca   : > { %v10296_v26 = vadd.f32 %v10295_v24, %v10294_v25 }
 0x6cc   : > { %v10298_v32 = vadd.f32 %v10297_v53, %v10296_v26 }
 0x6e1   : > { %v11873_v27 = vpop.f32.mrb[20].mxu1 }
 0x6e2   : > { %v10163_v18 = vpop.f32.mrb[21].mxu1  ;;  %v18236_v25 = vadd.f32 %v11873_v27, %v18089_v48  ;;  %v20117_v27 = vld [vmem:[#allocation38_spill] sm:$0xff] }
 0x6e3   : > { %v11874_v6 = vpop.f32.mrb[22].mxu1  ;;  %v18221_v46 = vadd.f32 %v18089_v48, %v10163_v18  ;;  %v10299_v18 = vsel %vm20107_vm15, %v10245_v9, 0.0  ;;  %vm20143_vm15 = vmmov %vm20089_vm0 }
 0x6e4   : > { %v10166_v42 = vpop.f32.mrb[23].mxu1  ;;  %v10300_v21 = vadd.f32 %v10299_v18, %v10298_v32  ;;  %20110 = vst [vmem:[#allocation31_spill] sm:$0xff] %v18236_v25 }
 0x6e5   : > { %20102 = vst [vmem:[#allocation5_spill] sm:$0xff] %v18221_v46  ;;  %v10246_v37 = vmul.f32 %v20105_v15, %v18221_v46  ;;  %v18229_v59 = vadd.f32 %v18089_v48, %v10166_v42  ;;  %v20112_v15 = vld [vmem:[#allocation36_spill] sm:$0xff]  ;;  %v18242_v42 = vadd.f32 %v11874_v6, %v18089_v48 }
 0x6e6   : > { %v10248_v36 = vmul.f32 %v20112_v15, %v18236_v25 }
 0x6e7   : > { %20106 = vst [vmem:[#allocation50_spill] sm:$0xff] %v18229_v59  ;;  %v10301_v43 = vsel %vm20108_vm8, %v10246_v37, 0.0  ;;  %v10247_v63 = vmul.f32 %v20109_v22, %v18229_v59  ;;  %20113 = vst [vmem:[#allocation19_spill] sm:$0xff] %v18242_v42  ;;  %v20116_v37 = vld [vmem:[#allocation37_spill] sm:$0xff] }
 0x6e8   : > { %v10302_v24 = vadd.f32 %v10301_v43, %v10300_v21  ;;  %v10305_v9 = vsel %vm20115_vm5, %v10248_v36, 0.0  ;;  %v10249_v32 = vmul.f32 %v20116_v37, %v18242_v42  ;;  %v20132_v22 = vld [vmem:[#allocation45_spill] sm:$0xff]  ;;  %vm20144_vm8 = vmmov %vm20089_vm0 }
 0x6e9   : > { %v10303_v51 = vsel %vm20111_vm7, %v10247_v63, 0.0  ;;  %vm20145_vm7 = vmmov %vm20089_vm0 }
 0x6ea   : > { %v10304_v53 = vadd.f32 %v10303_v51, %v10302_v24  ;;  %v10307_v21 = vsel %vm20119_vm13, %v10249_v32, 0.0  ;;  %v20127_v32 = vld [vmem:[#allocation41_spill] sm:$0xff]  ;;  %vm20146_vm5 = vmmov %vm20089_vm0 }
 0x6eb   : > { %vm20147_vm13 = vmmov %vm20089_vm0 }
 0x6ec   : > { %v10306_v63 = vadd.f32 %v10305_v9, %v10304_v53 }
 0x6ee   : > { %v10308_v24 = vadd.f32 %v10307_v21, %v10306_v63 }
 0x701   : > { %v11877_v29 = vpop.f32.mrb[24].mxu1 }
 0x702   : > { %v10179_v62 = vpop.f32.mrb[25].mxu1  ;;  %v18260_v36 = vadd.f32 %v11877_v29, %v18089_v48 }
 0x703   : > { %v11878_v34 = vpop.f32.mrb[26].mxu1  ;;  %v18245_v26 = vadd.f32 %v18089_v48, %v10179_v62  ;;  %v20121_v62 = vld [vmem:[#allocation39_spill] sm:$0xff] }
 0x704   : > { %v10182_v47 = vpop.f32.mrb[27].mxu1  ;;  %20122 = vst [vmem:[#allocation4_spill] sm:$0xff] %v18260_v36 }
 0x705   : > { %20114 = vst [vmem:[#allocation20_spill] sm:$0xff] %v18245_v26  ;;  %v10250_v18 = vmul.f32 %v20117_v27, %v18245_v26  ;;  %v18253_v43 = vadd.f32 %v18089_v48, %v10182_v47  ;;  %v20124_v27 = vld [vmem:[#allocation40_spill] sm:$0xff]  ;;  %v18266_v47 = vadd.f32 %v11878_v34, %v18089_v48 }
 0x706   : > { %v10252_v26 = vmul.f32 %v20124_v27, %v18260_v36  ;;  %v20129_v36 = vld [vmem:[#allocation42_spill] sm:$0xff] }
 0x707   : > { %20118 = vst [vmem:[#allocation14_spill] sm:$0xff] %v18253_v43  ;;  %v10309_v6 = vsel %vm20120_vm11, %v10250_v18, 0.0  ;;  %v10251_v15 = vmul.f32 %v20121_v62, %v18253_v43  ;;  %20125 = vst [vmem:[#allocation23_spill] sm:$0xff] %v18266_v47  ;;  %v10253_v18 = vmul.f32 %v20127_v32, %v18266_v47  ;;  %v20130_v43 = vld [vmem:[#allocation43_spill] sm:$0xff] }
 0x708   : > { %v10310_v51 = vadd.f32 %v10309_v6, %v10308_v24  ;;  %v10313_v9 = vsel %vm20126_vm9, %v10252_v26, 0.0  ;;  %vm20148_vm11 = vmmov %vm20089_vm0 }
 0x709   : > { %v10311_v37 = vsel %vm20123_vm1, %v10251_v15, 0.0  ;;  %v10315_v27 = vsel %vm20128_vm10, %v10253_v18, 0.0  ;;  %vm20149_vm1 = vmmov %vm20089_vm0 }
 0x70a   : > { %v10312_v53 = vadd.f32 %v10311_v37, %v10310_v51  ;;  %vm20150_vm9 = vmmov %vm20089_vm0 }
 0x70b   : > { %vm20151_vm10 = vmmov %vm20089_vm0 }
 0x70c   : > { %v10314_v63 = vadd.f32 %v10313_v9, %v10312_v53  ;;  %v20131_v9 = vld [vmem:[#allocation44_spill] sm:$0xff] }
 0x70e   : > { %v10316_v51 = vadd.f32 %v10315_v27, %v10314_v63 }
 0x721   : > { %v11881_v62 = vpop.f32.mrb[28].mxu1 }
 0x722   : > { %v10195_v21 = vpop.f32.mrb[29].mxu1  ;;  %v10204_v29 = vadd.f32 %v11881_v62, %v18089_v48 }
 0x723   : > { %v10196_v6 = vadd.f32 %v18089_v48, %v10195_v21  ;;  %v11882_v15 = vpop.f32.mrb[30].mxu1 }
 0x724   : > { %v10198_v24 = vpop.f32.mrb[31].mxu1  ;;  %v10207_v37 = vadd.f32 %v11882_v15, %v18089_v48  ;;  %v10256_v32 = vmul.f32 %v20130_v43, %v10204_v29 }
 0x725   : > { %v10254_v34 = vmul.f32 %v20129_v36, %v10196_v6  ;;  %v10199_v26 = vadd.f32 %v18089_v48, %v10198_v24 }
 0x726   : > { %v10257_v21 = vmul.f32 %v20132_v22, %v10207_v37  ;;  %v10321_v18 = vsel %vm20134_vm6, %v10256_v32, 0.0  ;;  %vm20153_vm6 = vmmov %vm20089_vm0 }
 0x727   : > { %v10317_v53 = vsel %vm20089_vm0, %v10254_v34, 0.0  ;;  %v10255_v47 = vmul.f32 %v20131_v9, %v10199_v26 }
 0x728   : > { %v10318_v62 = vadd.f32 %v10317_v53, %v10316_v51  ;;  %v10323_v15 = vsel %vm20135_vm14, %v10257_v21, 0.0  ;;  %v20136_v51 = vld [vmem:[#allocation46_spill] sm:$0xff]  ;;  %vm20154_vm14 = vmmov %vm20089_vm0 }
 0x729   : > { %v10319_v42 = vsel %vm20133_vm4, %v10255_v47, 0.0  ;;  %v20137_v47 = vld [vmem:[#allocation47_spill] sm:$0xff]  ;;  %vm20152_vm4 = vmmov %vm20089_vm0 }
 0x72a   : > { %v10320_v25 = vadd.f32 %v10319_v42, %v10318_v62  ;;  %v20139_v62 = vld [vmem:[#allocation48_spill] sm:$0xff] }
 0x72c   : > { %v10322_v36 = vadd.f32 %v10321_v18, %v10320_v25  ;;  %v20140_v18 = vld [vmem:[#allocation49_spill] sm:$0xff] }
 0x72e   : > { %v10324_v59 = vadd.f32 %v10323_v15, %v10322_v36 }
 0x73e   : > { %v11885_v24 = vpop.f32.mrb[32].mxu1 }
 0x73f   : > { %v10211_v27 = vpop.f32.mrb[33].mxu1  ;;  %v10220_v63 = vadd.f32 %v11885_v24, %v18089_v48 }
 0x740   : > { %v10212_v34 = vadd.f32 %v18089_v48, %v10211_v27  ;;  %v11886_v43 = vpop.f32.mrb[34].mxu1 }
 0x741   : > { %v10214_v9 = vpop.f32.mrb[35].mxu1  ;;  %v10223_v22 = vadd.f32 %v11886_v43, %v18089_v48  ;;  %v10260_v32 = vmul.f32 %v20137_v47, %v10220_v63 }
 0x742   : > { %v10258_v53 = vmul.f32 %v20136_v51, %v10212_v34  ;;  %v10215_v42 = vadd.f32 %v18089_v48, %v10214_v9 }
 0x743   : > { %v10261_v15 = vmul.f32 %v20140_v18, %v10223_v22  ;;  %v10329_v57 = vsel %vm20142_vm12, %v10260_v32, 0.0  ;;  %vm20162_vm12 = vmmov %vm20089_vm0 }
 0x744   : > { %v10325_v25 = vsel %vm20138_vm3, %v10258_v53, 0.0  ;;  %v10259_v36 = vmul.f32 %v20139_v62, %v10215_v42  ;;  %vm20156_vm3 = vmmov %vm20089_vm0 }
 0x745   : > { %v10326_v21 = vadd.f32 %v10325_v25, %v10324_v59  ;;  %v10331_v51 = vsel %vm20143_vm15, %v10261_v15, 0.0  ;;  %vm20165_vm15 = vmmov %vm20089_vm0 }
 0x746   : > { %v10327_v24 = vsel %vm20141_vm2, %v10259_v36, 0.0  ;;  %vm20159_vm2 = vmmov %vm20089_vm0 }
 0x747   : > { %v10328_v27 = vadd.f32 %v10327_v24, %v10326_v21 }
 0x749   : > { %v10330_v46 = vadd.f32 %v10329_v57, %v10328_v27 }
 0x74b   : > { %v10332_v43 = vadd.f32 %v10331_v51, %v10330_v46 }
 0x74d   : > { %v10333_v4 = vrot.slane %v10332_v43, 4 }
 0x74f   : > { %v10334_v48 = vadd.f32 %v10333_v4, %v10332_v43 }
 0x751   : > { %v10335_v9 = vrot.slane %v10334_v48, 2 }
 0x753   : > { %v10336_v47 = vadd.f32 %v10335_v9, %v10334_v48 }
 0x755   : > { %v10337_v10 = vrot.slane %v10336_v47, 1 }
 0x757   : > { %v10338_v53 = vadd.f32 %v10337_v10, %v10336_v47 }
 0x759   : > { %v18296_v45 = vmul.f32 0.00390625, %v10338_v53 }
 0x75b   : > { %v18299_v59 = vsub.f32 %v10196_v6, %v18296_v45  ;;  %v18302_v25 = vsub.f32 %v10199_v26, %v18296_v45  ;;  %v18305_v32 = vsub.f32 %v10204_v29, %v18296_v45  ;;  %v18308_v57 = vsub.f32 %v10207_v37, %v18296_v45 }
 0x75c   : > { %v18311_v4 = vsub.f32 %v10212_v34, %v18296_v45  ;;  %v18314_v46 = vsub.f32 %v10215_v42, %v18296_v45  ;;  %v18317_v10 = vsub.f32 %v10220_v63, %v18296_v45  ;;  %v18320_v6 = vsub.f32 %v10223_v22, %v18296_v45 }
 0x75d   : > { %v18324_v26 = vsub.f32 %v18095_v38, %v18296_v45  ;;  %v18328_v29 = vsub.f32 %v18092_v8, %v18296_v45  ;;  %v18332_v37 = vsub.f32 %v18107_v28, %v18296_v45  ;;  %v18336_v34 = vsub.f32 %v18117_v60, %v18296_v45 }
 0x75e   : > { %v18344_v38 = vsub.f32 %v18120_v49, %v18296_v45  ;;  %v18350_v28 = vsub.f32 %v18128_v55, %v18296_v45 }
 0x75f   : > { %v10376_v22 = vmul.f32 %v20065_v33, %v18324_v26  ;;  %v10377_v63 = vmul.f32 %v20064_v11, %v18328_v29  ;;  %v10378_v8 = vmul.f32 %v20067_v61, %v18332_v37  ;;  %v10379_v60 = vmul.f32 %v20070_v44, %v18336_v34 }
 0x760   : > { %v18356_v33 = vsub.f32 %v18135_v54, %v18296_v45  ;;  %v10380_v11 = vmul.f32 %v20071_v1, %v18344_v38  ;;  %v18362_v61 = vsub.f32 %v18141_v13, %v18296_v45  ;;  %v10381_v55 = vmul.f32 %v20074_v35, %v18350_v28 }
 0x761   : > { %v10412_v51 = vmul.f32 %v10376_v22, %v10376_v22  ;;  %v10413_v42 = vmul.f32 %v10377_v63, %v10377_v63  ;;  %v10414_v49 = vmul.f32 %v10378_v8, %v10378_v8  ;;  %v10415_v47 = vmul.f32 %v10379_v60, %v10379_v60 }
 0x762   : > { %v18370_v54 = vsub.f32 %v18144_v16, %v18296_v45  ;;  %v10382_v1 = vmul.f32 %v20076_v19, %v18356_v33  ;;  %v10416_v15 = vmul.f32 %v10380_v11, %v10380_v11  ;;  %v18377_v35 = vsub.f32 %v18152_v40, %v18296_v45 }
 0x763   : > { %v10448_v44 = vsel %vm20144_vm8, %v10412_v51, 0.0  ;;  %v10449_v36 = vsel %vm20145_vm7, %v10413_v42, 0.0  ;;  %v10451_v13 = vsel %vm20146_vm5, %v10414_v49, 0.0  ;;  %v10383_v27 = vmul.f32 %v20078_v58, %v18362_v61  ;;  %vm20168_vm8 = vmmov %vm20089_vm0 }
 0x764   : > { %v10450_v21 = vadd.f32 %v10449_v36, %v10448_v44  ;;  %v10417_v43 = vmul.f32 %v10381_v55, %v10381_v55  ;;  %v10453_v48 = vsel %vm20147_vm13, %v10415_v47, 0.0  ;;  %v18384_v16 = vsub.f32 %v18159_v12, %v18296_v45  ;;  %vm20171_vm7 = vmmov %vm20089_vm0 }
 0x765   : > { %v10384_v19 = vmul.f32 %v20079_v52, %v18370_v54  ;;  %v10418_v53 = vmul.f32 %v10382_v1, %v10382_v1  ;;  %v10455_v22 = vsel %vm20148_vm11, %v10416_v15, 0.0  ;;  %v18391_v40 = vsub.f32 %v18165_v20, %v18296_v45  ;;  %vm20174_vm5 = vmmov %vm20089_vm0 }
 0x766   : > { %v10452_v24 = vadd.f32 %v10451_v13, %v10450_v21  ;;  %v10385_v58 = vmul.f32 %v20082_v23, %v18377_v35  ;;  %v10419_v8 = vmul.f32 %v10383_v27, %v10383_v27  ;;  %v10457_v60 = vsel %vm20149_vm1, %v10417_v43, 0.0  ;;  %vm20177_vm13 = vmmov %vm20089_vm0 }
 0x767   : > { %v18398_v12 = vsub.f32 %v18168_v17, %v18296_v45  ;;  %v10386_v52 = vmul.f32 %v20084_v30, %v18384_v16  ;;  %v10420_v42 = vmul.f32 %v10384_v19, %v10384_v19  ;;  %v10459_v11 = vsel %vm20150_vm9, %v10418_v53, 0.0  ;;  %vm20180_vm11 = vmmov %vm20089_vm0 }
 0x768   : > { %v10454_v9 = vadd.f32 %v10453_v48, %v10452_v24  ;;  %v18405_v20 = vsub.f32 %v18176_v2, %v18296_v45  ;;  %v10387_v23 = vmul.f32 %v20086_v39, %v18391_v40  ;;  %v10421_v55 = vmul.f32 %v10385_v58, %v10385_v58  ;;  %vm20183_vm1 = vmmov %vm20089_vm0 }
 0x769   : > { %v10461_v47 = vsel %vm20151_vm10, %v10419_v8, 0.0  ;;  %v18412_v17 = vsub.f32 %v18184_v0, %v18296_v45  ;;  %v10388_v30 = vmul.f32 %v20087_v7, %v18398_v12  ;;  %v10422_v36 = vmul.f32 %v10386_v52, %v10386_v52  ;;  %vm20185_vm9 = vmmov %vm20089_vm0 }
 0x76a   : > { %v10456_v63 = vadd.f32 %v10455_v22, %v10454_v9  ;;  %v10463_v21 = vsel %vm20089_vm0, %v10420_v42, 0.0  ;;  %v18419_v2 = vsub.f32 %v18191_v31, %v18296_v45  ;;  %v10389_v39 = vmul.f32 %v20090_v3, %v18405_v20  ;;  %vm20187_vm10 = vmmov %vm20089_vm0 }
 0x76b   : > { %v10423_v15 = vmul.f32 %v10387_v23, %v10387_v23  ;;  %v10465_v13 = vsel %vm20152_vm4, %v10421_v55, 0.0  ;;  %v18426_v0 = vsub.f32 %v18194_v41, %v18296_v45  ;;  %v10390_v7 = vmul.f32 %v20092_v14, %v18412_v17  ;;  %v20155_v14 = vld [vmem:[#allocation27_spill] sm:$0xff]  ;;  %v20161_v23 = vld [vmem:[#allocation29_spill] sm:$0xff]  ;;  %vm20190_vm4 = vmmov %vm20089_vm0 }
 0x76c   : > { %v10458_v51 = vadd.f32 %v10457_v60, %v10456_v63  ;;  %v10424_v27 = vmul.f32 %v10388_v30, %v10388_v30  ;;  %v10467_v43 = vsel %vm20153_vm6, %v10422_v36, 0.0  ;;  %v18433_v31 = vsub.f32 %v18203_v5, %v18296_v45  ;;  %v20157_v5 = vld [vmem:[#allocation34_spill] sm:$0xff]  ;;  %vm20192_vm6 = vmmov %vm20089_vm0 }
 0x76d   : > { %v10391_v3 = vmul.f32 %v20094_v50, %v18419_v2  ;;  %v10425_v9 = vmul.f32 %v10389_v39, %v10389_v39  ;;  %v10469_v19 = vsel %vm20154_vm14, %v10423_v15, 0.0  ;;  %v18440_v41 = vsub.f32 %v18211_v56, %v18296_v45  ;;  %v20158_v50 = vld [vmem:[#allocation28_spill] sm:$0xff]  ;;  %v20160_v56 = vld [vmem:[#allocation5_spill] sm:$0xff]  ;;  %v20163_v36 = vld [vmem:[#allocation50_spill] sm:$0xff] }
 0x76e   : > { %v10460_v49 = vadd.f32 %v10459_v11, %v10458_v51  ;;  %v10392_v22 = vmul.f32 %v20155_v14, %v18426_v0  ;;  %v10426_v63 = vmul.f32 %v10390_v7, %v10390_v7  ;;  %v10471_v58 = vsel %vm20156_vm3, %v10424_v27, 0.0  ;;  %v20166_v7 = vld [vmem:[#allocation31_spill] sm:$0xff]  ;;  %vm20194_vm14 = vmmov %vm20089_vm0 }
 0x76f   : > { %v18447_v60 = vsub.f32 %v20157_v5, %v18296_v45  ;;  %v10393_v51 = vmul.f32 %v20158_v50, %v18433_v31  ;;  %v10427_v52 = vmul.f32 %v10391_v3, %v10391_v3  ;;  %v10473_v42 = vsel %vm20159_vm2, %v10425_v9, 0.0  ;;  %v20172_v50 = vld [vmem:[#allocation20_spill] sm:$0xff]  ;;  %vm20196_vm3 = vmmov %vm20089_vm0 }
 0x770   : > { %v10462_v44 = vadd.f32 %v10461_v47, %v10460_v49  ;;  %v18454_v49 = vsub.f32 %v20160_v56, %v18296_v45  ;;  %v10394_v55 = vmul.f32 %v20161_v23, %v18440_v41  ;;  %v10428_v47 = vmul.f32 %v10392_v22, %v10392_v22  ;;  %v20170_v22 = vld [vmem:[#allocation35_spill] sm:$0xff]  ;;  %vm20197_vm2 = vmmov %vm20089_vm0 }
 0x771   : > { %v10429_v15 = vmul.f32 %v10393_v51, %v10393_v51  ;;  %v18468_v27 = vsub.f32 %v20166_v7, %v18296_v45  ;;  %v18482_v51 = vsub.f32 %v20172_v50, %v18296_v45 }
 0x772   : > { %v10464_v1 = vadd.f32 %v10463_v21, %v10462_v44  ;;  %v10475_v44 = vsel %vm20162_vm12, %v10426_v63, 0.0  ;;  %v18461_v21 = vsub.f32 %v20163_v36, %v18296_v45  ;;  %v10430_v3 = vmul.f32 %v10394_v55, %v10394_v55  ;;  %v20175_v55 = vld [vmem:[#allocation14_spill] sm:$0xff]  ;;  %vm20199_vm12 = vmmov %vm20089_vm0 }
 0x773   : > { %v10479_v9 = vsel %vm20168_vm8, %v10428_v47, 0.0  ;;  %v18489_v47 = vsub.f32 %v20175_v55, %v18296_v45  ;;  %vm20201_vm8 = vmmov %vm20089_vm0 }
 0x774   : > { %v10466_v24 = vadd.f32 %v10465_v13, %v10464_v1  ;;  %v20164_v1 = vld [vmem:[#allocation30_spill] sm:$0xff]  ;;  %v10477_v13 = vsel %vm20165_vm15, %v10427_v52, 0.0  ;;  %v10397_v63 = vmul.f32 %v20170_v22, %v18461_v21  ;;  %v20173_v52 = vld [vmem:[#allocation36_spill] sm:$0xff]  ;;  %v10483_v56 = vsel %vm20174_vm5, %v10430_v3, 0.0  ;;  %vm20200_vm15 = vmmov %vm20089_vm0 }
 0x775   : > { %v10395_v39 = vmul.f32 %v20164_v1, %v18447_v60  ;;  %vm20203_vm5 = vmmov %vm20089_vm0 }
 0x776   : > { %v10468_v48 = vadd.f32 %v10467_v43, %v10466_v24  ;;  %v20167_v43 = vld [vmem:[#allocation33_spill] sm:$0xff]  ;;  %v10433_v36 = vmul.f32 %v10397_v63, %v10397_v63 }
 0x778   : > { %v10470_v53 = vadd.f32 %v10469_v19, %v10468_v48  ;;  %v10396_v48 = vmul.f32 %v20167_v43, %v18454_v49 }
 0x77a   : > { %v10472_v8 = vadd.f32 %v10471_v58, %v10470_v53  ;;  %v20169_v53 = vld [vmem:[#allocation19_spill] sm:$0xff]  ;;  %v10431_v58 = vmul.f32 %v10395_v39, %v10395_v39 }
 0x77b   : > { %v18475_v14 = vsub.f32 %v20169_v53, %v18296_v45  ;;  %v20182_v53 = vld [vmem:[#allocation39_spill] sm:$0xff] }
 0x77c   : > { %v10474_v11 = vadd.f32 %v10473_v42, %v10472_v8  ;;  %v10481_v8 = vsel %vm20171_vm7, %v10429_v15, 0.0  ;;  %v10398_v42 = vmul.f32 %v20173_v52, %v18468_v27  ;;  %v10485_v1 = vsel %vm20177_vm13, %v10431_v58, 0.0  ;;  %v20178_v15 = vld [vmem:[#allocation4_spill] sm:$0xff]  ;;  %vm20202_vm7 = vmmov %vm20089_vm0 }
 0x77d   : > { %v10401_v22 = vmul.f32 %v20182_v53, %v18489_v47  ;;  %v10489_v58 = vsel %vm20183_vm1, %v10433_v36, 0.0  ;;  %vm20204_vm13 = vmmov %vm20089_vm0 }
 0x77e   : > { %v10476_v30 = vadd.f32 %v10475_v44, %v10474_v11  ;;  %v10432_v11 = vmul.f32 %v10396_v48, %v10396_v48  ;;  %v20176_v44 = vld [vmem:[#allocation37_spill] sm:$0xff]  ;;  %v10434_v43 = vmul.f32 %v10398_v42, %v10398_v42 }
 0x77f   : > { %v10437_v55 = vmul.f32 %v10401_v22, %v10401_v22 }
 0x780   : > { %v10478_v24 = vadd.f32 %v10477_v13, %v10476_v30  ;;  %v10399_v30 = vmul.f32 %v20176_v44, %v18475_v14  ;;  %v18496_v13 = vsub.f32 %v20178_v15, %v18296_v45  ;;  %v10487_v48 = vsel %vm20180_vm11, %v10432_v11, 0.0  ;;  %v20186_v11 = vld [vmem:[#allocation41_spill] sm:$0xff] }
 0x781   : > { %v10491_v42 = vsel %vm20185_vm9, %v10434_v43, 0.0  ;;  %v10497_v43 = vsel %vm20190_vm4, %v10437_v55, 0.0 }
 0x782   : > { %v10480_v19 = vadd.f32 %v10479_v9, %v10478_v24  ;;  %v20179_v24 = vld [vmem:[#allocation38_spill] sm:$0xff]  ;;  %v20181_v9 = vld [vmem:[#allocation23_spill] sm:$0xff]  ;;  %v10435_v63 = vmul.f32 %v10399_v30, %v10399_v30 }
 0x783   : > { %v10400_v7 = vmul.f32 %v20179_v24, %v18482_v51  ;;  %v20189_v24 = vld [vmem:[#allocation44_spill] sm:$0xff] }
 0x784   : > { %v10482_v5 = vadd.f32 %v10481_v8, %v10480_v19  ;;  %v18503_v19 = vsub.f32 %v20181_v9, %v18296_v45  ;;  %v10493_v45 = vsel %vm20187_vm10, %v10435_v63, 0.0  ;;  %v20191_v9 = vld [vmem:[#allocation43_spill] sm:$0xff] }
 0x785   : > { %v10436_v52 = vmul.f32 %v10400_v7, %v10400_v7  ;;  %v10405_v7 = vmul.f32 %v20189_v24, %v18302_v25  ;;  %v10406_v53 = vmul.f32 %v20191_v9, %v18305_v32 }
 0x786   : > { %v10484_v23 = vadd.f32 %v10483_v56, %v10482_v5  ;;  %v20184_v5 = vld [vmem:[#allocation40_spill] sm:$0xff] }
 0x787   : > { %v10402_v50 = vmul.f32 %v20184_v5, %v18496_v13  ;;  %v10495_v36 = vsel %vm20089_vm0, %v10436_v52, 0.0 }
 0x788   : > { %v10486_v39 = vadd.f32 %v10485_v1, %v10484_v23  ;;  %v10403_v23 = vmul.f32 %v20186_v11, %v18503_v19  ;;  %v20188_v1 = vld [vmem:[#allocation42_spill] sm:$0xff] }
 0x789   : > { %v10404_v30 = vmul.f32 %v20188_v1, %v18299_v59 }
 0x78a   : > { %v10488_v3 = vadd.f32 %v10487_v48, %v10486_v39  ;;  %v10438_v39 = vmul.f32 %v10402_v50, %v10402_v50  ;;  %v10439_v48 = vmul.f32 %v10403_v23, %v10403_v23  ;;  %v10441_v50 = vmul.f32 %v10405_v7, %v10405_v7 }
 0x78b   : > { %v10440_v22 = vmul.f32 %v10404_v30, %v10404_v30  ;;  %v10442_v23 = vmul.f32 %v10406_v53, %v10406_v53 }
 0x78c   : > { %v10490_v8 = vadd.f32 %v10489_v58, %v10488_v3  ;;  %v10499_v63 = vsel %vm20192_vm6, %v10438_v39, 0.0  ;;  %v10501_v52 = vsel %vm20194_vm14, %v10439_v48, 0.0  ;;  %v10505_v30 = vsel %vm20197_vm2, %v10441_v50, 0.0 }
 0x78d   : > { %v10503_v55 = vsel %vm20196_vm3, %v10440_v22, 0.0  ;;  %v10507_v7 = vsel %vm20199_vm12, %v10442_v23, 0.0 }
 0x78e   : > { %v10492_v56 = vadd.f32 %v10491_v42, %v10490_v8  ;;  %v20193_v8 = vld [vmem:[#allocation45_spill] sm:$0xff] }
 0x78f   : > { %v10407_v5 = vmul.f32 %v20193_v8, %v18308_v57 }
 0x790   : > { %v10494_v44 = vadd.f32 %v10493_v45, %v10492_v56  ;;  %v20195_v56 = vld [vmem:[#allocation46_spill] sm:$0xff] }
 0x791   : > { %v10408_v11 = vmul.f32 %v20195_v56, %v18311_v4  ;;  %v10443_v1 = vmul.f32 %v10407_v5, %v10407_v5 }
 0x792   : > { %v10496_v15 = vadd.f32 %v10495_v36, %v10494_v44  ;;  %v10409_v44 = vmul.f32 %v20139_v62, %v18314_v46  ;;  %v20198_v36 = vld [vmem:[#allocation47_spill] sm:$0xff] }
 0x793   : > { %v10444_v24 = vmul.f32 %v10408_v11, %v10408_v11  ;;  %v10509_v9 = vsel %vm20200_vm15, %v10443_v1, 0.0 }
 0x794   : > { %v10498_v3 = vadd.f32 %v10497_v43, %v10496_v15  ;;  %v10410_v15 = vmul.f32 %v20198_v36, %v18317_v10  ;;  %v10411_v43 = vmul.f32 %v20140_v18, %v18320_v6 }
 0x795   : > { %v10511_v62 = vsel %vm20201_vm8, %v10444_v24, 0.0 }
 0x796   : > { %v10500_v58 = vadd.f32 %v10499_v63, %v10498_v3  ;;  %v10445_v3 = vmul.f32 %v10409_v44, %v10409_v44  ;;  %v10446_v22 = vmul.f32 %v10410_v15, %v10410_v15 }
 0x798   : > { %v10502_v42 = vadd.f32 %v10501_v52, %v10500_v58  ;;  %v10447_v58 = vmul.f32 %v10411_v43, %v10411_v43  ;;  %v10513_v8 = vsel %vm20202_vm7, %v10445_v3, 0.0  ;;  %v10515_v50 = vsel %vm20203_vm5, %v10446_v22, 0.0 }
 0x79a   : > { %v10504_v45 = vadd.f32 %v10503_v55, %v10502_v42  ;;  %v10517_v42 = vsel %vm20204_vm13, %v10447_v58, 0.0 }
 0x79c   : > { %v10506_v39 = vadd.f32 %v10505_v30, %v10504_v45 }
 0x79e   : > { %v10508_v48 = vadd.f32 %v10507_v7, %v10506_v39 }
 0x7a0   : > { %v10510_v53 = vadd.f32 %v10509_v9, %v10508_v48 }
 0x7a2   : > { %v10512_v63 = vadd.f32 %v10511_v62, %v10510_v53 }
 0x7a4   : > { %v10514_v5 = vadd.f32 %v10513_v8, %v10512_v63 }
 0x7a6   : > { %v10516_v52 = vadd.f32 %v10515_v50, %v10514_v5 }
 0x7a8   : > { %v10518_v56 = vadd.f32 %v10517_v42, %v10516_v52 }
 0x7aa   : > { %v10519_v11 = vrot.slane %v10518_v56, 4 }
 0x7ac   : > { %v10520_v18 = vadd.f32 %v10519_v11, %v10518_v56 }
 0x7ae   : > { %v10521_v23 = vrot.slane %v10520_v18, 2 }
 0x7b0   : > { %v10522_v55 = vadd.f32 %v10521_v23, %v10520_v18 }
 0x7b2   : > { %v10523_v45 = vrot.slane %v10522_v55, 1 }
 0x7b4   : > { %v10524_v44 = vadd.f32 %v10523_v45, %v10522_v55 }
 0x7b6   : > { %v10525_v1 = vmul.f32 0.00390625, %v10524_v44 }
 0x7b8   : > { %v10526_v30 = vadd.f32 1e-05, %v10525_v1 }
 0x7ba   : > { %12510 = vrsqrt.f32 %v10526_v30 }
 0x7c4   : > { %v12511_v39 = vpop.eup %12510 }
 0x7c5   : > { %v10551_v36 = vmul.f32 %v12511_v39, %v18475_v14  ;;  %v10552_v15 = vmul.f32 %v12511_v39, %v18482_v51  ;;  %v10553_v24 = vmul.f32 %v12511_v39, %v18489_v47  ;;  %v10554_v7 = vmul.f32 %v12511_v39, %v18496_v13 }
 0x7c6   : > { %v10555_v48 = vmul.f32 %v12511_v39, %v18503_v19  ;;  %v10556_v43 = vmul.f32 %v12511_v39, %v18299_v59  ;;  %v10557_v3 = vmul.f32 %v12511_v39, %v18302_v25  ;;  %v10558_v9 = vmul.f32 %v12511_v39, %v18305_v32 }
 0x7c7   : > { %v10559_v53 = vmul.f32 %v12511_v39, %v18308_v57  ;;  %v10560_v22 = vmul.f32 %v12511_v39, %v18311_v4  ;;  %v10561_v14 = vmul.f32 %v12511_v39, %v18314_v46  ;;  %v10562_v51 = vmul.f32 %v12511_v39, %v18317_v10 }
 0x7c8   : > { %v10563_v47 = vmul.f32 %v12511_v39, %v18320_v6  ;;  %v10528_v13 = vmul.f32 %v12511_v39, %v18324_v26  ;;  %v10529_v19 = vmul.f32 %v12511_v39, %v18328_v29  ;;  %v10530_v59 = vmul.f32 %v12511_v39, %v18332_v37 }
 0x7c9   : > { %v10531_v25 = vmul.f32 %v12511_v39, %v18336_v34  ;;  %v10532_v32 = vmul.f32 %v12511_v39, %v18344_v38  ;;  %v10533_v57 = vmul.f32 %v12511_v39, %v18350_v28  ;;  %v10534_v4 = vmul.f32 %v12511_v39, %v18356_v33  ;;  %v11643_v38 = vld [vmem:[%s19045_s8] ss:$0 sm:$0xff] }
 0x7ca   : > { %v10535_v46 = vmul.f32 %v12511_v39, %v18362_v61  ;;  %v10536_v10 = vmul.f32 %v12511_v39, %v18370_v54  ;;  %v10537_v6 = vmul.f32 %v12511_v39, %v18377_v35  ;;  %v10538_v26 = vmul.f32 %v12511_v39, %v18384_v16 }
 0x7cb   : > { %v10539_v29 = vmul.f32 %v12511_v39, %v18391_v40  ;;  %v10540_v37 = vmul.f32 %v12511_v39, %v18398_v12  ;;  %v10541_v34 = vmul.f32 %v12511_v39, %v18405_v20  ;;  %v10542_v28 = vmul.f32 %v12511_v39, %v18412_v17 }
 0x7cc   : > { %v10543_v33 = vmul.f32 %v12511_v39, %v18419_v2  ;;  %v10544_v61 = vmul.f32 %v12511_v39, %v18426_v0  ;;  %v10545_v54 = vmul.f32 %v12511_v39, %v18433_v31  ;;  %v10546_v35 = vmul.f32 %v12511_v39, %v18440_v41 }
 0x7cd   : > { %v10547_v16 = vmul.f32 %v12511_v39, %v18447_v60  ;;  %v10548_v40 = vmul.f32 %v12511_v39, %v18454_v49  ;;  %v10549_v12 = vmul.f32 %v12511_v39, %v18461_v21  ;;  %v10550_v20 = vmul.f32 %v12511_v39, %v18468_v27 }
 0x7ce   : > { %v10571_v62 = vmul.f32 %v11643_v38, %v10528_v13  ;;  %v10572_v63 = vmul.f32 %v11643_v38, %v10529_v19  ;;  %v10573_v58 = vmul.f32 %v11643_v38, %v10530_v59  ;;  %v10574_v17 = vmul.f32 %v11643_v38, %v10531_v25  ;;  %v11644_v13 = vld [vmem:[%s19046_s9] ss:$0 sm:$0xff] }
 0x7cf   : > { %v10575_v8 = vmul.f32 %v11643_v38, %v10532_v32  ;;  %v10576_v2 = vmul.f32 %v11643_v38, %v10533_v57  ;;  %v10577_v5 = vmul.f32 %v11643_v38, %v10534_v4  ;;  %v10578_v0 = vmul.f32 %v11643_v38, %v10535_v46 }
 0x7d0   : > { %v10579_v50 = vmul.f32 %v11643_v38, %v10536_v10  ;;  %v10580_v31 = vmul.f32 %v11643_v38, %v10537_v6  ;;  %v10581_v52 = vmul.f32 %v11643_v38, %v10538_v26  ;;  %v10582_v41 = vmul.f32 %v11643_v38, %v10539_v29 }
 0x7d1   : > { %v10583_v42 = vmul.f32 %v11643_v38, %v10540_v37  ;;  %v10584_v60 = vmul.f32 %v11643_v38, %v10541_v34  ;;  %v10585_v56 = vmul.f32 %v11643_v38, %v10542_v28  ;;  %v10586_v49 = vmul.f32 %v11643_v38, %v10543_v33 }
 0x7d2   : > { %v10587_v11 = vmul.f32 %v11643_v38, %v10544_v61  ;;  %v10588_v21 = vmul.f32 %v11643_v38, %v10545_v54  ;;  %v10589_v18 = vmul.f32 %v11643_v38, %v10546_v35  ;;  %v10590_v27 = vmul.f32 %v11643_v38, %v10547_v16 }
 0x7d3   : > { %v10591_v23 = vmul.f32 %v11643_v38, %v10548_v40  ;;  %v10592_v55 = vmul.f32 %v11643_v38, %v10549_v12  ;;  %v10593_v45 = vmul.f32 %v11643_v38, %v10550_v20  ;;  %v10594_v44 = vmul.f32 %v11643_v38, %v10551_v36 }
 0x7d4   : > { %v10595_v1 = vmul.f32 %v11643_v38, %v10552_v15  ;;  %v10596_v30 = vmul.f32 %v11643_v38, %v10553_v24  ;;  %v10597_v39 = vmul.f32 %v11643_v38, %v10554_v7  ;;  %v10598_v19 = vmul.f32 %v11643_v38, %v10555_v48 }
 0x7d5   : > { %v10599_v59 = vmul.f32 %v11643_v38, %v10556_v43  ;;  %v10600_v25 = vmul.f32 %v11643_v38, %v10557_v3  ;;  %v10601_v32 = vmul.f32 %v11643_v38, %v10558_v9  ;;  %v10602_v57 = vmul.f32 %v11643_v38, %v10559_v53 }
 0x7d6   : > { %v10603_v4 = vmul.f32 %v11643_v38, %v10560_v22  ;;  %v10604_v46 = vmul.f32 %v11643_v38, %v10561_v14  ;;  %v10605_v10 = vmul.f32 %v11643_v38, %v10562_v51  ;;  %v10606_v6 = vmul.f32 %v11643_v38, %v10563_v47 }
 0x7d7   : > { %v18584_v26 = vadd.f32 %v11644_v13, %v10571_v62  ;;  %v18586_v29 = vadd.f32 %v11644_v13, %v10572_v63  ;;  %v18588_v36 = vadd.f32 %v11644_v13, %v10573_v58  ;;  %v18590_v15 = vadd.f32 %v11644_v13, %v10574_v17 }
 0x7d8   : > { %v18592_v24 = vadd.f32 %v11644_v13, %v10575_v8  ;;  %v18594_v7 = vadd.f32 %v11644_v13, %v10576_v2  ;;  %v18596_v48 = vadd.f32 %v11644_v13, %v10577_v5  ;;  %v18598_v43 = vadd.f32 %v11644_v13, %v10578_v0 }
 0x7d9   : > { %v18600_v3 = vadd.f32 %v11644_v13, %v10579_v50  ;;  %v18602_v9 = vadd.f32 %v11644_v13, %v10580_v31  ;;  %v18604_v53 = vadd.f32 %v11644_v13, %v10581_v52  ;;  %v18606_v22 = vadd.f32 %v11644_v13, %v10582_v41 }
 0x7da   : > { %v18608_v14 = vadd.f32 %v11644_v13, %v10583_v42  ;;  %v18610_v51 = vadd.f32 %v11644_v13, %v10584_v60  ;;  %v18612_v47 = vadd.f32 %v11644_v13, %v10585_v56  ;;  %v18614_v37 = vadd.f32 %v11644_v13, %v10586_v49 }
 0x7db   : > { %v18616_v34 = vadd.f32 %v11644_v13, %v10587_v11  ;;  %v18618_v38 = vadd.f32 %v11644_v13, %v10588_v21  ;;  %v18620_v28 = vadd.f32 %v11644_v13, %v10589_v18  ;;  %v18622_v33 = vadd.f32 %v11644_v13, %v10590_v27 }
 0x7dc   : > { %v18624_v61 = vadd.f32 %v11644_v13, %v10591_v23  ;;  %v18626_v54 = vadd.f32 %v11644_v13, %v10592_v55  ;;  %v18628_v35 = vadd.f32 %v11644_v13, %v10593_v45  ;;  %v18630_v16 = vadd.f32 %v11644_v13, %v10594_v44 }
 0x7dd   : > { %v18632_v40 = vadd.f32 %v11644_v13, %v10595_v1  ;;  %v18634_v12 = vadd.f32 %v11644_v13, %v10596_v30  ;;  %v18636_v20 = vadd.f32 %v11644_v13, %v10597_v39  ;;  %v18638_v62 = vadd.f32 %v11644_v13, %v10598_v19 }
 0x7de   : > { %v18640_v63 = vadd.f32 %v11644_v13, %v10599_v59  ;;  %v18642_v58 = vadd.f32 %v11644_v13, %v10600_v25  ;;  %v18644_v17 = vadd.f32 %v11644_v13, %v10601_v32  ;;  %v18646_v8 = vadd.f32 %v11644_v13, %v10602_v57 }
 0x7df   : > { %v18648_v2 = vadd.f32 %v11644_v13, %v10603_v4  ;;  %v18650_v5 = vadd.f32 %v11644_v13, %v10604_v46  ;;  %vm10650_vm11 = vcmp.gt.f32.partialorder %v18584_v26, 0.0  ;;  %vm10651_vm1 = vcmp.gt.f32.partialorder %v18586_v29, 0.0 }
 0x7e0   : > { %vm10652_vm9 = vcmp.gt.f32.partialorder %v18588_v36, 0.0  ;;  %vm10653_vm10 = vcmp.gt.f32.partialorder %v18590_v15, 0.0  ;;  %vm10654_vm0 = vcmp.gt.f32.partialorder %v18592_v24, 0.0  ;;  %vm10655_vm4 = vcmp.gt.f32.partialorder %v18594_v7, 0.0 }
 0x7e1   : > { %vm10656_vm6 = vcmp.gt.f32.partialorder %v18596_v48, 0.0  ;;  %vm10657_vm14 = vcmp.gt.f32.partialorder %v18598_v43, 0.0  ;;  %vm10658_vm3 = vcmp.gt.f32.partialorder %v18600_v3, 0.0  ;;  %v18661_v0 = vadd.f32 %v11644_v13, %v10605_v10 }
 0x7e2   : > { %v10686_v50 = vmul.f32 0.1, %v18584_v26  ;;  %v10687_v31 = vmul.f32 0.1, %v18586_v29  ;;  %v10688_v52 = vmul.f32 0.1, %v18588_v36  ;;  %v18667_v41 = vadd.f32 %v11644_v13, %v10606_v6 }
 0x7e3   : > { %vm10661_vm15 = vcmp.gt.f32.partialorder %v18606_v22, 0.0  ;;  %vm10662_vm8 = vcmp.gt.f32.partialorder %v18608_v14, 0.0  ;;  %v10689_v42 = vmul.f32 0.1, %v18590_v15  ;;  %v10690_v60 = vmul.f32 0.1, %v18592_v24 }
 0x7e4   : > { %v10691_v56 = vmul.f32 0.1, %v18594_v7  ;;  %vm10667_vm12 = vcmp.gt.f32.partialorder %v18618_v38, 0.0  ;;  %v10692_v49 = vmul.f32 0.1, %v18596_v48  ;;  %v18686_v18 = vsel %vm10650_vm11, %v18584_v26, %v10686_v50 }
 0x7e5   : > { %v10693_v11 = vmul.f32 0.1, %v18598_v43  ;;  %v10694_v21 = vmul.f32 0.1, %v18600_v3  ;;  %vm10671_vm2 = vcmp.gt.f32.partialorder %v18626_v54, 0.0  ;;  %v18698_v45 = vsel %vm10651_vm1, %v18586_v29, %v10687_v31 }
 0x7e6   : > { %v10695_v27 = vmul.f32 0.1, %v18602_v9  ;;  %v10696_v23 = vmul.f32 0.1, %v18604_v53  ;;  %v10697_v55 = vmul.f32 0.1, %v18606_v22  ;;  %v18710_v39 = vsel %vm10652_vm9, %v18588_v36, %v10688_v52 }
 0x7e7   : > { %vm10675_vm13 = vcmp.gt.f32.partialorder %v18634_v12, 0.0  ;;  %v10698_v44 = vmul.f32 0.1, %v18608_v14  ;;  %v10699_v1 = vmul.f32 0.1, %v18610_v51  ;;  %vm10679_vm5 = vcmp.gt.f32.partialorder %v18642_v58, 0.0 }
 0x7e8   : > { %v10700_v30 = vmul.f32 0.1, %v18612_v47  ;;  %v10701_v13 = vmul.f32 0.1, %v18614_v37  ;;  %v10702_v19 = vmul.f32 0.1, %v18616_v34  ;;  %v18722_v25 = vsel %vm10653_vm10, %v18590_v15, %v10689_v42 }
 0x7e9   : > { %v10703_v59 = vmul.f32 0.1, %v18618_v38  ;;  %vm10681_vm1 = vcmp.gt.f32.partialorder %v18646_v8, 0.0  ;;  %vm10682_vm11 = vcmp.gt.f32.partialorder %v18648_v2, 0.0  ;;  %vm10683_vm7 = vcmp.gt.f32.partialorder %v18650_v5, 0.0 }
 0x7ea   : > { %v10704_v32 = vmul.f32 0.1, %v18620_v28  ;;  %v10705_v57 = vmul.f32 0.1, %v18622_v33  ;;  %v10706_v4 = vmul.f32 0.1, %v18624_v61  ;;  %v18734_v46 = vsel %vm10654_vm0, %v18592_v24, %v10690_v60 }
 0x7eb   : > { %20205 = vst [vmem:[#allocation21_spill] sm:$0xff] %v18734_v46  ;;  %vm10684_vm10 = vcmp.gt.f32.partialorder %v18661_v0, 0.0  ;;  %vm10685_vm9 = vcmp.gt.f32.partialorder %v18667_v41, 0.0  ;;  %v10707_v10 = vmul.f32 0.1, %v18626_v54  ;;  %v18744_v29 = vsel %vm10655_vm4, %v18594_v7, %v10691_v56 }
 0x7ec   : > { %v10708_v6 = vmul.f32 0.1, %v18628_v35  ;;  %v10709_v26 = vmul.f32 0.1, %v18630_v16  ;;  %20206 = vst [vmem:[#allocation32_spill] sm:$0xff] %v18744_v29  ;;  %v18752_v50 = vsel %vm10656_vm6, %v18596_v48, %v10692_v49  ;;  %v18760_v7 = vsel %vm10657_vm14, %v18598_v43, %v10693_v11 }
 0x7ed   : > { %v10710_v36 = vmul.f32 0.1, %v18632_v40  ;;  %v10711_v15 = vmul.f32 0.1, %v18634_v12  ;;  %v10712_v24 = vmul.f32 0.1, %v18636_v20  ;;  %v10730_v48 = vsel %vm10658_vm3, %v18600_v3, %v10694_v21 }
 0x7ee   : > { %20207 = vst [vmem:[#allocation51_spill] sm:$0xff] %v18752_v50  ;;  %v10713_v31 = vmul.f32 0.1, %v18638_v62  ;;  %v10714_v52 = vmul.f32 0.1, %v18640_v63  ;;  %20208 = vst [vmem:[#allocation7_spill] sm:$0xff] %v18760_v7  ;;  %v10733_v7 = vsel %vm10661_vm15, %v18606_v22, %v10697_v55  ;;  %v10734_v3 = vsel %vm10662_vm8, %v18608_v14, %v10698_v44 }
 0x7ef   : > { %v10715_v42 = vmul.f32 0.1, %v18642_v58  ;;  %v10716_v60 = vmul.f32 0.1, %v18644_v17  ;;  %v10717_v56 = vmul.f32 0.1, %v18646_v8  ;;  %v18805_v14 = vsel %vm10667_vm12, %v18618_v38, %v10703_v59 }
 0x7f0   : > { %v10718_v29 = vmul.f32 0.1, %v18648_v2  ;;  %v10719_v49 = vmul.f32 0.1, %v18650_v5  ;;  %v10720_v50 = vmul.f32 0.1, %v18661_v0  ;;  %v11731_v59 = vpack.c.bf16 %v10734_v3, %v10734_v3 }
 0x7f1   : > { %v10721_v46 = vmul.f32 0.1, %v18667_v41  ;;  %vm20209_vm0 = vcmp.gt.f32.partialorder %v18602_v9, 0.0  ;;  %vm20210_vm4 = vcmp.gt.f32.partialorder %v18604_v53, 0.0  ;;  %vm20211_vm6 = vcmp.gt.f32.partialorder %v18610_v51, 0.0 }
 0x7f2   : > { %v10731_v43 = vsel %vm20209_vm0, %v18602_v9, %v10695_v27  ;;  %v10732_v11 = vsel %vm20210_vm4, %v18604_v53, %v10696_v23  ;;  %v10735_v21 = vsel %vm20211_vm6, %v18610_v51, %v10699_v1  ;;  %vm20212_vm14 = vcmp.gt.f32.partialorder %v18612_v47, 0.0  ;;  %v20225_v27 = vld [vmem:[#allocation21_spill] sm:$0xff] }
 0x7f3   : > { %v18790_v9 = vsel %vm20212_vm14, %v18612_v47, %v10700_v30  ;;  %vm20213_vm3 = vcmp.gt.f32.partialorder %v18614_v37, 0.0  ;;  %vm20214_vm15 = vcmp.gt.f32.partialorder %v18616_v34, 0.0  ;;  %vm20215_vm8 = vcmp.gt.f32.partialorder %v18620_v28, 0.0  ;;  %v20226_v23 = vld [vmem:[#allocation32_spill] sm:$0xff] }
 0x7f4   : > { %v18795_v53 = vsel %vm20213_vm3, %v18614_v37, %v10701_v13  ;;  %v18800_v22 = vsel %vm20214_vm15, %v18616_v34, %v10702_v19  ;;  %v18810_v51 = vsel %vm20215_vm8, %v18620_v28, %v10704_v32  ;;  %vm20216_vm0 = vcmp.gt.f32.partialorder %v18622_v33, 0.0 }
 0x7f5   : > { %v18815_v47 = vsel %vm20216_vm0, %v18622_v33, %v10705_v57  ;;  %vm20217_vm4 = vcmp.gt.f32.partialorder %v18624_v61, 0.0  ;;  %v18825_v34 = vsel %vm10671_vm2, %v18626_v54, %v10707_v10  ;;  %vm20218_vm12 = vcmp.gt.f32.partialorder %v18628_v35, 0.0  ;;  %v20228_v1 = vld [vmem:[#allocation7_spill] sm:$0xff] }
 0x7f6   : > { %v18820_v37 = vsel %vm20217_vm4, %v18624_v61, %v10706_v4  ;;  %v18830_v38 = vsel %vm20218_vm12, %v18628_v35, %v10708_v6  ;;  %vm20219_vm6 = vcmp.gt.f32.partialorder %v18630_v16, 0.0  ;;  %vm20220_vm14 = vcmp.gt.f32.partialorder %v18632_v40, 0.0 }
 0x7f7   : > { %v18835_v28 = vsel %vm20219_vm6, %v18630_v16, %v10709_v26  ;;  %v18840_v33 = vsel %vm20220_vm14, %v18632_v40, %v10710_v36  ;;  %v18845_v61 = vsel %vm10675_vm13, %v18634_v12, %v10711_v15  ;;  %vm20221_vm2 = vcmp.gt.f32.partialorder %v18636_v20, 0.0 }
 0x7f8   : > { %v18850_v54 = vsel %vm20221_vm2, %v18636_v20, %v10712_v24  ;;  %vm20222_vm3 = vcmp.gt.f32.partialorder %v18638_v62, 0.0  ;;  %vm20223_vm15 = vcmp.gt.f32.partialorder %v18640_v63, 0.0  ;;  %v18865_v40 = vsel %vm10679_vm5, %v18642_v58, %v10715_v42 }
 0x7f9   : > { %v18855_v35 = vsel %vm20222_vm3, %v18638_v62, %v10713_v31  ;;  %v18860_v16 = vsel %vm20223_vm15, %v18640_v63, %v10714_v52  ;;  %vm20224_vm13 = vcmp.gt.f32.partialorder %v18644_v17, 0.0  ;;  %v18880_v20 = vsel %vm10681_vm1, %v18646_v8, %v10717_v56 }
 0x7fa   : > { %v18875_v12 = vsel %vm20224_vm13, %v18644_v17, %v10716_v60  ;;  %v18885_v62 = vsel %vm10682_vm11, %v18648_v2, %v10718_v29  ;;  %v18890_v63 = vsel %vm10683_vm7, %v18650_v5, %v10719_v49  ;;  %v18895_v58 = vsel %vm10684_vm10, %v18661_v0, %v10720_v50 }
 0x7fb   : > { %v18900_v17 = vsel %vm10685_vm9, %v18667_v41, %v10721_v46  ;;  %v11719_v8 = vpack.c.bf16 %v18686_v18, %v18686_v18  ;;  %v11720_v2 = vpack.c.bf16 %v18698_v45, %v18698_v45  ;;  %v11721_v5 = vpack.c.bf16 %v18710_v39, %v18710_v39  ;;  %v20227_v18 = vld [vmem:[#allocation51_spill] sm:$0xff] }
 0x7fc   : > { %v11722_v0 = vpack.c.bf16 %v18722_v25, %v18722_v25  ;;  %v11723_v41 = vpack.c.bf16 %v20225_v27, %v20225_v27  ;;  %v11724_v55 = vpack.c.bf16 %v20226_v23, %v20226_v23  ;;  %v11725_v44 = vpack.c.bf16 %v20227_v18, %v20227_v18 }
 0x7fd   : > { %v11726_v45 = vpack.c.bf16 %v20228_v1, %v20228_v1  ;;  %v11727_v30 = vpack.c.bf16 %v10730_v48, %v10730_v48  ;;  %v11728_v39 = vpack.c.bf16 %v10731_v43, %v10731_v43  ;;  %vm20229_vm7 = vcmask 27648  }
 0x7fe   : > { %10902 = vst.msk [vmem:[%s18870_s30] sm:$0xf] %vm20229_vm7, %v11719_v8  ;;  %vm20230_vm5 = vmmov %vm20229_vm7  ;;  %v11729_v13 = vpack.c.bf16 %v10732_v11, %v10732_v11  ;;  %v11730_v19 = vpack.c.bf16 %v10733_v7, %v10733_v7  ;;  %v11732_v25 = vpack.c.bf16 %v10735_v21, %v10735_v21  ;;  %v11733_v32 = vpack.c.bf16 %v18790_v9, %v18790_v9 }
 0x7ff   : > { %10903 = vst.msk [vmem:[%s18870_s30 + $0x4] sm:$0xf] %vm20230_vm5, %v11720_v2  ;;  %vm20231_vm11 = vmmov %vm20230_vm5  ;;  %v11734_v57 = vpack.c.bf16 %v18795_v53, %v18795_v53  ;;  %v11735_v4 = vpack.c.bf16 %v18800_v22, %v18800_v22  ;;  %v11736_v46 = vpack.c.bf16 %v18805_v14, %v18805_v14  ;;  %v11737_v10 = vpack.c.bf16 %v18810_v51, %v18810_v51 }
 0x800   : > { %10904 = vst.msk [vmem:[%s18870_s30 + $0x8] sm:$0xf] %vm20231_vm11, %v11721_v5  ;;  %vm20232_vm1 = vmmov %vm20230_vm5  ;;  %v11738_v6 = vpack.c.bf16 %v18815_v47, %v18815_v47  ;;  %v11739_v26 = vpack.c.bf16 %v18820_v37, %v18820_v37  ;;  %v11740_v29 = vpack.c.bf16 %v18825_v34, %v18825_v34  ;;  %v11741_v36 = vpack.c.bf16 %v18830_v38, %v18830_v38 }
 0x801   : > { %10905 = vst.msk [vmem:[%s18870_s30 + $0xc] sm:$0xf] %vm20232_vm1, %v11722_v0  ;;  %vm20233_vm9 = vmmov %vm20232_vm1  ;;  %v11742_v15 = vpack.c.bf16 %v18835_v28, %v18835_v28  ;;  %v11743_v24 = vpack.c.bf16 %v18840_v33, %v18840_v33  ;;  %v11744_v50 = vpack.c.bf16 %v18845_v61, %v18845_v61  ;;  %v11745_v31 = vpack.c.bf16 %v18850_v54, %v18850_v54 }
 0x802   : > { %10906 = vst.msk [vmem:[%s18870_s30 + $0x10] sm:$0xf] %vm20233_vm9, %v11723_v41  ;;  %vm20234_vm10 = vmmov %vm20232_vm1  ;;  %v11746_v52 = vpack.c.bf16 %v18855_v35, %v18855_v35  ;;  %v11747_v42 = vpack.c.bf16 %v18860_v16, %v18860_v16  ;;  %v11748_v7 = vpack.c.bf16 %v18865_v40, %v18865_v40  ;;  %v11749_v60 = vpack.c.bf16 %v18875_v12, %v18875_v12 }
 0x803   : > { %10907 = vst.msk [vmem:[%s18870_s30 + $0x14] sm:$0xf] %vm20234_vm10, %v11724_v55  ;;  %vm20235_vm8 = vmmov %vm20232_vm1  ;;  %v11750_v56 = vpack.c.bf16 %v18880_v20, %v18880_v20  ;;  %v11751_v48 = vpack.c.bf16 %v18885_v62, %v18885_v62  ;;  %v11752_v49 = vpack.c.bf16 %v18890_v63, %v18890_v63  ;;  %v11753_v43 = vpack.c.bf16 %v18895_v58, %v18895_v58 }
 0x804   : > { %10908 = vst.msk [vmem:[%s18870_s30 + $0x18] sm:$0xf] %vm20235_vm8, %v11725_v44  ;;  %vm20236_vm0 = vmmov %vm20232_vm1  ;;  %v11754_v11 = vpack.c.bf16 %v18900_v17, %v18900_v17 }
 0x805   : > { %10909 = vst.msk [vmem:[%s18870_s30 + $0x1c] sm:$0xf] %vm20236_vm0, %v11726_v45  ;;  %vm20237_vm4 = vmmov %vm20236_vm0 }
 0x806   : > { %10910 = vst.msk [vmem:[%s18870_s30 + $0x20] sm:$0xf] %vm20237_vm4, %v11727_v30  ;;  %vm20238_vm12 = vmmov %vm20236_vm0 }
 0x807   : > { %10911 = vst.msk [vmem:[%s18870_s30 + $0x24] sm:$0xf] %vm20238_vm12, %v11728_v39  ;;  %vm20239_vm6 = vmmov %vm20236_vm0 }
 0x808   : > { %10912 = vst.msk [vmem:[%s18870_s30 + $0x28] sm:$0xf] %vm20239_vm6, %v11729_v13  ;;  %vm20240_vm14 = vmmov %vm20236_vm0 }
 0x809   : > { %10913 = vst.msk [vmem:[%s18870_s30 + $0x2c] sm:$0xf] %vm20240_vm14, %v11730_v19  ;;  %vm20241_vm2 = vmmov %vm20236_vm0 }
 0x80a   : > { %10914 = vst.msk [vmem:[%s18870_s30 + $0x30] sm:$0xf] %vm20241_vm2, %v11731_v59  ;;  %vm20242_vm3 = vmmov %vm20236_vm0 }
 0x80b   : > { %10915 = vst.msk [vmem:[%s18870_s30 + $0x34] sm:$0xf] %vm20242_vm3, %v11732_v25  ;;  %vm20243_vm15 = vmmov %vm20236_vm0 }
 0x80c   : > { %10916 = vst.msk [vmem:[%s18870_s30 + $0x38] sm:$0xf] %vm20243_vm15, %v11733_v32  ;;  %vm20244_vm13 = vmmov %vm20236_vm0 }
 0x80d   : > { %10917 = vst.msk [vmem:[%s18870_s30 + $0x3c] sm:$0xf] %vm20244_vm13, %v11734_v57  ;;  %vm20245_vm7 = vmmov %vm20236_vm0 }
 0x80e   : > { %10918 = vst.msk [vmem:[%s18870_s30 + $0x40] sm:$0xf] %vm20245_vm7, %v11735_v4  ;;  %vm20246_vm5 = vmmov %vm20236_vm0 }
 0x80f   : > { %10919 = vst.msk [vmem:[%s18870_s30 + $0x44] sm:$0xf] %vm20246_vm5, %v11736_v46  ;;  %vm20247_vm11 = vmmov %vm20236_vm0 }
 0x810   : > { %10920 = vst.msk [vmem:[%s18870_s30 + $0x48] sm:$0xf] %vm20247_vm11, %v11737_v10  ;;  %vm20248_vm1 = vmmov %vm20236_vm0 }
 0x811   : > { %10921 = vst.msk [vmem:[%s18870_s30 + $0x4c] sm:$0xf] %vm20248_vm1, %v11738_v6  ;;  %vm20249_vm9 = vmmov %vm20236_vm0 }
 0x812   : > { %10922 = vst.msk [vmem:[%s18870_s30 + $0x50] sm:$0xf] %vm20249_vm9, %v11739_v26  ;;  %vm20250_vm10 = vmmov %vm20236_vm0 }
 0x813   : > { %10923 = vst.msk [vmem:[%s18870_s30 + $0x54] sm:$0xf] %vm20250_vm10, %v11740_v29  ;;  %vm20251_vm8 = vmmov %vm20236_vm0 }
 0x814   : > { %10924 = vst.msk [vmem:[%s18870_s30 + $0x58] sm:$0xf] %vm20251_vm8, %v11741_v36  ;;  %vm20252_vm4 = vmmov %vm20236_vm0 }
 0x815   : > { %10925 = vst.msk [vmem:[%s18870_s30 + $0x5c] sm:$0xf] %vm20236_vm0, %v11742_v15  ;;  %vm20253_vm12 = vmmov %vm20236_vm0 }
 0x816   : > { %10926 = vst.msk [vmem:[%s18870_s30 + $0x60] sm:$0xf] %vm20252_vm4, %v11743_v24  ;;  %vm20254_vm6 = vmmov %vm20236_vm0 }
 0x817   : > { %10927 = vst.msk [vmem:[%s18870_s30 + $0x64] sm:$0xf] %vm20253_vm12, %v11744_v50  ;;  %vm20255_vm14 = vmmov %vm20236_vm0 }
 0x818   : > { %10928 = vst.msk [vmem:[%s18870_s30 + $0x68] sm:$0xf] %vm20254_vm6, %v11745_v31  ;;  %vm20256_vm2 = vmmov %vm20236_vm0 }
 0x819   : > { %10929 = vst.msk [vmem:[%s18870_s30 + $0x6c] sm:$0xf] %vm20255_vm14, %v11746_v52  ;;  %vm20257_vm3 = vmmov %vm20236_vm0 }
 0x81a   : > { %10930 = vst.msk [vmem:[%s18870_s30 + $0x70] sm:$0xf] %vm20256_vm2, %v11747_v42  ;;  %vm20258_vm15 = vmmov %vm20236_vm0 }
 0x81b   : > { %10931 = vst.msk [vmem:[%s18870_s30 + $0x74] sm:$0xf] %vm20257_vm3, %v11748_v7  ;;  %vm20259_vm13 = vmmov %vm20236_vm0 }
 0x81c   : > { %10932 = vst.msk [vmem:[%s18870_s30 + $0x78] sm:$0xf] %vm20258_vm15, %v11749_v60  ;;  %vm20260_vm7 = vmmov %vm20236_vm0 }
 0x81d   : > { %10933 = vst.msk [vmem:[%s18870_s30 + $0x7c] sm:$0xf] %vm20259_vm13, %v11750_v56  ;;  %vm20261_vm5 = vmmov %vm20236_vm0 }
 0x81e   : > { %10934 = vst.msk [vmem:[%s18870_s30 + $0x80] sm:$0xf] %vm20260_vm7, %v11751_v48  ;;  %vm20262_vm11 = vmmov %vm20236_vm0 }
 0x81f   : > { %10935 = vst.msk [vmem:[%s18870_s30 + $0x84] sm:$0xf] %vm20261_vm5, %v11752_v49  ;;  %vm20263_vm1 = vmmov %vm20236_vm0 }
 0x820   : > { %10936 = vst.msk [vmem:[%s18870_s30 + $0x88] sm:$0xf] %vm20262_vm11, %v11753_v43 }
 0x821   : > { %10937 = vst.msk [vmem:[%s18870_s30 + $0x8c] sm:$0xf] %vm20263_vm1, %v11754_v11 }
 0x822 PF: > { %s20_s13 = sadd.s32 1, %s12520_s13  }
 0x823   : > { %p17_p4 = scmp.ge.s32.totalorder %s20_s13, 4  }
 0x825   :  { %19 = sbr.rel (!%p17_p4) target bundleno = 1 (0x1), region = 93 }

</bundles_post_ra>
